<compile_context>
chip_gen: v7x
topology: tpu7x:2x2x1
jax: 0.10.0
libtpu: 0.0.40
codegen_flags: <defaults>
</compile_context>

<pallas_src>
import functools

import jax
import jax.numpy as jnp
from jax.experimental import pallas as pl
from jax.experimental.pallas import tpu as pltpu


_PARALLEL = pltpu.CompilerParams(dimension_semantics=("parallel",))

# (expand_ratio, Cin, Cout, stride, se_channels)
BLOCK_CFG = [
    (1, 16, 16, 1, 4),
    (6, 16, 24, 2, 4),
    (6, 24, 24, 1, 6),
]
STEM_C = 16
HEAD_C = 64
NUM_CLASSES = 2


# ----------------------------- Pallas kernels ------------------------------

def _stem_kernel(a_ref, w_ref, b_ref, o_ref):
    # Whole-batch stem matmul: (N*Ho*Wo, 27) @ (27, STEM_C) + folded-BN bias + swish.
    h = jnp.dot(a_ref[...], w_ref[...], preferred_element_type=jnp.float32) + b_ref[...]
    h = h * jax.nn.sigmoid(h)
    o_ref[...] = h.astype(o_ref.dtype)


def _mbconv_kernel(*refs, H, W, Cin, Cmid, Cout, stride, has_expand, has_residual):
    # One fused MBConv block per image; everything between input and output stays in VMEM.
    it = iter(refs)
    x_ref = next(it)
    if has_expand:
        ew_ref, eb_ref = next(it), next(it)
    dw_ref, db_ref = next(it), next(it)
    rw_ref, rb_ref = next(it), next(it)
    qw_ref, qb_ref = next(it), next(it)
    pw_ref, pb_ref = next(it), next(it)
    sel_ref = next(it) if stride == 2 else None
    o_ref = next(it)
    pad_ref = next(it)                                   # VMEM f32 (H+2, W+2, Cmid)

    x = x_ref[0]                                         # (H, W, Cin) bf16
    xf = x.astype(jnp.float32).reshape(H * W, Cin)       # f32 reshape (sublane-safe)

    # ---- 1x1 expand (folded BN) + swish ----
    if has_expand:
        h = jnp.dot(xf.astype(jnp.bfloat16), ew_ref[...],
                    preferred_element_type=jnp.float32) + eb_ref[...]
        h = h * jax.nn.sigmoid(h)
        h = h.reshape(H, W, Cmid)                        # f32 (H, W, Cmid)
    else:
        h = x.astype(jnp.float32)                        # Cmid == Cin

    # ---- halo pad in VMEM scratch (no XLA pad / HBM round trip) ----
    pad_ref[...] = jnp.zeros_like(pad_ref)               # re-zero every step (parallel-safe)
    pad_ref[pl.ds(1, H), pl.ds(1, W), :] = h

    # ---- depthwise 3x3 (folded BN) + swish; dx column views hoisted out of the loop ----
    cols = [pad_ref[:, pl.ds(dx, W), :] for dx in range(3)]   # 3x (H+2, W, Cmid) f32
    acc = None
    for dy in range(3):
        for dx in range(3):
            tap = cols[dx][dy:dy + H] * dw_ref[3 * dy + dx]   # cheap major-dim slice
            acc = tap if acc is None else acc + tap
    acc = acc + db_ref[...]
    acc = acc * jax.nn.sigmoid(acc)
    hwc = acc.reshape(H * W, Cmid)                       # f32 (HW, Cmid)

    # ---- stride-2 subsample folded in-kernel via a 0/1 selection matmul ----
    if stride == 2:
        hwc = jnp.dot(sel_ref[...], hwc.astype(jnp.bfloat16),
                      preferred_element_type=jnp.float32)      # (Hs*Ws, Cmid)

    # ---- SE: GAP -> reduce (swish) -> expand -> sigmoid gate ----
    s = jnp.mean(hwc, axis=0, keepdims=True)             # (1, Cmid)
    s = jnp.dot(s.astype(jnp.bfloat16), rw_ref[...],
                preferred_element_type=jnp.float32) + rb_ref[...]
    s = s * jax.nn.sigmoid(s)
    s = jnp.dot(s.astype(jnp.bfloat16), qw_ref[...],
                preferred_element_type=jnp.float32) + qb_ref[...]
    gated = (hwc * jax.nn.sigmoid(s)).astype(jnp.bfloat16)

    # ---- 1x1 project (folded BN) + residual (drop_connect == identity at inference) ----
    y = jnp.dot(gated, pw_ref[...], preferred_element_type=jnp.float32) + pb_ref[...]
    if has_residual:
        y = y + xf                                        # stride==1 and Cin==Cout
    Hs, Ws = (H // 2, W // 2) if stride == 2 else (H, W)
    o_ref[0] = y.reshape(Hs, Ws, Cout).astype(o_ref.dtype)


def _tail_kernel(x_ref, hw_ref, hb_ref, fw_ref, fb_ref, o_ref, *, N, HW):
    # Whole-batch fused tail: head 1x1 conv (folded BN) + swish + GAP + FC.
    C = x_ref.shape[-1]
    Ch = hw_ref.shape[-1]
    xf = x_ref[...].astype(jnp.float32).reshape(N * HW, C)
    h = jnp.dot(xf.astype(jnp.bfloat16), hw_ref[...],
                preferred_element_type=jnp.float32) + hb_ref[...]
    h = h * jax.nn.sigmoid(h)
    f = jnp.mean(h.reshape(N, HW, Ch), axis=1)            # (N, Ch) per-image GAP
    logits = jnp.dot(f.astype(jnp.bfloat16), fw_ref[...],
                     preferred_element_type=jnp.float32) + fb_ref[...]
    o_ref[...] = logits


# ----------------------------- Pallas wrappers ------------------------------

def _same_pad(H, W, k, s):
    def one(dim):
        out = -(-dim // s)
        total = max((out - 1) * s + k - dim, 0)
        return total // 2, total - total // 2
    (pt, pb), (pleft, pright) = one(H), one(W)
    return pt, pb, pleft, pright


def stem_conv(x, w, b):
    """x: (N, H, W, 3) bf16 -> stem conv3x3 s2 (folded BN) + swish -> (N, Ho, Wo, STEM_C)."""
    N, H, W, C = x.shape
    pt, pb_, plft, prt = _same_pad(H, W, 3, 2)
    xp = jnp.pad(x, ((0, 0), (pt, pb_), (plft, prt), (0, 0)))
    Ho = (H + pt + pb_ - 3) // 2 + 1
    Wo = (W + plft + prt - 3) // 2 + 1
    taps = [xp[:, dy:dy + 2 * Ho:2, dx:dx + 2 * Wo:2, :]
            for dy in range(3) for dx in range(3)]
    a = jnp.stack(taps, axis=3).reshape(N * Ho * Wo, 9 * C)
    out = pl.pallas_call(
        _stem_kernel,
        out_shape=jax.ShapeDtypeStruct((N * Ho * Wo, STEM_C), jnp.bfloat16),
    )(a, w, b)
    return out.reshape(N, Ho, Wo, STEM_C)


def _make_stride2_sel(Ho, Wo):
    # 0/1 selection matrix picking the odd-row/odd-col positions of a flattened (Ho, Wo) map.
    Hs, Ws = Ho // 2, Wo // 2
    rows = jnp.arange(Hs * Ws)
    src = (2 * (rows // Ws) + 1) * Wo + (2 * (rows % Ws) + 1)
    return (src[:, None] == jnp.arange(Ho * Wo)[None, :]).astype(jnp.bfloat16)


def mbconv_block(x, bp, *, expand, cout, stride, sel=None):
    """One fused per-image MBConv block (single pallas_call, grid over batch)."""
    N, H, W, Cin = x.shape
    Cmid = Cin * expand
    has_expand = expand != 1
    has_residual = (stride == 1 and Cin == cout)
    if stride == 2:
        # stride-2 SAME 3x3 == stride-1 3x3 subsampled at odd offsets (even H/W only)
        assert H % 2 == 0 and W % 2 == 0
    Hs, Ws = (H // 2, W // 2) if stride == 2 else (H, W)

    args = [x]
    in_specs = [pl.BlockSpec((1, H, W, Cin), lambda n: (n, 0, 0, 0))]

    def full(a):
        args.append(a)
        in_specs.append(pl.BlockSpec(a.shape, lambda n, _nd=a.ndim: (0,) * _nd))

    if has_expand:
        full(bp["expand_w"]); full(bp["expand_b"])
    full(bp["dw_w"]); full(bp["dw_b"])
    full(bp["se_rw"]); full(bp["se_rb"])
    full(bp["se_ew"]); full(bp["se_eb"])
    full(bp["proj_w"]); full(bp["proj_b"])
    if stride == 2:
        full(sel)

    kernel = functools.partial(
        _mbconv_kernel, H=H, W=W, Cin=Cin, Cmid=Cmid, Cout=cout,
        stride=stride, has_expand=has_expand, has_residual=has_residual)

    return pl.pallas_call(
        kernel,
        out_shape=jax.ShapeDtypeStruct((N, Hs, Ws, cout), jnp.bfloat16),
        grid=(N,),
        in_specs=in_specs,
        out_specs=pl.BlockSpec((1, Hs, Ws, cout), lambda n: (n, 0, 0, 0)),
        scratch_shapes=[pltpu.VMEM((H + 2, W + 2, Cmid), jnp.float32)],
        compiler_params=_PARALLEL,
    )(*args)


def head_gap_fc(x, hw, hb, fw, fb):
    """x: (N, H, W, C) bf16 -> logits (N, NUM_CLASSES) f32 in one batched call."""
    N, H, W, C = x.shape
    return pl.pallas_call(
        functools.partial(_tail_kernel, N=N, HW=H * W),
        out_shape=jax.ShapeDtypeStruct((N, NUM_CLASSES), jnp.float32),
    )(x, hw, hb, fw, fb)


# ------------------------------- Parameters ---------------------------------

def _bn_scale_shift(c, eps=1e-3):
    # Inference BN (gamma=1, beta=0, mean=0, var=1) reduced to scale/shift for folding.
    gamma = jnp.ones((c,), jnp.float32)
    beta = jnp.zeros((c,), jnp.float32)
    mean = jnp.zeros((c,), jnp.float32)
    var = jnp.ones((c,), jnp.float32)
    scale = gamma / jnp.sqrt(var + eps)
    shift = beta - mean * scale
    return scale, shift


def init_params(key):
    keys = iter(jax.random.split(key, 64))

    def w_init(shape, fan_in):
        return jax.random.normal(next(keys), shape, jnp.float32) * (2.0 / fan_in) ** 0.5

    p = {"blocks": []}
    stem_w = w_init((3, 3, 3, STEM_C), 27)
    s, sh = _bn_scale_shift(STEM_C)
    p["stem_w"] = (stem_w.reshape(27, STEM_C) * s[None, :]).astype(jnp.bfloat16)
    p["stem_b"] = sh.reshape(1, STEM_C)

    for expand, cin, cout, _stride, se_ch in BLOCK_CFG:
        cmid = cin * expand
        bp = {}
        if expand != 1:
            ew = w_init((cin, cmid), cin)
            s, sh = _bn_scale_shift(cmid)
            bp["expand_w"] = (ew * s[None, :]).astype(jnp.bfloat16)
            bp["expand_b"] = sh.reshape(1, cmid)
        dw = w_init((3, 3, cmid), 9).reshape(9, cmid)
        s, sh = _bn_scale_shift(cmid)
        bp["dw_w"] = (dw * s[None, :]).reshape(9, 1, cmid)       # f32, per-tap rows
        bp["dw_b"] = sh.reshape(1, cmid)
        bp["se_rw"] = w_init((cmid, se_ch), cmid).astype(jnp.bfloat16)
        bp["se_rb"] = jnp.zeros((1, se_ch), jnp.float32)
        bp["se_ew"] = w_init((se_ch, cmid), se_ch).astype(jnp.bfloat16)
        bp["se_eb"] = jnp.zeros((1, cmid), jnp.float32)
        pw = w_init((cmid, cout), cmid)
        s, sh = _bn_scale_shift(cout)
        bp["proj_w"] = (pw * s[None, :]).astype(jnp.bfloat16)
        bp["proj_b"] = sh.reshape(1, cout)
        p["blocks"].append(bp)

    hw = w_init((BLOCK_CFG[-1][2], HEAD_C), BLOCK_CFG[-1][2])
    s, sh = _bn_scale_shift(HEAD_C)
    p["head_w"] = (hw * s[None, :]).astype(jnp.bfloat16)
    p["head_b"] = sh.reshape(1, HEAD_C)
    p["fc_w"] = w_init((HEAD_C, NUM_CLASSES), HEAD_C).astype(jnp.bfloat16)
    p["fc_b"] = jnp.zeros((1, NUM_CLASSES), jnp.float32)
    return p


# ------------------------------- Forward -------------------------------------

def sbi_detector_forward(params, x_nchw):
    """Forward pass of SBIDetector: logits = net(inputs). Input is NCHW float32."""
    x = jnp.transpose(x_nchw, (0, 2, 3, 1)).astype(jnp.bfloat16)   # NCHW -> NHWC bf16
    # stem: conv3x3 s2 + folded BN + swish (one batched pallas_call)
    x = stem_conv(x, params["stem_w"], params["stem_b"])
    # MBConv blocks: one fused per-image pallas_call each
    for (expand, _cin, cout, stride, _se), bp in zip(BLOCK_CFG, params["blocks"]):
        sel = _make_stride2_sel(x.shape[1], x.shape[2]) if stride == 2 else None
        x = mbconv_block(x, bp, expand=expand, cout=cout, stride=stride, sel=sel)
    # fused tail: head 1x1 conv + folded BN + swish + GAP (+ dropout == identity) + FC
    return head_gap_fc(x, params["head_w"], params["head_b"],
                       params["fc_w"], params["fc_b"])


if __name__ == "__main__":
    key = jax.random.PRNGKey(0)
    pkey, xkey = jax.random.split(key)
    params = init_params(pkey)
    x = jax.random.normal(xkey, (2, 3, 32, 32), jnp.float32)  # NCHW like PyTorch
    fwd = jax.jit(sbi_detector_forward)
    logits = fwd(params, x)
    jax.block_until_ready(logits)
    assert logits.shape == (2, NUM_CLASSES) and logits.dtype == jnp.float32
    assert bool(jnp.all(jnp.isfinite(logits)))
    print("KERNEL_OK")
</pallas_src>

<mosaic_0001>
module attributes {stable_mosaic.version = 11 : i64} {
  func.func @_stem_kernel(%arg0: memref<512x27xbf16, #tpu.memory_space<vmem>>, %arg1: memref<27x16xbf16, #tpu.memory_space<vmem>>, %arg2: memref<1x16xf32, #tpu.memory_space<vmem>>, %arg3: memref<512x16xbf16, #tpu.memory_space<vmem>>) attributes {dimension_semantics = [], scalar_prefetch = 0 : i64, scratch_operands = 0 : i64, tpu.core_type = #tpu.core_type<tc>} {
    %c0 = arith.constant 0 : index
    %c0_0 = arith.constant 0 : index
    %0 = vector.load %arg0[%c0, %c0_0] : memref<512x27xbf16, #tpu.memory_space<vmem>>, vector<512x27xbf16>
    %c0_1 = arith.constant 0 : index
    %c0_2 = arith.constant 0 : index
    %1 = vector.load %arg1[%c0_1, %c0_2] : memref<27x16xbf16, #tpu.memory_space<vmem>>, vector<27x16xbf16>
    %cst = arith.constant dense<0.000000e+00> : vector<512x16xf32>
    %2 = tpu.matmul %0, %1, %cst {dimension_numbers = #tpu.dot_dimension_numbers<[1], [0], [0], [1], [0, 0, 1, 1], [], []>} : vector<512x27xbf16>, vector<27x16xbf16>, vector<512x16xf32> -> vector<512x16xf32>
    %c0_3 = arith.constant 0 : index
    %c0_4 = arith.constant 0 : index
    %3 = vector.load %arg2[%c0_3, %c0_4] : memref<1x16xf32, #tpu.memory_space<vmem>>, vector<1x16xf32>
    %4 = vector.broadcast %3 : vector<1x16xf32> to vector<512x16xf32>
    %5 = arith.addf %2, %4 : vector<512x16xf32>
    %6 = arith.negf %5 : vector<512x16xf32>
    %7 = math.exp %6 : vector<512x16xf32>
    %cst_5 = arith.constant 1.000000e+00 : f32
    %8 = vector.broadcast %cst_5 : f32 to vector<512x16xf32>
    %9 = arith.addf %8, %7 : vector<512x16xf32>
    %10 = arith.divf %8, %9 : vector<512x16xf32>
    %11 = arith.mulf %5, %10 : vector<512x16xf32>
    %12 = arith.truncf %11 : vector<512x16xf32> to vector<512x16xbf16>
    %c0_6 = arith.constant 0 : index
    %c0_7 = arith.constant 0 : index
    %13 = vector.load %arg3[%c0_6, %c0_7] : memref<512x16xbf16, #tpu.memory_space<vmem>>, vector<512x16xbf16>
    tpu.vector_store %arg3[%c0_6, %c0_7], %12 {strides = array<i32>} : memref<512x16xbf16, #tpu.memory_space<vmem>>, vector<512x16xbf16>,
    return
  }
}

module attributes {stable_mosaic.version = 11 : i64} {
  func.func @_mbconv_kernel(%arg0: i32, %arg1: memref<1x16x16x16xbf16, #tpu.memory_space<vmem>>, %arg2: memref<9x1x16xf32, #tpu.memory_space<vmem>>, %arg3: memref<1x16xf32, #tpu.memory_space<vmem>>, %arg4: memref<16x4xbf16, #tpu.memory_space<vmem>>, %arg5: memref<1x4xf32, #tpu.memory_space<vmem>>, %arg6: memref<4x16xbf16, #tpu.memory_space<vmem>>, %arg7: memref<1x16xf32, #tpu.memory_space<vmem>>, %arg8: memref<16x16xbf16, #tpu.memory_space<vmem>>, %arg9: memref<1x16xf32, #tpu.memory_space<vmem>>, %arg10: memref<1x16x16x16xbf16, #tpu.memory_space<vmem>>, %arg11: memref<18x18x16xf32, #tpu.memory_space<vmem>>) attributes {dimension_semantics = [#tpu.dimension_semantics<parallel>], iteration_bounds = array<i64: 2>, scalar_prefetch = 0 : i64, scratch_operands = 1 : i64, tpu.core_type = #tpu.core_type<tc>, window_params = [{transform_indices = @transform_0, window_bounds = array<i64: 1, 16, 16, 16>}, {pipeline_mode = #tpu.pipeline_mode<synchronous>, transform_indices = @transform_1, window_bounds = array<i64: 9, 1, 16>}, {pipeline_mode = #tpu.pipeline_mode<synchronous>, transform_indices = @transform_2, window_bounds = array<i64: 1, 16>}, {pipeline_mode = #tpu.pipeline_mode<synchronous>, transform_indices = @transform_3, window_bounds = array<i64: 16, 4>}, {pipeline_mode = #tpu.pipeline_mode<synchronous>, transform_indices = @transform_4, window_bounds = array<i64: 1, 4>}, {pipeline_mode = #tpu.pipeline_mode<synchronous>, transform_indices = @transform_5, window_bounds = array<i64: 4, 16>}, {pipeline_mode = #tpu.pipeline_mode<synchronous>, transform_indices = @transform_6, window_bounds = array<i64: 1, 16>}, {pipeline_mode = #tpu.pipeline_mode<synchronous>, transform_indices = @transform_7, window_bounds = array<i64: 16, 16>}, {pipeline_mode = #tpu.pipeline_mode<synchronous>, transform_indices = @transform_8, window_bounds = array<i64: 1, 16>}, {transform_indices = @transform_9, window_bounds = array<i64: 1, 16, 16, 16>}]} {
    %c0 = arith.constant 0 : index
    %c0_0 = arith.constant 0 : index
    %c0_1 = arith.constant 0 : index
    %c0_2 = arith.constant 0 : index
    %0 = vector.load %arg1[%c0, %c0_0, %c0_1, %c0_2] : memref<1x16x16x16xbf16, #tpu.memory_space<vmem>>, vector<1x16x16x16xbf16>
    %1 = vector.shape_cast %0 : vector<1x16x16x16xbf16> to vector<16x16x16xbf16>
    %2 = arith.extf %1 : vector<16x16x16xbf16> to vector<16x16x16xf32>
    %3 = vector.shape_cast %2 : vector<16x16x16xf32> to vector<256x16xf32>
    %4 = arith.extf %1 : vector<16x16x16xbf16> to vector<16x16x16xf32>
    %cst = arith.constant 0.000000e+00 : f32
    %5 = vector.broadcast %cst : f32 to vector<18x18x16xf32>
    %c0_3 = arith.constant 0 : index
    %c0_4 = arith.constant 0 : index
    %c0_5 = arith.constant 0 : index
    %6 = vector.load %arg11[%c0_3, %c0_4, %c0_5] : memref<18x18x16xf32, #tpu.memory_space<vmem>>, vector<18x18x16xf32>
    tpu.vector_store %arg11[%c0_3, %c0_4, %c0_5], %5 {strides = array<i32>} : memref<18x18x16xf32, #tpu.memory_space<vmem>>, vector<18x18x16xf32>,
    %c1 = arith.constant 1 : index
    %c1_6 = arith.constant 1 : index
    %c0_7 = arith.constant 0 : index
    %7 = vector.load %arg11[%c1, %c1_6, %c0_7] : memref<18x18x16xf32, #tpu.memory_space<vmem>>, vector<16x16x16xf32>
    tpu.vector_store %arg11[%c1, %c1_6, %c0_7], %4 {strides = array<i32>} : memref<18x18x16xf32, #tpu.memory_space<vmem>>, vector<16x16x16xf32>,
    %c0_8 = arith.constant 0 : index
    %c0_9 = arith.constant 0 : index
    %c0_10 = arith.constant 0 : index
    %8 = vector.load %arg11[%c0_8, %c0_9, %c0_10] : memref<18x18x16xf32, #tpu.memory_space<vmem>>, vector<18x16x16xf32>
    %c0_11 = arith.constant 0 : index
    %c1_12 = arith.constant 1 : index
    %c0_13 = arith.constant 0 : index
    %9 = vector.load %arg11[%c0_11, %c1_12, %c0_13] : memref<18x18x16xf32, #tpu.memory_space<vmem>>, vector<18x16x16xf32>
    %c0_14 = arith.constant 0 : index
    %c2 = arith.constant 2 : index
    %c0_15 = arith.constant 0 : index
    %10 = vector.load %arg11[%c0_14, %c2, %c0_15] : memref<18x18x16xf32, #tpu.memory_space<vmem>>, vector<18x16x16xf32>
    %11 = vector.extract_strided_slice %8 {offsets = [0, 0, 0], sizes = [16, 16, 16], strides = [1, 1, 1]} : vector<18x16x16xf32> to vector<16x16x16xf32>
    %c0_16 = arith.constant 0 : index
    %c0_17 = arith.constant 0 : index
    %c0_18 = arith.constant 0 : index
    %12 = vector.load %arg2[%c0_16, %c0_17, %c0_18] : memref<9x1x16xf32, #tpu.memory_space<vmem>>, vector<1x1x16xf32>
    %13 = vector.shape_cast %12 : vector<1x1x16xf32> to vector<1x16xf32>
    %14 = vector.shape_cast %13 : vector<1x16xf32> to vector<1x1x16xf32>
    %15 = vector.broadcast %14 : vector<1x1x16xf32> to vector<16x16x16xf32>
    %16 = arith.mulf %11, %15 : vector<16x16x16xf32>
    %17 = vector.extract_strided_slice %9 {offsets = [0, 0, 0], sizes = [16, 16, 16], strides = [1, 1, 1]} : vector<18x16x16xf32> to vector<16x16x16xf32>
    %c1_19 = arith.constant 1 : index
    %c0_20 = arith.constant 0 : index
    %c0_21 = arith.constant 0 : index
    %18 = vector.load %arg2[%c1_19, %c0_20, %c0_21] : memref<9x1x16xf32, #tpu.memory_space<vmem>>, vector<1x1x16xf32>
    %19 = vector.shape_cast %18 : vector<1x1x16xf32> to vector<1x16xf32>
    %20 = vector.shape_cast %19 : vector<1x16xf32> to vector<1x1x16xf32>
    %21 = vector.broadcast %20 : vector<1x1x16xf32> to vector<16x16x16xf32>
    %22 = arith.mulf %17, %21 : vector<16x16x16xf32>
    %23 = arith.addf %16, %22 : vector<16x16x16xf32>
    %24 = vector.extract_strided_slice %10 {offsets = [0, 0, 0], sizes = [16, 16, 16], strides = [1, 1, 1]} : vector<18x16x16xf32> to vector<16x16x16xf32>
    %c2_22 = arith.constant 2 : index
    %c0_23 = arith.constant 0 : index
    %c0_24 = arith.constant 0 : index
    %25 = vector.load %arg2[%c2_22, %c0_23, %c0_24] : memref<9x1x16xf32, #tpu.memory_space<vmem>>, vector<1x1x16xf32>
    %26 = vector.shape_cast %25 : vector<1x1x16xf32> to vector<1x16xf32>
    %27 = vector.shape_cast %26 : vector<1x16xf32> to vector<1x1x16xf32>
    %28 = vector.broadcast %27 : vector<1x1x16xf32> to vector<16x16x16xf32>
    %29 = arith.mulf %24, %28 : vector<16x16x16xf32>
    %30 = arith.addf %23, %29 : vector<16x16x16xf32>
    %31 = vector.extract_strided_slice %8 {offsets = [1, 0, 0], sizes = [16, 16, 16], strides = [1, 1, 1]} : vector<18x16x16xf32> to vector<16x16x16xf32>
    %c3 = arith.constant 3 : index
    %c0_25 = arith.constant 0 : index
    %c0_26 = arith.constant 0 : index
    %32 = vector.load %arg2[%c3, %c0_25, %c0_26] : memref<9x1x16xf32, #tpu.memory_space<vmem>>, vector<1x1x16xf32>
    %33 = vector.shape_cast %32 : vector<1x1x16xf32> to vector<1x16xf32>
    %34 = vector.shape_cast %33 : vector<1x16xf32> to vector<1x1x16xf32>
    %35 = vector.broadcast %34 : vector<1x1x16xf32> to vector<16x16x16xf32>
    %36 = arith.mulf %31, %35 : vector<16x16x16xf32>
    %37 = arith.addf %30, %36 : vector<16x16x16xf32>
    %38 = vector.extract_strided_slice %9 {offsets = [1, 0, 0], sizes = [16, 16, 16], strides = [1, 1, 1]} : vector<18x16x16xf32> to vector<16x16x16xf32>
    %c4 = arith.constant 4 : index
    %c0_27 = arith.constant 0 : index
    %c0_28 = arith.constant 0 : index
    %39 = vector.load %arg2[%c4, %c0_27, %c0_28] : memref<9x1x16xf32, #tpu.memory_space<vmem>>, vector<1x1x16xf32>
    %40 = vector.shape_cast %39 : vector<1x1x16xf32> to vector<1x16xf32>
    %41 = vector.shape_cast %40 : vector<1x16xf32> to vector<1x1x16xf32>
    %42 = vector.broadcast %41 : vector<1x1x16xf32> to vector<16x16x16xf32>
    %43 = arith.mulf %38, %42 : vector<16x16x16xf32>
    %44 = arith.addf %37, %43 : vector<16x16x16xf32>
    %45 = vector.extract_strided_slice %10 {offsets = [1, 0, 0], sizes = [16, 16, 16], strides = [1, 1, 1]} : vector<18x16x16xf32> to vector<16x16x16xf32>
    %c5 = arith.constant 5 : index
    %c0_29 = arith.constant 0 : index
    %c0_30 = arith.constant 0 : index
    %46 = vector.load %arg2[%c5, %c0_29, %c0_30] : memref<9x1x16xf32, #tpu.memory_space<vmem>>, vector<1x1x16xf32>
    %47 = vector.shape_cast %46 : vector<1x1x16xf32> to vector<1x16xf32>
    %48 = vector.shape_cast %47 : vector<1x16xf32> to vector<1x1x16xf32>
    %49 = vector.broadcast %48 : vector<1x1x16xf32> to vector<16x16x16xf32>
    %50 = arith.mulf %45, %49 : vector<16x16x16xf32>
    %51 = arith.addf %44, %50 : vector<16x16x16xf32>
    %52 = vector.extract_strided_slice %8 {offsets = [2, 0, 0], sizes = [16, 16, 16], strides = [1, 1, 1]} : vector<18x16x16xf32> to vector<16x16x16xf32>
    %c6 = arith.constant 6 : index
    %c0_31 = arith.constant 0 : index
    %c0_32 = arith.constant 0 : index
    %53 = vector.load %arg2[%c6, %c0_31, %c0_32] : memref<9x1x16xf32, #tpu.memory_space<vmem>>, vector<1x1x16xf32>
    %54 = vector.shape_cast %53 : vector<1x1x16xf32> to vector<1x16xf32>
    %55 = vector.shape_cast %54 : vector<1x16xf32> to vector<1x1x16xf32>
    %56 = vector.broadcast %55 : vector<1x1x16xf32> to vector<16x16x16xf32>
    %57 = arith.mulf %52, %56 : vector<16x16x16xf32>
    %58 = arith.addf %51, %57 : vector<16x16x16xf32>
    %59 = vector.extract_strided_slice %9 {offsets = [2, 0, 0], sizes = [16, 16, 16], strides = [1, 1, 1]} : vector<18x16x16xf32> to vector<16x16x16xf32>
    %c7 = arith.constant 7 : index
    %c0_33 = arith.constant 0 : index
    %c0_34 = arith.constant 0 : index
    %60 = vector.load %arg2[%c7, %c0_33, %c0_34] : memref<9x1x16xf32, #tpu.memory_space<vmem>>, vector<1x1x16xf32>
    %61 = vector.shape_cast %60 : vector<1x1x16xf32> to vector<1x16xf32>
    %62 = vector.shape_cast %61 : vector<1x16xf32> to vector<1x1x16xf32>
    %63 = vector.broadcast %62 : vector<1x1x16xf32> to vector<16x16x16xf32>
    %64 = arith.mulf %59, %63 : vector<16x16x16xf32>
    %65 = arith.addf %58, %64 : vector<16x16x16xf32>
    %66 = vector.extract_strided_slice %10 {offsets = [2, 0, 0], sizes = [16, 16, 16], strides = [1, 1, 1]} : vector<18x16x16xf32> to vector<16x16x16xf32>
    %c8 = arith.constant 8 : index
    %c0_35 = arith.constant 0 : index
    %c0_36 = arith.constant 0 : index
    %67 = vector.load %arg2[%c8, %c0_35, %c0_36] : memref<9x1x16xf32, #tpu.memory_space<vmem>>, vector<1x1x16xf32>
    %68 = vector.shape_cast %67 : vector<1x1x16xf32> to vector<1x16xf32>
    %69 = vector.shape_cast %68 : vector<1x16xf32> to vector<1x1x16xf32>
    %70 = vector.broadcast %69 : vector<1x1x16xf32> to vector<16x16x16xf32>
    %71 = arith.mulf %66, %70 : vector<16x16x16xf32>
    %72 = arith.addf %65, %71 : vector<16x16x16xf32>
    %c0_37 = arith.constant 0 : index
    %c0_38 = arith.constant 0 : index
    %73 = vector.load %arg3[%c0_37, %c0_38] : memref<1x16xf32, #tpu.memory_space<vmem>>, vector<1x16xf32>
    %74 = vector.shape_cast %73 : vector<1x16xf32> to vector<1x1x16xf32>
    %75 = vector.broadcast %74 : vector<1x1x16xf32> to vector<16x16x16xf32>
    %76 = arith.addf %72, %75 : vector<16x16x16xf32>
    %77 = arith.negf %76 : vector<16x16x16xf32>
    %78 = math.exp %77 : vector<16x16x16xf32>
    %cst_39 = arith.constant 1.000000e+00 : f32
    %79 = vector.broadcast %cst_39 : f32 to vector<16x16x16xf32>
    %80 = arith.addf %79, %78 : vector<16x16x16xf32>
    %81 = arith.divf %79, %80 : vector<16x16x16xf32>
    %82 = arith.mulf %76, %81 : vector<16x16x16xf32>
    %83 = vector.shape_cast %82 : vector<16x16x16xf32> to vector<256x16xf32>
    %cst_40 = arith.constant dense<0.000000e+00> : vector<16xf32>
    %84 = vector.multi_reduction <add>, %83, %cst_40 [0] : vector<256x16xf32> to vector<16xf32>
    %85 = vector.shape_cast %84 : vector<16xf32> to vector<1x16xf32>
    %cst_41 = arith.constant 2.560000e+02 : f32
    %86 = vector.broadcast %cst_41 : f32 to vector<1x16xf32>
    %87 = arith.divf %85, %86 : vector<1x16xf32>
    %88 = arith.truncf %87 : vector<1x16xf32> to vector<1x16xbf16>
    %c0_42 = arith.constant 0 : index
    %c0_43 = arith.constant 0 : index
    %89 = vector.load %arg4[%c0_42, %c0_43] : memref<16x4xbf16, #tpu.memory_space<vmem>>, vector<16x4xbf16>
    %cst_44 = arith.constant dense<0.000000e+00> : vector<1x4xf32>
    %90 = tpu.matmul %88, %89, %cst_44 {dimension_numbers = #tpu.dot_dimension_numbers<[1], [0], [0], [1], [0, 0, 1, 1], [], []>} : vector<1x16xbf16>, vector<16x4xbf16>, vector<1x4xf32> -> vector<1x4xf32>
    %c0_45 = arith.constant 0 : index
    %c0_46 = arith.constant 0 : index
    %91 = vector.load %arg5[%c0_45, %c0_46] : memref<1x4xf32, #tpu.memory_space<vmem>>, vector<1x4xf32>
    %92 = arith.addf %90, %91 : vector<1x4xf32>
    %93 = arith.negf %92 : vector<1x4xf32>
    %94 = math.exp %93 : vector<1x4xf32>
    %cst_47 = arith.constant 1.000000e+00 : f32
    %95 = vector.broadcast %cst_47 : f32 to vector<1x4xf32>
    %96 = arith.addf %95, %94 : vector<1x4xf32>
    %97 = arith.divf %95, %96 : vector<1x4xf32>
    %98 = arith.mulf %92, %97 : vector<1x4xf32>
    %99 = arith.truncf %98 : vector<1x4xf32> to vector<1x4xbf16>
    %c0_48 = arith.constant 0 : index
    %c0_49 = arith.constant 0 : index
    %100 = vector.load %arg6[%c0_48, %c0_49] : memref<4x16xbf16, #tpu.memory_space<vmem>>, vector<4x16xbf16>
    %cst_50 = arith.constant dense<0.000000e+00> : vector<1x16xf32>
    %101 = tpu.matmul %99, %100, %cst_50 {dimension_numbers = #tpu.dot_dimension_numbers<[1], [0], [0], [1], [0, 0, 1, 1], [], []>} : vector<1x4xbf16>, vector<4x16xbf16>, vector<1x16xf32> -> vector<1x16xf32>
    %c0_51 = arith.constant 0 : index
    %c0_52 = arith.constant 0 : index
    %102 = vector.load %arg7[%c0_51, %c0_52] : memref<1x16xf32, #tpu.memory_space<vmem>>, vector<1x16xf32>
    %103 = arith.addf %101, %102 : vector<1x16xf32>
    %104 = arith.negf %103 : vector<1x16xf32>
    %105 = math.exp %104 : vector<1x16xf32>
    %cst_53 = arith.constant 1.000000e+00 : f32
    %106 = vector.broadcast %cst_53 : f32 to vector<1x16xf32>
    %107 = arith.addf %106, %105 : vector<1x16xf32>
    %108 = arith.divf %106, %107 : vector<1x16xf32>
    %109 = vector.broadcast %108 : vector<1x16xf32> to vector<256x16xf32>
    %110 = arith.mulf %83, %109 : vector<256x16xf32>
    %111 = arith.truncf %110 : vector<256x16xf32> to vector<256x16xbf16>
    %c0_54 = arith.constant 0 : index
    %c0_55 = arith.constant 0 : index
    %112 = vector.load %arg8[%c0_54, %c0_55] : memref<16x16xbf16, #tpu.memory_space<vmem>>, vector<16x16xbf16>
    %cst_56 = arith.constant dense<0.000000e+00> : vector<256x16xf32>
    %113 = tpu.matmul %111, %112, %cst_56 {dimension_numbers = #tpu.dot_dimension_numbers<[1], [0], [0], [1], [0, 0, 1, 1], [], []>} : vector<256x16xbf16>, vector<16x16xbf16>, vector<256x16xf32> -> vector<256x16xf32>
    %c0_57 = arith.constant 0 : index
    %c0_58 = arith.constant 0 : index
    %114 = vector.load %arg9[%c0_57, %c0_58] : memref<1x16xf32, #tpu.memory_space<vmem>>, vector<1x16xf32>
    %115 = vector.broadcast %114 : vector<1x16xf32> to vector<256x16xf32>
    %116 = arith.addf %113, %115 : vector<256x16xf32>
    %117 = arith.addf %116, %3 : vector<256x16xf32>
    %118 = vector.shape_cast %117 : vector<256x16xf32> to vector<16x16x16xf32>
    %119 = arith.truncf %118 : vector<16x16x16xf32> to vector<16x16x16xbf16>
    %c0_59 = arith.constant 0 : index
    %c0_60 = arith.constant 0 : index
    %c0_61 = arith.constant 0 : index
    %c0_62 = arith.constant 0 : index
    %120 = vector.load %arg10[%c0_59, %c0_60, %c0_61, %c0_62] : memref<1x16x16x16xbf16, #tpu.memory_space<vmem>>, vector<1x16x16x16xbf16>
    %121 = vector.shape_cast %120 : vector<1x16x16x16xbf16> to vector<16x16x16xbf16>
    %122 = vector.shape_cast %119 : vector<16x16x16xbf16> to vector<1x16x16x16xbf16>
    tpu.vector_store %arg10[%c0_59, %c0_60, %c0_61, %c0_62], %122 {strides = array<i32>} : memref<1x16x16x16xbf16, #tpu.memory_space<vmem>>, vector<1x16x16x16xbf16>,
    return
  }
  func.func @transform_0(%arg0: i32) -> (i32, i32, i32, i32) {
    %c0_i32 = arith.constant 0 : i32
    %c0_i32_0 = arith.constant 0 : i32
    %c0_i32_1 = arith.constant 0 : i32
    %c0_i32_2 = arith.constant 0 : i32
    return %arg0, %c0_i32, %c0_i32_0, %c0_i32_1 : i32, i32, i32, i32
  }
  func.func @transform_1(%arg0: i32) -> (i32, i32, i32) {
    %c0_i32 = arith.constant 0 : i32
    %c0_i32_0 = arith.constant 0 : i32
    %c0_i32_1 = arith.constant 0 : i32
    %c0_i32_2 = arith.constant 0 : i32
    return %c0_i32, %c0_i32_0, %c0_i32_1 : i32, i32, i32
  }
  func.func @transform_2(%arg0: i32) -> (i32, i32) {
    %c0_i32 = arith.constant 0 : i32
    %c0_i32_0 = arith.constant 0 : i32
    %c0_i32_1 = arith.constant 0 : i32
    return %c0_i32, %c0_i32_0 : i32, i32
  }
  func.func @transform_3(%arg0: i32) -> (i32, i32) {
    %c0_i32 = arith.constant 0 : i32
    %c0_i32_0 = arith.constant 0 : i32
    %c0_i32_1 = arith.constant 0 : i32
    return %c0_i32, %c0_i32_0 : i32, i32
  }
  func.func @transform_4(%arg0: i32) -> (i32, i32) {
    %c0_i32 = arith.constant 0 : i32
    %c0_i32_0 = arith.constant 0 : i32
    %c0_i32_1 = arith.constant 0 : i32
    return %c0_i32, %c0_i32_0 : i32, i32
  }
  func.func @transform_5(%arg0: i32) -> (i32, i32) {
    %c0_i32 = arith.constant 0 : i32
    %c0_i32_0 = arith.constant 0 : i32
    %c0_i32_1 = arith.constant 0 : i32
    return %c0_i32, %c0_i32_0 : i32, i32
  }
  func.func @transform_6(%arg0: i32) -> (i32, i32) {
    %c0_i32 = arith.constant 0 : i32
    %c0_i32_0 = arith.constant 0 : i32
    %c0_i32_1 = arith.constant 0 : i32
    return %c0_i32, %c0_i32_0 : i32, i32
  }
  func.func @transform_7(%arg0: i32) -> (i32, i32) {
    %c0_i32 = arith.constant 0 : i32
    %c0_i32_0 = arith.constant 0 : i32
    %c0_i32_1 = arith.constant 0 : i32
    return %c0_i32, %c0_i32_0 : i32, i32
  }
  func.func @transform_8(%arg0: i32) -> (i32, i32) {
    %c0_i32 = arith.constant 0 : i32
    %c0_i32_0 = arith.constant 0 : i32
    %c0_i32_1 = arith.constant 0 : i32
    return %c0_i32, %c0_i32_0 : i32, i32
  }
  func.func @transform_9(%arg0: i32) -> (i32, i32, i32, i32) {
    %c0_i32 = arith.constant 0 : i32
    %c0_i32_0 = arith.constant 0 : i32
    %c0_i32_1 = arith.constant 0 : i32
    %c0_i32_2 = arith.constant 0 : i32
    return %arg0, %c0_i32, %c0_i32_0, %c0_i32_1 : i32, i32, i32, i32
  }
}

module attributes {stable_mosaic.version = 11 : i64} {
  func.func @_mbconv_kernel(%arg0: i32, %arg1: memref<1x16x16x16xbf16, #tpu.memory_space<vmem>>, %arg2: memref<16x96xbf16, #tpu.memory_space<vmem>>, %arg3: memref<1x96xf32, #tpu.memory_space<vmem>>, %arg4: memref<9x1x96xf32, #tpu.memory_space<vmem>>, %arg5: memref<1x96xf32, #tpu.memory_space<vmem>>, %arg6: memref<96x4xbf16, #tpu.memory_space<vmem>>, %arg7: memref<1x4xf32, #tpu.memory_space<vmem>>, %arg8: memref<4x96xbf16, #tpu.memory_space<vmem>>, %arg9: memref<1x96xf32, #tpu.memory_space<vmem>>, %arg10: memref<96x24xbf16, #tpu.memory_space<vmem>>, %arg11: memref<1x24xf32, #tpu.memory_space<vmem>>, %arg12: memref<64x256xbf16, #tpu.memory_space<vmem>>, %arg13: memref<1x8x8x24xbf16, #tpu.memory_space<vmem>>, %arg14: memref<18x18x96xf32, #tpu.memory_space<vmem>>) attributes {dimension_semantics = [#tpu.dimension_semantics<parallel>], iteration_bounds = array<i64: 2>, scalar_prefetch = 0 : i64, scratch_operands = 1 : i64, tpu.core_type = #tpu.core_type<tc>, window_params = [{transform_indices = @transform_0, window_bounds = array<i64: 1, 16, 16, 16>}, {pipeline_mode = #tpu.pipeline_mode<synchronous>, transform_indices = @transform_1, window_bounds = array<i64: 16, 96>}, {pipeline_mode = #tpu.pipeline_mode<synchronous>, transform_indices = @transform_2, window_bounds = array<i64: 1, 96>}, {pipeline_mode = #tpu.pipeline_mode<synchronous>, transform_indices = @transform_3, window_bounds = array<i64: 9, 1, 96>}, {pipeline_mode = #tpu.pipeline_mode<synchronous>, transform_indices = @transform_4, window_bounds = array<i64: 1, 96>}, {pipeline_mode = #tpu.pipeline_mode<synchronous>, transform_indices = @transform_5, window_bounds = array<i64: 96, 4>}, {pipeline_mode = #tpu.pipeline_mode<synchronous>, transform_indices = @transform_6, window_bounds = array<i64: 1, 4>}, {pipeline_mode = #tpu.pipeline_mode<synchronous>, transform_indices = @transform_7, window_bounds = array<i64: 4, 96>}, {pipeline_mode = #tpu.pipeline_mode<synchronous>, transform_indices = @transform_8, window_bounds = array<i64: 1, 96>}, {pipeline_mode = #tpu.pipeline_mode<synchronous>, transform_indices = @transform_9, window_bounds = array<i64: 96, 24>}, {pipeline_mode = #tpu.pipeline_mode<synchronous>, transform_indices = @transform_10, window_bounds = array<i64: 1, 24>}, {pipeline_mode = #tpu.pipeline_mode<synchronous>, transform_indices = @transform_11, window_bounds = array<i64: 64, 256>}, {transform_indices = @transform_12, window_bounds = array<i64: 1, 8, 8, 24>}]} {
    %c0 = arith.constant 0 : index
    %c0_0 = arith.constant 0 : index
    %c0_1 = arith.constant 0 : index
    %c0_2 = arith.constant 0 : index
    %0 = vector.load %arg1[%c0, %c0_0, %c0_1, %c0_2] : memref<1x16x16x16xbf16, #tpu.memory_space<vmem>>, vector<1x16x16x16xbf16>
    %1 = vector.shape_cast %0 : vector<1x16x16x16xbf16> to vector<16x16x16xbf16>
    %2 = arith.extf %1 : vector<16x16x16xbf16> to vector<16x16x16xf32>
    %3 = vector.shape_cast %2 : vector<16x16x16xf32> to vector<256x16xf32>
    %4 = arith.truncf %3 : vector<256x16xf32> to vector<256x16xbf16>
    %c0_3 = arith.constant 0 : index
    %c0_4 = arith.constant 0 : index
    %5 = vector.load %arg2[%c0_3, %c0_4] : memref<16x96xbf16, #tpu.memory_space<vmem>>, vector<16x96xbf16>
    %cst = arith.constant dense<0.000000e+00> : vector<256x96xf32>
    %6 = tpu.matmul %4, %5, %cst {dimension_numbers = #tpu.dot_dimension_numbers<[1], [0], [0], [1], [0, 0, 1, 1], [], []>} : vector<256x16xbf16>, vector<16x96xbf16>, vector<256x96xf32> -> vector<256x96xf32>
    %c0_5 = arith.constant 0 : index
    %c0_6 = arith.constant 0 : index
    %7 = vector.load %arg3[%c0_5, %c0_6] : memref<1x96xf32, #tpu.memory_space<vmem>>, vector<1x96xf32>
    %8 = vector.broadcast %7 : vector<1x96xf32> to vector<256x96xf32>
    %9 = arith.addf %6, %8 : vector<256x96xf32>
    %10 = arith.negf %9 : vector<256x96xf32>
    %11 = math.exp %10 : vector<256x96xf32>
    %cst_7 = arith.constant 1.000000e+00 : f32
    %12 = vector.broadcast %cst_7 : f32 to vector<256x96xf32>
    %13 = arith.addf %12, %11 : vector<256x96xf32>
    %14 = arith.divf %12, %13 : vector<256x96xf32>
    %15 = arith.mulf %9, %14 : vector<256x96xf32>
    %16 = vector.shape_cast %15 : vector<256x96xf32> to vector<16x16x96xf32>
    %cst_8 = arith.constant 0.000000e+00 : f32
    %17 = vector.broadcast %cst_8 : f32 to vector<18x18x96xf32>
    %c0_9 = arith.constant 0 : index
    %c0_10 = arith.constant 0 : index
    %c0_11 = arith.constant 0 : index
    %18 = vector.load %arg14[%c0_9, %c0_10, %c0_11] : memref<18x18x96xf32, #tpu.memory_space<vmem>>, vector<18x18x96xf32>
    tpu.vector_store %arg14[%c0_9, %c0_10, %c0_11], %17 {strides = array<i32>} : memref<18x18x96xf32, #tpu.memory_space<vmem>>, vector<18x18x96xf32>,
    %c1 = arith.constant 1 : index
    %c1_12 = arith.constant 1 : index
    %c0_13 = arith.constant 0 : index
    %19 = vector.load %arg14[%c1, %c1_12, %c0_13] : memref<18x18x96xf32, #tpu.memory_space<vmem>>, vector<16x16x96xf32>
    tpu.vector_store %arg14[%c1, %c1_12, %c0_13], %16 {strides = array<i32>} : memref<18x18x96xf32, #tpu.memory_space<vmem>>, vector<16x16x96xf32>,
    %c0_14 = arith.constant 0 : index
    %c0_15 = arith.constant 0 : index
    %c0_16 = arith.constant 0 : index
    %20 = vector.load %arg14[%c0_14, %c0_15, %c0_16] : memref<18x18x96xf32, #tpu.memory_space<vmem>>, vector<18x16x96xf32>
    %c0_17 = arith.constant 0 : index
    %c1_18 = arith.constant 1 : index
    %c0_19 = arith.constant 0 : index
    %21 = vector.load %arg14[%c0_17, %c1_18, %c0_19] : memref<18x18x96xf32, #tpu.memory_space<vmem>>, vector<18x16x96xf32>
    %c0_20 = arith.constant 0 : index
    %c2 = arith.constant 2 : index
    %c0_21 = arith.constant 0 : index
    %22 = vector.load %arg14[%c0_20, %c2, %c0_21] : memref<18x18x96xf32, #tpu.memory_space<vmem>>, vector<18x16x96xf32>
    %23 = vector.extract_strided_slice %20 {offsets = [0, 0, 0], sizes = [16, 16, 96], strides = [1, 1, 1]} : vector<18x16x96xf32> to vector<16x16x96xf32>
    %c0_22 = arith.constant 0 : index
    %c0_23 = arith.constant 0 : index
    %c0_24 = arith.constant 0 : index
    %24 = vector.load %arg4[%c0_22, %c0_23, %c0_24] : memref<9x1x96xf32, #tpu.memory_space<vmem>>, vector<1x1x96xf32>
    %25 = vector.shape_cast %24 : vector<1x1x96xf32> to vector<1x96xf32>
    %26 = vector.shape_cast %25 : vector<1x96xf32> to vector<1x1x96xf32>
    %27 = vector.broadcast %26 : vector<1x1x96xf32> to vector<16x16x96xf32>
    %28 = arith.mulf %23, %27 : vector<16x16x96xf32>
    %29 = vector.extract_strided_slice %21 {offsets = [0, 0, 0], sizes = [16, 16, 96], strides = [1, 1, 1]} : vector<18x16x96xf32> to vector<16x16x96xf32>
    %c1_25 = arith.constant 1 : index
    %c0_26 = arith.constant 0 : index
    %c0_27 = arith.constant 0 : index
    %30 = vector.load %arg4[%c1_25, %c0_26, %c0_27] : memref<9x1x96xf32, #tpu.memory_space<vmem>>, vector<1x1x96xf32>
    %31 = vector.shape_cast %30 : vector<1x1x96xf32> to vector<1x96xf32>
    %32 = vector.shape_cast %31 : vector<1x96xf32> to vector<1x1x96xf32>
    %33 = vector.broadcast %32 : vector<1x1x96xf32> to vector<16x16x96xf32>
    %34 = arith.mulf %29, %33 : vector<16x16x96xf32>
    %35 = arith.addf %28, %34 : vector<16x16x96xf32>
    %36 = vector.extract_strided_slice %22 {offsets = [0, 0, 0], sizes = [16, 16, 96], strides = [1, 1, 1]} : vector<18x16x96xf32> to vector<16x16x96xf32>
    %c2_28 = arith.constant 2 : index
    %c0_29 = arith.constant 0 : index
    %c0_30 = arith.constant 0 : index
    %37 = vector.load %arg4[%c2_28, %c0_29, %c0_30] : memref<9x1x96xf32, #tpu.memory_space<vmem>>, vector<1x1x96xf32>
    %38 = vector.shape_cast %37 : vector<1x1x96xf32> to vector<1x96xf32>
    %39 = vector.shape_cast %38 : vector<1x96xf32> to vector<1x1x96xf32>
    %40 = vector.broadcast %39 : vector<1x1x96xf32> to vector<16x16x96xf32>
    %41 = arith.mulf %36, %40 : vector<16x16x96xf32>
    %42 = arith.addf %35, %41 : vector<16x16x96xf32>
    %43 = vector.extract_strided_slice %20 {offsets = [1, 0, 0], sizes = [16, 16, 96], strides = [1, 1, 1]} : vector<18x16x96xf32> to vector<16x16x96xf32>
    %c3 = arith.constant 3 : index
    %c0_31 = arith.constant 0 : index
    %c0_32 = arith.constant 0 : index
    %44 = vector.load %arg4[%c3, %c0_31, %c0_32] : memref<9x1x96xf32, #tpu.memory_space<vmem>>, vector<1x1x96xf32>
    %45 = vector.shape_cast %44 : vector<1x1x96xf32> to vector<1x96xf32>
    %46 = vector.shape_cast %45 : vector<1x96xf32> to vector<1x1x96xf32>
    %47 = vector.broadcast %46 : vector<1x1x96xf32> to vector<16x16x96xf32>
    %48 = arith.mulf %43, %47 : vector<16x16x96xf32>
    %49 = arith.addf %42, %48 : vector<16x16x96xf32>
    %50 = vector.extract_strided_slice %21 {offsets = [1, 0, 0], sizes = [16, 16, 96], strides = [1, 1, 1]} : vector<18x16x96xf32> to vector<16x16x96xf32>
    %c4 = arith.constant 4 : index
    %c0_33 = arith.constant 0 : index
    %c0_34 = arith.constant 0 : index
    %51 = vector.load %arg4[%c4, %c0_33, %c0_34] : memref<9x1x96xf32, #tpu.memory_space<vmem>>, vector<1x1x96xf32>
    %52 = vector.shape_cast %51 : vector<1x1x96xf32> to vector<1x96xf32>
    %53 = vector.shape_cast %52 : vector<1x96xf32> to vector<1x1x96xf32>
    %54 = vector.broadcast %53 : vector<1x1x96xf32> to vector<16x16x96xf32>
    %55 = arith.mulf %50, %54 : vector<16x16x96xf32>
    %56 = arith.addf %49, %55 : vector<16x16x96xf32>
    %57 = vector.extract_strided_slice %22 {offsets = [1, 0, 0], sizes = [16, 16, 96], strides = [1, 1, 1]} : vector<18x16x96xf32> to vector<16x16x96xf32>
    %c5 = arith.constant 5 : index
    %c0_35 = arith.constant 0 : index
    %c0_36 = arith.constant 0 : index
    %58 = vector.load %arg4[%c5, %c0_35, %c0_36] : memref<9x1x96xf32, #tpu.memory_space<vmem>>, vector<1x1x96xf32>
    %59 = vector.shape_cast %58 : vector<1x1x96xf32> to vector<1x96xf32>
    %60 = vector.shape_cast %59 : vector<1x96xf32> to vector<1x1x96xf32>
    %61 = vector.broadcast %60 : vector<1x1x96xf32> to vector<16x16x96xf32>
    %62 = arith.mulf %57, %61 : vector<16x16x96xf32>
    %63 = arith.addf %56, %62 : vector<16x16x96xf32>
    %64 = vector.extract_strided_slice %20 {offsets = [2, 0, 0], sizes = [16, 16, 96], strides = [1, 1, 1]} : vector<18x16x96xf32> to vector<16x16x96xf32>
    %c6 = arith.constant 6 : index
    %c0_37 = arith.constant 0 : index
    %c0_38 = arith.constant 0 : index
    %65 = vector.load %arg4[%c6, %c0_37, %c0_38] : memref<9x1x96xf32, #tpu.memory_space<vmem>>, vector<1x1x96xf32>
    %66 = vector.shape_cast %65 : vector<1x1x96xf32> to vector<1x96xf32>
    %67 = vector.shape_cast %66 : vector<1x96xf32> to vector<1x1x96xf32>
    %68 = vector.broadcast %67 : vector<1x1x96xf32> to vector<16x16x96xf32>
    %69 = arith.mulf %64, %68 : vector<16x16x96xf32>
    %70 = arith.addf %63, %69 : vector<16x16x96xf32>
    %71 = vector.extract_strided_slice %21 {offsets = [2, 0, 0], sizes = [16, 16, 96], strides = [1, 1, 1]} : vector<18x16x96xf32> to vector<16x16x96xf32>
    %c7 = arith.constant 7 : index
    %c0_39 = arith.constant 0 : index
    %c0_40 = arith.constant 0 : index
    %72 = vector.load %arg4[%c7, %c0_39, %c0_40] : memref<9x1x96xf32, #tpu.memory_space<vmem>>, vector<1x1x96xf32>
    %73 = vector.shape_cast %72 : vector<1x1x96xf32> to vector<1x96xf32>
    %74 = vector.shape_cast %73 : vector<1x96xf32> to vector<1x1x96xf32>
    %75 = vector.broadcast %74 : vector<1x1x96xf32> to vector<16x16x96xf32>
    %76 = arith.mulf %71, %75 : vector<16x16x96xf32>
    %77 = arith.addf %70, %76 : vector<16x16x96xf32>
    %78 = vector.extract_strided_slice %22 {offsets = [2, 0, 0], sizes = [16, 16, 96], strides = [1, 1, 1]} : vector<18x16x96xf32> to vector<16x16x96xf32>
    %c8 = arith.constant 8 : index
    %c0_41 = arith.constant 0 : index
    %c0_42 = arith.constant 0 : index
    %79 = vector.load %arg4[%c8, %c0_41, %c0_42] : memref<9x1x96xf32, #tpu.memory_space<vmem>>, vector<1x1x96xf32>
    %80 = vector.shape_cast %79 : vector<1x1x96xf32> to vector<1x96xf32>
    %81 = vector.shape_cast %80 : vector<1x96xf32> to vector<1x1x96xf32>
    %82 = vector.broadcast %81 : vector<1x1x96xf32> to vector<16x16x96xf32>
    %83 = arith.mulf %78, %82 : vector<16x16x96xf32>
    %84 = arith.addf %77, %83 : vector<16x16x96xf32>
    %c0_43 = arith.constant 0 : index
    %c0_44 = arith.constant 0 : index
    %85 = vector.load %arg5[%c0_43, %c0_44] : memref<1x96xf32, #tpu.memory_space<vmem>>, vector<1x96xf32>
    %86 = vector.shape_cast %85 : vector<1x96xf32> to vector<1x1x96xf32>
    %87 = vector.broadcast %86 : vector<1x1x96xf32> to vector<16x16x96xf32>
    %88 = arith.addf %84, %87 : vector<16x16x96xf32>
    %89 = arith.negf %88 : vector<16x16x96xf32>
    %90 = math.exp %89 : vector<16x16x96xf32>
    %cst_45 = arith.constant 1.000000e+00 : f32
    %91 = vector.broadcast %cst_45 : f32 to vector<16x16x96xf32>
    %92 = arith.addf %91, %90 : vector<16x16x96xf32>
    %93 = arith.divf %91, %92 : vector<16x16x96xf32>
    %94 = arith.mulf %88, %93 : vector<16x16x96xf32>
    %95 = vector.shape_cast %94 : vector<16x16x96xf32> to vector<256x96xf32>
    %c0_46 = arith.constant 0 : index
    %c0_47 = arith.constant 0 : index
    %96 = vector.load %arg12[%c0_46, %c0_47] : memref<64x256xbf16, #tpu.memory_space<vmem>>, vector<64x256xbf16>
    %97 = arith.truncf %95 : vector<256x96xf32> to vector<256x96xbf16>
    %cst_48 = arith.constant dense<0.000000e+00> : vector<64x96xf32>
    %98 = tpu.matmul %96, %97, %cst_48 {dimension_numbers = #tpu.dot_dimension_numbers<[1], [0], [0], [1], [0, 0, 1, 1], [], []>} : vector<64x256xbf16>, vector<256x96xbf16>, vector<64x96xf32> -> vector<64x96xf32>
    %cst_49 = arith.constant dense<0.000000e+00> : vector<96xf32>
    %99 = vector.multi_reduction <add>, %98, %cst_49 [0] : vector<64x96xf32> to vector<96xf32>
    %100 = vector.shape_cast %99 : vector<96xf32> to vector<1x96xf32>
    %cst_50 = arith.constant 6.400000e+01 : f32
    %101 = vector.broadcast %cst_50 : f32 to vector<1x96xf32>
    %102 = arith.divf %100, %101 : vector<1x96xf32>
    %103 = arith.truncf %102 : vector<1x96xf32> to vector<1x96xbf16>
    %c0_51 = arith.constant 0 : index
    %c0_52 = arith.constant 0 : index
    %104 = vector.load %arg6[%c0_51, %c0_52] : memref<96x4xbf16, #tpu.memory_space<vmem>>, vector<96x4xbf16>
    %cst_53 = arith.constant dense<0.000000e+00> : vector<1x4xf32>
    %105 = tpu.matmul %103, %104, %cst_53 {dimension_numbers = #tpu.dot_dimension_numbers<[1], [0], [0], [1], [0, 0, 1, 1], [], []>} : vector<1x96xbf16>, vector<96x4xbf16>, vector<1x4xf32> -> vector<1x4xf32>
    %c0_54 = arith.constant 0 : index
    %c0_55 = arith.constant 0 : index
    %106 = vector.load %arg7[%c0_54, %c0_55] : memref<1x4xf32, #tpu.memory_space<vmem>>, vector<1x4xf32>
    %107 = arith.addf %105, %106 : vector<1x4xf32>
    %108 = arith.negf %107 : vector<1x4xf32>
    %109 = math.exp %108 : vector<1x4xf32>
    %cst_56 = arith.constant 1.000000e+00 : f32
    %110 = vector.broadcast %cst_56 : f32 to vector<1x4xf32>
    %111 = arith.addf %110, %109 : vector<1x4xf32>
    %112 = arith.divf %110, %111 : vector<1x4xf32>
    %113 = arith.mulf %107, %112 : vector<1x4xf32>
    %114 = arith.truncf %113 : vector<1x4xf32> to vector<1x4xbf16>
    %c0_57 = arith.constant 0 : index
    %c0_58 = arith.constant 0 : index
    %115 = vector.load %arg8[%c0_57, %c0_58] : memref<4x96xbf16, #tpu.memory_space<vmem>>, vector<4x96xbf16>
    %cst_59 = arith.constant dense<0.000000e+00> : vector<1x96xf32>
    %116 = tpu.matmul %114, %115, %cst_59 {dimension_numbers = #tpu.dot_dimension_numbers<[1], [0], [0], [1], [0, 0, 1, 1], [], []>} : vector<1x4xbf16>, vector<4x96xbf16>, vector<1x96xf32> -> vector<1x96xf32>
    %c0_60 = arith.constant 0 : index
    %c0_61 = arith.constant 0 : index
    %117 = vector.load %arg9[%c0_60, %c0_61] : memref<1x96xf32, #tpu.memory_space<vmem>>, vector<1x96xf32>
    %118 = arith.addf %116, %117 : vector<1x96xf32>
    %119 = arith.negf %118 : vector<1x96xf32>
    %120 = math.exp %119 : vector<1x96xf32>
    %cst_62 = arith.constant 1.000000e+00 : f32
    %121 = vector.broadcast %cst_62 : f32 to vector<1x96xf32>
    %122 = arith.addf %121, %120 : vector<1x96xf32>
    %123 = arith.divf %121, %122 : vector<1x96xf32>
    %124 = vector.broadcast %123 : vector<1x96xf32> to vector<64x96xf32>
    %125 = arith.mulf %98, %124 : vector<64x96xf32>
    %126 = arith.truncf %125 : vector<64x96xf32> to vector<64x96xbf16>
    %c0_63 = arith.constant 0 : index
    %c0_64 = arith.constant 0 : index
    %127 = vector.load %arg10[%c0_63, %c0_64] : memref<96x24xbf16, #tpu.memory_space<vmem>>, vector<96x24xbf16>
    %cst_65 = arith.constant dense<0.000000e+00> : vector<64x24xf32>
    %128 = tpu.matmul %126, %127, %cst_65 {dimension_numbers = #tpu.dot_dimension_numbers<[1], [0], [0], [1], [0, 0, 1, 1], [], []>} : vector<64x96xbf16>, vector<96x24xbf16>, vector<64x24xf32> -> vector<64x24xf32>
    %c0_66 = arith.constant 0 : index
    %c0_67 = arith.constant 0 : index
    %129 = vector.load %arg11[%c0_66, %c0_67] : memref<1x24xf32, #tpu.memory_space<vmem>>, vector<1x24xf32>
    %130 = vector.broadcast %129 : vector<1x24xf32> to vector<64x24xf32>
    %131 = arith.addf %128, %130 : vector<64x24xf32>
    %132 = vector.shape_cast %131 : vector<64x24xf32> to vector<8x8x24xf32>
    %133 = arith.truncf %132 : vector<8x8x24xf32> to vector<8x8x24xbf16>
    %c0_68 = arith.constant 0 : index
    %c0_69 = arith.constant 0 : index
    %c0_70 = arith.constant 0 : index
    %c0_71 = arith.constant 0 : index
    %134 = vector.load %arg13[%c0_68, %c0_69, %c0_70, %c0_71] : memref<1x8x8x24xbf16, #tpu.memory_space<vmem>>, vector<1x8x8x24xbf16>
    %135 = vector.shape_cast %134 : vector<1x8x8x24xbf16> to vector<8x8x24xbf16>
    %136 = vector.shape_cast %133 : vector<8x8x24xbf16> to vector<1x8x8x24xbf16>
    tpu.vector_store %arg13[%c0_68, %c0_69, %c0_70, %c0_71], %136 {strides = array<i32>} : memref<1x8x8x24xbf16, #tpu.memory_space<vmem>>, vector<1x8x8x24xbf16>,
    return
  }
  func.func @transform_0(%arg0: i32) -> (i32, i32, i32, i32) {
    %c0_i32 = arith.constant 0 : i32
    %c0_i32_0 = arith.constant 0 : i32
    %c0_i32_1 = arith.constant 0 : i32
    %c0_i32_2 = arith.constant 0 : i32
    return %arg0, %c0_i32, %c0_i32_0, %c0_i32_1 : i32, i32, i32, i32
  }
  func.func @transform_1(%arg0: i32) -> (i32, i32) {
    %c0_i32 = arith.constant 0 : i32
    %c0_i32_0 = arith.constant 0 : i32
    %c0_i32_1 = arith.constant 0 : i32
    return %c0_i32, %c0_i32_0 : i32, i32
  }
  func.func @transform_2(%arg0: i32) -> (i32, i32) {
    %c0_i32 = arith.constant 0 : i32
    %c0_i32_0 = arith.constant 0 : i32
    %c0_i32_1 = arith.constant 0 : i32
    return %c0_i32, %c0_i32_0 : i32, i32
  }
  func.func @transform_3(%arg0: i32) -> (i32, i32, i32) {
    %c0_i32 = arith.constant 0 : i32
    %c0_i32_0 = arith.constant 0 : i32
    %c0_i32_1 = arith.constant 0 : i32
    %c0_i32_2 = arith.constant 0 : i32
    return %c0_i32, %c0_i32_0, %c0_i32_1 : i32, i32, i32
  }
  func.func @transform_4(%arg0: i32) -> (i32, i32) {
    %c0_i32 = arith.constant 0 : i32
    %c0_i32_0 = arith.constant 0 : i32
    %c0_i32_1 = arith.constant 0 : i32
    return %c0_i32, %c0_i32_0 : i32, i32
  }
  func.func @transform_5(%arg0: i32) -> (i32, i32) {
    %c0_i32 = arith.constant 0 : i32
    %c0_i32_0 = arith.constant 0 : i32
    %c0_i32_1 = arith.constant 0 : i32
    return %c0_i32, %c0_i32_0 : i32, i32
  }
  func.func @transform_6(%arg0: i32) -> (i32, i32) {
    %c0_i32 = arith.constant 0 : i32
    %c0_i32_0 = arith.constant 0 : i32
    %c0_i32_1 = arith.constant 0 : i32
    return %c0_i32, %c0_i32_0 : i32, i32
  }
  func.func @transform_7(%arg0: i32) -> (i32, i32) {
    %c0_i32 = arith.constant 0 : i32
    %c0_i32_0 = arith.constant 0 : i32
    %c0_i32_1 = arith.constant 0 : i32
    return %c0_i32, %c0_i32_0 : i32, i32
  }
  func.func @transform_8(%arg0: i32) -> (i32, i32) {
    %c0_i32 = arith.constant 0 : i32
    %c0_i32_0 = arith.constant 0 : i32
    %c0_i32_1 = arith.constant 0 : i32
    return %c0_i32, %c0_i32_0 : i32, i32
  }
  func.func @transform_9(%arg0: i32) -> (i32, i32) {
    %c0_i32 = arith.constant 0 : i32
    %c0_i32_0 = arith.constant 0 : i32
    %c0_i32_1 = arith.constant 0 : i32
    return %c0_i32, %c0_i32_0 : i32, i32
  }
  func.func @transform_10(%arg0: i32) -> (i32, i32) {
    %c0_i32 = arith.constant 0 : i32
    %c0_i32_0 = arith.constant 0 : i32
    %c0_i32_1 = arith.constant 0 : i32
    return %c0_i32, %c0_i32_0 : i32, i32
  }
  func.func @transform_11(%arg0: i32) -> (i32, i32) {
    %c0_i32 = arith.constant 0 : i32
    %c0_i32_0 = arith.constant 0 : i32
    %c0_i32_1 = arith.constant 0 : i32
    return %c0_i32, %c0_i32_0 : i32, i32
  }
  func.func @transform_12(%arg0: i32) -> (i32, i32, i32, i32) {
    %c0_i32 = arith.constant 0 : i32
    %c0_i32_0 = arith.constant 0 : i32
    %c0_i32_1 = arith.constant 0 : i32
    %c0_i32_2 = arith.constant 0 : i32
    return %arg0, %c0_i32, %c0_i32_0, %c0_i32_1 : i32, i32, i32, i32
  }
}

module attributes {stable_mosaic.version = 11 : i64} {
  func.func @_tail_kernel(%arg0: memref<2x8x8x24xbf16, #tpu.memory_space<vmem>>, %arg1: memref<24x64xbf16, #tpu.memory_space<vmem>>, %arg2: memref<1x64xf32, #tpu.memory_space<vmem>>, %arg3: memref<64x2xbf16, #tpu.memory_space<vmem>>, %arg4: memref<1x2xf32, #tpu.memory_space<vmem>>, %arg5: memref<2x2xf32, #tpu.memory_space<vmem>>) attributes {dimension_semantics = [], scalar_prefetch = 0 : i64, scratch_operands = 0 : i64, tpu.core_type = #tpu.core_type<tc>} {
    %c0 = arith.constant 0 : index
    %c0_0 = arith.constant 0 : index
    %c0_1 = arith.constant 0 : index
    %c0_2 = arith.constant 0 : index
    %0 = vector.load %arg0[%c0, %c0_0, %c0_1, %c0_2] : memref<2x8x8x24xbf16, #tpu.memory_space<vmem>>, vector<2x8x8x24xbf16>
    %1 = arith.extf %0 : vector<2x8x8x24xbf16> to vector<2x8x8x24xf32>
    %2 = vector.shape_cast %1 : vector<2x8x8x24xf32> to vector<128x24xf32>
    %3 = arith.truncf %2 : vector<128x24xf32> to vector<128x24xbf16>
    %c0_3 = arith.constant 0 : index
    %c0_4 = arith.constant 0 : index
    %4 = vector.load %arg1[%c0_3, %c0_4] : memref<24x64xbf16, #tpu.memory_space<vmem>>, vector<24x64xbf16>
    %cst = arith.constant dense<0.000000e+00> : vector<128x64xf32>
    %5 = tpu.matmul %3, %4, %cst {dimension_numbers = #tpu.dot_dimension_numbers<[1], [0], [0], [1], [0, 0, 1, 1], [], []>} : vector<128x24xbf16>, vector<24x64xbf16>, vector<128x64xf32> -> vector<128x64xf32>
    %c0_5 = arith.constant 0 : index
    %c0_6 = arith.constant 0 : index
    %6 = vector.load %arg2[%c0_5, %c0_6] : memref<1x64xf32, #tpu.memory_space<vmem>>, vector<1x64xf32>
    %7 = vector.broadcast %6 : vector<1x64xf32> to vector<128x64xf32>
    %8 = arith.addf %5, %7 : vector<128x64xf32>
    %9 = arith.negf %8 : vector<128x64xf32>
    %10 = math.exp %9 : vector<128x64xf32>
    %cst_7 = arith.constant 1.000000e+00 : f32
    %11 = vector.broadcast %cst_7 : f32 to vector<128x64xf32>
    %12 = arith.addf %11, %10 : vector<128x64xf32>
    %13 = arith.divf %11, %12 : vector<128x64xf32>
    %14 = arith.mulf %8, %13 : vector<128x64xf32>
    %15 = vector.shape_cast %14 : vector<128x64xf32> to vector<2x64x64xf32>
    %cst_8 = arith.constant dense<0.000000e+00> : vector<2x64xf32>
    %16 = vector.multi_reduction <add>, %15, %cst_8 [1] : vector<2x64x64xf32> to vector<2x64xf32>
    %cst_9 = arith.constant 6.400000e+01 : f32
    %17 = vector.broadcast %cst_9 : f32 to vector<2x64xf32>
    %18 = arith.divf %16, %17 : vector<2x64xf32>
    %19 = arith.truncf %18 : vector<2x64xf32> to vector<2x64xbf16>
    %c0_10 = arith.constant 0 : index
    %c0_11 = arith.constant 0 : index
    %20 = vector.load %arg3[%c0_10, %c0_11] : memref<64x2xbf16, #tpu.memory_space<vmem>>, vector<64x2xbf16>
    %cst_12 = arith.constant dense<0.000000e+00> : vector<2x2xf32>
    %21 = tpu.matmul %19, %20, %cst_12 {dimension_numbers = #tpu.dot_dimension_numbers<[1], [0], [0], [1], [0, 0, 1, 1], [], []>} : vector<2x64xbf16>, vector<64x2xbf16>, vector<2x2xf32> -> vector<2x2xf32>
    %c0_13 = arith.constant 0 : index
    %c0_14 = arith.constant 0 : index
    %22 = vector.load %arg4[%c0_13, %c0_14] : memref<1x2xf32, #tpu.memory_space<vmem>>, vector<1x2xf32>
    %23 = vector.broadcast %22 : vector<1x2xf32> to vector<2x2xf32>
    %24 = arith.addf %21, %23 : vector<2x2xf32>
    %c0_15 = arith.constant 0 : index
    %c0_16 = arith.constant 0 : index
    %25 = vector.load %arg5[%c0_15, %c0_16] : memref<2x2xf32, #tpu.memory_space<vmem>>, vector<2x2xf32>
    tpu.vector_store %arg5[%c0_15, %c0_16], %24 {strides = array<i32>} : memref<2x2xf32, #tpu.memory_space<vmem>>, vector<2x2xf32>,
    return
  }
}

module attributes {stable_mosaic.version = 11 : i64} {
  func.func @_mbconv_kernel(%arg0: i32, %arg1: memref<1x8x8x24xbf16, #tpu.memory_space<vmem>>, %arg2: memref<24x144xbf16, #tpu.memory_space<vmem>>, %arg3: memref<1x144xf32, #tpu.memory_space<vmem>>, %arg4: memref<9x1x144xf32, #tpu.memory_space<vmem>>, %arg5: memref<1x144xf32, #tpu.memory_space<vmem>>, %arg6: memref<144x6xbf16, #tpu.memory_space<vmem>>, %arg7: memref<1x6xf32, #tpu.memory_space<vmem>>, %arg8: memref<6x144xbf16, #tpu.memory_space<vmem>>, %arg9: memref<1x144xf32, #tpu.memory_space<vmem>>, %arg10: memref<144x24xbf16, #tpu.memory_space<vmem>>, %arg11: memref<1x24xf32, #tpu.memory_space<vmem>>, %arg12: memref<1x8x8x24xbf16, #tpu.memory_space<vmem>>, %arg13: memref<10x10x144xf32, #tpu.memory_space<vmem>>) attributes {dimension_semantics = [#tpu.dimension_semantics<parallel>], iteration_bounds = array<i64: 2>, scalar_prefetch = 0 : i64, scratch_operands = 1 : i64, tpu.core_type = #tpu.core_type<tc>, window_params = [{transform_indices = @transform_0, window_bounds = array<i64: 1, 8, 8, 24>}, {pipeline_mode = #tpu.pipeline_mode<synchronous>, transform_indices = @transform_1, window_bounds = array<i64: 24, 144>}, {pipeline_mode = #tpu.pipeline_mode<synchronous>, transform_indices = @transform_2, window_bounds = array<i64: 1, 144>}, {pipeline_mode = #tpu.pipeline_mode<synchronous>, transform_indices = @transform_3, window_bounds = array<i64: 9, 1, 144>}, {pipeline_mode = #tpu.pipeline_mode<synchronous>, transform_indices = @transform_4, window_bounds = array<i64: 1, 144>}, {pipeline_mode = #tpu.pipeline_mode<synchronous>, transform_indices = @transform_5, window_bounds = array<i64: 144, 6>}, {pipeline_mode = #tpu.pipeline_mode<synchronous>, transform_indices = @transform_6, window_bounds = array<i64: 1, 6>}, {pipeline_mode = #tpu.pipeline_mode<synchronous>, transform_indices = @transform_7, window_bounds = array<i64: 6, 144>}, {pipeline_mode = #tpu.pipeline_mode<synchronous>, transform_indices = @transform_8, window_bounds = array<i64: 1, 144>}, {pipeline_mode = #tpu.pipeline_mode<synchronous>, transform_indices = @transform_9, window_bounds = array<i64: 144, 24>}, {pipeline_mode = #tpu.pipeline_mode<synchronous>, transform_indices = @transform_10, window_bounds = array<i64: 1, 24>}, {transform_indices = @transform_11, window_bounds = array<i64: 1, 8, 8, 24>}]} {
    %c0 = arith.constant 0 : index
    %c0_0 = arith.constant 0 : index
    %c0_1 = arith.constant 0 : index
    %c0_2 = arith.constant 0 : index
    %0 = vector.load %arg1[%c0, %c0_0, %c0_1, %c0_2] : memref<1x8x8x24xbf16, #tpu.memory_space<vmem>>, vector<1x8x8x24xbf16>
    %1 = vector.shape_cast %0 : vector<1x8x8x24xbf16> to vector<8x8x24xbf16>
    %2 = arith.extf %1 : vector<8x8x24xbf16> to vector<8x8x24xf32>
    %3 = vector.shape_cast %2 : vector<8x8x24xf32> to vector<64x24xf32>
    %4 = arith.truncf %3 : vector<64x24xf32> to vector<64x24xbf16>
    %c0_3 = arith.constant 0 : index
    %c0_4 = arith.constant 0 : index
    %5 = vector.load %arg2[%c0_3, %c0_4] : memref<24x144xbf16, #tpu.memory_space<vmem>>, vector<24x144xbf16>
    %cst = arith.constant dense<0.000000e+00> : vector<64x144xf32>
    %6 = tpu.matmul %4, %5, %cst {dimension_numbers = #tpu.dot_dimension_numbers<[1], [0], [0], [1], [0, 0, 1, 1], [], []>} : vector<64x24xbf16>, vector<24x144xbf16>, vector<64x144xf32> -> vector<64x144xf32>
    %c0_5 = arith.constant 0 : index
    %c0_6 = arith.constant 0 : index
    %7 = vector.load %arg3[%c0_5, %c0_6] : memref<1x144xf32, #tpu.memory_space<vmem>>, vector<1x144xf32>
    %8 = vector.broadcast %7 : vector<1x144xf32> to vector<64x144xf32>
    %9 = arith.addf %6, %8 : vector<64x144xf32>
    %10 = arith.negf %9 : vector<64x144xf32>
    %11 = math.exp %10 : vector<64x144xf32>
    %cst_7 = arith.constant 1.000000e+00 : f32
    %12 = vector.broadcast %cst_7 : f32 to vector<64x144xf32>
    %13 = arith.addf %12, %11 : vector<64x144xf32>
    %14 = arith.divf %12, %13 : vector<64x144xf32>
    %15 = arith.mulf %9, %14 : vector<64x144xf32>
    %16 = vector.shape_cast %15 : vector<64x144xf32> to vector<8x8x144xf32>
    %cst_8 = arith.constant 0.000000e+00 : f32
    %17 = vector.broadcast %cst_8 : f32 to vector<10x10x144xf32>
    %c0_9 = arith.constant 0 : index
    %c0_10 = arith.constant 0 : index
    %c0_11 = arith.constant 0 : index
    %18 = vector.load %arg13[%c0_9, %c0_10, %c0_11] : memref<10x10x144xf32, #tpu.memory_space<vmem>>, vector<10x10x144xf32>
    tpu.vector_store %arg13[%c0_9, %c0_10, %c0_11], %17 {strides = array<i32>} : memref<10x10x144xf32, #tpu.memory_space<vmem>>, vector<10x10x144xf32>,
    %c1 = arith.constant 1 : index
    %c1_12 = arith.constant 1 : index
    %c0_13 = arith.constant 0 : index
    %19 = vector.load %arg13[%c1, %c1_12, %c0_13] : memref<10x10x144xf32, #tpu.memory_space<vmem>>, vector<8x8x144xf32>
    tpu.vector_store %arg13[%c1, %c1_12, %c0_13], %16 {strides = array<i32>} : memref<10x10x144xf32, #tpu.memory_space<vmem>>, vector<8x8x144xf32>,
    %c0_14 = arith.constant 0 : index
    %c0_15 = arith.constant 0 : index
    %c0_16 = arith.constant 0 : index
    %20 = vector.load %arg13[%c0_14, %c0_15, %c0_16] : memref<10x10x144xf32, #tpu.memory_space<vmem>>, vector<10x8x144xf32>
    %c0_17 = arith.constant 0 : index
    %c1_18 = arith.constant 1 : index
    %c0_19 = arith.constant 0 : index
    %21 = vector.load %arg13[%c0_17, %c1_18, %c0_19] : memref<10x10x144xf32, #tpu.memory_space<vmem>>, vector<10x8x144xf32>
    %c0_20 = arith.constant 0 : index
    %c2 = arith.constant 2 : index
    %c0_21 = arith.constant 0 : index
    %22 = vector.load %arg13[%c0_20, %c2, %c0_21] : memref<10x10x144xf32, #tpu.memory_space<vmem>>, vector<10x8x144xf32>
    %23 = vector.extract_strided_slice %20 {offsets = [0, 0, 0], sizes = [8, 8, 144], strides = [1, 1, 1]} : vector<10x8x144xf32> to vector<8x8x144xf32>
    %c0_22 = arith.constant 0 : index
    %c0_23 = arith.constant 0 : index
    %c0_24 = arith.constant 0 : index
    %24 = vector.load %arg4[%c0_22, %c0_23, %c0_24] : memref<9x1x144xf32, #tpu.memory_space<vmem>>, vector<1x1x144xf32>
    %25 = vector.shape_cast %24 : vector<1x1x144xf32> to vector<1x144xf32>
    %26 = vector.shape_cast %25 : vector<1x144xf32> to vector<1x1x144xf32>
    %27 = vector.broadcast %26 : vector<1x1x144xf32> to vector<8x8x144xf32>
    %28 = arith.mulf %23, %27 : vector<8x8x144xf32>
    %29 = vector.extract_strided_slice %21 {offsets = [0, 0, 0], sizes = [8, 8, 144], strides = [1, 1, 1]} : vector<10x8x144xf32> to vector<8x8x144xf32>
    %c1_25 = arith.constant 1 : index
    %c0_26 = arith.constant 0 : index
    %c0_27 = arith.constant 0 : index
    %30 = vector.load %arg4[%c1_25, %c0_26, %c0_27] : memref<9x1x144xf32, #tpu.memory_space<vmem>>, vector<1x1x144xf32>
    %31 = vector.shape_cast %30 : vector<1x1x144xf32> to vector<1x144xf32>
    %32 = vector.shape_cast %31 : vector<1x144xf32> to vector<1x1x144xf32>
    %33 = vector.broadcast %32 : vector<1x1x144xf32> to vector<8x8x144xf32>
    %34 = arith.mulf %29, %33 : vector<8x8x144xf32>
    %35 = arith.addf %28, %34 : vector<8x8x144xf32>
    %36 = vector.extract_strided_slice %22 {offsets = [0, 0, 0], sizes = [8, 8, 144], strides = [1, 1, 1]} : vector<10x8x144xf32> to vector<8x8x144xf32>
    %c2_28 = arith.constant 2 : index
    %c0_29 = arith.constant 0 : index
    %c0_30 = arith.constant 0 : index
    %37 = vector.load %arg4[%c2_28, %c0_29, %c0_30] : memref<9x1x144xf32, #tpu.memory_space<vmem>>, vector<1x1x144xf32>
    %38 = vector.shape_cast %37 : vector<1x1x144xf32> to vector<1x144xf32>
    %39 = vector.shape_cast %38 : vector<1x144xf32> to vector<1x1x144xf32>
    %40 = vector.broadcast %39 : vector<1x1x144xf32> to vector<8x8x144xf32>
    %41 = arith.mulf %36, %40 : vector<8x8x144xf32>
    %42 = arith.addf %35, %41 : vector<8x8x144xf32>
    %43 = vector.extract_strided_slice %20 {offsets = [1, 0, 0], sizes = [8, 8, 144], strides = [1, 1, 1]} : vector<10x8x144xf32> to vector<8x8x144xf32>
    %c3 = arith.constant 3 : index
    %c0_31 = arith.constant 0 : index
    %c0_32 = arith.constant 0 : index
    %44 = vector.load %arg4[%c3, %c0_31, %c0_32] : memref<9x1x144xf32, #tpu.memory_space<vmem>>, vector<1x1x144xf32>
    %45 = vector.shape_cast %44 : vector<1x1x144xf32> to vector<1x144xf32>
    %46 = vector.shape_cast %45 : vector<1x144xf32> to vector<1x1x144xf32>
    %47 = vector.broadcast %46 : vector<1x1x144xf32> to vector<8x8x144xf32>
    %48 = arith.mulf %43, %47 : vector<8x8x144xf32>
    %49 = arith.addf %42, %48 : vector<8x8x144xf32>
    %50 = vector.extract_strided_slice %21 {offsets = [1, 0, 0], sizes = [8, 8, 144], strides = [1, 1, 1]} : vector<10x8x144xf32> to vector<8x8x144xf32>
    %c4 = arith.constant 4 : index
    %c0_33 = arith.constant 0 : index
    %c0_34 = arith.constant 0 : index
    %51 = vector.load %arg4[%c4, %c0_33, %c0_34] : memref<9x1x144xf32, #tpu.memory_space<vmem>>, vector<1x1x144xf32>
    %52 = vector.shape_cast %51 : vector<1x1x144xf32> to vector<1x144xf32>
    %53 = vector.shape_cast %52 : vector<1x144xf32> to vector<1x1x144xf32>
    %54 = vector.broadcast %53 : vector<1x1x144xf32> to vector<8x8x144xf32>
    %55 = arith.mulf %50, %54 : vector<8x8x144xf32>
    %56 = arith.addf %49, %55 : vector<8x8x144xf32>
    %57 = vector.extract_strided_slice %22 {offsets = [1, 0, 0], sizes = [8, 8, 144], strides = [1, 1, 1]} : vector<10x8x144xf32> to vector<8x8x144xf32>
    %c5 = arith.constant 5 : index
    %c0_35 = arith.constant 0 : index
    %c0_36 = arith.constant 0 : index
    %58 = vector.load %arg4[%c5, %c0_35, %c0_36] : memref<9x1x144xf32, #tpu.memory_space<vmem>>, vector<1x1x144xf32>
    %59 = vector.shape_cast %58 : vector<1x1x144xf32> to vector<1x144xf32>
    %60 = vector.shape_cast %59 : vector<1x144xf32> to vector<1x1x144xf32>
    %61 = vector.broadcast %60 : vector<1x1x144xf32> to vector<8x8x144xf32>
    %62 = arith.mulf %57, %61 : vector<8x8x144xf32>
    %63 = arith.addf %56, %62 : vector<8x8x144xf32>
    %64 = vector.extract_strided_slice %20 {offsets = [2, 0, 0], sizes = [8, 8, 144], strides = [1, 1, 1]} : vector<10x8x144xf32> to vector<8x8x144xf32>
    %c6 = arith.constant 6 : index
    %c0_37 = arith.constant 0 : index
    %c0_38 = arith.constant 0 : index
    %65 = vector.load %arg4[%c6, %c0_37, %c0_38] : memref<9x1x144xf32, #tpu.memory_space<vmem>>, vector<1x1x144xf32>
    %66 = vector.shape_cast %65 : vector<1x1x144xf32> to vector<1x144xf32>
    %67 = vector.shape_cast %66 : vector<1x144xf32> to vector<1x1x144xf32>
    %68 = vector.broadcast %67 : vector<1x1x144xf32> to vector<8x8x144xf32>
    %69 = arith.mulf %64, %68 : vector<8x8x144xf32>
    %70 = arith.addf %63, %69 : vector<8x8x144xf32>
    %71 = vector.extract_strided_slice %21 {offsets = [2, 0, 0], sizes = [8, 8, 144], strides = [1, 1, 1]} : vector<10x8x144xf32> to vector<8x8x144xf32>
    %c7 = arith.constant 7 : index
    %c0_39 = arith.constant 0 : index
    %c0_40 = arith.constant 0 : index
    %72 = vector.load %arg4[%c7, %c0_39, %c0_40] : memref<9x1x144xf32, #tpu.memory_space<vmem>>, vector<1x1x144xf32>
    %73 = vector.shape_cast %72 : vector<1x1x144xf32> to vector<1x144xf32>
    %74 = vector.shape_cast %73 : vector<1x144xf32> to vector<1x1x144xf32>
    %75 = vector.broadcast %74 : vector<1x1x144xf32> to vector<8x8x144xf32>
    %76 = arith.mulf %71, %75 : vector<8x8x144xf32>
    %77 = arith.addf %70, %76 : vector<8x8x144xf32>
    %78 = vector.extract_strided_slice %22 {offsets = [2, 0, 0], sizes = [8, 8, 144], strides = [1, 1, 1]} : vector<10x8x144xf32> to vector<8x8x144xf32>
    %c8 = arith.constant 8 : index
    %c0_41 = arith.constant 0 : index
    %c0_42 = arith.constant 0 : index
    %79 = vector.load %arg4[%c8, %c0_41, %c0_42] : memref<9x1x144xf32, #tpu.memory_space<vmem>>, vector<1x1x144xf32>
    %80 = vector.shape_cast %79 : vector<1x1x144xf32> to vector<1x144xf32>
    %81 = vector.shape_cast %80 : vector<1x144xf32> to vector<1x1x144xf32>
    %82 = vector.broadcast %81 : vector<1x1x144xf32> to vector<8x8x144xf32>
    %83 = arith.mulf %78, %82 : vector<8x8x144xf32>
    %84 = arith.addf %77, %83 : vector<8x8x144xf32>
    %c0_43 = arith.constant 0 : index
    %c0_44 = arith.constant 0 : index
    %85 = vector.load %arg5[%c0_43, %c0_44] : memref<1x144xf32, #tpu.memory_space<vmem>>, vector<1x144xf32>
    %86 = vector.shape_cast %85 : vector<1x144xf32> to vector<1x1x144xf32>
    %87 = vector.broadcast %86 : vector<1x1x144xf32> to vector<8x8x144xf32>
    %88 = arith.addf %84, %87 : vector<8x8x144xf32>
    %89 = arith.negf %88 : vector<8x8x144xf32>
    %90 = math.exp %89 : vector<8x8x144xf32>
    %cst_45 = arith.constant 1.000000e+00 : f32
    %91 = vector.broadcast %cst_45 : f32 to vector<8x8x144xf32>
    %92 = arith.addf %91, %90 : vector<8x8x144xf32>
    %93 = arith.divf %91, %92 : vector<8x8x144xf32>
    %94 = arith.mulf %88, %93 : vector<8x8x144xf32>
    %95 = vector.shape_cast %94 : vector<8x8x144xf32> to vector<64x144xf32>
    %cst_46 = arith.constant dense<0.000000e+00> : vector<144xf32>
    %96 = vector.multi_reduction <add>, %95, %cst_46 [0] : vector<64x144xf32> to vector<144xf32>
    %97 = vector.shape_cast %96 : vector<144xf32> to vector<1x144xf32>
    %cst_47 = arith.constant 6.400000e+01 : f32
    %98 = vector.broadcast %cst_47 : f32 to vector<1x144xf32>
    %99 = arith.divf %97, %98 : vector<1x144xf32>
    %100 = arith.truncf %99 : vector<1x144xf32> to vector<1x144xbf16>
    %c0_48 = arith.constant 0 : index
    %c0_49 = arith.constant 0 : index
    %101 = vector.load %arg6[%c0_48, %c0_49] : memref<144x6xbf16, #tpu.memory_space<vmem>>, vector<144x6xbf16>
    %cst_50 = arith.constant dense<0.000000e+00> : vector<1x6xf32>
    %102 = tpu.matmul %100, %101, %cst_50 {dimension_numbers = #tpu.dot_dimension_numbers<[1], [0], [0], [1], [0, 0, 1, 1], [], []>} : vector<1x144xbf16>, vector<144x6xbf16>, vector<1x6xf32> -> vector<1x6xf32>
    %c0_51 = arith.constant 0 : index
    %c0_52 = arith.constant 0 : index
    %103 = vector.load %arg7[%c0_51, %c0_52] : memref<1x6xf32, #tpu.memory_space<vmem>>, vector<1x6xf32>
    %104 = arith.addf %102, %103 : vector<1x6xf32>
    %105 = arith.negf %104 : vector<1x6xf32>
    %106 = math.exp %105 : vector<1x6xf32>
    %cst_53 = arith.constant 1.000000e+00 : f32
    %107 = vector.broadcast %cst_53 : f32 to vector<1x6xf32>
    %108 = arith.addf %107, %106 : vector<1x6xf32>
    %109 = arith.divf %107, %108 : vector<1x6xf32>
    %110 = arith.mulf %104, %109 : vector<1x6xf32>
    %111 = arith.truncf %110 : vector<1x6xf32> to vector<1x6xbf16>
    %c0_54 = arith.constant 0 : index
    %c0_55 = arith.constant 0 : index
    %112 = vector.load %arg8[%c0_54, %c0_55] : memref<6x144xbf16, #tpu.memory_space<vmem>>, vector<6x144xbf16>
    %cst_56 = arith.constant dense<0.000000e+00> : vector<1x144xf32>
    %113 = tpu.matmul %111, %112, %cst_56 {dimension_numbers = #tpu.dot_dimension_numbers<[1], [0], [0], [1], [0, 0, 1, 1], [], []>} : vector<1x6xbf16>, vector<6x144xbf16>, vector<1x144xf32> -> vector<1x144xf32>
    %c0_57 = arith.constant 0 : index
    %c0_58 = arith.constant 0 : index
    %114 = vector.load %arg9[%c0_57, %c0_58] : memref<1x144xf32, #tpu.memory_space<vmem>>, vector<1x144xf32>
    %115 = arith.addf %113, %114 : vector<1x144xf32>
    %116 = arith.negf %115 : vector<1x144xf32>
    %117 = math.exp %116 : vector<1x144xf32>
    %cst_59 = arith.constant 1.000000e+00 : f32
    %118 = vector.broadcast %cst_59 : f32 to vector<1x144xf32>
    %119 = arith.addf %118, %117 : vector<1x144xf32>
    %120 = arith.divf %118, %119 : vector<1x144xf32>
    %121 = vector.broadcast %120 : vector<1x144xf32> to vector<64x144xf32>
    %122 = arith.mulf %95, %121 : vector<64x144xf32>
    %123 = arith.truncf %122 : vector<64x144xf32> to vector<64x144xbf16>
    %c0_60 = arith.constant 0 : index
    %c0_61 = arith.constant 0 : index
    %124 = vector.load %arg10[%c0_60, %c0_61] : memref<144x24xbf16, #tpu.memory_space<vmem>>, vector<144x24xbf16>
    %cst_62 = arith.constant dense<0.000000e+00> : vector<64x24xf32>
    %125 = tpu.matmul %123, %124, %cst_62 {dimension_numbers = #tpu.dot_dimension_numbers<[1], [0], [0], [1], [0, 0, 1, 1], [], []>} : vector<64x144xbf16>, vector<144x24xbf16>, vector<64x24xf32> -> vector<64x24xf32>
    %c0_63 = arith.constant 0 : index
    %c0_64 = arith.constant 0 : index
    %126 = vector.load %arg11[%c0_63, %c0_64] : memref<1x24xf32, #tpu.memory_space<vmem>>, vector<1x24xf32>
    %127 = vector.broadcast %126 : vector<1x24xf32> to vector<64x24xf32>
    %128 = arith.addf %125, %127 : vector<64x24xf32>
    %129 = arith.addf %128, %3 : vector<64x24xf32>
    %130 = vector.shape_cast %129 : vector<64x24xf32> to vector<8x8x24xf32>
    %131 = arith.truncf %130 : vector<8x8x24xf32> to vector<8x8x24xbf16>
    %c0_65 = arith.constant 0 : index
    %c0_66 = arith.constant 0 : index
    %c0_67 = arith.constant 0 : index
    %c0_68 = arith.constant 0 : index
    %132 = vector.load %arg12[%c0_65, %c0_66, %c0_67, %c0_68] : memref<1x8x8x24xbf16, #tpu.memory_space<vmem>>, vector<1x8x8x24xbf16>
    %133 = vector.shape_cast %132 : vector<1x8x8x24xbf16> to vector<8x8x24xbf16>
    %134 = vector.shape_cast %131 : vector<8x8x24xbf16> to vector<1x8x8x24xbf16>
    tpu.vector_store %arg12[%c0_65, %c0_66, %c0_67, %c0_68], %134 {strides = array<i32>} : memref<1x8x8x24xbf16, #tpu.memory_space<vmem>>, vector<1x8x8x24xbf16>,
    return
  }
  func.func @transform_0(%arg0: i32) -> (i32, i32, i32, i32) {
    %c0_i32 = arith.constant 0 : i32
    %c0_i32_0 = arith.constant 0 : i32
    %c0_i32_1 = arith.constant 0 : i32
    %c0_i32_2 = arith.constant 0 : i32
    return %arg0, %c0_i32, %c0_i32_0, %c0_i32_1 : i32, i32, i32, i32
  }
  func.func @transform_1(%arg0: i32) -> (i32, i32) {
    %c0_i32 = arith.constant 0 : i32
    %c0_i32_0 = arith.constant 0 : i32
    %c0_i32_1 = arith.constant 0 : i32
    return %c0_i32, %c0_i32_0 : i32, i32
  }
  func.func @transform_2(%arg0: i32) -> (i32, i32) {
    %c0_i32 = arith.constant 0 : i32
    %c0_i32_0 = arith.constant 0 : i32
    %c0_i32_1 = arith.constant 0 : i32
    return %c0_i32, %c0_i32_0 : i32, i32
  }
  func.func @transform_3(%arg0: i32) -> (i32, i32, i32) {
    %c0_i32 = arith.constant 0 : i32
    %c0_i32_0 = arith.constant 0 : i32
    %c0_i32_1 = arith.constant 0 : i32
    %c0_i32_2 = arith.constant 0 : i32
    return %c0_i32, %c0_i32_0, %c0_i32_1 : i32, i32, i32
  }
  func.func @transform_4(%arg0: i32) -> (i32, i32) {
    %c0_i32 = arith.constant 0 : i32
    %c0_i32_0 = arith.constant 0 : i32
    %c0_i32_1 = arith.constant 0 : i32
    return %c0_i32, %c0_i32_0 : i32, i32
  }
  func.func @transform_5(%arg0: i32) -> (i32, i32) {
    %c0_i32 = arith.constant 0 : i32
    %c0_i32_0 = arith.constant 0 : i32
    %c0_i32_1 = arith.constant 0 : i32
    return %c0_i32, %c0_i32_0 : i32, i32
  }
  func.func @transform_6(%arg0: i32) -> (i32, i32) {
    %c0_i32 = arith.constant 0 : i32
    %c0_i32_0 = arith.constant 0 : i32
    %c0_i32_1 = arith.constant 0 : i32
    return %c0_i32, %c0_i32_0 : i32, i32
  }
  func.func @transform_7(%arg0: i32) -> (i32, i32) {
    %c0_i32 = arith.constant 0 : i32
    %c0_i32_0 = arith.constant 0 : i32
    %c0_i32_1 = arith.constant 0 : i32
    return %c0_i32, %c0_i32_0 : i32, i32
  }
  func.func @transform_8(%arg0: i32) -> (i32, i32) {
    %c0_i32 = arith.constant 0 : i32
    %c0_i32_0 = arith.constant 0 : i32
    %c0_i32_1 = arith.constant 0 : i32
    return %c0_i32, %c0_i32_0 : i32, i32
  }
  func.func @transform_9(%arg0: i32) -> (i32, i32) {
    %c0_i32 = arith.constant 0 : i32
    %c0_i32_0 = arith.constant 0 : i32
    %c0_i32_1 = arith.constant 0 : i32
    return %c0_i32, %c0_i32_0 : i32, i32
  }
  func.func @transform_10(%arg0: i32) -> (i32, i32) {
    %c0_i32 = arith.constant 0 : i32
    %c0_i32_0 = arith.constant 0 : i32
    %c0_i32_1 = arith.constant 0 : i32
    return %c0_i32, %c0_i32_0 : i32, i32
  }
  func.func @transform_11(%arg0: i32) -> (i32, i32, i32, i32) {
    %c0_i32 = arith.constant 0 : i32
    %c0_i32_0 = arith.constant 0 : i32
    %c0_i32_1 = arith.constant 0 : i32
    %c0_i32_2 = arith.constant 0 : i32
    return %arg0, %c0_i32, %c0_i32_0, %c0_i32_1 : i32, i32, i32, i32
  }
}

</mosaic_0001>

<bundles_post_ra>
// kernel: sbi_detector_forward.5
= control target key start
LH: loop header
LB: loop body
LE: loop exit
PB: predicated region body
PF: predicated region fallthrough
CT: control target
= control target key end

     0   :  { %vm358_vm0 = vcmask 1044480   ;;  %vm359_vm1 = vcmask 1045504   ;;  %vm261_vm2 = vcmask 220160   ;;  %v2084_v1 = vmov 65535   ;;  %s2931_s1 = inlined_call_operand.vmem [shape: bf16[27,16], index: 1, kind: input, shape index: {}]   ;;  %s2932_s0 = inlined_call_operand.vmem [shape: bf16[512,27], index: 0, kind: input, shape index: {}]   ;;  %s2933_s2 = inlined_call_operand.vmem [shape: f32[1,16], index: 2, kind: input, shape index: {}]   ;;  %s2934_s3 = inlined_call_operand.vmem [shape: bf16[512,16], index: 3, kind: output, shape index: {}]  }
   0x1   :  { %v1793_v0 = vld [vmem:[%s2931_s1] sm:$0xff]   ;;  %v360_v2 = vsel %vm358_vm0, 4294967295, %v2084_v1  ;;  %v1794_v3 = vld [vmem:[%s2931_s1 + $0x8] sm:$0x3f]   ;;  %v1799_v10 = vld [vmem:[%s2932_s0 + $0x10] sm:$0xff]   ;;  %vm1358_vm3 = vcmask 125952  }
   0x2   :  { %1720 = vmatprep.subr.bf16.mxu0 %v1793_v0  ;;  %1788 = vmatprep.subr.bf16.mxu1 %v1793_v0  ;;  %v361_v4 = vsel %vm359_vm1, %v360_v2, 0  ;;  %v1795_v5 = vld [vmem:[%s2932_s0] sm:$0xff]   ;;  %v1797_v8 = vld [vmem:[%s2932_s0 + $0x8] sm:$0xff]   ;;  %v1800_v11 = vld [vmem:[%s2932_s0 + $0x90] sm:$0xff]  }
   0x3   :  { %1721 = vmatpush3.bf16.msra.mxu0 %v1793_v0  ;;  %1790 = vmatpush3.bf16.msra.mxu1 %v1793_v0  ;;  %v363_v6 = vand.u32 %v1794_v3, %v361_v4  ;;  %v1796_v7 = vld [vmem:[%s2932_s0 + $0x80] sm:$0xff]   ;;  %v1798_v9 = vld [vmem:[%s2932_s0 + $0x88] sm:$0xff]   ;;  %v1801_v12 = vld [vmem:[%s2932_s0 + $0x18] sm:$0xff]  }
   0x4   :  { %1724 = vmatprep.mubr.msk.bf16.mxu0 %vm261_vm2, %v1795_v5  ;;  %1756 = vmatprep.mubr.msk.bf16.mxu1 %vm261_vm2, %v1796_v7  ;;  %v1802_v13 = vld [vmem:[%s2932_s0 + $0x98] sm:$0xff]   ;;  %v1803_v14 = vld [vmem:[%s2932_s0 + $0x20] sm:$0xff]   ;;  %v1805_v16 = vld [vmem:[%s2932_s0 + $0x28] sm:$0xff]  }
   0x5   :  { %1722 = vmatprep.subr.bf16.mxu0 %v363_v6  ;;  %1789 = vmatprep.subr.bf16.mxu1 %v363_v6  ;;  %v1804_v15 = vld [vmem:[%s2932_s0 + $0xa0] sm:$0xff]   ;;  %v1806_v17 = vld [vmem:[%s2932_s0 + $0xa8] sm:$0xff]   ;;  %v1807_v18 = vld [vmem:[%s2932_s0 + $0x30] sm:$0xff]  }
   0x6   :  { %v1808_v19 = vld [vmem:[%s2932_s0 + $0xb0] sm:$0xff]   ;;  %v1809_v20 = vld [vmem:[%s2932_s0 + $0x38] sm:$0xff]   ;;  %v1811_v22 = vld [vmem:[%s2932_s0 + $0x40] sm:$0xff]  }
   0x7   :  { %1723 = vmatpush3.bf16.msra.mxu0 %v363_v6  ;;  %1791 = vmatpush3.bf16.msra.mxu1 %v363_v6  ;;  %v1810_v21 = vld [vmem:[%s2932_s0 + $0xb8] sm:$0xff]   ;;  %v1812_v23 = vld [vmem:[%s2932_s0 + $0xc0] sm:$0xff]   ;;  %v1813_v24 = vld [vmem:[%s2932_s0 + $0x48] sm:$0xff]  }
   0x8   :  { %v1814_v25 = vld [vmem:[%s2932_s0 + $0xc8] sm:$0xff]   ;;  %v1815_v26 = vld [vmem:[%s2932_s0 + $0x50] sm:$0xff]   ;;  %v1817_v28 = vld [vmem:[%s2932_s0 + $0x58] sm:$0xff]  }
   0x9   :  { %v1816_v27 = vld [vmem:[%s2932_s0 + $0xd0] sm:$0xff]   ;;  %v1818_v29 = vld [vmem:[%s2932_s0 + $0xd8] sm:$0xff]   ;;  %v1819_v30 = vld [vmem:[%s2932_s0 + $0x60] sm:$0xff]  }
   0xa   :  { %1725 = vmatmul.mubr.msk.bf16.vlgmr.msra.gmra.mrb[0].mxu0 %vm261_vm2, %v1797_v8  ;;  %1757 = vmatmul.mubr.msk.bf16.vlgmr.msra.gmra.mrb[0].mxu1 %vm261_vm2, %v1798_v9  ;;  %v1820_v31 = vld [vmem:[%s2932_s0 + $0xe0] sm:$0xff]   ;;  %v1821_v32 = vld [vmem:[%s2932_s0 + $0x68] sm:$0xff]   ;;  %v1823_v34 = vld [vmem:[%s2932_s0 + $0x70] sm:$0xff]  }
   0xb   :  { %1728 = vmatprep.mubr.msk.bf16.mxu0 %vm261_vm2, %v1799_v10  ;;  %1760 = vmatprep.mubr.msk.bf16.mxu1 %vm261_vm2, %v1800_v11  ;;  %v1822_v33 = vld [vmem:[%s2932_s0 + $0xe8] sm:$0xff]   ;;  %v1824_v35 = vld [vmem:[%s2932_s0 + $0xf0] sm:$0xff]   ;;  %v1825_v36 = vld [vmem:[%s2932_s0 + $0x78] sm:$0xff]  }
   0xc   :  { %v1826_v37 = vld [vmem:[%s2932_s0 + $0xf8] sm:$0xff]   ;;  %v2242_v38 = vld [vmem:[%s2933_s2] ss:$0 sm:$0xff] }
  0x12   :  { %1729 = vmatmul.mubr.msk.bf16.gmra.mrb[4].mxu0 %vm261_vm2, %v1801_v12  ;;  %1761 = vmatmul.mubr.msk.bf16.gmra.mrb[4].mxu1 %vm261_vm2, %v1802_v13 }
  0x13   :  { %1732 = vmatprep.mubr.msk.bf16.mxu0 %vm261_vm2, %v1803_v14  ;;  %1764 = vmatprep.mubr.msk.bf16.mxu1 %vm261_vm2, %v1804_v15 }
  0x1a   :  { %1733 = vmatmul.mubr.msk.bf16.gmra.mrb[8].mxu0 %vm261_vm2, %v1805_v16  ;;  %1765 = vmatmul.mubr.msk.bf16.gmra.mrb[8].mxu1 %vm261_vm2, %v1806_v17 }
  0x1b   :  { %1736 = vmatprep.mubr.msk.bf16.mxu0 %vm261_vm2, %v1807_v18  ;;  %1768 = vmatprep.mubr.msk.bf16.mxu1 %vm261_vm2, %v1808_v19 }
  0x22   :  { %1737 = vmatmul.mubr.msk.bf16.gmra.mrb[12].mxu0 %vm261_vm2, %v1809_v20  ;;  %1769 = vmatmul.mubr.msk.bf16.gmra.mrb[12].mxu1 %vm261_vm2, %v1810_v21 }
  0x23   :  { %1740 = vmatprep.mubr.msk.bf16.mxu0 %vm261_vm2, %v1811_v22  ;;  %1772 = vmatprep.mubr.msk.bf16.mxu1 %vm261_vm2, %v1812_v23 }
  0x2a   :  { %1741 = vmatmul.mubr.msk.bf16.gmra.mrb[16].mxu0 %vm261_vm2, %v1813_v24  ;;  %1773 = vmatmul.mubr.msk.bf16.gmra.mrb[16].mxu1 %vm261_vm2, %v1814_v25 }
  0x2b   :  { %1744 = vmatprep.mubr.msk.bf16.mxu0 %vm261_vm2, %v1815_v26  ;;  %1776 = vmatprep.mubr.msk.bf16.mxu1 %vm261_vm2, %v1816_v27 }
  0x32   :  { %1745 = vmatmul.mubr.msk.bf16.gmra.mrb[20].mxu0 %vm261_vm2, %v1817_v28  ;;  %1777 = vmatmul.mubr.msk.bf16.gmra.mrb[20].mxu1 %vm261_vm2, %v1818_v29 }
  0x33   :  { %1748 = vmatprep.mubr.msk.bf16.mxu0 %vm261_vm2, %v1819_v30  ;;  %1780 = vmatprep.mubr.msk.bf16.mxu1 %vm261_vm2, %v1820_v31 }
  0x3a   :  { %1749 = vmatmul.mubr.msk.bf16.gmra.mrb[24].mxu0 %vm261_vm2, %v1821_v32  ;;  %1781 = vmatmul.mubr.msk.bf16.gmra.mrb[24].mxu1 %vm261_vm2, %v1822_v33 }
  0x3b   :  { %1752 = vmatprep.mubr.msk.bf16.mxu0 %vm261_vm2, %v1823_v34  ;;  %1784 = vmatprep.mubr.msk.bf16.mxu1 %vm261_vm2, %v1824_v35 }
  0x42   :  { %1753 = vmatmul.mubr.msk.bf16.gmra.mrb[28].mxu0 %vm261_vm2, %v1825_v36  ;;  %1785 = vmatmul.mubr.msk.bf16.gmra.mrb[28].mxu1 %vm261_vm2, %v1826_v37 }
  0xdd   :  { %v1726_v39 = vpop.f32.mrb[0].mxu0  ;;  %v1758_v40 = vpop.f32.mrb[0].mxu1 }
  0xde   :  { %v2245_v41 = vadd.f32 %v1726_v39, %v2242_v38  ;;  %v2248_v42 = vadd.f32 %v1758_v40, %v2242_v38  ;;  %v399_v43 = vpop.f32.mrb[1].mxu0  ;;  %v527_v44 = vpop.f32.mrb[1].mxu1 }
  0xdf   :  { %v2251_v45 = vadd.f32 %v2242_v38, %v399_v43  ;;  %v2254_v46 = vadd.f32 %v2242_v38, %v527_v44  ;;  %v1727_v47 = vpop.f32.mrb[2].mxu0  ;;  %v1759_v48 = vpop.f32.mrb[2].mxu1 }
  0xe0   :  { %v1496_v49 = vmul.f32 -1.442695, %v2245_v41  ;;  %v1528_v50 = vmul.f32 -1.442695, %v2248_v42  ;;  %v2259_v51 = vadd.f32 %v1727_v47, %v2242_v38  ;;  %v2262_v52 = vadd.f32 %v1759_v48, %v2242_v38  ;;  %v402_v53 = vpop.f32.mrb[3].mxu0  ;;  %v530_v54 = vpop.f32.mrb[3].mxu1 }
  0xe1   :  { %v1494_v55 = vmul.f32 -1.442695, %v2251_v45  ;;  %v1526_v56 = vmul.f32 -1.442695, %v2254_v46  ;;  %v2267_v57 = vadd.f32 %v2242_v38, %v402_v53  ;;  %v2270_v58 = vadd.f32 %v2242_v38, %v530_v54 }
  0xe2   :  { %1827 = vpow2.f32 %v1496_v49  ;;  %v1497_v59 = vmul.f32 -1.442695, %v2259_v51  ;;  %v1529_v60 = vmul.f32 -1.442695, %v2262_v52 }
  0xe3   :  { %1829 = vpow2.f32 %v1528_v50  ;;  %v1495_v61 = vmul.f32 -1.442695, %v2267_v57  ;;  %v1527_v62 = vmul.f32 -1.442695, %v2270_v58 }
  0xe4   :  { %1831 = vpow2.f32 %v1494_v55 }
  0xe5   :  { %1833 = vpow2.f32 %v1526_v56  ;;  %v1730_v63 = vpop.f32.mrb[4].mxu0  ;;  %v1762_v0 = vpop.f32.mrb[4].mxu1 }
  0xe6   :  { %1835 = vpow2.f32 %v1497_v59  ;;  %v2277_v1 = vadd.f32 %v1730_v63, %v2242_v38  ;;  %v2280_v2 = vadd.f32 %v1762_v0, %v2242_v38  ;;  %v415_v3 = vpop.f32.mrb[5].mxu0  ;;  %v543_v4 = vpop.f32.mrb[5].mxu1 }
  0xe7   :  { %1837 = vpow2.f32 %v1529_v60  ;;  %v2283_v5 = vadd.f32 %v2242_v38, %v415_v3  ;;  %v2286_v6 = vadd.f32 %v2242_v38, %v543_v4  ;;  %v1731_v7 = vpop.f32.mrb[6].mxu0  ;;  %v1763_v8 = vpop.f32.mrb[6].mxu1 }
  0xe8   :  { %1839 = vpow2.f32 %v1495_v61  ;;  %v1500_v9 = vmul.f32 -1.442695, %v2277_v1  ;;  %v1532_v10 = vmul.f32 -1.442695, %v2280_v2  ;;  %v2291_v11 = vadd.f32 %v1731_v7, %v2242_v38  ;;  %v418_v12 = vpop.f32.mrb[7].mxu0  ;;  %v546_v13 = vpop.f32.mrb[7].mxu1 }
  0xe9   :  { %1841 = vpow2.f32 %v1527_v62  ;;  %v1498_v14 = vmul.f32 -1.442695, %v2283_v5  ;;  %v1530_v15 = vmul.f32 -1.442695, %v2286_v6  ;;  %v2297_v35 = vadd.f32 %v1763_v8, %v2242_v38 }
  0xea   :  { %1843 = vpow2.f32 %v1500_v9  ;;  %v1501_v16 = vmul.f32 -1.442695, %v2291_v11  ;;  %v2300_v40 = vadd.f32 %v2242_v38, %v418_v12  ;;  %v2303_v47 = vadd.f32 %v2242_v38, %v546_v13 }
  0xeb   :  { %1845 = vpow2.f32 %v1532_v10  ;;  %v1533_v55 = vmul.f32 -1.442695, %v2297_v35 }
  0xec   :  { %v1828_v17 = vpop.eup %1827  ;;  %1847 = vpow2.f32 %v1498_v14  ;;  %v1499_v62 = vmul.f32 -1.442695, %v2300_v40  ;;  %v1531_v8 = vmul.f32 -1.442695, %v2303_v47 }
  0xed   :  { %v1830_v18 = vpop.eup %1829  ;;  %v848_v19 = vadd.f32 1.0, %v1828_v17  ;;  %1849 = vpow2.f32 %v1530_v15  ;;  %v1734_v20 = vpop.f32.mrb[8].mxu0 }
  0xee   :  { %v1766_v21 = vpop.f32.mrb[8].mxu1  ;;  %v1832_v22 = vpop.eup %1831  ;;  %v880_v23 = vadd.f32 1.0, %v1830_v18  ;;  %1851 = vpow2.f32 %v1501_v16  ;;  %v2306_v50 = vadd.f32 %v1734_v20, %v2242_v38 }
  0xef   :  { %v431_v24 = vpop.f32.mrb[9].mxu0  ;;  %v559_v25 = vpop.f32.mrb[9].mxu1  ;;  %1853 = vrcp.f32 %v848_v19  ;;  %v846_v27 = vadd.f32 1.0, %v1832_v22  ;;  %v2310_v56 = vadd.f32 %v1766_v21, %v2242_v38 }
  0xf0   :  { %v1834_v26 = vpop.eup %1833  ;;  %v1735_v28 = vpop.f32.mrb[10].mxu0  ;;  %1855 = vrcp.f32 %v880_v23  ;;  %v2316_v63 = vadd.f32 %v2242_v38, %v431_v24  ;;  %v2324_v9 = vadd.f32 %v2242_v38, %v559_v25  ;;  %v1504_v15 = vmul.f32 -1.442695, %v2306_v50 }
  0xf1   :  { %v1767_v29 = vpop.f32.mrb[10].mxu1  ;;  %v1836_v30 = vpop.eup %1835  ;;  %v878_v31 = vadd.f32 1.0, %v1834_v26  ;;  %1857 = vrcp.f32 %v846_v27  ;;  %v1536_v20 = vmul.f32 -1.442695, %v2310_v56  ;;  %v2337_v21 = vadd.f32 %v1735_v28, %v2242_v38 }
  0xf2   :  { %v434_v32 = vpop.f32.mrb[11].mxu0  ;;  %v1838_v33 = vpop.eup %1837  ;;  %v849_v34 = vadd.f32 1.0, %v1836_v30  ;;  %v1502_v25 = vmul.f32 -1.442695, %v2316_v63  ;;  %v2344_v26 = vadd.f32 %v1767_v29, %v2242_v38 }
  0xf3   :  { %v562_v36 = vpop.f32.mrb[11].mxu1  ;;  %v1840_v37 = vpop.eup %1839  ;;  %1859 = vrcp.f32 %v878_v31  ;;  %v881_v39 = vadd.f32 1.0, %v1838_v33  ;;  %v1534_v31 = vmul.f32 -1.442695, %v2324_v9  ;;  %v2349_v28 = vadd.f32 %v2242_v38, %v434_v32 }
  0xf4   :  { %v1842_v43 = vpop.eup %1841  ;;  %1861 = vrcp.f32 %v849_v34  ;;  %v847_v44 = vadd.f32 1.0, %v1840_v37 }
  0xf5   :  { %v1844_v48 = vpop.eup %1843  ;;  %1863 = vrcp.f32 %v881_v39  ;;  %v879_v49 = vadd.f32 1.0, %v1842_v43  ;;  %v2312_v59 = vpop.f32.mrb[12].mxu0 }
  0xf6   :  { %v1846_v53 = vpop.eup %1845  ;;  %1865 = vrcp.f32 %v847_v44  ;;  %v852_v54 = vadd.f32 1.0, %v1844_v48  ;;  %v2318_v0 = vpop.f32.mrb[12].mxu1 }
  0xf7   :  { %v1848_v60 = vpop.eup %1847  ;;  %1867 = vrcp.f32 %v879_v49  ;;  %v884_v61 = vadd.f32 1.0, %v1846_v53  ;;  %v2320_v3 = vpop.f32.mrb[13].mxu0  ;;  %v1537_v49 = vmul.f32 -1.442695, %v2344_v26 }
  0xf8   :  { %v1850_v4 = vpop.eup %1849  ;;  %1869 = vrcp.f32 %v852_v54  ;;  %v850_v7 = vadd.f32 1.0, %v1848_v60  ;;  %v2326_v10 = vpop.f32.mrb[13].mxu1 }
  0xf9   :  { %v2328_v12 = vpop.f32.mrb[14].mxu0  ;;  %v1852_v13 = vpop.eup %1851  ;;  %1871 = vrcp.f32 %v884_v61  ;;  %v882_v14 = vadd.f32 1.0, %v1850_v4 }
  0xfa   :  { %v2331_v16 = vpop.f32.mrb[14].mxu1  ;;  %v2333_v17 = vpop.f32.mrb[15].mxu0  ;;  %1873 = vrcp.f32 %v850_v7  ;;  %v853_v19 = vadd.f32 1.0, %v1852_v13 }
  0xfb   :  { %v1854_v18 = vpop.eup %1853  ;;  %v2339_v22 = vpop.f32.mrb[15].mxu1  ;;  %1875 = vrcp.f32 %v882_v14 }
  0xfc   :  { %v1856_v23 = vpop.eup %1855  ;;  %v1040_v24 = vmul.f32 %v1854_v18, %v2245_v41  ;;  %1877 = vrcp.f32 %v853_v19  ;;  %v2353_v41 = vadd.f32 %v2242_v38, %v562_v36 }
  0xfd   :  { %v1858_v27 = vpop.eup %1857  ;;  %v1072_v30 = vmul.f32 %v1856_v23, %v2248_v42  ;;  %1879 = vpow2.f32 %v1533_v55  ;;  %v1505_v42 = vmul.f32 -1.442695, %v2337_v21  ;;  %v2357_v44 = vpop.f32.mrb[16].mxu0 }
  0xfe   :  { %v1860_v33 = vpop.eup %1859  ;;  %v1624_v34 = vpack.c.bf16 %v1040_v24, %v1040_v24  ;;  %v1038_v37 = vmul.f32 %v1858_v27, %v2251_v45  ;;  %1881 = vpow2.f32 %v1499_v62  ;;  %v2359_v48 = vpop.f32.mrb[16].mxu1  ;;  %v1535_v23 = vmul.f32 -1.442695, %v2353_v41 }
  0xff   :  { %v1862_v39 = vpop.eup %1861  ;;  %v1656_v29 = vpack.c.bf16 %v1072_v30, %v1072_v30  ;;  %v1070_v43 = vmul.f32 %v1860_v33, %v2254_v46  ;;  %1883 = vpow2.f32 %v1531_v8  ;;  %v2367_v46 = vpop.f32.mrb[17].mxu0 }
 0x100   :  { %v1864_v32 = vpop.eup %1863  ;;  %1361 = vst.msk [vmem:[%s2934_s3 + $0x8] sm:$0xf] %vm1358_vm3, %v1624_v34  ;;  %v1622_v45 = vpack.c.bf16 %v1038_v37, %v1038_v37  ;;  %v1041_v36 = vmul.f32 %v1862_v39, %v2259_v51  ;;  %v2369_v53 = vpop.f32.mrb[17].mxu1  ;;  %1885 = vpow2.f32 %v1504_v15  ;;  %v2378_v51 = vadd.f32 %v2312_v59, %v2242_v38 }
 0x101   :  { %v1866_v54 = vpop.eup %1865  ;;  %1393 = vst.msk [vmem:[%s2934_s3 + $0x88] sm:$0xf] %vm1358_vm3, %v1656_v29  ;;  %v1654_v55 = vpack.c.bf16 %v1070_v43, %v1070_v43  ;;  %v1073_v60 = vmul.f32 %v1864_v32, %v2262_v52  ;;  %v2380_v61 = vpop.f32.mrb[18].mxu0  ;;  %1887 = vpow2.f32 %v1536_v20  ;;  %v2391_v52 = vadd.f32 %v2318_v0, %v2242_v38 }
 0x102   :  { %v2382_v62 = vpop.f32.mrb[18].mxu1  ;;  %v1868_v4 = vpop.eup %1867  ;;  %1359 = vst.msk [vmem:[%s2934_s3] sm:$0xf] %vm1358_vm3, %v1622_v45  ;;  %v1625_v7 = vpack.c.bf16 %v1041_v36, %v1041_v36  ;;  %v1039_v8 = vmul.f32 %v1866_v54, %v2267_v57  ;;  %1889 = vpow2.f32 %v1502_v25  ;;  %v1503_v57 = vmul.f32 -1.442695, %v2349_v28 }
 0x103   :  { %v2393_v59 = vpop.f32.mrb[19].mxu0  ;;  %v2395_v13 = vpop.f32.mrb[19].mxu1  ;;  %1391 = vst.msk [vmem:[%s2934_s3 + $0x80] sm:$0xf] %vm1358_vm3, %v1654_v55  ;;  %v1657_v15 = vpack.c.bf16 %v1073_v60, %v1073_v60  ;;  %v1071_v18 = vmul.f32 %v1868_v4, %v2270_v58  ;;  %1891 = vpow2.f32 %v1534_v31  ;;  %v1508_v27 = vmul.f32 -1.442695, %v2378_v51 }
 0x104   :  { %v1870_v14 = vpop.eup %1869  ;;  %1362 = vst.msk [vmem:[%s2934_s3 + $0xc] sm:$0xf] %vm1358_vm3, %v1625_v7  ;;  %v1623_v0 = vpack.c.bf16 %v1039_v8, %v1039_v8  ;;  %1893 = vpow2.f32 %v1505_v42  ;;  %v1540_v33 = vmul.f32 -1.442695, %v2391_v52 }
 0x105   :  { %v1872_v19 = vpop.eup %1871  ;;  %v1044_v20 = vmul.f32 %v1870_v14, %v2277_v1  ;;  %1394 = vst.msk [vmem:[%s2934_s3 + $0x8c] sm:$0xf] %vm1358_vm3, %v1657_v15  ;;  %v1655_v58 = vpack.c.bf16 %v1071_v18, %v1071_v18  ;;  %1895 = vpow2.f32 %v1537_v49  ;;  %v2426_v39 = vpop.f32.mrb[20].mxu0 }
 0x106   :  { %v1874_v24 = vpop.eup %1873  ;;  %v1076_v25 = vmul.f32 %v1872_v19, %v2280_v2  ;;  %1360 = vst.msk [vmem:[%s2934_s3 + $0x4] sm:$0xf] %vm1358_vm3, %v1623_v0  ;;  %1897 = vpow2.f32 %v1503_v57  ;;  %v2428_v29 = vpop.f32.mrb[20].mxu1  ;;  %v2465_v19 = vadd.f32 %v2242_v38, %v2320_v3  ;;  %v2474_v3 = vadd.f32 %v2242_v38, %v2326_v10 }
 0x107   :  { %v1876_v30 = vpop.eup %1875  ;;  %v1628_v1 = vpack.c.bf16 %v1044_v20, %v1044_v20  ;;  %v1042_v31 = vmul.f32 %v1874_v24, %v2283_v5  ;;  %1392 = vst.msk [vmem:[%s2934_s3 + $0x84] sm:$0xf] %vm1358_vm3, %v1655_v58  ;;  %1899 = vpow2.f32 %v1535_v23  ;;  %v2435_v32 = vpop.f32.mrb[21].mxu0 }
 0x108   :  { %v1878_v34 = vpop.eup %1877  ;;  %v1660_v2 = vpack.c.bf16 %v1076_v25, %v1076_v25  ;;  %v1074_v37 = vmul.f32 %v1876_v30, %v2286_v6  ;;  %v2437_v45 = vpop.f32.mrb[21].mxu1  ;;  %1901 = vpow2.f32 %v1508_v27 }
 0x109   :  { %v1880_v43 = vpop.eup %1879  ;;  %1365 = vst.msk [vmem:[%s2934_s3 + $0x18] sm:$0xf] %vm1358_vm3, %v1628_v1  ;;  %v1626_v5 = vpack.c.bf16 %v1042_v31, %v1042_v31  ;;  %v1045_v42 = vmul.f32 %v1878_v34, %v2291_v11  ;;  %v2443_v54 = vpop.f32.mrb[22].mxu0  ;;  %1903 = vpow2.f32 %v1540_v33  ;;  %v1506_v33 = vmul.f32 -1.442695, %v2465_v19 }
 0x10a   :  { %v1882_v6 = vpop.eup %1881  ;;  %1397 = vst.msk [vmem:[%s2934_s3 + $0x98] sm:$0xf] %vm1358_vm3, %v1660_v2  ;;  %v1658_v36 = vpack.c.bf16 %v1074_v37, %v1074_v37  ;;  %v885_v49 = vadd.f32 1.0, %v1880_v43  ;;  %v2445_v55 = vpop.f32.mrb[22].mxu1 }
 0x10b   :  { %v1884_v60 = vpop.eup %1883  ;;  %1363 = vst.msk [vmem:[%s2934_s3 + $0x10] sm:$0xf] %vm1358_vm3, %v1626_v5  ;;  %v1629_v11 = vpack.c.bf16 %v1045_v42, %v1045_v42  ;;  %v851_v4 = vadd.f32 1.0, %v1882_v6  ;;  %v2451_v7 = vpop.f32.mrb[23].mxu0  ;;  %v2482_v5 = vadd.f32 %v2328_v12, %v2242_v38  ;;  %v2486_v42 = vadd.f32 %v2331_v16, %v2242_v38 }
 0x10c   :  { %v2453_v8 = vpop.f32.mrb[23].mxu1  ;;  %v1886_v14 = vpop.eup %1885  ;;  %1395 = vst.msk [vmem:[%s2934_s3 + $0x90] sm:$0xf] %vm1358_vm3, %v1658_v36  ;;  %1905 = vrcp.f32 %v885_v49  ;;  %v883_v15 = vadd.f32 1.0, %v1884_v60  ;;  %v2494_v60 = vadd.f32 %v2242_v38, %v2333_v17 }
 0x10d   :  { %v1888_v18 = vpop.eup %1887  ;;  %1366 = vst.msk [vmem:[%s2934_s3 + $0x1c] sm:$0xf] %vm1358_vm3, %v1629_v11  ;;  %1907 = vrcp.f32 %v851_v4  ;;  %v856_v57 = vadd.f32 1.0, %v1886_v14  ;;  %v2467_v27 = vpop.f32.mrb[24].mxu0  ;;  %v2498_v11 = vadd.f32 %v2242_v38, %v2339_v22  ;;  %v1538_v22 = vmul.f32 -1.442695, %v2474_v3 }
 0x10e   :  { %v1890_v0 = vpop.eup %1889  ;;  %1909 = vrcp.f32 %v883_v15  ;;  %v888_v20 = vadd.f32 1.0, %v1888_v18  ;;  %v2469_v30 = vpop.f32.mrb[24].mxu1  ;;  %v2506_v15 = vadd.f32 %v2357_v44, %v2242_v38  ;;  %v2510_v18 = vadd.f32 %v2359_v48, %v2242_v38 }
 0x10f   :  { %v1892_v23 = vpop.eup %1891  ;;  %1911 = vrcp.f32 %v856_v57  ;;  %v854_v24 = vadd.f32 1.0, %v1890_v0  ;;  %v2476_v34 = vpop.f32.mrb[25].mxu0  ;;  %v2515_v0 = vadd.f32 %v2242_v38, %v2367_v46  ;;  %v1541_v44 = vmul.f32 -1.442695, %v2486_v42 }
 0x110   :  { %v1894_v58 = vpop.eup %1893  ;;  %1913 = vrcp.f32 %v888_v20  ;;  %v886_v25 = vadd.f32 1.0, %v1892_v23  ;;  %v2478_v2 = vpop.f32.mrb[25].mxu1  ;;  %v1512_v46 = vmul.f32 -1.442695, %v2506_v15 }
 0x111   :  { %v1896_v1 = vpop.eup %1895  ;;  %1915 = vrcp.f32 %v854_v24  ;;  %v857_v31 = vadd.f32 1.0, %v1894_v58  ;;  %v2488_v6 = vpop.f32.mrb[26].mxu0  ;;  %v1509_v24 = vmul.f32 -1.442695, %v2482_v5 }
 0x112   :  { %v1898_v37 = vpop.eup %1897  ;;  %1917 = vrcp.f32 %v886_v25  ;;  %v889_v43 = vadd.f32 1.0, %v1896_v1  ;;  %v2490_v36 = vpop.f32.mrb[26].mxu1  ;;  %v1507_v25 = vmul.f32 -1.442695, %v2494_v60  ;;  %v1539_v1 = vmul.f32 -1.442695, %v2498_v11 }
 0x113   :  { %v1900_v10 = vpop.eup %1899  ;;  %1919 = vrcp.f32 %v857_v31  ;;  %v855_v49 = vadd.f32 1.0, %v1898_v37  ;;  %v2500_v12 = vpop.f32.mrb[27].mxu0 }
 0x114   :  { %v2502_v4 = vpop.f32.mrb[27].mxu1  ;;  %v1902_v16 = vpop.eup %1901  ;;  %1921 = vrcp.f32 %v889_v43  ;;  %v887_v14 = vadd.f32 1.0, %v1900_v10  ;;  %v1544_v43 = vmul.f32 -1.442695, %v2510_v18 }
 0x115   :  { %v1904_v17 = vpop.eup %1903  ;;  %1923 = vrcp.f32 %v855_v49  ;;  %v860_v57 = vadd.f32 1.0, %v1902_v16  ;;  %v2525_v10 = vpop.f32.mrb[28].mxu0 }
 0x116   :  { %v1906_v20 = vpop.eup %1905  ;;  %1925 = vrcp.f32 %v887_v14  ;;  %v892_v23 = vadd.f32 1.0, %v1904_v17  ;;  %2935 = vst [vmem:[#allocation2_spill] sm:$0xff] %v2525_v10  ;;  %v2527_v49 = vpop.f32.mrb[28].mxu1  ;;  %v1510_v17 = vmul.f32 -1.442695, %v2515_v0  ;;  %v2538_v10 = vadd.f32 %v2242_v38, %v2369_v53 }
 0x117   :  { %v1908_v58 = vpop.eup %1907  ;;  %v1077_v48 = vmul.f32 %v1906_v20, %v2297_v35  ;;  %1927 = vrcp.f32 %v860_v57  ;;  %2936 = vst [vmem:[#allocation3_spill] sm:$0xff] %v2527_v49  ;;  %v2531_v57 = vpop.f32.mrb[29].mxu0 }
 0x118   :  { %v1910_v31 = vpop.eup %1909  ;;  %v1043_v37 = vmul.f32 %v1908_v58, %v2300_v40  ;;  %1929 = vrcp.f32 %v892_v23  ;;  %v2533_v20 = vpop.f32.mrb[29].mxu1 }
 0x119   :  { %v1912_v16 = vpop.eup %1911  ;;  %v1661_v14 = vpack.c.bf16 %v1077_v48, %v1077_v48  ;;  %v1075_v35 = vmul.f32 %v1910_v31, %v2303_v47  ;;  %1931 = vpow2.f32 %v1506_v33  ;;  %v2540_v49 = vpop.f32.mrb[30].mxu0 }
 0x11a   :  { %v1914_v40 = vpop.eup %1913  ;;  %v1627_v23 = vpack.c.bf16 %v1043_v37, %v1043_v37  ;;  %v1048_v58 = vmul.f32 %v1912_v16, %v2306_v50  ;;  %1933 = vpow2.f32 %v1538_v22  ;;  %v2542_v48 = vpop.f32.mrb[30].mxu1  ;;  %v2551_v50 = vadd.f32 %v2380_v61, %v2242_v38 }
 0x11b   :  { %v1916_v47 = vpop.eup %1915  ;;  %1398 = vst.msk [vmem:[%s2934_s3 + $0x9c] sm:$0xf] %vm1358_vm3, %v1661_v14  ;;  %v1659_v33 = vpack.c.bf16 %v1075_v35, %v1075_v35  ;;  %v1080_v31 = vmul.f32 %v1914_v40, %v2310_v56  ;;  %1935 = vpow2.f32 %v1509_v24  ;;  %v2553_v53 = vpop.f32.mrb[31].mxu0  ;;  %v2564_v56 = vadd.f32 %v2382_v62, %v2242_v38 }
 0x11c   :  { %v2555_v22 = vpop.f32.mrb[31].mxu1  ;;  %v1918_v37 = vpop.eup %1917  ;;  %1364 = vst.msk [vmem:[%s2934_s3 + $0x14] sm:$0xf] %vm1358_vm3, %v1627_v23  ;;  %v1632_v16 = vpack.c.bf16 %v1048_v58, %v1048_v58  ;;  %v1046_v14 = vmul.f32 %v1916_v47, %v2316_v63  ;;  %1937 = vpow2.f32 %v1541_v44  ;;  %v2573_v40 = vadd.f32 %v2242_v38, %v2393_v59 }
 0x11d   :  { %v1920_v61 = vpop.eup %1919  ;;  %1396 = vst.msk [vmem:[%s2934_s3 + $0x94] sm:$0xf] %vm1358_vm3, %v1659_v33  ;;  %v1664_v24 = vpack.c.bf16 %v1080_v31, %v1080_v31  ;;  %v1078_v35 = vmul.f32 %v1918_v37, %v2324_v9  ;;  %1939 = vpow2.f32 %v1507_v25  ;;  %v1542_v23 = vmul.f32 -1.442695, %v2538_v10 }
 0x11e   :  { %v1922_v63 = vpop.eup %1921  ;;  %1369 = vst.msk [vmem:[%s2934_s3 + $0x28] sm:$0xf] %vm1358_vm3, %v1632_v16  ;;  %v1630_v62 = vpack.c.bf16 %v1046_v14, %v1046_v14  ;;  %v1049_v44 = vmul.f32 %v1920_v61, %v2337_v21  ;;  %1941 = vpow2.f32 %v1539_v1  ;;  %v1513_v25 = vmul.f32 -1.442695, %v2551_v50 }
 0x11f   :  { %v1924_v58 = vpop.eup %1923  ;;  %1401 = vst.msk [vmem:[%s2934_s3 + $0xa8] sm:$0xf] %vm1358_vm3, %v1664_v24  ;;  %v1662_v9 = vpack.c.bf16 %v1078_v35, %v1078_v35  ;;  %v1081_v59 = vmul.f32 %v1922_v63, %v2344_v26  ;;  %1943 = vpow2.f32 %v1512_v46  ;;  %v1545_v33 = vmul.f32 -1.442695, %v2564_v56 }
 0x120   :  { %v1926_v47 = vpop.eup %1925  ;;  %1367 = vst.msk [vmem:[%s2934_s3 + $0x20] sm:$0xf] %vm1358_vm3, %v1630_v62  ;;  %v1633_v21 = vpack.c.bf16 %v1049_v44, %v1049_v44  ;;  %v1047_v1 = vmul.f32 %v1924_v58, %v2349_v28  ;;  %1945 = vpow2.f32 %v1544_v43  ;;  %v1511_v37 = vmul.f32 -1.442695, %v2573_v40 }
 0x121   :  { %v1928_v31 = vpop.eup %1927  ;;  %1399 = vst.msk [vmem:[%s2934_s3 + $0xa0] sm:$0xf] %vm1358_vm3, %v1662_v9  ;;  %v1665_v26 = vpack.c.bf16 %v1081_v59, %v1081_v59  ;;  %v1079_v46 = vmul.f32 %v1926_v47, %v2353_v41  ;;  %1947 = vpow2.f32 %v1510_v17 }
 0x122   :  { %v1930_v16 = vpop.eup %1929  ;;  %1370 = vst.msk [vmem:[%s2934_s3 + $0x2c] sm:$0xf] %vm1358_vm3, %v1633_v21  ;;  %v1631_v28 = vpack.c.bf16 %v1047_v1, %v1047_v1  ;;  %v1052_v43 = vmul.f32 %v1928_v31, %v2378_v51  ;;  %1949 = vpow2.f32 %v1542_v23 }
 0x123   :  { %v1932_v14 = vpop.eup %1931  ;;  %1402 = vst.msk [vmem:[%s2934_s3 + $0xac] sm:$0xf] %vm1358_vm3, %v1665_v26  ;;  %v1663_v41 = vpack.c.bf16 %v1079_v46, %v1079_v46  ;;  %v1084_v17 = vmul.f32 %v1930_v16, %v2391_v52  ;;  %1951 = vpow2.f32 %v1513_v25  ;;  %v2627_v25 = vadd.f32 %v2242_v38, %v2395_v13 }
 0x124   :  { %v1934_v61 = vpop.eup %1933  ;;  %1368 = vst.msk [vmem:[%s2934_s3 + $0x24] sm:$0xf] %vm1358_vm3, %v1631_v28  ;;  %v1636_v24 = vpack.c.bf16 %v1052_v43, %v1052_v43  ;;  %v858_v35 = vadd.f32 1.0, %v1932_v14  ;;  %1953 = vpow2.f32 %v1545_v33  ;;  %v2631_v46 = vadd.f32 %v2426_v39, %v2242_v38 }
 0x125   :  { %v1936_v51 = vpop.eup %1935  ;;  %1400 = vst.msk [vmem:[%s2934_s3 + $0xa4] sm:$0xf] %vm1358_vm3, %v1663_v41  ;;  %v1668_v63 = vpack.c.bf16 %v1084_v17, %v1084_v17  ;;  %v890_v62 = vadd.f32 1.0, %v1934_v61  ;;  %1955 = vpow2.f32 %v1511_v37  ;;  %v2635_v37 = vadd.f32 %v2428_v29, %v2242_v38 }
 0x126   :  { %v1938_v52 = vpop.eup %1937  ;;  %1373 = vst.msk [vmem:[%s2934_s3 + $0x38] sm:$0xf] %vm1358_vm3, %v1636_v24  ;;  %1957 = vrcp.f32 %v858_v35  ;;  %v861_v44 = vadd.f32 1.0, %v1936_v51  ;;  %v1543_v28 = vmul.f32 -1.442695, %v2627_v25  ;;  %v2640_v43 = vadd.f32 %v2242_v38, %v2435_v32 }
 0x127   :  { %v1940_v23 = vpop.eup %1939  ;;  %1405 = vst.msk [vmem:[%s2934_s3 + $0xb8] sm:$0xf] %vm1358_vm3, %v1668_v63  ;;  %1959 = vrcp.f32 %v890_v62  ;;  %v893_v58 = vadd.f32 1.0, %v1938_v52  ;;  %v2644_v39 = vadd.f32 %v2242_v38, %v2437_v45  ;;  %v2648_v29 = vadd.f32 %v2443_v54, %v2242_v38 }
 0x128   :  { %v1942_v9 = vpop.eup %1941  ;;  %1961 = vrcp.f32 %v861_v44  ;;  %v859_v59 = vadd.f32 1.0, %v1940_v23  ;;  %v2652_v24 = vadd.f32 %v2445_v55, %v2242_v38  ;;  %v2656_v32 = vadd.f32 %v2242_v38, %v2451_v7 }
 0x129   :  { %v1944_v47 = vpop.eup %1943  ;;  %1963 = vrcp.f32 %v893_v58  ;;  %v891_v21 = vadd.f32 1.0, %v1942_v9  ;;  %v1516_v45 = vmul.f32 -1.442695, %v2631_v46  ;;  %v1548_v63 = vmul.f32 -1.442695, %v2635_v37 }
 0x12a   :  { %v1946_v1 = vpop.eup %1945  ;;  %1965 = vrcp.f32 %v859_v59  ;;  %v864_v33 = vadd.f32 1.0, %v1944_v47  ;;  %v1514_v52 = vmul.f32 -1.442695, %v2640_v43  ;;  %v2663_v55 = vadd.f32 %v2242_v38, %v2453_v8 }
 0x12b   :  { %v1948_v31 = vpop.eup %1947  ;;  %1967 = vrcp.f32 %v891_v21  ;;  %v896_v26 = vadd.f32 1.0, %v1946_v1  ;;  %v1546_v23 = vmul.f32 -1.442695, %v2644_v39  ;;  %v1517_v58 = vmul.f32 -1.442695, %v2648_v29 }
 0x12c   :  { %v1950_v16 = vpop.eup %1949  ;;  %1969 = vrcp.f32 %v864_v33  ;;  %v862_v13 = vadd.f32 1.0, %v1948_v31  ;;  %v1549_v47 = vmul.f32 -1.442695, %v2652_v24  ;;  %v1515_v21 = vmul.f32 -1.442695, %v2656_v32 }
 0x12d   :  { %v1952_v14 = vpop.eup %1951  ;;  %1971 = vrcp.f32 %v896_v26  ;;  %v894_v41 = vadd.f32 1.0, %v1950_v16 }
 0x12e   :  { %v1954_v17 = vpop.eup %1953  ;;  %1973 = vrcp.f32 %v862_v13  ;;  %v865_v61 = vadd.f32 1.0, %v1952_v14 }
 0x12f   :  { %v1956_v35 = vpop.eup %1955  ;;  %1975 = vrcp.f32 %v894_v41  ;;  %v897_v51 = vadd.f32 1.0, %v1954_v17  ;;  %v2694_v17 = vadd.f32 %v2242_v38, %v2476_v34 }
 0x130   :  { %v1958_v54 = vpop.eup %1957  ;;  %1977 = vrcp.f32 %v865_v61  ;;  %v863_v62 = vadd.f32 1.0, %v1956_v35  ;;  %v2703_v35 = vadd.f32 %v2242_v38, %v2478_v2 }
 0x131   :  { %v1960_v44 = vpop.eup %1959  ;;  %v1050_v7 = vmul.f32 %v1958_v54, %v2465_v19  ;;  %1979 = vrcp.f32 %v897_v51  ;;  %v2674_v19 = vadd.f32 %v2467_v27, %v2242_v38  ;;  %v2685_v27 = vadd.f32 %v2469_v30, %v2242_v38 }
 0x132   :  { %v1962_v9 = vpop.eup %1961  ;;  %v1082_v59 = vmul.f32 %v1960_v44, %v2474_v3  ;;  %1981 = vrcp.f32 %v863_v62  ;;  %v1547_v3 = vmul.f32 -1.442695, %v2663_v55 }
 0x133   :  { %v1964_v1 = vpop.eup %1963  ;;  %v1634_v33 = vpack.c.bf16 %v1050_v7, %v1050_v7  ;;  %v1053_v8 = vmul.f32 %v1962_v9, %v2482_v5  ;;  %1983 = vpow2.f32 %v1543_v28 }
 0x134   :  { %v1966_v31 = vpop.eup %1965  ;;  %v1666_v26 = vpack.c.bf16 %v1082_v59, %v1082_v59  ;;  %v1085_v16 = vmul.f32 %v1964_v1, %v2486_v42  ;;  %1985 = vpow2.f32 %v1516_v45  ;;  %v1520_v45 = vmul.f32 -1.442695, %v2674_v19 }
 0x135   :  { %v1968_v13 = vpop.eup %1967  ;;  %1371 = vst.msk [vmem:[%s2934_s3 + $0x30] sm:$0xf] %vm1358_vm3, %v1634_v33  ;;  %v1637_v14 = vpack.c.bf16 %v1053_v8, %v1053_v8  ;;  %v1051_v5 = vmul.f32 %v1966_v31, %v2494_v60  ;;  %1987 = vpow2.f32 %v1548_v63 }
 0x136   :  { %v1970_v28 = vpop.eup %1969  ;;  %1403 = vst.msk [vmem:[%s2934_s3 + $0xb0] sm:$0xf] %vm1358_vm3, %v1666_v26  ;;  %v1669_v42 = vpack.c.bf16 %v1085_v16, %v1085_v16  ;;  %v1083_v41 = vmul.f32 %v1968_v13, %v2498_v11  ;;  %1989 = vpow2.f32 %v1514_v52  ;;  %v1518_v52 = vmul.f32 -1.442695, %v2694_v17 }
 0x137   :  { %v1972_v60 = vpop.eup %1971  ;;  %1374 = vst.msk [vmem:[%s2934_s3 + $0x3c] sm:$0xf] %vm1358_vm3, %v1637_v14  ;;  %v1635_v30 = vpack.c.bf16 %v1051_v5, %v1051_v5  ;;  %v1056_v61 = vmul.f32 %v1970_v28, %v2506_v15  ;;  %1991 = vpow2.f32 %v1546_v23  ;;  %v1552_v15 = vmul.f32 -1.442695, %v2685_v27 }
 0x138   :  { %v1974_v11 = vpop.eup %1973  ;;  %1406 = vst.msk [vmem:[%s2934_s3 + $0xbc] sm:$0xf] %vm1358_vm3, %v1669_v42  ;;  %v1667_v34 = vpack.c.bf16 %v1083_v41, %v1083_v41  ;;  %v1088_v51 = vmul.f32 %v1972_v60, %v2510_v18  ;;  %1993 = vpow2.f32 %v1517_v58  ;;  %v1550_v23 = vmul.f32 -1.442695, %v2703_v35 }
 0x139   :  { %v1976_v63 = vpop.eup %1975  ;;  %1372 = vst.msk [vmem:[%s2934_s3 + $0x34] sm:$0xf] %vm1358_vm3, %v1635_v30  ;;  %v1640_v38 = vpack.c.bf16 %v1056_v61, %v1056_v61  ;;  %v1054_v2 = vmul.f32 %v1974_v11, %v2515_v0  ;;  %1995 = vpow2.f32 %v1549_v47  ;;  %v2083_v61 = vld [vmem:[%s2933_s2] ss:$0 sm:$0xff] }
 0x13a   :  { %v1978_v54 = vpop.eup %1977  ;;  %1404 = vst.msk [vmem:[%s2934_s3 + $0xb4] sm:$0xf] %vm1358_vm3, %v1667_v34  ;;  %v1672_v18 = vpack.c.bf16 %v1088_v51, %v1088_v51  ;;  %v1086_v62 = vmul.f32 %v1976_v63, %v2538_v10  ;;  %1997 = vpow2.f32 %v1515_v21  ;;  %v2759_v11 = vadd.f32 %v2083_v61, %v2488_v6  ;;  %v2938_v6 = vld [vmem:[#allocation3_spill] sm:$0xff] }
 0x13b   :  { %v1980_v44 = vpop.eup %1979  ;;  %1377 = vst.msk [vmem:[%s2934_s3 + $0x48] sm:$0xf] %vm1358_vm3, %v1640_v38  ;;  %v1638_v0 = vpack.c.bf16 %v1054_v2, %v1054_v2  ;;  %v1057_v7 = vmul.f32 %v1978_v54, %v2551_v50  ;;  %1999 = vpow2.f32 %v1547_v3  ;;  %v2762_v34 = vadd.f32 %v2083_v61, %v2490_v36  ;;  %v2937_v54 = vld [vmem:[#allocation2_spill] sm:$0xff] }
 0x13c   :  { %v1982_v58 = vpop.eup %1981  ;;  %1409 = vst.msk [vmem:[%s2934_s3 + $0xc8] sm:$0xf] %vm1358_vm3, %v1672_v18  ;;  %v1670_v10 = vpack.c.bf16 %v1086_v62, %v1086_v62  ;;  %v1089_v9 = vmul.f32 %v1980_v44, %v2564_v56  ;;  %2001 = vpow2.f32 %v1520_v45  ;;  %v2765_v63 = vadd.f32 %v2083_v61, %v2500_v12 }
 0x13d   :  { %v1984_v59 = vpop.eup %1983  ;;  %1375 = vst.msk [vmem:[%s2934_s3 + $0x40] sm:$0xf] %vm1358_vm3, %v1638_v0  ;;  %v1641_v50 = vpack.c.bf16 %v1057_v7, %v1057_v7  ;;  %v1055_v47 = vmul.f32 %v1982_v58, %v2573_v40  ;;  %2003 = vpow2.f32 %v1552_v15  ;;  %v2768_v38 = vadd.f32 %v2083_v61, %v2502_v4 }
 0x13e   :  { %v1986_v21 = vpop.eup %1985  ;;  %1407 = vst.msk [vmem:[%s2934_s3 + $0xc0] sm:$0xf] %vm1358_vm3, %v1670_v10  ;;  %v1673_v1 = vpack.c.bf16 %v1089_v9, %v1089_v9  ;;  %v895_v33 = vadd.f32 1.0, %v1984_v59  ;;  %2005 = vpow2.f32 %v1518_v52  ;;  %v2771_v18 = vadd.f32 %v2083_v61, %v2937_v54 }
 0x13f   :  { %v1988_v56 = vpop.eup %1987  ;;  %1378 = vst.msk [vmem:[%s2934_s3 + $0x4c] sm:$0xf] %vm1358_vm3, %v1641_v50  ;;  %v1639_v8 = vpack.c.bf16 %v1055_v47, %v1055_v47  ;;  %v868_v31 = vadd.f32 1.0, %v1986_v21  ;;  %2007 = vpow2.f32 %v1550_v23  ;;  %v2774_v62 = vadd.f32 %v2083_v61, %v2938_v6 }
 0x140   :  { %v1990_v40 = vpop.eup %1989  ;;  %1410 = vst.msk [vmem:[%s2934_s3 + $0xcc] sm:$0xf] %vm1358_vm3, %v1673_v1  ;;  %2009 = vrcp.f32 %v895_v33  ;;  %v900_v26 = vadd.f32 1.0, %v1988_v56  ;;  %v2777_v44 = vadd.f32 %v2083_v61, %v2531_v57  ;;  %v2780_v12 = vadd.f32 %v2083_v61, %v2533_v20 }
 0x141   :  { %v1992_v16 = vpop.eup %1991  ;;  %1376 = vst.msk [vmem:[%s2934_s3 + $0x44] sm:$0xf] %vm1358_vm3, %v1639_v8  ;;  %2011 = vrcp.f32 %v868_v31  ;;  %v866_v3 = vadd.f32 1.0, %v1990_v40  ;;  %v1521_v7 = vmul.f32 -1.442695, %v2759_v11 }
 0x142   :  { %v1994_v13 = vpop.eup %1993  ;;  %2013 = vrcp.f32 %v900_v26  ;;  %v898_v14 = vadd.f32 1.0, %v1992_v16  ;;  %v1553_v23 = vmul.f32 -1.442695, %v2762_v34  ;;  %v1519_v9 = vmul.f32 -1.442695, %v2765_v63 }
 0x143   :  { %v1996_v5 = vpop.eup %1995  ;;  %2015 = vrcp.f32 %v866_v3  ;;  %v869_v28 = vadd.f32 1.0, %v1994_v13  ;;  %v1551_v59 = vmul.f32 -1.442695, %v2768_v38  ;;  %v1524_v20 = vmul.f32 -1.442695, %v2771_v18 }
 0x144   :  { %v1998_v42 = vpop.eup %1997  ;;  %2017 = vrcp.f32 %v898_v14  ;;  %v901_v41 = vadd.f32 1.0, %v1996_v5  ;;  %v1556_v47 = vmul.f32 -1.442695, %v2774_v62  ;;  %v1522_v33 = vmul.f32 -1.442695, %v2777_v44 }
 0x145   :  { %v2000_v60 = vpop.eup %1999  ;;  %2019 = vrcp.f32 %v869_v28  ;;  %v867_v30 = vadd.f32 1.0, %v1998_v42  ;;  %v1554_v56 = vmul.f32 -1.442695, %v2780_v12  ;;  %v2814_v28 = vadd.f32 %v2083_v61, %v2555_v22 }
 0x146   :  { %v2002_v51 = vpop.eup %2001  ;;  %2021 = vrcp.f32 %v901_v41  ;;  %v899_v45 = vadd.f32 1.0, %v2000_v60 }
 0x147   :  { %v2004_v2 = vpop.eup %2003  ;;  %2023 = vrcp.f32 %v867_v30  ;;  %v872_v15 = vadd.f32 1.0, %v2002_v51  ;;  %v1555_v54 = vmul.f32 -1.442695, %v2814_v28 }
 0x148   :  { %v2006_v36 = vpop.eup %2005  ;;  %2025 = vrcp.f32 %v899_v45  ;;  %v904_v52 = vadd.f32 1.0, %v2004_v2 }
 0x149   :  { %v2008_v4 = vpop.eup %2007  ;;  %2027 = vrcp.f32 %v872_v15  ;;  %v870_v0 = vadd.f32 1.0, %v2006_v36 }
 0x14a   :  { %v2010_v58 = vpop.eup %2009  ;;  %2029 = vrcp.f32 %v904_v52  ;;  %v902_v10 = vadd.f32 1.0, %v2008_v4 }
 0x14b   :  { %v2012_v50 = vpop.eup %2011  ;;  %v1087_v57 = vmul.f32 %v2010_v58, %v2627_v25  ;;  %2031 = vrcp.f32 %v870_v0  ;;  %v2794_v25 = vadd.f32 %v2083_v61, %v2540_v49  ;;  %v2806_v49 = vadd.f32 %v2083_v61, %v2553_v53 }
 0x14c   :  { %v2014_v21 = vpop.eup %2013  ;;  %v1060_v1 = vmul.f32 %v2012_v50, %v2631_v46  ;;  %2033 = vrcp.f32 %v902_v10  ;;  %v2798_v46 = vadd.f32 %v2083_v61, %v2542_v48 }
 0x14d   :  { %v2016_v8 = vpop.eup %2015  ;;  %v1671_v31 = vpack.c.bf16 %v1087_v57, %v1087_v57  ;;  %v1092_v40 = vmul.f32 %v2014_v21, %v2635_v37  ;;  %2035 = vpow2.f32 %v1521_v7  ;;  %v1525_v41 = vmul.f32 -1.442695, %v2794_v25 }
 0x14e   :  { %v2018_v26 = vpop.eup %2017  ;;  %v1644_v16 = vpack.c.bf16 %v1060_v1, %v1060_v1  ;;  %v1058_v3 = vmul.f32 %v2016_v8, %v2640_v43  ;;  %2037 = vpow2.f32 %v1553_v23  ;;  %v1557_v30 = vmul.f32 -1.442695, %v2798_v46 }
 0x14f   :  { %v2020_v13 = vpop.eup %2019  ;;  %1408 = vst.msk [vmem:[%s2934_s3 + $0xc4] sm:$0xf] %vm1358_vm3, %v1671_v31  ;;  %v1676_v14 = vpack.c.bf16 %v1092_v40, %v1092_v40  ;;  %v1090_v37 = vmul.f32 %v2018_v26, %v2644_v39  ;;  %2039 = vpow2.f32 %v1519_v9  ;;  %v1523_v45 = vmul.f32 -1.442695, %v2806_v49 }
 0x150   :  { %v2022_v5 = vpop.eup %2021  ;;  %1381 = vst.msk [vmem:[%s2934_s3 + $0x58] sm:$0xf] %vm1358_vm3, %v1644_v16  ;;  %v1642_v48 = vpack.c.bf16 %v1058_v3, %v1058_v3  ;;  %v1061_v43 = vmul.f32 %v2020_v13, %v2648_v29  ;;  %2041 = vpow2.f32 %v1551_v59 }
 0x151   :  { %v2024_v42 = vpop.eup %2023  ;;  %1413 = vst.msk [vmem:[%s2934_s3 + $0xd8] sm:$0xf] %vm1358_vm3, %v1676_v14  ;;  %v1674_v53 = vpack.c.bf16 %v1090_v37, %v1090_v37  ;;  %v1093_v39 = vmul.f32 %v2022_v5, %v2652_v24  ;;  %2043 = vpow2.f32 %v1524_v20 }
 0x152   :  { %v2026_v60 = vpop.eup %2025  ;;  %1379 = vst.msk [vmem:[%s2934_s3 + $0x50] sm:$0xf] %vm1358_vm3, %v1642_v48  ;;  %v1645_v22 = vpack.c.bf16 %v1061_v43, %v1061_v43  ;;  %v1059_v29 = vmul.f32 %v2024_v42, %v2656_v32  ;;  %2045 = vpow2.f32 %v1556_v47 }
 0x153   :  { %v2028_v61 = vpop.eup %2027  ;;  %1411 = vst.msk [vmem:[%s2934_s3 + $0xd0] sm:$0xf] %vm1358_vm3, %v1674_v53  ;;  %v1677_v24 = vpack.c.bf16 %v1093_v39, %v1093_v39  ;;  %v1091_v51 = vmul.f32 %v2026_v60, %v2663_v55  ;;  %2047 = vpow2.f32 %v1522_v33 }
 0x154   :  { %v2030_v2 = vpop.eup %2029  ;;  %1382 = vst.msk [vmem:[%s2934_s3 + $0x5c] sm:$0xf] %vm1358_vm3, %v1645_v22  ;;  %v1643_v32 = vpack.c.bf16 %v1059_v29, %v1059_v29  ;;  %v1064_v15 = vmul.f32 %v2028_v61, %v2674_v19  ;;  %2049 = vpow2.f32 %v1554_v56 }
 0x155   :  { %v2032_v6 = vpop.eup %2031  ;;  %1414 = vst.msk [vmem:[%s2934_s3 + $0xdc] sm:$0xf] %vm1358_vm3, %v1677_v24  ;;  %v1675_v55 = vpack.c.bf16 %v1091_v51, %v1091_v51  ;;  %v1096_v36 = vmul.f32 %v2030_v2, %v2685_v27  ;;  %2051 = vpow2.f32 %v1525_v41 }
 0x156   :  { %v2034_v52 = vpop.eup %2033  ;;  %1380 = vst.msk [vmem:[%s2934_s3 + $0x54] sm:$0xf] %vm1358_vm3, %v1643_v32  ;;  %v1648_v19 = vpack.c.bf16 %v1064_v15, %v1064_v15  ;;  %v1062_v4 = vmul.f32 %v2032_v6, %v2694_v17  ;;  %2053 = vpow2.f32 %v1557_v30 }
 0x157   :  { %v2036_v0 = vpop.eup %2035  ;;  %1412 = vst.msk [vmem:[%s2934_s3 + $0xd4] sm:$0xf] %vm1358_vm3, %v1675_v55  ;;  %v1680_v7 = vpack.c.bf16 %v1096_v36, %v1096_v36  ;;  %v1094_v27 = vmul.f32 %v2034_v52, %v2703_v35  ;;  %2055 = vpow2.f32 %v1523_v45 }
 0x158   :  { %v2038_v23 = vpop.eup %2037  ;;  %1385 = vst.msk [vmem:[%s2934_s3 + $0x68] sm:$0xf] %vm1358_vm3, %v1648_v19  ;;  %v1646_v58 = vpack.c.bf16 %v1062_v4, %v1062_v4  ;;  %v873_v10 = vadd.f32 1.0, %v2036_v0  ;;  %2057 = vpow2.f32 %v1555_v54 }
 0x159   :  { %v2040_v17 = vpop.eup %2039  ;;  %1417 = vst.msk [vmem:[%s2934_s3 + $0xe8] sm:$0xf] %vm1358_vm3, %v1680_v7  ;;  %v1678_v9 = vpack.c.bf16 %v1094_v27, %v1094_v27  ;;  %v905_v59 = vadd.f32 1.0, %v2038_v23 }
 0x15a   :  { %v2042_v50 = vpop.eup %2041  ;;  %1383 = vst.msk [vmem:[%s2934_s3 + $0x60] sm:$0xf] %vm1358_vm3, %v1646_v58  ;;  %2059 = vrcp.f32 %v873_v10  ;;  %v871_v35 = vadd.f32 1.0, %v2040_v17 }
 0x15b   :  { %v2044_v57 = vpop.eup %2043  ;;  %1415 = vst.msk [vmem:[%s2934_s3 + $0xe0] sm:$0xf] %vm1358_vm3, %v1678_v9  ;;  %2061 = vrcp.f32 %v905_v59  ;;  %v903_v20 = vadd.f32 1.0, %v2042_v50 }
 0x15c   :  { %v2046_v47 = vpop.eup %2045  ;;  %2063 = vrcp.f32 %v871_v35  ;;  %v876_v21 = vadd.f32 1.0, %v2044_v57 }
 0x15d   :  { %v2048_v1 = vpop.eup %2047  ;;  %2065 = vrcp.f32 %v903_v20  ;;  %v908_v33 = vadd.f32 1.0, %v2046_v47 }
 0x15e   :  { %v2050_v56 = vpop.eup %2049  ;;  %2067 = vrcp.f32 %v876_v21  ;;  %v874_v8 = vadd.f32 1.0, %v2048_v1 }
 0x15f   :  { %v2052_v31 = vpop.eup %2051  ;;  %2069 = vrcp.f32 %v908_v33  ;;  %v906_v40 = vadd.f32 1.0, %v2050_v56 }
 0x160   :  { %v2054_v26 = vpop.eup %2053  ;;  %2071 = vrcp.f32 %v874_v8  ;;  %v877_v16 = vadd.f32 1.0, %v2052_v31 }
 0x161   :  { %v2056_v3 = vpop.eup %2055  ;;  %2073 = vrcp.f32 %v906_v40  ;;  %v909_v13 = vadd.f32 1.0, %v2054_v26 }
 0x162   :  { %v2058_v14 = vpop.eup %2057  ;;  %2075 = vrcp.f32 %v877_v16  ;;  %v875_v37 = vadd.f32 1.0, %v2056_v3 }
 0x163   :  { %2077 = vrcp.f32 %v909_v13  ;;  %v907_v5 = vadd.f32 1.0, %v2058_v14 }
 0x164   :  { %v2060_v48 = vpop.eup %2059  ;;  %2079 = vrcp.f32 %v875_v37 }
 0x165   :  { %v2062_v43 = vpop.eup %2061  ;;  %v1065_v42 = vmul.f32 %v2060_v48, %v2759_v11  ;;  %2081 = vrcp.f32 %v907_v5 }
 0x166   :  { %v2064_v53 = vpop.eup %2063  ;;  %v1097_v39 = vmul.f32 %v2062_v43, %v2762_v34 }
 0x167   :  { %v2066_v41 = vpop.eup %2065  ;;  %v1649_v60 = vpack.c.bf16 %v1065_v42, %v1065_v42  ;;  %v1063_v22 = vmul.f32 %v2064_v53, %v2765_v63 }
 0x168   :  { %v2068_v29 = vpop.eup %2067  ;;  %v1681_v30 = vpack.c.bf16 %v1097_v39, %v1097_v39  ;;  %v1095_v61 = vmul.f32 %v2066_v41, %v2768_v38 }
 0x169   :  { %v2070_v24 = vpop.eup %2069  ;;  %1386 = vst.msk [vmem:[%s2934_s3 + $0x6c] sm:$0xf] %vm1358_vm3, %v1649_v60  ;;  %v1647_v51 = vpack.c.bf16 %v1063_v22, %v1063_v22  ;;  %v1068_v11 = vmul.f32 %v2068_v29, %v2771_v18 }
 0x16a   :  { %v2072_v45 = vpop.eup %2071  ;;  %1418 = vst.msk [vmem:[%s2934_s3 + $0xec] sm:$0xf] %vm1358_vm3, %v1681_v30  ;;  %v1679_v34 = vpack.c.bf16 %v1095_v61, %v1095_v61  ;;  %v1100_v63 = vmul.f32 %v2070_v24, %v2774_v62 }
 0x16b   :  { %v2074_v2 = vpop.eup %2073  ;;  %1384 = vst.msk [vmem:[%s2934_s3 + $0x64] sm:$0xf] %vm1358_vm3, %v1647_v51  ;;  %v1652_v38 = vpack.c.bf16 %v1068_v11, %v1068_v11  ;;  %v1066_v32 = vmul.f32 %v2072_v45, %v2777_v44 }
 0x16c   :  { %v2076_v15 = vpop.eup %2075  ;;  %1416 = vst.msk [vmem:[%s2934_s3 + $0xe4] sm:$0xf] %vm1358_vm3, %v1679_v34  ;;  %v1684_v18 = vpack.c.bf16 %v1100_v63, %v1100_v63  ;;  %v1098_v54 = vmul.f32 %v2074_v2, %v2780_v12 }
 0x16d   :  { %v2078_v6 = vpop.eup %2077  ;;  %1389 = vst.msk [vmem:[%s2934_s3 + $0x78] sm:$0xf] %vm1358_vm3, %v1652_v38  ;;  %v1650_v62 = vpack.c.bf16 %v1066_v32, %v1066_v32  ;;  %v1069_v55 = vmul.f32 %v2076_v15, %v2794_v25 }
 0x16e   :  { %v2080_v36 = vpop.eup %2079  ;;  %1421 = vst.msk [vmem:[%s2934_s3 + $0xf8] sm:$0xf] %vm1358_vm3, %v1684_v18  ;;  %v1682_v44 = vpack.c.bf16 %v1098_v54, %v1098_v54  ;;  %v1101_v52 = vmul.f32 %v2078_v6, %v2798_v46 }
 0x16f   :  { %v2082_v19 = vpop.eup %2081  ;;  %1387 = vst.msk [vmem:[%s2934_s3 + $0x70] sm:$0xf] %vm1358_vm3, %v1650_v62  ;;  %v1653_v12 = vpack.c.bf16 %v1069_v55, %v1069_v55  ;;  %v1067_v4 = vmul.f32 %v2080_v36, %v2806_v49 }
 0x170   :  { %1419 = vst.msk [vmem:[%s2934_s3 + $0xf0] sm:$0xf] %vm1358_vm3, %v1682_v44  ;;  %v1685_v25 = vpack.c.bf16 %v1101_v52, %v1101_v52  ;;  %v1099_v0 = vmul.f32 %v2082_v19, %v2814_v28 }
 0x171   :  { %1390 = vst.msk [vmem:[%s2934_s3 + $0x7c] sm:$0xf] %vm1358_vm3, %v1653_v12  ;;  %v1651_v46 = vpack.c.bf16 %v1067_v4, %v1067_v4 }
 0x172   :  { %1422 = vst.msk [vmem:[%s2934_s3 + $0xfc] sm:$0xf] %vm1358_vm3, %v1685_v25  ;;  %v1683_v49 = vpack.c.bf16 %v1099_v0, %v1099_v0 }
 0x173   :  { %1388 = vst.msk [vmem:[%s2934_s3 + $0x74] sm:$0xf] %vm1358_vm3, %v1651_v46 }
 0x174   :  { %1420 = vst.msk [vmem:[%s2934_s3 + $0xf4] sm:$0xf] %vm1358_vm3, %v1683_v49 }

// kernel: sbi_detector_forward.6
= control target key start
LH: loop header
LB: loop body
LE: loop exit
PB: predicated region body
PF: predicated region fallthrough
CT: control target
= control target key end

     0   :  { %s2691_s30 = smov 0   ;;  %s4853_s0 = inlined_call_operand.vmem [shape: bf16[2,16,16,16], index: 0, kind: input, shape index: {}]   ;;  %s4854_s1 = inlined_call_operand.vmem [shape: f32[9,1,16], index: 1, kind: input, shape index: {}]   ;;  %s4855_s2 = inlined_call_operand.vmem [shape: f32[1,16], index: 2, kind: input, shape index: {}]   ;;  %s4856_s3 = inlined_call_operand.vmem [shape: bf16[16,4], index: 3, kind: input, shape index: {}]   ;;  %s4857_s4 = inlined_call_operand.vmem [shape: f32[1,4], index: 4, kind: input, shape index: {}]   ;;  %s4858_s5 = inlined_call_operand.vmem [shape: bf16[4,16], index: 5, kind: input, shape index: {}]   ;;  %s4859_s6 = inlined_call_operand.vmem [shape: f32[1,16], index: 6, kind: input, shape index: {}]   ;;  %s4860_s7 = inlined_call_operand.vmem [shape: bf16[16,16], index: 7, kind: input, shape index: {}]   ;;  %s4861_s8 = inlined_call_operand.vmem [shape: f32[1,16], index: 8, kind: input, shape index: {}]   ;;  %s4862_s9 = inlined_call_operand.vmem [shape: bf16[2,16,16,16], index: 9, kind: output, shape index: {}]  }
   0x1 LB: > { %s2185_s10 = sadd.s32 4294967295, %s2637_s30   ;;  %p2189_p0 = scmp.ge.s32.totalorder %s2637_s30, 1  ;;  %s2637_s30 = sphi %s2691_s30, %s19_s30  }
   0x2   : > { %p287_p1 = scmp.lt.s32.totalorder %s2637_s30, 3 }
   0x4   : > { %p288_p2 = pnand %p2189_p0, %p287_p1 }
   0x6   : > { %291 = sbr.rel (%p288_p2) target bundleno = 1064 (0x428), region = 56 }
   0xd   : > { %v2493_v0 = vld [vmem:[%s4856_s3] sm:$0xff]   ;;  %v2639_v1 = vmov 0.0   ;;  %p2705_p3 = scmp.lt.s32.totalorder %s2185_s10, 1  ;;  %vm398_vm0 = vcmask 130048   ;;  %vm401_vm1 = vcmask 123904   ;;  %vm2640_vm2 = vmmov 0  }
   0xe   : > { %2435 = vmatprep.subr.bf16.mxu0 %v2639_v1  ;;  %2441 = vmatprep.subr.bf16.mxu1 %v2639_v1  ;;  %399 = vst.msk [vmem:[#allocation2] sm:$0xff] %vm398_vm0, %v2639_v1  ;;  %400 = vst.msk [vmem:[#allocation2 + $0x8] sm:$0xff] %vm398_vm0, %v2639_v1  ;;  %v3015_v50 = vld [vmem:[%s4854_s1] ss:$0 sm:$0xff]  ;;  %v3020_v53 = vld [vmem:[%s4854_s1 + $0x1] ss:$0 sm:$0xff] }
   0xf   : > { %2436 = vmatpush3.bf16.msra.mxu0 %v2493_v0  ;;  %2437 = vmatprep.mubr.msk.bf16.mxu0 %vm2640_vm2, %v2639_v1  ;;  %402 = vst.msk [vmem:[#allocation2 + $0x10] sm:$0x3] %vm401_vm1, %v2639_v1  ;;  %405 = vst.msk [vmem:[#allocation2 + $0x28] sm:$0x3] %vm401_vm1, %v2639_v1  ;;  %s5585_s10 = smov (!%p2705_p3, %s2185_s10), 1  ;;  %vm1611_vm3 = vcmask 1041408  }
  0x10   : > { %403 = vst.msk [vmem:[#allocation2 + $0x18] sm:$0xff] %vm398_vm0, %v2639_v1  ;;  %404 = vst.msk [vmem:[#allocation2 + $0x20] sm:$0xff] %vm398_vm0, %v2639_v1  ;;  %2443 = vmatprep.mubr.msk.bf16.mxu1 %vm2640_vm2, %v2639_v1  ;;  %s2301_s14 = sshll.u32 %s5585_s10, 7  ;;  %v3027_v58 = vld [vmem:[%s4854_s1 + $0x2] ss:$0 sm:$0xff]  ;;  %vm1607_vm4 = vcmask 31744  }
  0x11   : > { %406 = vst.msk [vmem:[#allocation2 + $0x30] sm:$0xff] %vm398_vm0, %v2639_v1  ;;  %407 = vst.msk [vmem:[#allocation2 + $0x38] sm:$0xff] %vm398_vm0, %v2639_v1  ;;  %s2834_s17 = scalar_lea.vmem %s4853_s0, %s2301_s14  ;;  %vm2097_vm5 = vcmask 125952   ;;  %s4698_s13 = scalar_lea.vmem %s4862_s9, %s2301_s14 }
  0x12   : > { %408 = vst.msk [vmem:[#allocation2 + $0x40] sm:$0x3] %vm401_vm1, %v2639_v1  ;;  %411 = vst.msk [vmem:[#allocation2 + $0x58] sm:$0x3] %vm401_vm1, %v2639_v1  ;;  %v2837_v2 = vld [vmem:[%s2834_s17] sm:$0xff]   ;;  %v2840_v3 = vld [vmem:[%s2834_s17 + $0x8] sm:$0xff]  }
  0x13   : > { %409 = vst.msk [vmem:[#allocation2 + $0x48] sm:$0xff] %vm398_vm0, %v2639_v1  ;;  %410 = vst.msk [vmem:[#allocation2 + $0x50] sm:$0xff] %vm398_vm0, %v2639_v1  ;;  %v2843_v4 = vld [vmem:[%s2834_s17 + $0x10] sm:$0xff]   ;;  %v4892_v5 = vunpack.c.l.bf16 %v2837_v2  ;;  %v4888_v6 = vunpack.c.h.bf16 %v2837_v2  ;;  %v4894_v7 = vunpack.c.l.bf16 %v2840_v3  ;;  %v4890_v8 = vunpack.c.h.bf16 %v2840_v3  ;;  %v2850_v9 = vld [vmem:[%s2834_s17 + $0x18] sm:$0xff]  }
  0x14   : > { %412 = vst.msk [vmem:[#allocation2 + $0x60] sm:$0xff] %vm398_vm0, %v2639_v1  ;;  %413 = vst.msk [vmem:[#allocation2 + $0x68] sm:$0xff] %vm398_vm0, %v2639_v1  ;;  %v2853_v10 = vld [vmem:[%s2834_s17 + $0x20] sm:$0xff]   ;;  %v2856_v11 = vld [vmem:[%s2834_s17 + $0x28] sm:$0xff]   ;;  %v4884_v12 = vunpack.c.l.bf16 %v2843_v4  ;;  %v4880_v13 = vunpack.c.h.bf16 %v2843_v4  ;;  %v4886_v14 = vunpack.c.l.bf16 %v2850_v9  ;;  %v4882_v15 = vunpack.c.h.bf16 %v2850_v9 }
  0x15   : > { %414 = vst.msk [vmem:[#allocation2 + $0x70] sm:$0x3] %vm401_vm1, %v2639_v1  ;;  %417 = vst.msk [vmem:[#allocation2 + $0x88] sm:$0x3] %vm401_vm1, %v2639_v1  ;;  %v2863_v16 = vld [vmem:[%s2834_s17 + $0x30] sm:$0xff]   ;;  %v2866_v17 = vld [vmem:[%s2834_s17 + $0x38] sm:$0xff]   ;;  %v4876_v19 = vunpack.c.l.bf16 %v2853_v10  ;;  %v4872_v20 = vunpack.c.h.bf16 %v2853_v10  ;;  %v4878_v21 = vunpack.c.l.bf16 %v2856_v11  ;;  %v4874_v22 = vunpack.c.h.bf16 %v2856_v11 }
  0x16   : > { %415 = vst.msk [vmem:[#allocation2 + $0x78] sm:$0xff] %vm398_vm0, %v2639_v1  ;;  %416 = vst.msk [vmem:[#allocation2 + $0x80] sm:$0xff] %vm398_vm0, %v2639_v1  ;;  %v2869_v18 = vld [vmem:[%s2834_s17 + $0x40] sm:$0xff]   ;;  %v2876_v23 = vld [vmem:[%s2834_s17 + $0x48] sm:$0xff]   ;;  %v4868_v26 = vunpack.c.l.bf16 %v2863_v16  ;;  %v4864_v27 = vunpack.c.h.bf16 %v2863_v16  ;;  %v4870_v28 = vunpack.c.l.bf16 %v2866_v17  ;;  %v4866_v29 = vunpack.c.h.bf16 %v2866_v17 }
  0x17   : > { %418 = vst.msk [vmem:[#allocation2 + $0x90] sm:$0xff] %vm398_vm0, %v2639_v1  ;;  %419 = vst.msk [vmem:[#allocation2 + $0x98] sm:$0xff] %vm398_vm0, %v2639_v1  ;;  %v2879_v24 = vld [vmem:[%s2834_s17 + $0x50] sm:$0xff]   ;;  %v2882_v25 = vld [vmem:[%s2834_s17 + $0x58] sm:$0xff]   ;;  %v4891_v32 = vunpack.c.l.bf16 %v2869_v18  ;;  %v4887_v33 = vunpack.c.h.bf16 %v2869_v18  ;;  %v4893_v34 = vunpack.c.l.bf16 %v2876_v23  ;;  %v4889_v35 = vunpack.c.h.bf16 %v2876_v23 }
  0x18   : > { %420 = vst.msk [vmem:[#allocation2 + $0xa0] sm:$0x3] %vm401_vm1, %v2639_v1  ;;  %423 = vst.msk [vmem:[#allocation2 + $0xb8] sm:$0x3] %vm401_vm1, %v2639_v1  ;;  %v2901_v30 = vld [vmem:[%s2834_s17 + $0x60] sm:$0xff]   ;;  %v2904_v31 = vld [vmem:[%s2834_s17 + $0x68] sm:$0xff]   ;;  %v4883_v38 = vunpack.c.l.bf16 %v2879_v24  ;;  %v4879_v39 = vunpack.c.h.bf16 %v2879_v24  ;;  %v4885_v40 = vunpack.c.l.bf16 %v2882_v25  ;;  %v4881_v41 = vunpack.c.h.bf16 %v2882_v25 }
  0x19   : > { %421 = vst.msk [vmem:[#allocation2 + $0xa8] sm:$0xff] %vm398_vm0, %v2639_v1  ;;  %422 = vst.msk [vmem:[#allocation2 + $0xb0] sm:$0xff] %vm398_vm0, %v2639_v1  ;;  %v2923_v36 = vld [vmem:[%s2834_s17 + $0x70] sm:$0xff]   ;;  %v2926_v37 = vld [vmem:[%s2834_s17 + $0x78] sm:$0xff]   ;;  %v4875_v42 = vunpack.c.l.bf16 %v2901_v30  ;;  %v4871_v43 = vunpack.c.h.bf16 %v2901_v30  ;;  %v4877_v44 = vunpack.c.l.bf16 %v2904_v31  ;;  %v4873_v45 = vunpack.c.h.bf16 %v2904_v31 }
  0x1a   : > { %424 = vst.msk [vmem:[#allocation2 + $0xc0] sm:$0xff] %vm398_vm0, %v2639_v1  ;;  %425 = vst.msk [vmem:[#allocation2 + $0xc8] sm:$0xff] %vm398_vm0, %v2639_v1  ;;  %v4867_v46 = vunpack.c.l.bf16 %v2923_v36  ;;  %v4863_v47 = vunpack.c.h.bf16 %v2923_v36  ;;  %v4869_v48 = vunpack.c.l.bf16 %v2926_v37  ;;  %v4865_v49 = vunpack.c.h.bf16 %v2926_v37  ;;  %v487_v51 = vld [vmem:[#allocation2] sm:$0xff]  ;;  %v488_v54 = vld [vmem:[#allocation2 + $0x8] sm:$0xff] }
  0x1b   : > { %426 = vst.msk [vmem:[#allocation2 + $0xd0] sm:$0x3] %vm401_vm1, %v2639_v1  ;;  %429 = vst.msk [vmem:[#allocation2 + $0xe8] sm:$0x3] %vm401_vm1, %v2639_v1  ;;  %v523_v52 = vld [vmem:[#allocation2 + $0x1] sm:$0xff]  ;;  %v524_v55 = vld [vmem:[#allocation2 + $0x9] sm:$0xff]  ;;  %v602_v56 = vmul.f32 %v3015_v50, %v487_v51  ;;  %v603_v62 = vmul.f32 %v3015_v50, %v488_v54 }
  0x1c   : > { %427 = vst.msk [vmem:[#allocation2 + $0xd8] sm:$0xff] %vm398_vm0, %v2639_v1  ;;  %428 = vst.msk [vmem:[#allocation2 + $0xe0] sm:$0xff] %vm398_vm0, %v2639_v1  ;;  %v642_v57 = vmul.f32 %v3020_v53, %v523_v52  ;;  %v559_v61 = vld [vmem:[#allocation2 + $0x2] sm:$0xff]  ;;  %v643_v63 = vmul.f32 %v3020_v53, %v524_v55 }
  0x1d   : > { %430 = vst.msk [vmem:[#allocation2 + $0xf0] sm:$0xff] %vm398_vm0, %v2639_v1  ;;  %431 = vst.msk [vmem:[#allocation2 + $0xf8] sm:$0xff] %vm398_vm0, %v2639_v1  ;;  %v3034_v51 = vld [vmem:[%s4854_s1 + $0x6] ss:$0 sm:$0xff] }
  0x1e   : > { %432 = vst.msk [vmem:[#allocation2 + $0x100] sm:$0x3] %vm401_vm1, %v2639_v1  ;;  %435 = vst.msk [vmem:[#allocation2 + $0x118] sm:$0x3] %vm401_vm1, %v2639_v1  ;;  %v674_v55 = vadd.f32 %v642_v57, %v602_v56 }
  0x1f   : > { %433 = vst.msk [vmem:[#allocation2 + $0x108] sm:$0xff] %vm398_vm0, %v2639_v1  ;;  %434 = vst.msk [vmem:[#allocation2 + $0x110] sm:$0xff] %vm398_vm0, %v2639_v1 }
  0x20   : > { %436 = vst.msk [vmem:[#allocation2 + $0x120] sm:$0xff] %vm398_vm0, %v2639_v1  ;;  %437 = vst.msk [vmem:[#allocation2 + $0x128] sm:$0xff] %vm398_vm0, %v2639_v1 }
  0x21   : > { %438 = vst.msk [vmem:[#allocation2 + $0x130] sm:$0x3] %vm401_vm1, %v2639_v1  ;;  %441 = vst.msk [vmem:[#allocation2 + $0x148] sm:$0x3] %vm401_vm1, %v2639_v1 }
  0x22   : > { %439 = vst.msk [vmem:[#allocation2 + $0x138] sm:$0xff] %vm398_vm0, %v2639_v1  ;;  %440 = vst.msk [vmem:[#allocation2 + $0x140] sm:$0xff] %vm398_vm0, %v2639_v1 }
  0x23   : > { %442 = vst.msk [vmem:[#allocation2 + $0x150] sm:$0xff] %vm398_vm0, %v2639_v1  ;;  %443 = vst.msk [vmem:[#allocation2 + $0x158] sm:$0xff] %vm398_vm0, %v2639_v1 }
  0x24   : > { %444 = vst.msk [vmem:[#allocation2 + $0x160] sm:$0x3] %vm401_vm1, %v2639_v1  ;;  %447 = vst.msk [vmem:[#allocation2 + $0x178] sm:$0x3] %vm401_vm1, %v2639_v1 }
  0x25   : > { %445 = vst.msk [vmem:[#allocation2 + $0x168] sm:$0xff] %vm398_vm0, %v2639_v1  ;;  %446 = vst.msk [vmem:[#allocation2 + $0x170] sm:$0xff] %vm398_vm0, %v2639_v1 }
  0x26   : > { %448 = vst.msk [vmem:[#allocation2 + $0x180] sm:$0xff] %vm398_vm0, %v2639_v1  ;;  %449 = vst.msk [vmem:[#allocation2 + $0x188] sm:$0xff] %vm398_vm0, %v2639_v1 }
  0x27   : > { %450 = vst.msk [vmem:[#allocation2 + $0x190] sm:$0x3] %vm401_vm1, %v2639_v1  ;;  %453 = vst.msk [vmem:[#allocation2 + $0x1a8] sm:$0x3] %vm401_vm1, %v2639_v1 }
  0x28   : > { %451 = vst.msk [vmem:[#allocation2 + $0x198] sm:$0xff] %vm398_vm0, %v2639_v1  ;;  %452 = vst.msk [vmem:[#allocation2 + $0x1a0] sm:$0xff] %vm398_vm0, %v2639_v1 }
  0x29   : > { %5106 = vst [vmem:[#allocation3_spill] sm:$0xff] %v2837_v2  ;;  %5107 = vst [vmem:[#allocation4_spill] sm:$0xff] %v2840_v3 }
  0x2a   : > { %5108 = vst [vmem:[#allocation5_spill] sm:$0xff] %v2843_v4  ;;  %5109 = vst [vmem:[#allocation6_spill] sm:$0xff] %v2850_v9 }
  0x2b   : > { %5110 = vst [vmem:[#allocation7_spill] sm:$0xff] %v2853_v10  ;;  %5111 = vst [vmem:[#allocation8_spill] sm:$0xff] %v2856_v11 }
  0x2c   : > { %5112 = vst [vmem:[#allocation9_spill] sm:$0xff] %v2863_v16  ;;  %5113 = vst [vmem:[#allocation10_spill] sm:$0xff] %v2866_v17 }
  0x2d   : > { %5114 = vst [vmem:[#allocation11_spill] sm:$0xff] %v2869_v18  ;;  %5115 = vst [vmem:[#allocation12_spill] sm:$0xff] %v2876_v23 }
  0x2e   : > { %5116 = vst [vmem:[#allocation13_spill] sm:$0xff] %v2879_v24  ;;  %5117 = vst [vmem:[#allocation14_spill] sm:$0xff] %v2882_v25 }
  0x2f   : > { %455 = vst.msk [vmem:[#allocation2 + $0x19] sm:$0xff] %vm398_vm0, %v4892_v5  ;;  %456 = vst.msk [vmem:[#allocation2 + $0x21] sm:$0xff] %vm398_vm0, %v4888_v6  ;;  %v521_v59 = vld [vmem:[#allocation2 + $0x198] sm:$0xff]  ;;  %v522_v60 = vld [vmem:[#allocation2 + $0x1a0] sm:$0xff] }
  0x30   : > { %457 = vst.msk [vmem:[#allocation2 + $0x31] sm:$0xff] %vm398_vm0, %v4894_v7  ;;  %458 = vst.msk [vmem:[#allocation2 + $0x39] sm:$0xff] %vm398_vm0, %v4890_v8  ;;  %v3065_v56 = vmul.f32 %v3034_v51, %v522_v60 }
  0x31   : > { %5118 = vst [vmem:[#allocation15_spill] sm:$0xff] %v2901_v30  ;;  %5119 = vst [vmem:[#allocation16_spill] sm:$0xff] %v2904_v31 }
  0x32   : > { %459 = vst.msk [vmem:[#allocation2 + $0x49] sm:$0xff] %vm398_vm0, %v4884_v12  ;;  %460 = vst.msk [vmem:[#allocation2 + $0x51] sm:$0xff] %vm398_vm0, %v4880_v13 }
  0x33   : > { %461 = vst.msk [vmem:[#allocation2 + $0x61] sm:$0xff] %vm398_vm0, %v4886_v14  ;;  %462 = vst.msk [vmem:[#allocation2 + $0x69] sm:$0xff] %vm398_vm0, %v4882_v15 }
  0x34   : > { %5120 = vst [vmem:[#allocation17_spill] sm:$0xff] %v2923_v36  ;;  %5121 = vst [vmem:[#allocation18_spill] sm:$0xff] %v2926_v37 }
  0x35   : > { %463 = vst.msk [vmem:[#allocation2 + $0x79] sm:$0xff] %vm398_vm0, %v4876_v19  ;;  %464 = vst.msk [vmem:[#allocation2 + $0x81] sm:$0xff] %vm398_vm0, %v4872_v20  ;;  %v675_v20 = vadd.f32 %v643_v63, %v603_v62 }
  0x36   : > { %465 = vst.msk [vmem:[#allocation2 + $0x91] sm:$0xff] %vm398_vm0, %v4878_v21  ;;  %466 = vst.msk [vmem:[#allocation2 + $0x99] sm:$0xff] %vm398_vm0, %v4874_v22  ;;  %v489_v0 = vld [vmem:[#allocation2 + $0x18] sm:$0xff]  ;;  %v490_v1 = vld [vmem:[#allocation2 + $0x20] sm:$0xff] }
  0x37   : > { %467 = vst.msk [vmem:[#allocation2 + $0xa9] sm:$0xff] %vm398_vm0, %v4868_v26  ;;  %468 = vst.msk [vmem:[#allocation2 + $0xb1] sm:$0xff] %vm398_vm0, %v4864_v27  ;;  %v3036_v52 = vld [vmem:[#allocation2 + $0x30] sm:$0xff]  ;;  %v3038_v27 = vld [vmem:[#allocation2 + $0x38] sm:$0xff]  ;;  %v714_v26 = vmul.f32 %v3027_v58, %v559_v61  ;;  %v3074_v62 = vmul.f32 %v3015_v50, %v489_v0 }
  0x38   : > { %469 = vst.msk [vmem:[#allocation2 + $0xc1] sm:$0xff] %vm398_vm0, %v4870_v28  ;;  %470 = vst.msk [vmem:[#allocation2 + $0xc9] sm:$0xff] %vm398_vm0, %v4866_v29  ;;  %v3059_v22 = vld [vmem:[%s4854_s1 + $0x3] ss:$0 sm:$0xff]  ;;  %v3081_v63 = vmul.f32 %v3015_v50, %v3036_v52  ;;  %v3174_v11 = vld [vmem:[#allocation2 + $0x19] sm:$0xff] }
  0x39   : > { %471 = vst.msk [vmem:[#allocation2 + $0xd9] sm:$0xff] %vm398_vm0, %v4891_v32  ;;  %472 = vst.msk [vmem:[#allocation2 + $0xe1] sm:$0xff] %vm398_vm0, %v4887_v33  ;;  %v3042_v29 = vld [vmem:[#allocation2 + $0x50] sm:$0xff]  ;;  %v3195_v2 = vld [vmem:[#allocation2 + $0x21] sm:$0xff] }
  0x3a   : > { %473 = vst.msk [vmem:[#allocation2 + $0xf1] sm:$0xff] %vm398_vm0, %v4893_v34  ;;  %474 = vst.msk [vmem:[#allocation2 + $0xf9] sm:$0xff] %vm398_vm0, %v4889_v35  ;;  %v3046_v54 = vld [vmem:[#allocation2 + $0x68] sm:$0xff]  ;;  %v3099_v13 = vmul.f32 %v3015_v50, %v3042_v29  ;;  %v3127_v35 = vadd.f32 %v714_v26, %v674_v55 }
  0x3b   : > { %475 = vst.msk [vmem:[#allocation2 + $0x109] sm:$0xff] %vm398_vm0, %v4883_v38  ;;  %476 = vst.msk [vmem:[#allocation2 + $0x111] sm:$0xff] %vm398_vm0, %v4879_v39  ;;  %v3107_v15 = vmul.f32 %v3015_v50, %v3046_v54 }
  0x3c   : > { %477 = vst.msk [vmem:[#allocation2 + $0x121] sm:$0xff] %vm398_vm0, %v4885_v40  ;;  %478 = vst.msk [vmem:[#allocation2 + $0x129] sm:$0xff] %vm398_vm0, %v4881_v41  ;;  %v3051_v28 = vld [vmem:[#allocation2 + $0x80] sm:$0xff] }
  0x3d   : > { %479 = vst.msk [vmem:[#allocation2 + $0x139] sm:$0xff] %vm398_vm0, %v4875_v42  ;;  %480 = vst.msk [vmem:[#allocation2 + $0x141] sm:$0xff] %vm398_vm0, %v4871_v43  ;;  %v3053_v43 = vld [vmem:[#allocation2 + $0x90] sm:$0xff]  ;;  %v3062_v42 = vmul.f32 %v3034_v51, %v521_v59  ;;  %v3067_v57 = vld [vmem:[#allocation2 + $0x98] sm:$0xff]  ;;  %v3085_v59 = vmul.f32 %v3015_v50, %v3038_v27  ;;  %v3121_v33 = vmul.f32 %v3015_v50, %v3051_v28 }
  0x3e   : > { %481 = vst.msk [vmem:[#allocation2 + $0x151] sm:$0xff] %vm398_vm0, %v4877_v44  ;;  %482 = vst.msk [vmem:[#allocation2 + $0x159] sm:$0xff] %vm398_vm0, %v4873_v45  ;;  %v3069_v61 = vld [vmem:[#allocation2 + $0xa8] sm:$0xff]  ;;  %v3071_v19 = vld [vmem:[#allocation2 + $0xb0] sm:$0xff]  ;;  %v3125_v6 = vmul.f32 %v3015_v50, %v3053_v43  ;;  %v3137_v34 = vmul.f32 %v3015_v50, %v3067_v57 }
  0x3f   : > { %483 = vst.msk [vmem:[#allocation2 + $0x169] sm:$0xff] %vm398_vm0, %v4867_v46  ;;  %484 = vst.msk [vmem:[#allocation2 + $0x171] sm:$0xff] %vm398_vm0, %v4863_v47  ;;  %v560_v47 = vld [vmem:[#allocation2 + $0xa] sm:$0xff]  ;;  %v3044_v46 = vld [vmem:[#allocation2 + $0x60] sm:$0xff]  ;;  %v3141_v7 = vmul.f32 %v3015_v50, %v3069_v61  ;;  %v3145_v36 = vmul.f32 %v3015_v50, %v3071_v19 }
  0x40   : > { %485 = vst.msk [vmem:[#allocation2 + $0x181] sm:$0xff] %vm398_vm0, %v4869_v48  ;;  %486 = vst.msk [vmem:[#allocation2 + $0x189] sm:$0xff] %vm398_vm0, %v4865_v49  ;;  %v3040_v49 = vld [vmem:[#allocation2 + $0x48] sm:$0xff]  ;;  %v3049_v48 = vld [vmem:[#allocation2 + $0x78] sm:$0xff]  ;;  %v715_v45 = vmul.f32 %v3027_v58, %v560_v47  ;;  %v3077_v47 = vmul.f32 %v3015_v50, %v490_v1  ;;  %v3103_v41 = vmul.f32 %v3015_v50, %v3044_v46 }
  0x41   : > { %5122 = vst [vmem:[#allocation19_spill] sm:$0xff] %v3034_v51  ;;  %5123 = vst [vmem:[#allocation20_spill] sm:$0xff] %v3036_v52  ;;  %v3087_v60 = vld [vmem:[#allocation2 + $0xc0] sm:$0xff]  ;;  %v3089_v44 = vld [vmem:[#allocation2 + $0xc8] sm:$0xff]  ;;  %v3095_v39 = vmul.f32 %v3015_v50, %v3040_v49  ;;  %v3117_v14 = vmul.f32 %v3015_v50, %v3049_v48 }
  0x42   : > { %5124 = vst [vmem:[#allocation21_spill] sm:$0xff] %v3038_v27  ;;  %5125 = vst [vmem:[#allocation22_spill] sm:$0xff] %v3040_v49  ;;  %v3091_v21 = vld [vmem:[#allocation2 + $0xd8] sm:$0xff]  ;;  %v3109_v38 = vld [vmem:[#allocation2 + $0xe0] sm:$0xff]  ;;  %v3147_v26 = vadd.f32 %v715_v45, %v675_v20  ;;  %v3157_v17 = vmul.f32 %v3015_v50, %v3087_v60  ;;  %v3161_v30 = vmul.f32 %v3015_v50, %v3089_v44 }
  0x43   : > { %5126 = vst [vmem:[#allocation23_spill] sm:$0xff] %v3042_v29  ;;  %5127 = vst [vmem:[#allocation24_spill] sm:$0xff] %v3044_v46  ;;  %v3111_v12 = vld [vmem:[#allocation2 + $0xf0] sm:$0xff]  ;;  %v3113_v40 = vld [vmem:[#allocation2 + $0xf8] sm:$0xff]  ;;  %v3165_v10 = vmul.f32 %v3015_v50, %v3091_v21  ;;  %v3168_v20 = vmul.f32 %v3059_v22, %v489_v0  ;;  %v3178_v24 = vmul.f32 %v3015_v50, %v3109_v38 }
  0x44   : > { %5128 = vst [vmem:[#allocation25_spill] sm:$0xff] %v3046_v54  ;;  %5129 = vst [vmem:[#allocation26_spill] sm:$0xff] %v3049_v48  ;;  %v3129_v8 = vld [vmem:[#allocation2 + $0x108] sm:$0xff]  ;;  %v3131_v32 = vld [vmem:[#allocation2 + $0x110] sm:$0xff]  ;;  %v3182_v4 = vmul.f32 %v3015_v50, %v3111_v12  ;;  %v3186_v25 = vmul.f32 %v3015_v50, %v3113_v40  ;;  %v3189_v0 = vmul.f32 %v3059_v22, %v490_v1 }
  0x45   : > { %5130 = vst [vmem:[#allocation27_spill] sm:$0xff] %v3051_v28  ;;  %5131 = vst [vmem:[#allocation28_spill] sm:$0xff] %v3053_v43  ;;  %v3133_v5 = vld [vmem:[#allocation2 + $0x120] sm:$0xff]  ;;  %v3149_v55 = vld [vmem:[#allocation2 + $0x128] sm:$0xff]  ;;  %v3199_v23 = vmul.f32 %v3015_v50, %v3129_v8  ;;  %v3203_v3 = vmul.f32 %v3015_v50, %v3131_v32  ;;  %v3211_v1 = vmul.f32 %v3059_v22, %v3036_v52 }
  0x46   : > { %5132 = vst [vmem:[#allocation29_spill] sm:$0xff] %v3059_v22  ;;  %5133 = vst [vmem:[#allocation30_spill] sm:$0xff] %v3062_v42  ;;  %v3151_v16 = vld [vmem:[#allocation2 + $0x138] sm:$0xff]  ;;  %v3153_v37 = vld [vmem:[#allocation2 + $0x140] sm:$0xff]  ;;  %v3217_v51 = vmul.f32 %v3015_v50, %v3149_v55 }
  0x47   : > { %5134 = vst [vmem:[#allocation31_spill] sm:$0xff] %v3065_v56  ;;  %5135 = vst [vmem:[#allocation32_spill] sm:$0xff] %v3067_v57  ;;  %v3170_v45 = vld [vmem:[#allocation2 + $0x150] sm:$0xff]  ;;  %v3172_v31 = vld [vmem:[#allocation2 + $0x158] sm:$0xff]  ;;  %v3207_v56 = vmul.f32 %v3015_v50, %v3133_v5 }
  0x48   : > { %5136 = vst [vmem:[#allocation33_spill] sm:$0xff] %v3069_v61  ;;  %5137 = vst [vmem:[#allocation34_spill] sm:$0xff] %v3071_v19  ;;  %v3191_v9 = vld [vmem:[#allocation2 + $0x168] sm:$0xff]  ;;  %v3193_v18 = vld [vmem:[#allocation2 + $0x170] sm:$0xff] }
  0x49   : > { %5138 = vst [vmem:[#allocation35_spill] sm:$0xff] %v3087_v60  ;;  %5139 = vst [vmem:[#allocation36_spill] sm:$0xff] %v3089_v44  ;;  %v3213_v42 = vld [vmem:[#allocation2 + $0x31] sm:$0xff]  ;;  %v3231_v52 = vld [vmem:[#allocation2 + $0x39] sm:$0xff] }
  0x4a   : > { %5140 = vst [vmem:[#allocation37_spill] sm:$0xff] %v3091_v21  ;;  %5141 = vst [vmem:[#allocation38_spill] sm:$0xff] %v3109_v38  ;;  %v3326_v21 = vld [vmem:[#allocation2 + $0x109] sm:$0xff]  ;;  %v3356_v61 = vld [vmem:[#allocation2 + $0x151] sm:$0xff] }
  0x4b   : > { %5142 = vst [vmem:[#allocation39_spill] sm:$0xff] %v3111_v12  ;;  %5143 = vst [vmem:[#allocation40_spill] sm:$0xff] %v3113_v40  ;;  %v3275_v40 = vld [vmem:[#allocation2 + $0x99] sm:$0xff]  ;;  %v3295_v12 = vld [vmem:[#allocation2 + $0xc1] sm:$0xff] }
  0x4c   : > { %5144 = vst [vmem:[#allocation41_spill] sm:$0xff] %v3127_v35  ;;  %5145 = vst [vmem:[#allocation42_spill] sm:$0xff] %v3129_v8  ;;  %v3235_v35 = vld [vmem:[#allocation2 + $0x51] sm:$0xff]  ;;  %v3341_v60 = vld [vmem:[#allocation2 + $0x129] sm:$0xff] }
  0x4d   : > { %5146 = vst [vmem:[#allocation43_spill] sm:$0xff] %v3131_v32  ;;  %5147 = vst [vmem:[#allocation44_spill] sm:$0xff] %v3133_v5  ;;  %v3253_v5 = vld [vmem:[#allocation2 + $0x69] sm:$0xff]  ;;  %v3255_v32 = vld [vmem:[#allocation2 + $0x79] sm:$0xff] }
  0x4e   : > { %5148 = vst [vmem:[#allocation45_spill] sm:$0xff] %v3147_v26  ;;  %5149 = vst [vmem:[#allocation46_spill] sm:$0xff] %v3149_v55  ;;  %v3225_v26 = vmul.f32 %v3015_v50, %v3153_v37  ;;  %v3239_v55 = vmul.f32 %v3015_v50, %v3170_v45  ;;  %v3273_v8 = vld [vmem:[#allocation2 + $0x91] sm:$0xff] }
  0x4f   : > { %5150 = vst [vmem:[#allocation47_spill] sm:$0xff] %v3151_v16  ;;  %5151 = vst [vmem:[#allocation48_spill] sm:$0xff] %v3153_v37  ;;  %v644_v37 = vmul.f32 %v3020_v53, %v3174_v11 }
  0x50   : > { %5152 = vst [vmem:[#allocation49_spill] sm:$0xff] %v3168_v20  ;;  %5153 = vst [vmem:[#allocation50_spill] sm:$0xff] %v3170_v45  ;;  %v3229_v20 = vmul.f32 %v3059_v22, %v3038_v27  ;;  %v3249_v27 = vmul.f32 %v3059_v22, %v3040_v49  ;;  %v3259_v45 = vmul.f32 %v3015_v50, %v3191_v9 }
  0x51   : > { %5154 = vst [vmem:[#allocation51_spill] sm:$0xff] %v3172_v31  ;;  %5155 = vst [vmem:[#allocation52_spill] sm:$0xff] %v3174_v11  ;;  %v645_v11 = vmul.f32 %v3020_v53, %v3195_v2  ;;  %v3269_v49 = vmul.f32 %v3059_v22, %v3042_v29  ;;  %v3289_v29 = vmul.f32 %v3059_v22, %v3049_v48  ;;  %v3307_v48 = vld [vmem:[#allocation2 + $0xc9] sm:$0xff] }
  0x52   : > { %5156 = vst [vmem:[#allocation53_spill] sm:$0xff] %v3189_v0  ;;  %5157 = vst [vmem:[#allocation54_spill] sm:$0xff] %v3191_v9  ;;  %v3221_v0 = vmul.f32 %v3015_v50, %v3151_v16  ;;  %v3243_v16 = vmul.f32 %v3015_v50, %v3172_v31  ;;  %v3263_v31 = vmul.f32 %v3015_v50, %v3193_v18 }
  0x53   : > { %5158 = vst [vmem:[#allocation55_spill] sm:$0xff] %v3193_v18  ;;  %5159 = vst [vmem:[#allocation56_spill] sm:$0xff] %v3195_v2  ;;  %v646_v9 = vmul.f32 %v3020_v53, %v3213_v42  ;;  %v3281_v50 = vmul.f32 %v3059_v22, %v3044_v46  ;;  %v3285_v2 = vmul.f32 %v3059_v22, %v3046_v54  ;;  %v3293_v18 = vld [vmem:[#allocation2 + $0xb1] sm:$0xff] }
  0x54   : > { %5160 = vst [vmem:[#allocation57_spill] sm:$0xff] %v3211_v1  ;;  %5161 = vst [vmem:[#allocation58_spill] sm:$0xff] %v3213_v42  ;;  %v3233_v1 = vld [vmem:[#allocation2 + $0x49] sm:$0xff]  ;;  %v647_v42 = vmul.f32 %v3020_v53, %v3231_v52  ;;  %v649_v54 = vmul.f32 %v3020_v53, %v3235_v35  ;;  %v659_v57 = vmul.f32 %v3020_v53, %v3307_v48 }
  0x55   : > { %5162 = vst [vmem:[#allocation59_spill] sm:$0xff] %v3229_v20  ;;  %5163 = vst [vmem:[#allocation60_spill] sm:$0xff] %v3231_v52  ;;  %v3251_v20 = vld [vmem:[#allocation2 + $0x61] sm:$0xff]  ;;  %v648_v46 = vmul.f32 %v3020_v53, %v3233_v1  ;;  %v651_v52 = vmul.f32 %v3020_v53, %v3253_v5 }
  0x56   : > { %5164 = vst [vmem:[#allocation61_spill] sm:$0xff] %v3233_v1  ;;  %5165 = vst [vmem:[#allocation62_spill] sm:$0xff] %v3235_v35  ;;  %v650_v38 = vmul.f32 %v3020_v53, %v3251_v20  ;;  %v652_v1 = vmul.f32 %v3020_v53, %v3255_v32  ;;  %v3320_v35 = vadd.f32 %v644_v37, %v3074_v62  ;;  %v3337_v37 = vld [vmem:[#allocation2 + $0x111] sm:$0xff]  ;;  %v3339_v62 = vld [vmem:[#allocation2 + $0x121] sm:$0xff] }
  0x57   : > { %5166 = vst [vmem:[#allocation63_spill] sm:$0xff] %v3249_v27  ;;  %5167 = vst [vmem:[#allocation64_spill] sm:$0xff] %v3251_v20  ;;  %v3271_v27 = vld [vmem:[#allocation2 + $0x81] sm:$0xff]  ;;  %v654_v20 = vmul.f32 %v3020_v53, %v3273_v8 }
  0x58   : > { %5168 = vst [vmem:[#allocation65_spill] sm:$0xff] %v3253_v5  ;;  %5169 = vst [vmem:[#allocation66_spill] sm:$0xff] %v3255_v32  ;;  %v653_v44 = vmul.f32 %v3020_v53, %v3271_v27  ;;  %v655_v5 = vmul.f32 %v3020_v53, %v3275_v40  ;;  %v3335_v32 = vadd.f32 %v645_v11, %v3077_v47  ;;  %v3352_v11 = vld [vmem:[#allocation2 + $0x139] sm:$0xff]  ;;  %v3354_v47 = vld [vmem:[#allocation2 + $0x141] sm:$0xff] }
  0x59   : > { %5170 = vst [vmem:[#allocation67_spill] sm:$0xff] %v3269_v49  ;;  %5171 = vst [vmem:[#allocation68_spill] sm:$0xff] %v3271_v27  ;;  %v3291_v49 = vld [vmem:[#allocation2 + $0xa9] sm:$0xff]  ;;  %v657_v27 = vmul.f32 %v3020_v53, %v3293_v18 }
  0x5a   : > { %5172 = vst [vmem:[#allocation69_spill] sm:$0xff] %v3273_v8  ;;  %5173 = vst [vmem:[#allocation70_spill] sm:$0xff] %v3275_v40  ;;  %v656_v19 = vmul.f32 %v3020_v53, %v3291_v49  ;;  %v658_v8 = vmul.f32 %v3020_v53, %v3295_v12  ;;  %v3350_v40 = vadd.f32 %v646_v9, %v3081_v63  ;;  %v3367_v9 = vld [vmem:[#allocation2 + $0x159] sm:$0xff]  ;;  %v3369_v63 = vld [vmem:[#allocation2 + $0x169] sm:$0xff] }
  0x5b   : > { %5174 = vst [vmem:[#allocation71_spill] sm:$0xff] %v3281_v50  ;;  %5175 = vst [vmem:[#allocation72_spill] sm:$0xff] %v3285_v2  ;;  %v3305_v2 = vmul.f32 %v3059_v22, %v3051_v28  ;;  %v3311_v50 = vld [vmem:[#allocation2 + $0xe1] sm:$0xff]  ;;  %v3322_v28 = vld [vmem:[#allocation2 + $0xf1] sm:$0xff] }
  0x5c   : > { %5176 = vst [vmem:[#allocation73_spill] sm:$0xff] %v3289_v29  ;;  %5177 = vst [vmem:[#allocation74_spill] sm:$0xff] %v3291_v49  ;;  %v3309_v29 = vld [vmem:[#allocation2 + $0xd9] sm:$0xff]  ;;  %v3371_v22 = vld [vmem:[#allocation2 + $0x171] sm:$0xff]  ;;  %v662_v43 = vmul.f32 %v3020_v53, %v3322_v28 }
  0x5d   : > { %5178 = vst [vmem:[#allocation75_spill] sm:$0xff] %v3293_v18  ;;  %5179 = vst [vmem:[#allocation76_spill] sm:$0xff] %v3295_v12  ;;  %v660_v49 = vmul.f32 %v3020_v53, %v3309_v29  ;;  %v661_v18 = vmul.f32 %v3020_v53, %v3311_v50  ;;  %v3365_v12 = vadd.f32 %v647_v42, %v3085_v59 }
  0x5e   : > { %5180 = vst [vmem:[#allocation77_spill] sm:$0xff] %v3305_v2  ;;  %5181 = vst [vmem:[#allocation78_spill] sm:$0xff] %v3307_v48  ;;  %v3324_v2 = vld [vmem:[#allocation2 + $0xf9] sm:$0xff]  ;;  %v665_v42 = vmul.f32 %v3020_v53, %v3337_v37  ;;  %v666_v59 = vmul.f32 %v3020_v53, %v3339_v62 }
  0x5f   : > { %5182 = vst [vmem:[#allocation79_spill] sm:$0xff] %v3309_v29  ;;  %5183 = vst [vmem:[#allocation80_spill] sm:$0xff] %v3311_v50  ;;  %v663_v48 = vmul.f32 %v3020_v53, %v3324_v2  ;;  %v664_v29 = vmul.f32 %v3020_v53, %v3326_v21  ;;  %v3380_v50 = vadd.f32 %v648_v46, %v3095_v39 }
  0x60   : > { %5184 = vst [vmem:[#allocation81_spill] sm:$0xff] %v3322_v28  ;;  %5185 = vst [vmem:[#allocation82_spill] sm:$0xff] %v3324_v2  ;;  %v3389_v28 = vadd.f32 %v649_v54, %v3099_v13  ;;  %v668_v2 = vmul.f32 %v3020_v53, %v3352_v11  ;;  %v670_v39 = vmul.f32 %v3020_v53, %v3356_v61 }
  0x61   : > { %5186 = vst [vmem:[#allocation83_spill] sm:$0xff] %v3326_v21  ;;  %5187 = vst [vmem:[#allocation84_spill] sm:$0xff] %v3337_v37  ;;  %v669_v21 = vmul.f32 %v3020_v53, %v3354_v47  ;;  %v3398_v46 = vadd.f32 %v650_v38, %v3103_v41  ;;  %v673_v13 = vmul.f32 %v3020_v53, %v3371_v22  ;;  %v3561_v37 = vld [vmem:[#allocation2 + $0x172] sm:$0xff] }
  0x62   : > { %5188 = vst [vmem:[#allocation85_spill] sm:$0xff] %v3339_v62  ;;  %5189 = vst [vmem:[#allocation86_spill] sm:$0xff] %v3341_v60  ;;  %v671_v62 = vmul.f32 %v3020_v53, %v3367_v9  ;;  %v3407_v54 = vadd.f32 %v651_v52, %v3107_v15  ;;  %v3417_v38 = vadd.f32 %v653_v44, %v3121_v33  ;;  %v3427_v15 = vld [vmem:[#allocation2 + $0x3a] sm:$0xff]  ;;  %v3429_v52 = vld [vmem:[#allocation2 + $0x4a] sm:$0xff] }
  0x63   : > { %5190 = vst [vmem:[#allocation87_spill] sm:$0xff] %v3352_v11  ;;  %5191 = vst [vmem:[#allocation88_spill] sm:$0xff] %v3354_v47  ;;  %v3409_v11 = vld [vmem:[#allocation2 + $0x1a] sm:$0xff]  ;;  %v3411_v47 = vld [vmem:[#allocation2 + $0x22] sm:$0xff]  ;;  %v3420_v41 = vadd.f32 %v654_v20, %v3125_v6  ;;  %v3437_v33 = vadd.f32 %v657_v27, %v3145_v36  ;;  %v3440_v6 = vadd.f32 %v658_v8, %v3157_v17 }
  0x64   : > { %5192 = vst [vmem:[#allocation89_spill] sm:$0xff] %v3356_v61  ;;  %5193 = vst [vmem:[#allocation90_spill] sm:$0xff] %v3365_v12  ;;  %v667_v12 = vmul.f32 %v3020_v53, %v3341_v60  ;;  %v672_v60 = vmul.f32 %v3020_v53, %v3369_v63  ;;  %v3414_v61 = vadd.f32 %v652_v1, %v3117_v14  ;;  %v3425_v53 = vld [vmem:[#allocation2 + $0x32] sm:$0xff]  ;;  %v3447_v44 = vld [vmem:[#allocation2 + $0x6a] sm:$0xff] }
  0x65   : > { %5194 = vst [vmem:[#allocation91_spill] sm:$0xff] %v3367_v9  ;;  %5195 = vst [vmem:[#allocation92_spill] sm:$0xff] %v3369_v63  ;;  %v3423_v63 = vadd.f32 %v655_v5, %v3137_v34  ;;  %v3434_v14 = vadd.f32 %v656_v19, %v3141_v7  ;;  %v3443_v5 = vadd.f32 %v659_v57, %v3161_v30  ;;  %v3445_v34 = vld [vmem:[#allocation2 + $0x62] sm:$0xff]  ;;  %v3449_v20 = vld [vmem:[#allocation2 + $0x7a] sm:$0xff] }
  0x66   : > { %5196 = vst [vmem:[#allocation93_spill] sm:$0xff] %v3371_v22  ;;  %5197 = vst [vmem:[#allocation94_spill] sm:$0xff] %v3409_v11  ;;  %v3431_v22 = vld [vmem:[#allocation2 + $0x52] sm:$0xff]  ;;  %v3452_v1 = vadd.f32 %v660_v49, %v3165_v10  ;;  %v3455_v7 = vadd.f32 %v661_v18, %v3178_v24  ;;  %v3458_v19 = vadd.f32 %v662_v43, %v3182_v4  ;;  %v3463_v17 = vld [vmem:[#allocation2 + $0x82] sm:$0xff] }
  0x67   : > { %5198 = vst [vmem:[#allocation95_spill] sm:$0xff] %v3411_v47  ;;  %5199 = vst [vmem:[#allocation96_spill] sm:$0xff] %v3425_v53  ;;  %v3461_v8 = vadd.f32 %v663_v48, %v3186_v25  ;;  %v3465_v27 = vld [vmem:[#allocation2 + $0x92] sm:$0xff]  ;;  %v3467_v30 = vld [vmem:[#allocation2 + $0x9a] sm:$0xff]  ;;  %v3470_v36 = vadd.f32 %v664_v29, %v3199_v23  ;;  %v3473_v10 = vadd.f32 %v665_v42, %v3203_v3 }
  0x68   : > { %5200 = vst [vmem:[#allocation97_spill] sm:$0xff] %v3427_v15  ;;  %5201 = vst [vmem:[#allocation98_spill] sm:$0xff] %v3429_v52  ;;  %v3476_v18 = vadd.f32 %v666_v59, %v3207_v56  ;;  %v3479_v4 = vadd.f32 %v667_v12, %v3217_v51  ;;  %v3481_v24 = vld [vmem:[#allocation2 + $0xaa] sm:$0xff]  ;;  %v3483_v25 = vld [vmem:[#allocation2 + $0xb2] sm:$0xff]  ;;  %v3488_v48 = vadd.f32 %v668_v2, %v3221_v0 }
  0x69   : > { %5202 = vst [vmem:[#allocation99_spill] sm:$0xff] %v3431_v22  ;;  %5203 = vst [vmem:[#allocation100_spill] sm:$0xff] %v3445_v34  ;;  %v3485_v43 = vld [vmem:[#allocation2 + $0xc2] sm:$0xff]  ;;  %v3491_v23 = vadd.f32 %v669_v21, %v3225_v26  ;;  %v3494_v3 = vadd.f32 %v670_v39, %v3239_v55  ;;  %v3497_v29 = vadd.f32 %v671_v62, %v3243_v16  ;;  %v3499_v12 = vld [vmem:[#allocation2 + $0xca] sm:$0xff] }
  0x6a   : > { %5204 = vst [vmem:[#allocation101_spill] sm:$0xff] %v3447_v44  ;;  %5205 = vst [vmem:[#allocation102_spill] sm:$0xff] %v3449_v20  ;;  %v3501_v49 = vld [vmem:[#allocation2 + $0xda] sm:$0xff]  ;;  %v3503_v51 = vld [vmem:[#allocation2 + $0xe2] sm:$0xff]  ;;  %v3506_v56 = vadd.f32 %v672_v60, %v3259_v45  ;;  %v3509_v2 = vadd.f32 %v673_v13, %v3263_v31  ;;  %v716_v21 = vmul.f32 %v3027_v58, %v3409_v11 }
  0x6b   : > { %5206 = vst [vmem:[#allocation103_spill] sm:$0xff] %v3463_v17  ;;  %5207 = vst [vmem:[#allocation104_spill] sm:$0xff] %v3465_v27  ;;  %v717_v57 = vmul.f32 %v3027_v58, %v3411_v47  ;;  %v3515_v16 = vld [vmem:[#allocation2 + $0xf2] sm:$0xff]  ;;  %v3517_v26 = vld [vmem:[#allocation2 + $0xfa] sm:$0xff]  ;;  %v718_v0 = vmul.f32 %v3027_v58, %v3425_v53  ;;  %v719_v60 = vmul.f32 %v3027_v58, %v3427_v15 }
  0x6c   : > { %5208 = vst [vmem:[#allocation105_spill] sm:$0xff] %v3467_v30  ;;  %5209 = vst [vmem:[#allocation106_spill] sm:$0xff] %v3479_v4  ;;  %v3519_v55 = vld [vmem:[#allocation2 + $0x10a] sm:$0xff]  ;;  %v720_v31 = vmul.f32 %v3027_v58, %v3429_v52  ;;  %v721_v45 = vmul.f32 %v3027_v58, %v3431_v22  ;;  %v3529_v62 = vld [vmem:[#allocation2 + $0x112] sm:$0xff]  ;;  %v722_v39 = vmul.f32 %v3027_v58, %v3445_v34 }
  0x6d   : > { %5210 = vst [vmem:[#allocation107_spill] sm:$0xff] %v3481_v24  ;;  %5211 = vst [vmem:[#allocation108_spill] sm:$0xff] %v3483_v25  ;;  %v3531_v42 = vld [vmem:[#allocation2 + $0x122] sm:$0xff]  ;;  %v3533_v59 = vld [vmem:[#allocation2 + $0x12a] sm:$0xff]  ;;  %v723_v13 = vmul.f32 %v3027_v58, %v3447_v44  ;;  %v724_v15 = vmul.f32 %v3027_v58, %v3449_v20  ;;  %v725_v52 = vmul.f32 %v3027_v58, %v3463_v17 }
  0x6e   : > { %5212 = vst [vmem:[#allocation109_spill] sm:$0xff] %v3485_v43  ;;  %5213 = vst [vmem:[#allocation110_spill] sm:$0xff] %v3488_v48  ;;  %v3543_v53 = vld [vmem:[#allocation2 + $0x13a] sm:$0xff]  ;;  %v3545_v22 = vld [vmem:[#allocation2 + $0x142] sm:$0xff]  ;;  %v726_v11 = vmul.f32 %v3027_v58, %v3465_v27  ;;  %v727_v34 = vmul.f32 %v3027_v58, %v3467_v30  ;;  %v728_v44 = vmul.f32 %v3027_v58, %v3481_v24 }
  0x6f   : > { %5214 = vst [vmem:[#allocation111_spill] sm:$0xff] %v3491_v23  ;;  %5215 = vst [vmem:[#allocation112_spill] sm:$0xff] %v3494_v3  ;;  %v3547_v47 = vld [vmem:[#allocation2 + $0x152] sm:$0xff]  ;;  %v729_v20 = vmul.f32 %v3027_v58, %v3483_v25  ;;  %v3557_v9 = vld [vmem:[#allocation2 + $0x15a] sm:$0xff]  ;;  %v731_v27 = vmul.f32 %v3027_v58, %v3499_v12  ;;  %v732_v30 = vmul.f32 %v3027_v58, %v3501_v49 }
  0x70   : > { %5216 = vst [vmem:[#allocation113_spill] sm:$0xff] %v3497_v29  ;;  %5217 = vst [vmem:[#allocation114_spill] sm:$0xff] %v3499_v12  ;;  %v3559_v17 = vld [vmem:[#allocation2 + $0x16a] sm:$0xff]  ;;  %v733_v24 = vmul.f32 %v3027_v58, %v3503_v51  ;;  %v734_v25 = vmul.f32 %v3027_v58, %v3515_v16  ;;  %v736_v29 = vmul.f32 %v3027_v58, %v3519_v55 }
  0x71   : > { %5218 = vst [vmem:[#allocation115_spill] sm:$0xff] %v3501_v49  ;;  %5219 = vst [vmem:[#allocation116_spill] sm:$0xff] %v3503_v51  ;;  %v738_v12 = vmul.f32 %v3027_v58, %v3531_v42  ;;  %v739_v49 = vmul.f32 %v3027_v58, %v3533_v59  ;;  %v740_v51 = vmul.f32 %v3027_v58, %v3543_v53  ;;  %v5234_v23 = vld [vmem:[#allocation90_spill] sm:$0xff] }
  0x72   : > { %5220 = vst [vmem:[#allocation117_spill] sm:$0xff] %v3506_v56  ;;  %5221 = vst [vmem:[#allocation118_spill] sm:$0xff] %v3509_v2  ;;  %v730_v2 = vmul.f32 %v3027_v58, %v3485_v43  ;;  %v735_v56 = vmul.f32 %v3027_v58, %v3517_v26  ;;  %v737_v43 = vmul.f32 %v3027_v58, %v3529_v62 }
  0x73   : > { %5222 = vst [vmem:[#allocation119_spill] sm:$0xff] %v3515_v16  ;;  %5223 = vst [vmem:[#allocation120_spill] sm:$0xff] %v3517_v26  ;;  %v741_v16 = vmul.f32 %v3027_v58, %v3545_v22  ;;  %v742_v26 = vmul.f32 %v3027_v58, %v3547_v47  ;;  %v749_v3 = vadd.f32 %v717_v57, %v3335_v32  ;;  %v3639_v57 = vld [vmem:[#allocation2 + $0x188] sm:$0xff] }
  0x74   : > { %5224 = vst [vmem:[#allocation121_spill] sm:$0xff] %v3519_v55  ;;  %5225 = vst [vmem:[#allocation122_spill] sm:$0xff] %v3529_v62  ;;  %v743_v55 = vmul.f32 %v3027_v58, %v3557_v9  ;;  %v744_v62 = vmul.f32 %v3027_v58, %v3559_v17  ;;  %v752_v48 = vadd.f32 %v720_v31, %v3380_v50 }
  0x75   : > { %5226 = vst [vmem:[#allocation123_spill] sm:$0xff] %v3531_v42  ;;  %5227 = vst [vmem:[#allocation124_spill] sm:$0xff] %v3533_v59  ;;  %v745_v42 = vmul.f32 %v3027_v58, %v3561_v37  ;;  %v748_v59 = vadd.f32 %v716_v21, %v3320_v35  ;;  %v755_v4 = vadd.f32 %v723_v13, %v3407_v54  ;;  %v3637_v21 = vld [vmem:[#allocation2 + $0x180] sm:$0xff]  ;;  %v5256_v13 = vld [vmem:[#allocation43_spill] sm:$0xff] }
  0x76   : > { %5228 = vst [vmem:[#allocation125_spill] sm:$0xff] %v3543_v53  ;;  %5229 = vst [vmem:[#allocation126_spill] sm:$0xff] %v3545_v22  ;;  %v750_v53 = vadd.f32 %v718_v0, %v3350_v40  ;;  %v751_v22 = vadd.f32 %v719_v60, %v5234_v23  ;;  %v757_v58 = vadd.f32 %v725_v52, %v3417_v38  ;;  %v5253_v60 = vld [vmem:[#allocation39_spill] sm:$0xff] }
  0x77   : > { %5230 = vst [vmem:[#allocation127_spill] sm:$0xff] %v3547_v47  ;;  %5231 = vst [vmem:[#allocation128_spill] sm:$0xff] %v3557_v9  ;;  %v753_v47 = vadd.f32 %v721_v45, %v3389_v28  ;;  %v754_v9 = vadd.f32 %v722_v39, %v3398_v46  ;;  %v758_v35 = vadd.f32 %v726_v11, %v3420_v41  ;;  %v5254_v45 = vld [vmem:[#allocation40_spill] sm:$0xff] }
  0x78   : > { %5232 = vst [vmem:[#allocation129_spill] sm:$0xff] %v3559_v17  ;;  %5233 = vst [vmem:[#allocation130_spill] sm:$0xff] %v3561_v37  ;;  %v756_v17 = vadd.f32 %v724_v15, %v3414_v61  ;;  %v759_v32 = vadd.f32 %v727_v34, %v3423_v63  ;;  %v760_v40 = vadd.f32 %v728_v44, %v3434_v14  ;;  %v5235_v15 = vld [vmem:[#allocation106_spill] sm:$0xff]  ;;  %v5238_v34 = vld [vmem:[#allocation112_spill] sm:$0xff] }
  0x79   : > { %v761_v23 = vadd.f32 %v729_v20, %v3437_v33  ;;  %v762_v50 = vadd.f32 %v730_v2, %v3440_v6  ;;  %v763_v28 = vadd.f32 %v731_v27, %v3443_v5  ;;  %v764_v46 = vadd.f32 %v732_v30, %v3452_v1  ;;  %v5236_v14 = vld [vmem:[#allocation110_spill] sm:$0xff]  ;;  %v5237_v6 = vld [vmem:[#allocation111_spill] sm:$0xff]  ;;  %v5239_v20 = vld [vmem:[#allocation113_spill] sm:$0xff]  ;;  %5249 = vst [vmem:[#allocation90_spill] sm:$0xff] %v3637_v21 }
  0x7a   : > { %v765_v54 = vadd.f32 %v733_v24, %v3455_v7  ;;  %v766_v61 = vadd.f32 %v734_v25, %v3458_v19  ;;  %v767_v38 = vadd.f32 %v735_v56, %v3461_v8  ;;  %v768_v11 = vadd.f32 %v736_v29, %v3470_v36  ;;  %v5240_v7 = vld [vmem:[#allocation117_spill] sm:$0xff]  ;;  %v5241_v27 = vld [vmem:[#allocation118_spill] sm:$0xff]  ;;  %v5242_v30 = vld [vmem:[#allocation28_spill] sm:$0xff]  ;;  %5250 = vst [vmem:[#allocation106_spill] sm:$0xff] %v3639_v57 }
  0x7b   : > { %v769_v63 = vadd.f32 %v737_v43, %v3473_v10  ;;  %v770_v41 = vadd.f32 %v738_v12, %v3476_v18  ;;  %v771_v52 = vadd.f32 %v739_v49, %v5235_v15  ;;  %v772_v33 = vadd.f32 %v740_v51, %v5236_v14  ;;  %v5243_v36 = vld [vmem:[#allocation29_spill] sm:$0xff]  ;;  %v5244_v10 = vld [vmem:[#allocation32_spill] sm:$0xff]  ;;  %v5246_v29 = vld [vmem:[#allocation34_spill] sm:$0xff] }
  0x7c   : > { %v773_v5 = vadd.f32 %v741_v16, %v5237_v6  ;;  %v774_v44 = vadd.f32 %v742_v26, %v5238_v34  ;;  %v775_v1 = vadd.f32 %v743_v55, %v5239_v20  ;;  %v776_v19 = vadd.f32 %v744_v62, %v5240_v7  ;;  %v5245_v25 = vld [vmem:[#allocation33_spill] sm:$0xff]  ;;  %v5247_v49 = vld [vmem:[#allocation35_spill] sm:$0xff]  ;;  %v5248_v56 = vld [vmem:[#allocation36_spill] sm:$0xff] }
  0x7d   : > { %v777_v8 = vadd.f32 %v745_v42, %v5241_v27  ;;  %v796_v24 = vmul.f32 %v5243_v36, %v5242_v30  ;;  %v797_v18 = vmul.f32 %v5243_v36, %v5244_v10  ;;  %v798_v43 = vmul.f32 %v5243_v36, %v5245_v25  ;;  %v5251_v16 = vld [vmem:[#allocation37_spill] sm:$0xff]  ;;  %v5252_v55 = vld [vmem:[#allocation38_spill] sm:$0xff]  ;;  %v5257_v14 = vld [vmem:[#allocation44_spill] sm:$0xff] }
  0x7e   : > { %v799_v12 = vmul.f32 %v5243_v36, %v5246_v29  ;;  %v800_v51 = vmul.f32 %v5243_v36, %v5247_v49  ;;  %v801_v2 = vmul.f32 %v5243_v36, %v5248_v56  ;;  %v802_v26 = vmul.f32 %v5243_v36, %v5251_v16  ;;  %v5255_v42 = vld [vmem:[#allocation42_spill] sm:$0xff]  ;;  %v5259_v7 = vld [vmem:[#allocation47_spill] sm:$0xff]  ;;  %v5265_v25 = vld [vmem:[#allocation41_spill] sm:$0xff] }
  0x7f   : > { %v803_v0 = vmul.f32 %v5243_v36, %v5252_v55  ;;  %v804_v31 = vmul.f32 %v5243_v36, %v5253_v60  ;;  %v805_v62 = vmul.f32 %v5243_v36, %v5254_v45  ;;  %v806_v39 = vmul.f32 %v5243_v36, %v5255_v42  ;;  %v5258_v34 = vld [vmem:[#allocation46_spill] sm:$0xff]  ;;  %v5260_v55 = vld [vmem:[#allocation48_spill] sm:$0xff]  ;;  %v5262_v56 = vld [vmem:[#allocation51_spill] sm:$0xff] }
  0x80   : > { %v807_v15 = vmul.f32 %v5243_v36, %v5256_v13  ;;  %v808_v6 = vmul.f32 %v5243_v36, %v5257_v14  ;;  %v809_v20 = vmul.f32 %v5243_v36, %v5258_v34  ;;  %v810_v27 = vmul.f32 %v5243_v36, %v5259_v7  ;;  %v5261_v16 = vld [vmem:[#allocation50_spill] sm:$0xff]  ;;  %v5264_v29 = vld [vmem:[#allocation55_spill] sm:$0xff]  ;;  %v5269_v30 = vld [vmem:[#allocation53_spill] sm:$0xff] }
  0x81   : > { %v811_v60 = vmul.f32 %v5243_v36, %v5260_v55  ;;  %v812_v45 = vmul.f32 %v5243_v36, %v5261_v16  ;;  %v813_v42 = vmul.f32 %v5243_v36, %v5262_v56  ;;  %v5263_v49 = vld [vmem:[#allocation54_spill] sm:$0xff]  ;;  %v815_v14 = vmul.f32 %v5243_v36, %v5264_v29  ;;  %v5266_v55 = vld [vmem:[#allocation49_spill] sm:$0xff]  ;;  %v5273_v29 = vld [vmem:[#allocation59_spill] sm:$0xff] }
  0x82   : > { %v814_v13 = vmul.f32 %v5243_v36, %v5263_v49  ;;  %v816_v34 = vmul.f32 %v5243_v36, %v3637_v21  ;;  %v817_v7 = vmul.f32 %v5243_v36, %v3639_v57  ;;  %v3675_v10 = vadd.f32 %v5266_v55, %v5265_v25  ;;  %v5268_v16 = vld [vmem:[#allocation45_spill] sm:$0xff]  ;;  %v5275_v36 = vld [vmem:[#allocation63_spill] sm:$0xff] }
  0x83   : > { %v3679_v37 = vadd.f32 %v5269_v30, %v5268_v16  ;;  %v5271_v56 = vld [vmem:[#allocation57_spill] sm:$0xff]  ;;  %v3685_v21 = vadd.f32 %v5273_v29, %v749_v3  ;;  %v3688_v57 = vadd.f32 %v5275_v36, %v750_v53  ;;  %v5276_v25 = vld [vmem:[#allocation67_spill] sm:$0xff]  ;;  %v5278_v30 = vld [vmem:[#allocation72_spill] sm:$0xff]  ;;  %v3705_v29 = vadd.f32 %v796_v24, %v756_v17 }
  0x84   : > { %5267 = vst [vmem:[#allocation110_spill] sm:$0xff] %v3675_v10  ;;  %v3682_v49 = vadd.f32 %v5271_v56, %v748_v59  ;;  %v3691_v55 = vadd.f32 %v5276_v25, %v751_v22  ;;  %v5277_v10 = vld [vmem:[#allocation71_spill] sm:$0xff]  ;;  %v5279_v56 = vld [vmem:[#allocation73_spill] sm:$0xff]  ;;  %v3709_v53 = vadd.f32 %v798_v43, %v758_v35  ;;  %v3711_v22 = vadd.f32 %v799_v12, %v759_v32 }
  0x85   : > { %5270 = vst [vmem:[#allocation111_spill] sm:$0xff] %v3679_v37  ;;  %5274 = vst [vmem:[#allocation113_spill] sm:$0xff] %v3685_v21  ;;  %v3694_v16 = vadd.f32 %v5277_v10, %v752_v48  ;;  %v3697_v37 = vadd.f32 %v5278_v30, %v753_v47  ;;  %v3700_v59 = vadd.f32 %v5279_v56, %v754_v9  ;;  %v3768_v25 = vld [vmem:[#allocation2 + $0x181] sm:$0xff]  ;;  %v3770_v30 = vld [vmem:[#allocation2 + $0x189] sm:$0xff] }
  0x86   : > { %5272 = vst [vmem:[#allocation112_spill] sm:$0xff] %v3682_v49  ;;  %v5280_v49 = vld [vmem:[#allocation77_spill] sm:$0xff]  ;;  %v3707_v21 = vadd.f32 %v797_v18, %v757_v58  ;;  %v3713_v36 = vadd.f32 %v800_v51, %v760_v40  ;;  %v3715_v48 = vadd.f32 %v801_v2, %v761_v23  ;;  %v3717_v47 = vadd.f32 %v802_v26, %v762_v50  ;;  %v5292_v18 = vld [vmem:[#allocation56_spill] sm:$0xff]  ;;  %v5309_v56 = vld [vmem:[#allocation79_spill] sm:$0xff] }
  0x87   : > { %v3703_v3 = vadd.f32 %v5280_v49, %v755_v4  ;;  %v3719_v10 = vadd.f32 %v803_v0, %v763_v28  ;;  %v3721_v9 = vadd.f32 %v804_v31, %v764_v46  ;;  %v3723_v4 = vadd.f32 %v805_v62, %v765_v54  ;;  %v2202_v40 = vld [vmem:[%s4854_s1 + $0x4] ss:$0 sm:$0xff]  ;;  %5307 = vst [vmem:[#allocation67_spill] sm:$0xff] %v3768_v25 }
  0x88   : > { %v3725_v17 = vadd.f32 %v806_v39, %v766_v61  ;;  %v3727_v58 = vadd.f32 %v807_v15, %v767_v38  ;;  %v3729_v35 = vadd.f32 %v808_v6, %v768_v11  ;;  %v3731_v32 = vadd.f32 %v809_v20, %v769_v63  ;;  %v5291_v63 = vld [vmem:[#allocation52_spill] sm:$0xff]  ;;  %5308 = vst [vmem:[#allocation71_spill] sm:$0xff] %v3770_v30 }
  0x89   : > { %v3736_v23 = vadd.f32 %v810_v27, %v770_v41  ;;  %v3738_v50 = vadd.f32 %v811_v60, %v771_v52  ;;  %v3740_v28 = vadd.f32 %v812_v45, %v772_v33  ;;  %v3742_v46 = vadd.f32 %v813_v42, %v773_v5  ;;  %v5293_v41 = vld [vmem:[#allocation58_spill] sm:$0xff]  ;;  %v5294_v52 = vld [vmem:[#allocation60_spill] sm:$0xff]  ;;  %v5295_v33 = vld [vmem:[#allocation61_spill] sm:$0xff] }
  0x8a   : > { %5281 = vst [vmem:[#allocation117_spill] sm:$0xff] %v3729_v35  ;;  %5282 = vst [vmem:[#allocation118_spill] sm:$0xff] %v3731_v32  ;;  %v3744_v54 = vadd.f32 %v814_v13, %v774_v44  ;;  %v3746_v61 = vadd.f32 %v815_v14, %v775_v1  ;;  %v3748_v38 = vadd.f32 %v816_v34, %v776_v19  ;;  %v5296_v5 = vld [vmem:[#allocation62_spill] sm:$0xff]  ;;  %v5297_v44 = vld [vmem:[#allocation64_spill] sm:$0xff] }
  0x8b   : > { %5283 = vst [vmem:[#allocation29_spill] sm:$0xff] %v3736_v23  ;;  %5284 = vst [vmem:[#allocation41_spill] sm:$0xff] %v3738_v50  ;;  %v3750_v11 = vadd.f32 %v817_v7, %v777_v8  ;;  %v858_v24 = vmul.f32 %v2202_v40, %v5291_v63  ;;  %v859_v43 = vmul.f32 %v2202_v40, %v5292_v18  ;;  %v5298_v1 = vld [vmem:[#allocation65_spill] sm:$0xff]  ;;  %v5299_v19 = vld [vmem:[#allocation66_spill] sm:$0xff] }
  0x8c   : > { %5285 = vst [vmem:[#allocation49_spill] sm:$0xff] %v3740_v28  ;;  %5286 = vst [vmem:[#allocation45_spill] sm:$0xff] %v3742_v46  ;;  %v860_v12 = vmul.f32 %v2202_v40, %v5293_v41  ;;  %v861_v49 = vmul.f32 %v2202_v40, %v5294_v52  ;;  %v862_v51 = vmul.f32 %v2202_v40, %v5295_v33  ;;  %v5300_v8 = vld [vmem:[#allocation68_spill] sm:$0xff]  ;;  %v5301_v45 = vld [vmem:[#allocation69_spill] sm:$0xff] }
  0x8d   : > { %5287 = vst [vmem:[#allocation53_spill] sm:$0xff] %v3744_v54  ;;  %5288 = vst [vmem:[#allocation57_spill] sm:$0xff] %v3746_v61  ;;  %v863_v2 = vmul.f32 %v2202_v40, %v5296_v5  ;;  %v864_v26 = vmul.f32 %v2202_v40, %v5297_v44  ;;  %v865_v0 = vmul.f32 %v2202_v40, %v5298_v1  ;;  %v5302_v42 = vld [vmem:[#allocation70_spill] sm:$0xff]  ;;  %v5304_v14 = vld [vmem:[#allocation75_spill] sm:$0xff] }
  0x8e   : > { %5289 = vst [vmem:[#allocation59_spill] sm:$0xff] %v3748_v38  ;;  %5290 = vst [vmem:[#allocation63_spill] sm:$0xff] %v3750_v11  ;;  %v866_v60 = vmul.f32 %v2202_v40, %v5299_v19  ;;  %v867_v31 = vmul.f32 %v2202_v40, %v5300_v8  ;;  %v868_v62 = vmul.f32 %v2202_v40, %v5301_v45  ;;  %v5303_v13 = vld [vmem:[#allocation74_spill] sm:$0xff]  ;;  %v5305_v34 = vld [vmem:[#allocation76_spill] sm:$0xff] }
  0x8f   : > { %v869_v39 = vmul.f32 %v2202_v40, %v5302_v42  ;;  %v870_v15 = vmul.f32 %v2202_v40, %v5303_v13  ;;  %v871_v6 = vmul.f32 %v2202_v40, %v5304_v14  ;;  %v872_v20 = vmul.f32 %v2202_v40, %v5305_v34  ;;  %v5306_v7 = vld [vmem:[#allocation78_spill] sm:$0xff]  ;;  %v5310_v18 = vld [vmem:[#allocation80_spill] sm:$0xff]  ;;  %v5311_v19 = vld [vmem:[#allocation81_spill] sm:$0xff] }
  0x90   : > { %v873_v27 = vmul.f32 %v2202_v40, %v5306_v7  ;;  %v874_v63 = vmul.f32 %v2202_v40, %v5309_v56  ;;  %v875_v8 = vmul.f32 %v2202_v40, %v5310_v18  ;;  %v876_v45 = vmul.f32 %v2202_v40, %v5311_v19  ;;  %v5312_v1 = vld [vmem:[#allocation82_spill] sm:$0xff]  ;;  %v5313_v44 = vld [vmem:[#allocation83_spill] sm:$0xff]  ;;  %v5314_v5 = vld [vmem:[#allocation84_spill] sm:$0xff] }
  0x91   : > { %v877_v42 = vmul.f32 %v2202_v40, %v5312_v1  ;;  %v878_v13 = vmul.f32 %v2202_v40, %v5313_v44  ;;  %v879_v14 = vmul.f32 %v2202_v40, %v5314_v5  ;;  %v5315_v33 = vld [vmem:[#allocation85_spill] sm:$0xff]  ;;  %v5316_v52 = vld [vmem:[#allocation86_spill] sm:$0xff]  ;;  %v5317_v41 = vld [vmem:[#allocation87_spill] sm:$0xff]  ;;  %v888_v44 = vmul.f32 %v2202_v40, %v3768_v25 }
  0x92   : > { %v880_v34 = vmul.f32 %v2202_v40, %v5315_v33  ;;  %v881_v7 = vmul.f32 %v2202_v40, %v5316_v52  ;;  %v882_v11 = vmul.f32 %v2202_v40, %v5317_v41  ;;  %v5318_v38 = vld [vmem:[#allocation88_spill] sm:$0xff]  ;;  %v5319_v54 = vld [vmem:[#allocation89_spill] sm:$0xff]  ;;  %v5320_v46 = vld [vmem:[#allocation91_spill] sm:$0xff]  ;;  %v889_v5 = vmul.f32 %v2202_v40, %v3770_v30 }
  0x93   : > { %v883_v61 = vmul.f32 %v2202_v40, %v5318_v38  ;;  %v884_v56 = vmul.f32 %v2202_v40, %v5319_v54  ;;  %v885_v18 = vmul.f32 %v2202_v40, %v5320_v46  ;;  %v5321_v28 = vld [vmem:[#allocation92_spill] sm:$0xff]  ;;  %v5322_v50 = vld [vmem:[#allocation93_spill] sm:$0xff]  ;;  %v5323_v23 = vld [vmem:[#allocation110_spill] sm:$0xff] }
  0x94   : > { %v886_v19 = vmul.f32 %v2202_v40, %v5321_v28  ;;  %v887_v1 = vmul.f32 %v2202_v40, %v5322_v50  ;;  %v3789_v33 = vadd.f32 %v858_v24, %v5323_v23  ;;  %v5324_v52 = vld [vmem:[#allocation111_spill] sm:$0xff]  ;;  %v5325_v41 = vld [vmem:[#allocation112_spill] sm:$0xff]  ;;  %v5326_v54 = vld [vmem:[#allocation113_spill] sm:$0xff]  ;;  %v3801_v28 = vadd.f32 %v862_v51, %v3688_v57 }
  0x95   : > { %v3792_v32 = vadd.f32 %v859_v43, %v5324_v52  ;;  %v3795_v38 = vadd.f32 %v860_v12, %v5325_v41  ;;  %v3798_v35 = vadd.f32 %v861_v49, %v5326_v54  ;;  %v3804_v50 = vadd.f32 %v863_v2, %v3691_v55  ;;  %v5368_v30 = vld [vmem:[#allocation119_spill] sm:$0xff]  ;;  %v5369_v25 = vld [vmem:[#allocation120_spill] sm:$0xff]  ;;  %v5370_v46 = vld [vmem:[#allocation121_spill] sm:$0xff] }
  0x96   : > { %v3807_v40 = vadd.f32 %v864_v26, %v3694_v16  ;;  %v3810_v23 = vadd.f32 %v865_v0, %v3697_v37  ;;  %v3813_v24 = vadd.f32 %v866_v60, %v3700_v59  ;;  %v3816_v43 = vadd.f32 %v867_v31, %v3703_v3  ;;  %v5340_v26 = vld [vmem:[#allocation53_spill] sm:$0xff]  ;;  %v5344_v31 = vld [vmem:[#allocation59_spill] sm:$0xff] }
  0x97   : > { %v3819_v54 = vadd.f32 %v868_v62, %v3705_v29  ;;  %v3822_v57 = vadd.f32 %v869_v39, %v3707_v21  ;;  %v3825_v55 = vadd.f32 %v870_v15, %v3709_v53  ;;  %v3828_v16 = vadd.f32 %v871_v6, %v3711_v22  ;;  %v5342_v60 = vld [vmem:[#allocation57_spill] sm:$0xff]  ;;  %v5349_v39 = vld [vmem:[#allocation95_spill] sm:$0xff]  ;;  %v5350_v15 = vld [vmem:[#allocation96_spill] sm:$0xff] }
  0x98   : > { %v3831_v37 = vadd.f32 %v872_v20, %v3713_v36  ;;  %v3834_v59 = vadd.f32 %v873_v27, %v3715_v48  ;;  %v3837_v3 = vadd.f32 %v874_v63, %v3717_v47  ;;  %v3840_v29 = vadd.f32 %v875_v8, %v3719_v10  ;;  %v5328_v48 = vld [vmem:[#allocation117_spill] sm:$0xff]  ;;  %v5330_v47 = vld [vmem:[#allocation118_spill] sm:$0xff] }
  0x99   : > { %v3843_v21 = vadd.f32 %v876_v45, %v3721_v9  ;;  %v3846_v53 = vadd.f32 %v877_v42, %v3723_v4  ;;  %v3849_v22 = vadd.f32 %v878_v13, %v3725_v17  ;;  %v3852_v36 = vadd.f32 %v879_v14, %v3727_v58  ;;  %v2204_v10 = vld [vmem:[%s4854_s1 + $0x5] ss:$0 sm:$0xff]  ;;  %v5352_v20 = vld [vmem:[#allocation98_spill] sm:$0xff] }
  0x9a   : > { %v3855_v41 = vadd.f32 %v880_v34, %v5328_v48  ;;  %v3858_v12 = vadd.f32 %v881_v7, %v5330_v47  ;;  %v5332_v9 = vld [vmem:[#allocation29_spill] sm:$0xff]  ;;  %v3876_v0 = vadd.f32 %v886_v19, %v5340_v26  ;;  %v3879_v8 = vadd.f32 %v887_v1, %v5342_v60  ;;  %v5353_v7 = vld [vmem:[#allocation99_spill] sm:$0xff]  ;;  %v5354_v1 = vld [vmem:[#allocation100_spill] sm:$0xff] }
  0x9b   : > { %5327 = vst [vmem:[#allocation72_spill] sm:$0xff] %v3852_v36  ;;  %v3864_v52 = vadd.f32 %v882_v11, %v5332_v9  ;;  %v5334_v4 = vld [vmem:[#allocation41_spill] sm:$0xff]  ;;  %v3882_v45 = vadd.f32 %v888_v44, %v5344_v31  ;;  %v5346_v11 = vld [vmem:[#allocation63_spill] sm:$0xff]  ;;  %v931_v13 = vmul.f32 %v2204_v10, %v5349_v39  ;;  %v932_v14 = vmul.f32 %v2204_v10, %v5350_v15  ;;  %v5358_v9 = vld [vmem:[#allocation104_spill] sm:$0xff] }
  0x9c   : > { %5329 = vst [vmem:[#allocation73_spill] sm:$0xff] %v3855_v41  ;;  %5331 = vst [vmem:[#allocation77_spill] sm:$0xff] %v3858_v12  ;;  %v3867_v49 = vadd.f32 %v883_v61, %v5334_v4  ;;  %v5336_v17 = vld [vmem:[#allocation49_spill] sm:$0xff]  ;;  %v3885_v62 = vadd.f32 %v889_v5, %v5346_v11  ;;  %v5348_v61 = vld [vmem:[#allocation94_spill] sm:$0xff]  ;;  %v934_v19 = vmul.f32 %v2204_v10, %v5352_v20 }
  0x9d   : > { %5333 = vst [vmem:[#allocation52_spill] sm:$0xff] %v3864_v52  ;;  %v3870_v51 = vadd.f32 %v884_v56, %v5336_v17  ;;  %v5338_v58 = vld [vmem:[#allocation45_spill] sm:$0xff]  ;;  %5341 = vst [vmem:[#allocation112_spill] sm:$0xff] %v3876_v0  ;;  %v930_v42 = vmul.f32 %v2204_v10, %v5348_v61  ;;  %v935_v27 = vmul.f32 %v2204_v10, %v5353_v7  ;;  %v5357_v5 = vld [vmem:[#allocation103_spill] sm:$0xff] }
  0x9e   : > { %5335 = vst [vmem:[#allocation56_spill] sm:$0xff] %v3867_v49  ;;  %v3873_v2 = vadd.f32 %v885_v18, %v5338_v58  ;;  %5343 = vst [vmem:[#allocation113_spill] sm:$0xff] %v3879_v8  ;;  %v5351_v6 = vld [vmem:[#allocation97_spill] sm:$0xff]  ;;  %v936_v56 = vmul.f32 %v2204_v10, %v5354_v1  ;;  %v5356_v18 = vld [vmem:[#allocation102_spill] sm:$0xff]  ;;  %v939_v47 = vmul.f32 %v2204_v10, %v5357_v5 }
  0x9f   : > { %5337 = vst [vmem:[#allocation110_spill] sm:$0xff] %v3870_v51  ;;  %5345 = vst [vmem:[#allocation117_spill] sm:$0xff] %v3882_v45  ;;  %v933_v34 = vmul.f32 %v2204_v10, %v5351_v6  ;;  %v5355_v63 = vld [vmem:[#allocation101_spill] sm:$0xff]  ;;  %v938_v48 = vmul.f32 %v2204_v10, %v5356_v18  ;;  %v940_v4 = vmul.f32 %v2204_v10, %v5358_v9  ;;  %v5360_v26 = vld [vmem:[#allocation107_spill] sm:$0xff] }
  0xa0   : > { %5339 = vst [vmem:[#allocation111_spill] sm:$0xff] %v3873_v2  ;;  %5347 = vst [vmem:[#allocation118_spill] sm:$0xff] %v3885_v62  ;;  %v937_v44 = vmul.f32 %v2204_v10, %v5355_v63  ;;  %v5359_v17 = vld [vmem:[#allocation105_spill] sm:$0xff]  ;;  %v942_v60 = vmul.f32 %v2204_v10, %v5360_v26  ;;  %v5361_v31 = vld [vmem:[#allocation108_spill] sm:$0xff]  ;;  %v948_v9 = vmul.f32 %v2204_v10, %v5368_v30 }
  0xa1   : > { %v941_v58 = vmul.f32 %v2204_v10, %v5359_v17  ;;  %v943_v11 = vmul.f32 %v2204_v10, %v5361_v31  ;;  %v5362_v61 = vld [vmem:[#allocation109_spill] sm:$0xff]  ;;  %v5363_v20 = vld [vmem:[#allocation114_spill] sm:$0xff]  ;;  %v5366_v63 = vld [vmem:[#allocation115_spill] sm:$0xff]  ;;  %v949_v17 = vmul.f32 %v2204_v10, %v5369_v25  ;;  %v950_v26 = vmul.f32 %v2204_v10, %v5370_v46 }
  0xa2   : > { %v944_v39 = vmul.f32 %v2204_v10, %v5362_v61  ;;  %v945_v7 = vmul.f32 %v2204_v10, %v5363_v20  ;;  %v3903_v6 = vld [vmem:[#allocation2 + $0x182] sm:$0xff]  ;;  %v3905_v1 = vld [vmem:[#allocation2 + $0x18a] sm:$0xff]  ;;  %v946_v18 = vmul.f32 %v2204_v10, %v5366_v63  ;;  %v5367_v15 = vld [vmem:[#allocation116_spill] sm:$0xff] }
  0xa3   : > { %5364 = vst [vmem:[#allocation29_spill] sm:$0xff] %v3903_v6  ;;  %5365 = vst [vmem:[#allocation41_spill] sm:$0xff] %v3905_v1  ;;  %v947_v5 = vmul.f32 %v2204_v10, %v5367_v15  ;;  %v5371_v62 = vld [vmem:[#allocation122_spill] sm:$0xff]  ;;  %v5372_v45 = vld [vmem:[#allocation123_spill] sm:$0xff]  ;;  %v960_v46 = vmul.f32 %v2204_v10, %v3903_v6  ;;  %v970_v6 = vadd.f32 %v938_v48, %v3813_v24 }
  0xa4   : > { %v951_v31 = vmul.f32 %v2204_v10, %v5371_v62  ;;  %v952_v61 = vmul.f32 %v2204_v10, %v5372_v45  ;;  %v5373_v8 = vld [vmem:[#allocation124_spill] sm:$0xff]  ;;  %v5374_v0 = vld [vmem:[#allocation125_spill] sm:$0xff]  ;;  %v5375_v51 = vld [vmem:[#allocation126_spill] sm:$0xff]  ;;  %v961_v62 = vmul.f32 %v2204_v10, %v3905_v1  ;;  %v962_v45 = vadd.f32 %v930_v42, %v3789_v33 }
  0xa5   : > { %v953_v20 = vmul.f32 %v2204_v10, %v5373_v8  ;;  %v954_v2 = vmul.f32 %v2204_v10, %v5374_v0  ;;  %v955_v49 = vmul.f32 %v2204_v10, %v5375_v51  ;;  %v5376_v52 = vld [vmem:[#allocation127_spill] sm:$0xff]  ;;  %v5377_v12 = vld [vmem:[#allocation128_spill] sm:$0xff]  ;;  %v5378_v41 = vld [vmem:[#allocation129_spill] sm:$0xff]  ;;  %v963_v8 = vadd.f32 %v931_v13, %v3792_v32 }
  0xa6   : > { %v956_v63 = vmul.f32 %v2204_v10, %v5376_v52  ;;  %v957_v15 = vmul.f32 %v2204_v10, %v5377_v12  ;;  %v958_v30 = vmul.f32 %v2204_v10, %v5378_v41  ;;  %v5379_v36 = vld [vmem:[#allocation130_spill] sm:$0xff]  ;;  %v964_v0 = vadd.f32 %v932_v14, %v3795_v38  ;;  %v5380_v42 = vld [vmem:[#allocation72_spill] sm:$0xff]  ;;  %v5381_v13 = vld [vmem:[#allocation73_spill] sm:$0xff] }
  0xa7   : > { %v959_v25 = vmul.f32 %v2204_v10, %v5379_v36  ;;  %v965_v51 = vadd.f32 %v933_v34, %v3798_v35  ;;  %v966_v52 = vadd.f32 %v934_v19, %v3801_v28  ;;  %v967_v12 = vadd.f32 %v935_v27, %v3804_v50  ;;  %v5395_v27 = vld [vmem:[#allocation113_spill] sm:$0xff]  ;;  %v5402_v48 = vld [vmem:[#allocation19_spill] sm:$0xff]  ;;  %v5425_v1 = vld [vmem:[#allocation48_spill] sm:$0xff] }
  0xa8   : > { %v968_v41 = vadd.f32 %v936_v56, %v3807_v40  ;;  %v969_v36 = vadd.f32 %v937_v44, %v3810_v23  ;;  %v971_v10 = vadd.f32 %v939_v47, %v3816_v43  ;;  %v972_v33 = vadd.f32 %v940_v4, %v3819_v54 }
  0xa9   : > { %v973_v32 = vadd.f32 %v941_v58, %v3822_v57  ;;  %v974_v38 = vadd.f32 %v942_v60, %v3825_v55  ;;  %v975_v35 = vadd.f32 %v943_v11, %v3828_v16  ;;  %v976_v28 = vadd.f32 %v944_v39, %v3831_v37  ;;  %v5383_v16 = vld [vmem:[#allocation77_spill] sm:$0xff]  ;;  %v5385_v37 = vld [vmem:[#allocation52_spill] sm:$0xff]  ;;  %v5409_v60 = vld [vmem:[#allocation27_spill] sm:$0xff] }
  0xaa   : > { %v977_v50 = vadd.f32 %v945_v7, %v3834_v59  ;;  %v978_v40 = vadd.f32 %v946_v18, %v3837_v3  ;;  %v979_v23 = vadd.f32 %v947_v5, %v3840_v29  ;;  %v980_v24 = vadd.f32 %v948_v9, %v3843_v21  ;;  %v5387_v3 = vld [vmem:[#allocation56_spill] sm:$0xff]  ;;  %v5389_v29 = vld [vmem:[#allocation110_spill] sm:$0xff] }
  0xab   : > { %v981_v43 = vadd.f32 %v949_v17, %v3846_v53  ;;  %v982_v54 = vadd.f32 %v950_v26, %v3849_v22  ;;  %v983_v57 = vadd.f32 %v951_v31, %v5380_v42  ;;  %v3946_v55 = vadd.f32 %v952_v61, %v5381_v13  ;;  %v5391_v53 = vld [vmem:[#allocation111_spill] sm:$0xff]  ;;  %v5393_v22 = vld [vmem:[#allocation112_spill] sm:$0xff]  ;;  %v5412_v13 = vld [vmem:[#allocation33_spill] sm:$0xff] }
  0xac   : > { %v3949_v14 = vadd.f32 %v953_v20, %v5383_v16  ;;  %v3952_v59 = vadd.f32 %v954_v2, %v5385_v37  ;;  %v3955_v34 = vadd.f32 %v955_v49, %v5387_v3  ;;  %v3958_v21 = vadd.f32 %v956_v63, %v5389_v29  ;;  %v5397_v20 = vld [vmem:[#allocation117_spill] sm:$0xff]  ;;  %v5399_v2 = vld [vmem:[#allocation118_spill] sm:$0xff]  ;;  %v5401_v49 = vld [vmem:[#allocation20_spill] sm:$0xff] }
  0xad   : > { %5382 = vst [vmem:[#allocation49_spill] sm:$0xff] %v3946_v55  ;;  %v3961_v19 = vadd.f32 %v957_v15, %v5391_v53  ;;  %v3964_v7 = vadd.f32 %v958_v30, %v5393_v22  ;;  %v3967_v56 = vadd.f32 %v959_v25, %v5395_v27  ;;  %v3970_v44 = vadd.f32 %v960_v46, %v5397_v20  ;;  %v5403_v63 = vld [vmem:[#allocation21_spill] sm:$0xff]  ;;  %v5404_v15 = vld [vmem:[#allocation22_spill] sm:$0xff]  ;;  %v5405_v30 = vld [vmem:[#allocation23_spill] sm:$0xff] }
  0xae   : > { %5384 = vst [vmem:[#allocation45_spill] sm:$0xff] %v3949_v14  ;;  %5386 = vst [vmem:[#allocation53_spill] sm:$0xff] %v3952_v59  ;;  %v3973_v18 = vadd.f32 %v961_v62, %v5399_v2  ;;  %v1002_v5 = vmul.f32 %v5402_v48, %v5401_v49  ;;  %v1003_v47 = vmul.f32 %v5402_v48, %v5403_v63  ;;  %v5406_v25 = vld [vmem:[#allocation24_spill] sm:$0xff]  ;;  %v5407_v46 = vld [vmem:[#allocation25_spill] sm:$0xff] }
  0xaf   : > { %5388 = vst [vmem:[#allocation57_spill] sm:$0xff] %v3955_v34  ;;  %5390 = vst [vmem:[#allocation59_spill] sm:$0xff] %v3958_v21  ;;  %v1004_v9 = vmul.f32 %v5402_v48, %v5404_v15  ;;  %v1005_v4 = vmul.f32 %v5402_v48, %v5405_v30  ;;  %v1006_v17 = vmul.f32 %v5402_v48, %v5406_v25  ;;  %v5408_v62 = vld [vmem:[#allocation26_spill] sm:$0xff]  ;;  %v5410_v11 = vld [vmem:[#allocation28_spill] sm:$0xff] }
  0xb0   : > { %5392 = vst [vmem:[#allocation63_spill] sm:$0xff] %v3961_v19  ;;  %5394 = vst [vmem:[#allocation94_spill] sm:$0xff] %v3964_v7  ;;  %v1007_v58 = vmul.f32 %v5402_v48, %v5407_v46  ;;  %v1008_v26 = vmul.f32 %v5402_v48, %v5408_v62  ;;  %v1009_v31 = vmul.f32 %v5402_v48, %v5409_v60  ;;  %v5411_v39 = vld [vmem:[#allocation32_spill] sm:$0xff]  ;;  %v5413_v37 = vld [vmem:[#allocation34_spill] sm:$0xff] }
  0xb1   : > { %5396 = vst [vmem:[#allocation95_spill] sm:$0xff] %v3967_v56  ;;  %5398 = vst [vmem:[#allocation72_spill] sm:$0xff] %v3970_v44  ;;  %v1010_v61 = vmul.f32 %v5402_v48, %v5410_v11  ;;  %v1011_v42 = vmul.f32 %v5402_v48, %v5411_v39  ;;  %v1012_v16 = vmul.f32 %v5402_v48, %v5412_v13  ;;  %v5414_v29 = vld [vmem:[#allocation35_spill] sm:$0xff]  ;;  %v5415_v22 = vld [vmem:[#allocation36_spill] sm:$0xff] }
  0xb2   : > { %5400 = vst [vmem:[#allocation73_spill] sm:$0xff] %v3973_v18  ;;  %v1013_v3 = vmul.f32 %v5402_v48, %v5413_v37  ;;  %v1014_v53 = vmul.f32 %v5402_v48, %v5414_v29  ;;  %v1015_v27 = vmul.f32 %v5402_v48, %v5415_v22  ;;  %v5416_v20 = vld [vmem:[#allocation37_spill] sm:$0xff]  ;;  %v5417_v49 = vld [vmem:[#allocation38_spill] sm:$0xff]  ;;  %v5418_v15 = vld [vmem:[#allocation39_spill] sm:$0xff]  ;;  %v4035_v34 = vadd.f32 %v1002_v5, %v962_v45 }
  0xb3   : > { %v1016_v2 = vmul.f32 %v5402_v48, %v5416_v20  ;;  %v1017_v63 = vmul.f32 %v5402_v48, %v5417_v49  ;;  %v1018_v30 = vmul.f32 %v5402_v48, %v5418_v15  ;;  %v5419_v25 = vld [vmem:[#allocation40_spill] sm:$0xff]  ;;  %v5420_v62 = vld [vmem:[#allocation42_spill] sm:$0xff]  ;;  %v5421_v11 = vld [vmem:[#allocation43_spill] sm:$0xff]  ;;  %v1025_v15 = vmul.f32 %v5402_v48, %v5425_v1 }
  0xb4   : > { %v1019_v46 = vmul.f32 %v5402_v48, %v5419_v25  ;;  %v1020_v60 = vmul.f32 %v5402_v48, %v5420_v62  ;;  %v1021_v39 = vmul.f32 %v5402_v48, %v5421_v11  ;;  %v5422_v13 = vld [vmem:[#allocation44_spill] sm:$0xff]  ;;  %v5423_v29 = vld [vmem:[#allocation46_spill] sm:$0xff]  ;;  %v5424_v20 = vld [vmem:[#allocation47_spill] sm:$0xff]  ;;  %v4037_v1 = vadd.f32 %v1003_v47, %v963_v8 }
  0xb5   : > { %v1022_v37 = vmul.f32 %v5402_v48, %v5422_v13  ;;  %v1023_v22 = vmul.f32 %v5402_v48, %v5423_v29  ;;  %v1024_v49 = vmul.f32 %v5402_v48, %v5424_v20  ;;  %v5426_v18 = vld [vmem:[#allocation50_spill] sm:$0xff]  ;;  %v5427_v44 = vld [vmem:[#allocation51_spill] sm:$0xff]  ;;  %v4041_v59 = vadd.f32 %v1005_v4, %v965_v51 }
  0xb6   : > { %v1026_v25 = vmul.f32 %v5402_v48, %v5426_v18  ;;  %v1027_v62 = vmul.f32 %v5402_v48, %v5427_v44  ;;  %v5428_v56 = vld [vmem:[#allocation54_spill] sm:$0xff]  ;;  %v5429_v7 = vld [vmem:[#allocation55_spill] sm:$0xff]  ;;  %v4039_v18 = vadd.f32 %v1004_v9, %v964_v0  ;;  %v4043_v44 = vadd.f32 %v1006_v17, %v966_v52 }
  0xb7   : > { %v1028_v11 = vmul.f32 %v5402_v48, %v5428_v56  ;;  %v1029_v13 = vmul.f32 %v5402_v48, %v5429_v7  ;;  %v5430_v19 = vld [vmem:[#allocation90_spill] sm:$0xff]  ;;  %v4045_v56 = vadd.f32 %v1007_v58, %v967_v12  ;;  %v4047_v14 = vadd.f32 %v1008_v26, %v968_v41 }
  0xb8   : > { %v1030_v29 = vmul.f32 %v5402_v48, %v5430_v19  ;;  %v5431_v21 = vld [vmem:[#allocation106_spill] sm:$0xff]  ;;  %v4049_v7 = vadd.f32 %v1009_v31, %v969_v36  ;;  %v4051_v19 = vadd.f32 %v1010_v61, %v970_v6  ;;  %v4053_v55 = vadd.f32 %v1011_v42, %v971_v10  ;;  %v5448_v4 = vld [vmem:[#allocation95_spill] sm:$0xff]  ;;  %v5450_v58 = vld [vmem:[#allocation72_spill] sm:$0xff] }
  0xb9   : > { %v1031_v20 = vmul.f32 %v5402_v48, %v5431_v21  ;;  %v4055_v45 = vadd.f32 %v1012_v16, %v972_v33  ;;  %v4057_v8 = vadd.f32 %v1013_v3, %v973_v32  ;;  %v4059_v0 = vadd.f32 %v1014_v53, %v974_v38  ;;  %v2208_v38 = vld [vmem:[%s4854_s1 + $0x7] ss:$0 sm:$0xff]  ;;  %v5446_v47 = vld [vmem:[#allocation94_spill] sm:$0xff]  ;;  %v5454_v42 = vld [vmem:[#allocation31_spill] sm:$0xff] }
  0xba   : > { %v4061_v51 = vadd.f32 %v1015_v27, %v975_v35  ;;  %v4063_v52 = vadd.f32 %v1016_v2, %v976_v28  ;;  %v4065_v12 = vadd.f32 %v1017_v63, %v977_v50  ;;  %v4067_v41 = vadd.f32 %v1018_v30, %v978_v40  ;;  %v5434_v35 = vld [vmem:[#allocation49_spill] sm:$0xff]  ;;  %v5451_v26 = vld [vmem:[#allocation30_spill] sm:$0xff]  ;;  %v5457_v27 = vld [vmem:[#allocation60_spill] sm:$0xff] }
  0xbb   : > { %v4069_v36 = vadd.f32 %v1019_v46, %v979_v23  ;;  %v4071_v6 = vadd.f32 %v1020_v60, %v980_v24  ;;  %v4073_v10 = vadd.f32 %v1021_v39, %v981_v43  ;;  %v4075_v33 = vadd.f32 %v1022_v37, %v982_v54  ;;  %v5436_v50 = vld [vmem:[#allocation45_spill] sm:$0xff]  ;;  %v5442_v54 = vld [vmem:[#allocation59_spill] sm:$0xff]  ;;  %v5456_v3 = vld [vmem:[#allocation58_spill] sm:$0xff] }
  0xbc   : > { %v4077_v32 = vadd.f32 %v1023_v22, %v983_v57  ;;  %v4083_v28 = vadd.f32 %v1024_v49, %v5434_v35  ;;  %v4086_v40 = vadd.f32 %v1025_v15, %v5436_v50  ;;  %v5438_v23 = vld [vmem:[#allocation53_spill] sm:$0xff]  ;;  %v4095_v48 = vadd.f32 %v1028_v11, %v5442_v54  ;;  %v5444_v57 = vld [vmem:[#allocation63_spill] sm:$0xff]  ;;  %v5459_v46 = vld [vmem:[#allocation62_spill] sm:$0xff] }
  0xbd   : > { %5432 = vst [vmem:[#allocation77_spill] sm:$0xff] %v4075_v33  ;;  %v4089_v21 = vadd.f32 %v1026_v25, %v5438_v23  ;;  %v5440_v24 = vld [vmem:[#allocation57_spill] sm:$0xff]  ;;  %v4098_v5 = vadd.f32 %v1029_v13, %v5444_v57  ;;  %v4101_v9 = vadd.f32 %v1030_v29, %v5446_v47  ;;  %v4104_v17 = vadd.f32 %v1031_v20, %v5448_v4  ;;  %v5460_v39 = vld [vmem:[#allocation64_spill] sm:$0xff]  ;;  %v5462_v15 = vld [vmem:[#allocation66_spill] sm:$0xff] }
  0xbe   : > { %5433 = vst [vmem:[#allocation52_spill] sm:$0xff] %v4077_v32  ;;  %5435 = vst [vmem:[#allocation56_spill] sm:$0xff] %v4083_v28  ;;  %v4092_v43 = vadd.f32 %v1027_v62, %v5440_v24  ;;  %v4108_v31 = vadd.f32 %v5451_v26, %v5450_v58  ;;  %v5453_v61 = vld [vmem:[#allocation73_spill] sm:$0xff]  ;;  %v1074_v53 = vmul.f32 %v2208_v38, %v5456_v3  ;;  %v5463_v62 = vld [vmem:[#allocation68_spill] sm:$0xff] }
  0xbf   : > { %5437 = vst [vmem:[#allocation110_spill] sm:$0xff] %v4086_v40  ;;  %5439 = vst [vmem:[#allocation111_spill] sm:$0xff] %v4089_v21  ;;  %v4112_v16 = vadd.f32 %v5454_v42, %v5453_v61  ;;  %v1075_v2 = vmul.f32 %v2208_v38, %v5457_v27  ;;  %v5458_v63 = vld [vmem:[#allocation61_spill] sm:$0xff]  ;;  %v1077_v60 = vmul.f32 %v2208_v38, %v5459_v46  ;;  %v5465_v20 = vld [vmem:[#allocation70_spill] sm:$0xff] }
  0xc0   : > { %5441 = vst [vmem:[#allocation112_spill] sm:$0xff] %v4092_v43  ;;  %5443 = vst [vmem:[#allocation113_spill] sm:$0xff] %v4095_v48  ;;  %v1076_v30 = vmul.f32 %v2208_v38, %v5458_v63  ;;  %v1078_v37 = vmul.f32 %v2208_v38, %v5460_v39  ;;  %v5461_v22 = vld [vmem:[#allocation65_spill] sm:$0xff]  ;;  %v1080_v25 = vmul.f32 %v2208_v38, %v5462_v15  ;;  %v5466_v50 = vld [vmem:[#allocation74_spill] sm:$0xff] }
  0xc1   : > { %5445 = vst [vmem:[#allocation117_spill] sm:$0xff] %v4098_v5  ;;  %5447 = vst [vmem:[#allocation118_spill] sm:$0xff] %v4101_v9  ;;  %v1079_v49 = vmul.f32 %v2208_v38, %v5461_v22  ;;  %v1081_v11 = vmul.f32 %v2208_v38, %v5463_v62  ;;  %v5464_v13 = vld [vmem:[#allocation69_spill] sm:$0xff]  ;;  %v1083_v35 = vmul.f32 %v2208_v38, %v5465_v20  ;;  %v5467_v24 = vld [vmem:[#allocation75_spill] sm:$0xff] }
  0xc2   : > { %5449 = vst [vmem:[#allocation20_spill] sm:$0xff] %v4104_v17  ;;  %5452 = vst [vmem:[#allocation19_spill] sm:$0xff] %v4108_v31  ;;  %v1082_v29 = vmul.f32 %v2208_v38, %v5464_v13  ;;  %v1084_v23 = vmul.f32 %v2208_v38, %v5466_v50  ;;  %v1085_v54 = vmul.f32 %v2208_v38, %v5467_v24  ;;  %v5468_v57 = vld [vmem:[#allocation76_spill] sm:$0xff]  ;;  %v5469_v4 = vld [vmem:[#allocation78_spill] sm:$0xff] }
  0xc3   : > { %5455 = vst [vmem:[#allocation21_spill] sm:$0xff] %v4112_v16  ;;  %v1086_v47 = vmul.f32 %v2208_v38, %v5468_v57  ;;  %v1087_v58 = vmul.f32 %v2208_v38, %v5469_v4  ;;  %v5470_v26 = vld [vmem:[#allocation79_spill] sm:$0xff]  ;;  %v5471_v42 = vld [vmem:[#allocation80_spill] sm:$0xff]  ;;  %v5472_v27 = vld [vmem:[#allocation81_spill] sm:$0xff]  ;;  %v1107_v28 = vadd.f32 %v1075_v2, %v4037_v1  ;;  %v1108_v32 = vadd.f32 %v1076_v30, %v4039_v18 }
  0xc4   : > { %v1088_v61 = vmul.f32 %v2208_v38, %v5470_v26  ;;  %v1089_v3 = vmul.f32 %v2208_v38, %v5471_v42  ;;  %v1090_v63 = vmul.f32 %v2208_v38, %v5472_v27  ;;  %v5473_v46 = vld [vmem:[#allocation82_spill] sm:$0xff]  ;;  %v557_v22 = vld [vmem:[#allocation2 + $0x199] sm:$0xff]  ;;  %v5474_v62 = vld [vmem:[#allocation83_spill] sm:$0xff]  ;;  %v1114_v1 = vadd.f32 %v1082_v29, %v4051_v19 }
  0xc5   : > { %v1091_v39 = vmul.f32 %v2208_v38, %v5473_v46  ;;  %v558_v15 = vld [vmem:[#allocation2 + $0x1a1] sm:$0xff]  ;;  %v1092_v13 = vmul.f32 %v2208_v38, %v5474_v62  ;;  %v5475_v20 = vld [vmem:[#allocation84_spill] sm:$0xff]  ;;  %v5478_v17 = vld [vmem:[#allocation87_spill] sm:$0xff]  ;;  %v1115_v18 = vadd.f32 %v1083_v35, %v4053_v55 }
  0xc6   : > { %v1093_v50 = vmul.f32 %v2208_v38, %v5475_v20  ;;  %v5476_v16 = vld [vmem:[#allocation85_spill] sm:$0xff]  ;;  %v5477_v31 = vld [vmem:[#allocation86_spill] sm:$0xff]  ;;  %v1096_v4 = vmul.f32 %v2208_v38, %v5478_v17  ;;  %v5479_v9 = vld [vmem:[#allocation88_spill] sm:$0xff]  ;;  %v1120_v30 = vadd.f32 %v1088_v61, %v4063_v52  ;;  %v4181_v19 = vadd.f32 %v1089_v3, %v4065_v12 }
  0xc7   : > { %v1094_v24 = vmul.f32 %v2208_v38, %v5476_v16  ;;  %v1095_v57 = vmul.f32 %v2208_v38, %v5477_v31  ;;  %v1097_v26 = vmul.f32 %v2208_v38, %v5479_v9  ;;  %v5480_v5 = vld [vmem:[#allocation89_spill] sm:$0xff]  ;;  %v5481_v48 = vld [vmem:[#allocation91_spill] sm:$0xff]  ;;  %v4143_v46 = vld [vmem:[%s4854_s1 + $0x8] ss:$0 sm:$0xff]  ;;  %v4153_v9 = vmul.f32 %v2208_v38, %v557_v22 }
  0xc8   : > { %v1098_v42 = vmul.f32 %v2208_v38, %v5480_v5  ;;  %v1099_v27 = vmul.f32 %v2208_v38, %v5481_v48  ;;  %v5482_v62 = vld [vmem:[#allocation92_spill] sm:$0xff]  ;;  %v5483_v20 = vld [vmem:[#allocation93_spill] sm:$0xff]  ;;  %v5484_v16 = vld [vmem:[#allocation67_spill] sm:$0xff]  ;;  %v4155_v5 = vmul.f32 %v2208_v38, %v558_v15  ;;  %v1106_v48 = vadd.f32 %v1074_v53, %v4035_v34 }
  0xc9   : > { %v1100_v43 = vmul.f32 %v2208_v38, %v5482_v62  ;;  %v1101_v21 = vmul.f32 %v2208_v38, %v5483_v20  ;;  %v4148_v40 = vmul.f32 %v2208_v38, %v5484_v16  ;;  %v5485_v31 = vld [vmem:[#allocation71_spill] sm:$0xff]  ;;  %v1109_v62 = vadd.f32 %v1077_v60, %v4041_v59  ;;  %v5486_v33 = vld [vmem:[#allocation96_spill] sm:$0xff]  ;;  %v5487_v15 = vld [vmem:[#allocation97_spill] sm:$0xff] }
  0xca   : > { %v4151_v17 = vmul.f32 %v2208_v38, %v5485_v31  ;;  %v1110_v20 = vadd.f32 %v1078_v37, %v4043_v44  ;;  %v1146_v16 = vmul.f32 %v4143_v46, %v5486_v33  ;;  %v1111_v31 = vadd.f32 %v1079_v49, %v4045_v56  ;;  %v5488_v53 = vld [vmem:[#allocation98_spill] sm:$0xff]  ;;  %v5489_v2 = vld [vmem:[#allocation99_spill] sm:$0xff]  ;;  %v5490_v55 = vld [vmem:[#allocation100_spill] sm:$0xff] }
  0xcb   : > { %v1112_v22 = vadd.f32 %v1080_v25, %v4047_v14  ;;  %v1113_v38 = vadd.f32 %v1081_v11, %v4049_v7  ;;  %v1147_v34 = vmul.f32 %v4143_v46, %v5487_v15  ;;  %v1116_v59 = vadd.f32 %v1084_v23, %v4055_v45  ;;  %v4196_v52 = vld [vmem:[%s4855_s2] ss:$0 sm:$0xff]  ;;  %v5494_v23 = vld [vmem:[#allocation52_spill] sm:$0xff]  ;;  %v5497_v3 = vld [vmem:[#allocation110_spill] sm:$0xff] }
  0xcc   : > { %v1148_v44 = vmul.f32 %v4143_v46, %v5488_v53  ;;  %v1117_v33 = vadd.f32 %v1085_v54, %v4057_v8  ;;  %v1118_v56 = vadd.f32 %v1086_v47, %v4059_v0  ;;  %v1119_v14 = vadd.f32 %v1087_v58, %v4061_v51  ;;  %v5491_v0 = vld [vmem:[#allocation101_spill] sm:$0xff]  ;;  %v5495_v54 = vld [vmem:[#allocation103_spill] sm:$0xff]  ;;  %v5496_v61 = vld [vmem:[#allocation56_spill] sm:$0xff] }
  0xcd   : > { %v1149_v7 = vmul.f32 %v4143_v46, %v5489_v2  ;;  %v1150_v45 = vmul.f32 %v4143_v46, %v5490_v55  ;;  %v1178_v60 = vadd.f32 %v1146_v16, %v1106_v48  ;;  %v4186_v37 = vadd.f32 %v1090_v63, %v4067_v41  ;;  %v5492_v41 = vld [vmem:[#allocation102_spill] sm:$0xff]  ;;  %v5493_v29 = vld [vmem:[#allocation77_spill] sm:$0xff]  ;;  %v5503_v53 = vld [vmem:[#allocation107_spill] sm:$0xff] }
  0xce   : > { %v4189_v8 = vadd.f32 %v1091_v39, %v4069_v36  ;;  %v1151_v51 = vmul.f32 %v4143_v46, %v5491_v0  ;;  %v1179_v49 = vadd.f32 %v1147_v34, %v1107_v28  ;;  %v4199_v12 = vadd.f32 %v1092_v13, %v4071_v6  ;;  %v5501_v16 = vld [vmem:[#allocation105_spill] sm:$0xff]  ;;  %v5505_v55 = vld [vmem:[#allocation108_spill] sm:$0xff] }
  0xcf   : > { %v4202_v25 = vadd.f32 %v1093_v50, %v4073_v10  ;;  %v1152_v11 = vmul.f32 %v4143_v46, %v5492_v41  ;;  %v1180_v36 = vadd.f32 %v1148_v44, %v1108_v32  ;;  %v4207_v35 = vadd.f32 %v1094_v24, %v5493_v29  ;;  %v5498_v32 = vld [vmem:[#allocation111_spill] sm:$0xff]  ;;  %v5499_v50 = vld [vmem:[#allocation104_spill] sm:$0xff]  ;;  %v5502_v34 = vld [vmem:[#allocation113_spill] sm:$0xff] }
  0xd0   : > { %v4210_v28 = vadd.f32 %v1095_v57, %v5494_v23  ;;  %v1153_v47 = vmul.f32 %v4143_v46, %v5495_v54  ;;  %v1181_v58 = vadd.f32 %v1149_v7, %v1109_v62  ;;  %v4215_v6 = vadd.f32 %v1096_v4, %v5496_v61  ;;  %v5500_v62 = vld [vmem:[#allocation112_spill] sm:$0xff]  ;;  %v5504_v7 = vld [vmem:[#allocation117_spill] sm:$0xff]  ;;  %v5507_v41 = vld [vmem:[#allocation114_spill] sm:$0xff] }
  0xd1   : > { %v4218_v10 = vadd.f32 %v1097_v26, %v5497_v3  ;;  %v1182_v63 = vadd.f32 %v1150_v45, %v1110_v20  ;;  %v4221_v39 = vadd.f32 %v4196_v52, %v1178_v60  ;;  %v4224_v13 = vadd.f32 %v1098_v42, %v5498_v32  ;;  %v5508_v23 = vld [vmem:[#allocation115_spill] sm:$0xff]  ;;  %v5509_v61 = vld [vmem:[#allocation116_spill] sm:$0xff] }
  0xd2   : > { %v1154_v24 = vmul.f32 %v4143_v46, %v5499_v50  ;;  %v1183_v57 = vadd.f32 %v1151_v51, %v1111_v31  ;;  %v4229_v48 = vadd.f32 %v4196_v52, %v1179_v49  ;;  %v4232_v4 = vadd.f32 %v1099_v27, %v5500_v62 }
  0xd3   : > { %v1155_v26 = vmul.f32 %v4143_v46, %v5501_v16  ;;  %v1184_v20 = vadd.f32 %v1152_v11, %v1112_v22  ;;  %v4237_v15 = vadd.f32 %v4196_v52, %v1180_v36  ;;  %v4240_v42 = vadd.f32 %v1100_v43, %v5502_v34  ;;  %v5506_v43 = vld [vmem:[#allocation109_spill] sm:$0xff] }
  0xd4   : > { %v1156_v44 = vmul.f32 %v4143_v46, %v5503_v53  ;;  %v1185_v31 = vadd.f32 %v1153_v47, %v1113_v38  ;;  %v4245_v2 = vadd.f32 %v4196_v52, %v1181_v58  ;;  %v4248_v27 = vadd.f32 %v1101_v21, %v5504_v7  ;;  %v5511_v53 = vld [vmem:[#allocation20_spill] sm:$0xff]  ;;  %v5513_v7 = vld [vmem:[#allocation19_spill] sm:$0xff] }
  0xd5   : > { %v1157_v45 = vmul.f32 %v4143_v46, %v5505_v55  ;;  %v4253_v22 = vadd.f32 %v4196_v52, %v1182_v63  ;;  %v2212_v60 = vmul.f32 -1.442695, %v4221_v39  ;;  %v1158_v0 = vmul.f32 %v4143_v46, %v5506_v43 }
  0xd6   : > { %v1186_v51 = vadd.f32 %v1154_v24, %v1114_v1  ;;  %v4259_v38 = vadd.f32 %v4196_v52, %v1183_v57  ;;  %v2213_v49 = vmul.f32 -1.442695, %v4229_v48  ;;  %v1159_v21 = vmul.f32 %v4143_v46, %v5507_v41 }
  0xd7   : > { %v1187_v11 = vadd.f32 %v1155_v26, %v1115_v18  ;;  %v4265_v36 = vadd.f32 %v4196_v52, %v1184_v20  ;;  %v2214_v29 = vmul.f32 -1.442695, %v4237_v15  ;;  %v1160_v54 = vmul.f32 %v4143_v46, %v5508_v23  ;;  %v5510_v26 = vld [vmem:[#allocation118_spill] sm:$0xff] }
  0xd8   : > { %v1188_v47 = vadd.f32 %v1156_v44, %v1116_v59  ;;  %v4271_v1 = vadd.f32 %v4196_v52, %v1185_v31  ;;  %v2215_v58 = vmul.f32 -1.442695, %v4245_v2  ;;  %v1161_v3 = vmul.f32 %v4143_v46, %v5509_v61 }
  0xd9   : > { %v1189_v63 = vadd.f32 %v1157_v45, %v1117_v33  ;;  %2495 = vpow2.f32 %v2212_v60  ;;  %v2216_v18 = vmul.f32 -1.442695, %v4253_v22  ;;  %v1190_v32 = vadd.f32 %v1158_v0, %v1118_v56  ;;  %v5515_v45 = vld [vmem:[#allocation21_spill] sm:$0xff]  ;;  %v5517_v0 = vld [vmem:[#allocation119_spill] sm:$0xff] }
  0xda   : > { %v4278_v50 = vadd.f32 %v4196_v52, %v1186_v51  ;;  %2497 = vpow2.f32 %v2213_v49  ;;  %v2217_v24 = vmul.f32 -1.442695, %v4259_v38  ;;  %v1191_v59 = vadd.f32 %v1159_v21, %v1119_v14  ;;  %v5518_v51 = vld [vmem:[#allocation120_spill] sm:$0xff] }
  0xdb   : > { %v4282_v57 = vadd.f32 %v4196_v52, %v1187_v11  ;;  %2499 = vpow2.f32 %v2214_v29  ;;  %v2218_v62 = vmul.f32 -1.442695, %v4265_v36  ;;  %v1192_v16 = vadd.f32 %v1160_v54, %v1120_v30  ;;  %v5520_v11 = vld [vmem:[#allocation121_spill] sm:$0xff]  ;;  %v5521_v29 = vld [vmem:[#allocation122_spill] sm:$0xff] }
  0xdc   : > { %v4286_v33 = vadd.f32 %v4196_v52, %v1188_v47  ;;  %2501 = vpow2.f32 %v2215_v58  ;;  %v2219_v56 = vmul.f32 -1.442695, %v4271_v1  ;;  %v4291_v20 = vadd.f32 %v4148_v40, %v5510_v26  ;;  %v5522_v58 = vld [vmem:[#allocation123_spill] sm:$0xff] }
  0xdd   : > { %v1193_v34 = vadd.f32 %v1161_v3, %v4181_v19  ;;  %v4295_v14 = vadd.f32 %v4196_v52, %v1189_v63  ;;  %2503 = vpow2.f32 %v2216_v18  ;;  %v4299_v44 = vadd.f32 %v4151_v17, %v5511_v53  ;;  %v5523_v3 = vld [vmem:[#allocation124_spill] sm:$0xff] }
  0xde   : > { %v4302_v30 = vadd.f32 %v4196_v52, %v1190_v32  ;;  %2505 = vpow2.f32 %v2217_v24  ;;  %v2220_v31 = vmul.f32 -1.442695, %v4278_v50  ;;  %v4307_v40 = vadd.f32 %v4153_v9, %v5513_v7  ;;  %v5524_v24 = vld [vmem:[#allocation125_spill] sm:$0xff] }
  0xdf   : > { %v4310_v19 = vadd.f32 %v4196_v52, %v1191_v59  ;;  %2507 = vpow2.f32 %v2218_v62  ;;  %v2221_v55 = vmul.f32 -1.442695, %v4282_v57  ;;  %v4315_v17 = vadd.f32 %v4155_v5, %v5515_v45  ;;  %v5525_v62 = vld [vmem:[#allocation126_spill] sm:$0xff] }
  0xe0   : > { %5512 = vst [vmem:[#allocation22_spill] sm:$0xff] %v4302_v30  ;;  %v4318_v60 = vadd.f32 %v4196_v52, %v1192_v16  ;;  %2509 = vpow2.f32 %v2219_v56  ;;  %v2222_v43 = vmul.f32 -1.442695, %v4286_v33  ;;  %v1162_v9 = vmul.f32 %v4143_v46, %v5517_v0  ;;  %v593_v0 = vld [vmem:[#allocation2 + $0x19a] sm:$0xff] }
  0xe1   : > { %5514 = vst [vmem:[#allocation23_spill] sm:$0xff] %v4310_v19  ;;  %v1163_v49 = vmul.f32 %v4143_v46, %v5518_v51  ;;  %v4326_v41 = vadd.f32 %v4196_v52, %v1193_v34  ;;  %v2223_v21 = vmul.f32 -1.442695, %v4295_v14  ;;  %v1164_v5 = vmul.f32 %v4143_v46, %v5520_v11  ;;  %v5526_v34 = vld [vmem:[#allocation127_spill] sm:$0xff]  ;;  %v594_v51 = vld [vmem:[#allocation2 + $0x1a2] sm:$0xff] }
  0xe2   : > { %5516 = vst [vmem:[#allocation24_spill] sm:$0xff] %v4318_v60  ;;  %v1165_v23 = vmul.f32 %v4143_v46, %v5521_v29  ;;  %2511 = vpow2.f32 %v2220_v31  ;;  %v2224_v54 = vmul.f32 -1.442695, %v4302_v30  ;;  %v1166_v61 = vmul.f32 %v4143_v46, %v5522_v58  ;;  %v5527_v31 = vld [vmem:[#allocation128_spill] sm:$0xff]  ;;  %v5528_v11 = vld [vmem:[#allocation129_spill] sm:$0xff] }
  0xe3   : > { %5519 = vst [vmem:[#allocation25_spill] sm:$0xff] %v4326_v41  ;;  %v2496_v47 = vpop.eup %2495  ;;  %v1167_v63 = vmul.f32 %v4143_v46, %v5523_v3  ;;  %2513 = vpow2.f32 %v2221_v55  ;;  %v2225_v18 = vmul.f32 -1.442695, %v4310_v19  ;;  %v1168_v59 = vmul.f32 %v4143_v46, %v5524_v24  ;;  %v5529_v24 = vld [vmem:[#allocation130_spill] sm:$0xff] }
  0xe4   : > { %v2498_v32 = vpop.eup %2497  ;;  %v1169_v16 = vmul.f32 %v4143_v46, %v5525_v62  ;;  %2515 = vpow2.f32 %v2222_v43  ;;  %v2226_v56 = vmul.f32 -1.442695, %v4318_v60  ;;  %v1170_v53 = vmul.f32 %v4143_v46, %v5526_v34  ;;  %v5530_v34 = vld [vmem:[#allocation29_spill] sm:$0xff] }
  0xe5   : > { %v2500_v26 = vpop.eup %2499  ;;  %v1171_v7 = vmul.f32 %v4143_v46, %v5527_v31  ;;  %2517 = vpow2.f32 %v2223_v21  ;;  %v2227_v55 = vmul.f32 -1.442695, %v4326_v41  ;;  %v1172_v29 = vmul.f32 %v4143_v46, %v5528_v11  ;;  %v5531_v60 = vld [vmem:[#allocation41_spill] sm:$0xff] }
  0xe6   : > { %v2502_v45 = vpop.eup %2501  ;;  %v1194_v43 = vadd.f32 %v1162_v9, %v4186_v37  ;;  %2519 = vpow2.f32 %v2224_v54  ;;  %v1345_v58 = vadd.f32 1.0, %v2496_v47  ;;  %v1173_v62 = vmul.f32 %v4143_v46, %v5529_v24 }
  0xe7   : > { %v2504_v3 = vpop.eup %2503  ;;  %v1174_v31 = vmul.f32 %v4143_v46, %v5530_v34  ;;  %2521 = vpow2.f32 %v2225_v18  ;;  %v1346_v21 = vadd.f32 1.0, %v2498_v32  ;;  %v1175_v19 = vmul.f32 %v4143_v46, %v5531_v60 }
  0xe8   : > { %v2506_v41 = vpop.eup %2505  ;;  %v1195_v30 = vadd.f32 %v1163_v49, %v4189_v8  ;;  %2523 = vpow2.f32 %v2226_v56  ;;  %v1347_v11 = vadd.f32 1.0, %v2500_v26  ;;  %v1176_v9 = vmul.f32 %v4143_v46, %v593_v0 }
  0xe9   : > { %v2508_v37 = vpop.eup %2507  ;;  %v1177_v54 = vmul.f32 %v4143_v46, %v594_v51  ;;  %2525 = vpow2.f32 %v2227_v55  ;;  %v1348_v47 = vadd.f32 1.0, %v2502_v45  ;;  %v1196_v34 = vadd.f32 %v1164_v5, %v4199_v12 }
  0xea   : > { %v2510_v24 = vpop.eup %2509  ;;  %v4363_v18 = vadd.f32 %v4196_v52, %v1194_v43  ;;  %v1349_v32 = vadd.f32 1.0, %v2504_v3  ;;  %2527 = vrcp.f32 %v1345_v58  ;;  %v1197_v60 = vadd.f32 %v1165_v23, %v4202_v25 }
  0xeb   : > { %v1198_v8 = vadd.f32 %v1166_v61, %v4207_v35  ;;  %v1350_v49 = vadd.f32 1.0, %v2506_v41  ;;  %2529 = vrcp.f32 %v1346_v21  ;;  %v1199_v26 = vadd.f32 %v1167_v63, %v4210_v28 }
  0xec   : > { %v2512_v56 = vpop.eup %2511  ;;  %v4369_v46 = vadd.f32 %v4196_v52, %v1195_v30  ;;  %v1351_v55 = vadd.f32 1.0, %v2508_v37  ;;  %2531 = vrcp.f32 %v1347_v11  ;;  %v1200_v5 = vadd.f32 %v1168_v59, %v4215_v6 }
  0xed   : > { %v2514_v12 = vpop.eup %2513  ;;  %v1201_v45 = vadd.f32 %v1169_v16, %v4218_v10  ;;  %v1352_v0 = vadd.f32 1.0, %v2510_v24  ;;  %2533 = vrcp.f32 %v1348_v47  ;;  %v1202_v35 = vadd.f32 %v1170_v53, %v4224_v13 }
  0xee   : > { %v2516_v25 = vpop.eup %2515  ;;  %v4375_v41 = vadd.f32 %v4196_v52, %v1196_v34  ;;  %v2228_v28 = vmul.f32 -1.442695, %v4363_v18  ;;  %2535 = vrcp.f32 %v1349_v32  ;;  %v1203_v23 = vadd.f32 %v1171_v7, %v4232_v4 }
  0xef   : > { %v2518_v30 = vpop.eup %2517  ;;  %v4380_v61 = vadd.f32 %v1172_v29, %v4240_v42  ;;  %v1353_v6 = vadd.f32 1.0, %v2512_v56  ;;  %2537 = vrcp.f32 %v1350_v49  ;;  %v4383_v63 = vadd.f32 %v1173_v62, %v4248_v27 }
  0xf0   : > { %v2520_v10 = vpop.eup %2519  ;;  %v4386_v13 = vadd.f32 %v4196_v52, %v1197_v60  ;;  %v2229_v59 = vmul.f32 -1.442695, %v4369_v46  ;;  %2539 = vrcp.f32 %v1351_v55  ;;  %v4390_v53 = vadd.f32 %v1174_v31, %v4291_v20 }
  0xf1   : > { %v2522_v16 = vpop.eup %2521  ;;  %v4393_v4 = vadd.f32 %v1175_v19, %v4299_v44  ;;  %v1354_v42 = vadd.f32 1.0, %v2514_v12  ;;  %2541 = vrcp.f32 %v1352_v0  ;;  %v4396_v51 = vadd.f32 %v4196_v52, %v1198_v8 }
  0xf2   : > { %v2524_v7 = vpop.eup %2523  ;;  %v4399_v27 = vadd.f32 %v4196_v52, %v1199_v26  ;;  %2543 = vpow2.f32 %v2228_v28  ;;  %v2230_v29 = vmul.f32 -1.442695, %v4375_v41  ;;  %v4403_v58 = vadd.f32 %v1176_v9, %v4307_v40 }
  0xf3   : > { %v2526_v43 = vpop.eup %2525  ;;  %v4406_v20 = vadd.f32 %v1177_v54, %v4315_v17  ;;  %v1355_v44 = vadd.f32 1.0, %v2516_v25  ;;  %2545 = vrcp.f32 %v1353_v6  ;;  %v4409_v3 = vadd.f32 %v4196_v52, %v1200_v5 }
  0xf4   : > { %v2528_v19 = vpop.eup %2527  ;;  %v4412_v62 = vadd.f32 %v4196_v52, %v1201_v45  ;;  %2547 = vpow2.f32 %v2229_v59  ;;  %v2231_v31 = vmul.f32 -1.442695, %v4386_v13  ;;  %v4416_v11 = vadd.f32 %v4196_v52, %v1202_v35 }
  0xf5   : > { %v2530_v21 = vpop.eup %2529  ;;  %v1356_v40 = vadd.f32 1.0, %v2518_v30  ;;  %2549 = vrcp.f32 %v1354_v42  ;;  %v4419_v17 = vmul.f32 %v2528_v19, %v4221_v39  ;;  %v2232_v9 = vmul.f32 -1.442695, %v4396_v51 }
  0xf6   : > { %v2532_v37 = vpop.eup %2531  ;;  %2551 = vpow2.f32 %v2230_v29  ;;  %v2233_v54 = vmul.f32 -1.442695, %v4399_v27  ;;  %v4424_v47 = vmul.f32 %v2530_v21, %v4229_v48  ;;  %v1357_v34 = vadd.f32 1.0, %v2520_v10 }
  0xf7   : > { %v2534_v24 = vpop.eup %2533  ;;  %2553 = vrcp.f32 %v1355_v44  ;;  %v4427_v32 = vmul.f32 %v2532_v37, %v4237_v15  ;;  %v1473_v60 = vsel %vm398_vm0, %v4419_v17, 0.0  ;;  %v1358_v8 = vadd.f32 1.0, %v2522_v16 }
  0xf8   : > { %v2536_v39 = vpop.eup %2535  ;;  %2555 = vpow2.f32 %v2231_v31  ;;  %v4432_v49 = vmul.f32 %v2534_v24, %v4245_v2  ;;  %v1474_v56 = vsel %vm398_vm0, %v4424_v47, 0.0  ;;  %v2234_v5 = vmul.f32 -1.442695, %v4409_v3 }
  0xf9   : > { %v2538_v48 = vpop.eup %2537  ;;  %2557 = vrcp.f32 %v1356_v40  ;;  %v4437_v26 = vmul.f32 %v2536_v39, %v4253_v22  ;;  %v1475_v55 = vadd.f32 %v1474_v56, %v1473_v60  ;;  %v1476_v15 = vsel %vm398_vm0, %v4427_v32, 0.0 }
  0xfa   : > { %v2540_v12 = vpop.eup %2539  ;;  %2559 = vpow2.f32 %v2232_v9  ;;  %v4443_v45 = vmul.f32 %v2538_v48, %v4259_v38  ;;  %v1478_v2 = vsel %vm398_vm0, %v4432_v49, 0.0  ;;  %v4448_v25 = vadd.f32 %v4196_v52, %v1203_v23 }
  0xfb   : > { %v2542_v0 = vpop.eup %2541  ;;  %v1359_v22 = vadd.f32 1.0, %v2524_v7  ;;  %2561 = vrcp.f32 %v1357_v34  ;;  %v1477_v35 = vadd.f32 %v1476_v15, %v1475_v55  ;;  %v2235_v30 = vmul.f32 -1.442695, %v4412_v62 }
  0xfc   : > { %v2544_v28 = vpop.eup %2543  ;;  %2563 = vpow2.f32 %v2233_v54  ;;  %v4452_v6 = vmul.f32 %v2540_v12, %v4265_v36  ;;  %v1480_v38 = vsel %vm398_vm0, %v4437_v26, 0.0  ;;  %v4458_v59 = vadd.f32 %v4196_v52, %v4380_v61 }
  0xfd   : > { %v2546_v10 = vpop.eup %2545  ;;  %v1360_v23 = vadd.f32 1.0, %v2526_v43  ;;  %2565 = vrcp.f32 %v1358_v8  ;;  %v1479_v16 = vadd.f32 %v1478_v2, %v1477_v35  ;;  %v2236_v7 = vmul.f32 -1.442695, %v4416_v11 }
  0xfe   : > { %v2548_v42 = vpop.eup %2547  ;;  %2567 = vpow2.f32 %v2234_v5  ;;  %v4462_v29 = vmul.f32 %v2542_v0, %v4271_v1  ;;  %v1482_v36 = vsel %vm398_vm0, %v4443_v45, 0.0  ;;  %v4468_v19 = vadd.f32 %v4196_v52, %v4383_v63 }
  0xff   : > { %v2550_v44 = vpop.eup %2549  ;;  %v1361_v61 = vadd.f32 1.0, %v2544_v28  ;;  %2569 = vrcp.f32 %v1359_v22  ;;  %v1481_v43 = vadd.f32 %v1480_v38, %v1479_v16  ;;  %v2237_v21 = vmul.f32 -1.442695, %v4448_v25  ;;  %v5532_v16 = vld [vmem:[#allocation22_spill] sm:$0xff] }
 0x100   : > { %v2552_v31 = vpop.eup %2551  ;;  %2571 = vpow2.f32 %v2235_v30  ;;  %v4472_v40 = vmul.f32 %v2546_v10, %v4278_v50  ;;  %v1484_v1 = vsel %vm398_vm0, %v4452_v6, 0.0  ;;  %v4478_v9 = vadd.f32 %v4196_v52, %v4390_v53 }
 0x101   : > { %v2554_v37 = vpop.eup %2553  ;;  %v1362_v63 = vadd.f32 1.0, %v2548_v42  ;;  %2573 = vrcp.f32 %v1360_v23  ;;  %v1483_v54 = vadd.f32 %v1482_v36, %v1481_v43  ;;  %v2238_v34 = vmul.f32 -1.442695, %v4458_v59 }
 0x102   : > { %v2556_v24 = vpop.eup %2555  ;;  %2575 = vpow2.f32 %v2236_v7  ;;  %v4482_v60 = vmul.f32 %v2550_v44, %v4282_v57  ;;  %v1486_v50 = vsel %vm398_vm0, %v4462_v29, 0.0  ;;  %v4488_v8 = vadd.f32 %v4196_v52, %v4393_v4 }
 0x103   : > { %v2558_v39 = vpop.eup %2557  ;;  %v1363_v53 = vadd.f32 1.0, %v2552_v31  ;;  %2577 = vrcp.f32 %v1361_v61  ;;  %v1485_v56 = vadd.f32 %v1484_v1, %v1483_v54  ;;  %v2239_v55 = vmul.f32 -1.442695, %v4468_v19 }
 0x104   : > { %v2560_v48 = vpop.eup %2559  ;;  %2579 = vpow2.f32 %v2237_v21  ;;  %v4492_v15 = vmul.f32 %v2554_v37, %v4286_v33  ;;  %v1488_v57 = vsel %vm398_vm0, %v4472_v40, 0.0  ;;  %v4498_v5 = vadd.f32 %v4196_v52, %v4403_v58 }
 0x105   : > { %v2562_v12 = vpop.eup %2561  ;;  %v1364_v4 = vadd.f32 1.0, %v2556_v24  ;;  %2581 = vrcp.f32 %v1362_v63  ;;  %v1487_v2 = vadd.f32 %v1486_v50, %v1485_v56  ;;  %v2240_v22 = vmul.f32 -1.442695, %v4478_v9  ;;  %v5534_v24 = vld [vmem:[#allocation24_spill] sm:$0xff] }
 0x106   : > { %v2564_v0 = vpop.eup %2563  ;;  %2583 = vpow2.f32 %v2238_v34  ;;  %v4502_v35 = vmul.f32 %v2558_v39, %v4295_v14  ;;  %v1490_v33 = vsel %vm398_vm0, %v4482_v60, 0.0  ;;  %v4508_v30 = vadd.f32 %v4196_v52, %v4406_v20  ;;  %v5533_v20 = vld [vmem:[#allocation23_spill] sm:$0xff] }
 0x107   : > { %v2566_v28 = vpop.eup %2565  ;;  %v1365_v58 = vadd.f32 1.0, %v2560_v48  ;;  %2585 = vrcp.f32 %v1363_v53  ;;  %v1489_v38 = vadd.f32 %v1488_v57, %v1487_v2  ;;  %v2241_v23 = vmul.f32 -1.442695, %v4488_v8 }
 0x108   : > { %v2568_v10 = vpop.eup %2567  ;;  %2587 = vpow2.f32 %v2239_v55  ;;  %v4512_v42 = vmul.f32 %v2562_v12, %v5532_v16  ;;  %v1492_v14 = vsel %vm398_vm0, %v4492_v15, 0.0  ;;  %v1366_v36 = vadd.f32 1.0, %v2564_v0  ;;  %v5535_v55 = vld [vmem:[#allocation25_spill] sm:$0xff] }
 0x109   : > { %v2570_v7 = vpop.eup %2569  ;;  %2589 = vrcp.f32 %v1364_v4  ;;  %v1491_v44 = vadd.f32 %v1490_v33, %v1489_v38  ;;  %v2242_v52 = vmul.f32 -1.442695, %v4498_v5  ;;  %v4518_v43 = vmul.f32 %v2566_v28, %v5533_v20 }
 0x10a   : > { %v2572_v61 = vpop.eup %2571  ;;  %2591 = vpow2.f32 %v2240_v22  ;;  %v1494_v31 = vsel %vm398_vm0, %v4502_v35, 0.0  ;;  %v1367_v1 = vadd.f32 1.0, %v2568_v10  ;;  %v2243_v54 = vmul.f32 -1.442695, %v4508_v30 }
 0x10b   : > { %v2574_v21 = vpop.eup %2573  ;;  %2593 = vrcp.f32 %v1365_v58  ;;  %v1493_v37 = vadd.f32 %v1492_v14, %v1491_v44  ;;  %v4524_v34 = vmul.f32 %v2570_v7, %v5534_v24  ;;  %v1496_v50 = vsel %vm398_vm0, %v4512_v42, 0.0 }
 0x10c   : > { %v2576_v63 = vpop.eup %2575  ;;  %2595 = vpow2.f32 %v2241_v23  ;;  %v1368_v53 = vadd.f32 1.0, %v2572_v61  ;;  %v4529_v57 = vmul.f32 %v2574_v21, %v5535_v55  ;;  %v1498_v12 = vsel %vm398_vm0, %v4518_v43, 0.0 }
 0x10d   : > { %v2578_v39 = vpop.eup %2577  ;;  %2597 = vrcp.f32 %v1366_v36  ;;  %v1495_v56 = vadd.f32 %v1494_v31, %v1493_v37  ;;  %v1369_v2 = vadd.f32 1.0, %v2576_v63  ;;  %v1500_v28 = vsel %vm398_vm0, %v4524_v34, 0.0 }
 0x10e   : > { %v2580_v48 = vpop.eup %2579  ;;  %2599 = vpow2.f32 %v2242_v52  ;;  %v4534_v33 = vmul.f32 %v2578_v39, %v4363_v18  ;;  %v1502_v14 = vsel %vm398_vm0, %v4529_v57, 0.0 }
 0x10f   : > { %v2582_v4 = vpop.eup %2581  ;;  %2601 = vrcp.f32 %v1367_v1  ;;  %v1497_v0 = vadd.f32 %v1496_v50, %v1495_v56  ;;  %v1370_v38 = vadd.f32 1.0, %v2580_v48 }
 0x110   : > { %v2584_v22 = vpop.eup %2583  ;;  %2603 = vpow2.f32 %v2243_v54  ;;  %v4539_v16 = vmul.f32 %v2582_v4, %v4369_v46  ;;  %v1504_v52 = vsel %vm398_vm0, %v4534_v33, 0.0 }
 0x111   : > { %v2586_v58 = vpop.eup %2585  ;;  %2605 = vrcp.f32 %v1368_v53  ;;  %v1499_v10 = vadd.f32 %v1498_v12, %v1497_v0  ;;  %v1371_v36 = vadd.f32 1.0, %v2584_v22 }
 0x112   : > { %v2588_v23 = vpop.eup %2587  ;;  %2607 = vrcp.f32 %v1369_v2  ;;  %v4544_v61 = vmul.f32 %v2586_v58, %v4375_v41  ;;  %v1506_v37 = vsel %vm398_vm0, %v4539_v16, 0.0 }
 0x113   : > { %v2590_v7 = vpop.eup %2589  ;;  %v1501_v44 = vadd.f32 %v1500_v28, %v1499_v10  ;;  %v1372_v31 = vadd.f32 1.0, %v2588_v23  ;;  %2609 = vrcp.f32 %v1370_v38 }
 0x114   : > { %v2592_v18 = vpop.eup %2591  ;;  %v4549_v1 = vmul.f32 %v2590_v7, %v4386_v13  ;;  %2611 = vrcp.f32 %v1371_v36  ;;  %v1508_v39 = vsel %vm398_vm0, %v4544_v61, 0.0 }
 0x115   : > { %v2594_v20 = vpop.eup %2593  ;;  %v1503_v21 = vadd.f32 %v1502_v14, %v1501_v44  ;;  %v1373_v54 = vadd.f32 1.0, %v2592_v18  ;;  %2613 = vrcp.f32 %v1372_v31 }
 0x116   : > { %v2596_v46 = vpop.eup %2595  ;;  %v4554_v50 = vmul.f32 %v2594_v20, %v4396_v51  ;;  %v1510_v12 = vsel %vm398_vm0, %v4549_v1, 0.0 }
 0x117   : > { %v2598_v63 = vpop.eup %2597  ;;  %v1505_v24 = vadd.f32 %v1504_v52, %v1503_v21  ;;  %v1374_v56 = vadd.f32 1.0, %v2596_v46  ;;  %2615 = vrcp.f32 %v1373_v54 }
 0x118   : > { %v2600_v41 = vpop.eup %2599  ;;  %v4559_v55 = vmul.f32 %v2598_v63, %v4399_v27  ;;  %v1512_v22 = vsel %vm398_vm0, %v4554_v50, 0.0 }
 0x119   : > { %v2602_v53 = vpop.eup %2601  ;;  %v1507_v48 = vadd.f32 %v1506_v37, %v1505_v24  ;;  %v1375_v2 = vadd.f32 1.0, %v2600_v41  ;;  %2617 = vrcp.f32 %v1374_v56 }
 0x11a   : > { %v2604_v13 = vpop.eup %2603  ;;  %v4564_v51 = vmul.f32 %v2602_v53, %v4409_v3  ;;  %v1514_v10 = vsel %vm398_vm0, %v4559_v55, 0.0 }
 0x11b   : > { %v2606_v4 = vpop.eup %2605  ;;  %v1509_v0 = vadd.f32 %v1508_v39, %v1507_v48  ;;  %v1376_v58 = vadd.f32 1.0, %v2604_v13  ;;  %2619 = vrcp.f32 %v1375_v2 }
 0x11c   : > { %v2608_v28 = vpop.eup %2607  ;;  %v4569_v27 = vmul.f32 %v2606_v4, %v4412_v62  ;;  %v1516_v3 = vsel %vm398_vm0, %v4564_v51, 0.0 }
 0x11d   : > { %v1511_v38 = vadd.f32 %v1510_v12, %v1509_v0  ;;  %v2610_v23 = vpop.eup %2609  ;;  %v4574_v7 = vmul.f32 %v2608_v28, %v4416_v11  ;;  %2621 = vrcp.f32 %v1376_v58 }
 0x11e   : > { %v2612_v36 = vpop.eup %2611  ;;  %v4579_v18 = vmul.f32 %v2610_v23, %v4448_v25  ;;  %v1518_v62 = vsel %vm398_vm0, %v4569_v27, 0.0 }
 0x11f   : > { %v1513_v14 = vadd.f32 %v1512_v22, %v1511_v38  ;;  %v2614_v52 = vpop.eup %2613  ;;  %v4584_v31 = vmul.f32 %v2612_v36, %v4458_v59  ;;  %v1520_v11 = vsel %vm398_vm0, %v4574_v7, 0.0 }
 0x120   : > { %v4589_v37 = vmul.f32 %v2614_v52, %v4468_v19  ;;  %v1522_v25 = vsel %vm398_vm0, %v4579_v18, 0.0 }
 0x121   : > { %v1515_v44 = vadd.f32 %v1514_v10, %v1513_v14  ;;  %v2616_v21 = vpop.eup %2615  ;;  %v1524_v59 = vsel %vm398_vm0, %v4584_v31, 0.0 }
 0x122   : > { %v4594_v24 = vmul.f32 %v2616_v21, %v4478_v9  ;;  %v1526_v19 = vsel %vm398_vm0, %v4589_v37, 0.0 }
 0x123   : > { %v1517_v20 = vadd.f32 %v1516_v3, %v1515_v44  ;;  %v2618_v63 = vpop.eup %2617 }
 0x124   : > { %v4599_v53 = vmul.f32 %v2618_v63, %v4488_v8  ;;  %v1528_v9 = vsel %vm398_vm0, %v4594_v24, 0.0 }
 0x125   : > { %v1519_v46 = vadd.f32 %v1518_v62, %v1517_v20  ;;  %v2620_v41 = vpop.eup %2619  ;;  %v1605_v62 = vld [vmem:[%s4858_s5] sm:$0x3] }
 0x126   : > { %v4604_v13 = vmul.f32 %v2620_v41, %v4498_v5  ;;  %v1530_v2 = vsel %vm398_vm0, %v4599_v53, 0.0  ;;  %v1613_v52 = vsel %vm1611_vm3, %v1605_v62, 0  ;;  %v1547_v20 = vld [vmem:[%s4857_s4] sm:$0x1] }
 0x127   : > { %v1521_v54 = vadd.f32 %v1520_v11, %v1519_v46  ;;  %v2622_v56 = vpop.eup %2621  ;;  %2442 = vmatpush3.bf16.msra.mxu1 %v1613_v52 }
 0x128   : > { %v4609_v4 = vmul.f32 %v2622_v56, %v4508_v30  ;;  %v1532_v0 = vsel %vm398_vm0, %v4604_v13, 0.0 }
 0x129   : > { %v1523_v39 = vadd.f32 %v1522_v25, %v1521_v54 }
 0x12a   : > { %v1534_v28 = vsel %vm398_vm0, %v4609_v4, 0.0 }
 0x12b   : > { %v1525_v48 = vadd.f32 %v1524_v59, %v1523_v39 }
 0x12d   : > { %v1527_v12 = vadd.f32 %v1526_v19, %v1525_v48  ;;  %v2494_v48 = vld [vmem:[%s4860_s7] sm:$0xff]  }
 0x12e   : > { %2447 = vmatprep.subr.bf16.mxu0 %v2494_v48  ;;  %2481 = vmatprep.subr.bf16.mxu1 %v2494_v48 }
 0x12f   : > { %v1529_v8 = vadd.f32 %v1528_v9, %v1527_v12  ;;  %v1606_v9 = vld [vmem:[%s4859_s6] sm:$0x1] }
 0x131   : > { %v1531_v22 = vadd.f32 %v1530_v2, %v1529_v8 }
 0x133   : > { %v1533_v5 = vadd.f32 %v1532_v0, %v1531_v22 }
 0x135   : > { %v1535_v58 = vadd.f32 %v1534_v28, %v1533_v5 }
 0x137   : > { %v1536_v38 = vrot.slane %v1535_v58, 4 }
 0x139   : > { %v1537_v10 = vadd.f32 %v1536_v38, %v1535_v58  ;;  %v1661_v38 = vlaneseq }
 0x13b   : > { %v1538_v23 = vrot.slane %v1537_v10, 2 }
 0x13d   : > { %v1539_v14 = vadd.f32 %v1538_v23, %v1537_v10  ;;  %v1662_v10 = vshrl.u32 %v1661_v38, 7  ;;  %v5536_v38 = vld [vmem:[#allocation4_spill] sm:$0xff] }
 0x13f   : > { %v1540_v3 = vrot.slane %v1539_v14, 1  ;;  %v1663_v23 = vsub.s32 0, %v1662_v10  ;;  %v5537_v10 = vunpack.c.l.bf16 %v5536_v38 }
 0x141   : > { %v1541_v30 = vadd.f32 %v1540_v3, %v1539_v14 }
 0x143   : > { %v1543_v36 = vmul.f32 0.00390625, %v1541_v30 }
 0x145   : > { %v1544_v44 = vpack.c.bf16 %v1543_v36, %v1543_v36 }
 0x147   : > { %2438 = vmatmul.mubr.msk.bf16.vlgmr.msra.gmra.mrb[0].mxu0 %vm398_vm0, %v1544_v44 }
 0x148   : > { %2448 = vmatpush3.bf16.msra.mxu0 %v2494_v48 }
 0x21a   : > { %v1591_v11 = vpop.f32.mrb[0].mxu0 }
 0x21b   : > { %v1592_v21 = vadd.f32 %v1591_v11, %v1547_v20  ;;  %v2439_v46 = vpop.f32.mrb[1].mxu0 }
 0x21c   : > { %v1594_v25 = vpop.f32.mrb[2].mxu0 }
 0x21d   : > { %v2246_v63 = vmul.f32 -1.442695, %v1592_v21  ;;  %v2440_v54 = vpop.f32.mrb[3].mxu0 }
 0x21f   : > { %2623 = vpow2.f32 %v2246_v63 }
 0x229   : > { %v2624_v59 = vpop.eup %2623 }
 0x22a   : > { %v1600_v41 = vadd.f32 1.0, %v2624_v59 }
 0x22c   : > { %2625 = vrcp.f32 %v1600_v41 }
 0x236   : > { %v2626_v39 = vpop.eup %2625 }
 0x237   : > { %v1603_v19 = vmul.f32 %v2626_v39, %v1592_v21 }
 0x239   : > { %v1604_v56 = vpack.c.bf16 %v1603_v19, %v1603_v19 }
 0x23b   : > { %2444 = vmatmul.mubr.msk.bf16.vlgmr.msra.gmra.mrb[0].mxu1 %vm1607_vm4, %v1604_v56 }
 0x23c   : > { %2482 = vmatpush3.bf16.msra.mxu1 %v2494_v48 }
 0x30e   : > { %v1649_v12 = vpop.f32.mrb[0].mxu1 }
 0x30f   : > { %v1650_v2 = vadd.f32 %v1649_v12, %v1606_v9  ;;  %v2445_v8 = vpop.f32.mrb[1].mxu1 }
 0x310   : > { %v1652_v0 = vpop.f32.mrb[2].mxu1 }
 0x311   : > { %v2248_v22 = vmul.f32 -1.442695, %v1650_v2  ;;  %v2446_v28 = vpop.f32.mrb[3].mxu1 }
 0x313   : > { %2627 = vpow2.f32 %v2248_v22 }
 0x31d   : > { %v2628_v5 = vpop.eup %2627 }
 0x31e   : > { %v1658_v58 = vadd.f32 1.0, %v2628_v5 }
 0x320   : > { %2629 = vrcp.f32 %v1658_v58 }
 0x32a   : > { %v2630_v14 = vpop.eup %2629 }
 0x32b   : > { %v1664_v3 = vrot.slane %v2630_v14, %v1663_v23  ;;  %v5538_v14 = vld [vmem:[#allocation12_spill] sm:$0xff] }
 0x32d   : > { %v1665_v30 = vmul.f32 %v1664_v3, %v4419_v17  ;;  %v1666_v36 = vmul.f32 %v1664_v3, %v4424_v47  ;;  %v1681_v44 = vmul.f32 %v1664_v3, %v4534_v33  ;;  %v1682_v62 = vmul.f32 %v1664_v3, %v4539_v16 }
 0x32e   : > { %v1667_v52 = vmul.f32 %v1664_v3, %v4427_v32  ;;  %v1668_v20 = vmul.f32 %v1664_v3, %v4432_v49  ;;  %v1683_v11 = vmul.f32 %v1664_v3, %v4544_v61  ;;  %v1684_v21 = vmul.f32 %v1664_v3, %v4549_v1 }
 0x32f   : > { %v1697_v46 = vpack.c.bf16 %v1666_v36, %v1665_v30  ;;  %v1705_v25 = vpack.c.bf16 %v1682_v62, %v1681_v44  ;;  %v1669_v63 = vmul.f32 %v1664_v3, %v4437_v26  ;;  %v1670_v17 = vmul.f32 %v1664_v3, %v4443_v45 }
 0x330   : > { %v1698_v54 = vpack.c.bf16 %v1668_v20, %v1667_v52  ;;  %v1706_v47 = vpack.c.bf16 %v1684_v21, %v1683_v11  ;;  %v1685_v33 = vmul.f32 %v1664_v3, %v4554_v50  ;;  %v1686_v16 = vmul.f32 %v1664_v3, %v4559_v55  ;;  %v5540_v20 = vld [vmem:[#allocation3_spill] sm:$0xff] }
 0x331   : > { %2449 = vmatprep.mubr.msk.bf16.mxu0 %vm398_vm0, %v1697_v46  ;;  %2465 = vmatprep.mubr.msk.bf16.mxu1 %vm398_vm0, %v1705_v25  ;;  %v1699_v32 = vpack.c.bf16 %v1670_v17, %v1669_v63  ;;  %v1671_v26 = vmul.f32 %v1664_v3, %v4452_v6  ;;  %v1672_v45 = vmul.f32 %v1664_v3, %v4462_v29  ;;  %v5541_v11 = vunpack.c.l.bf16 %v5540_v20  ;;  %v5542_v46 = vld [vmem:[#allocation11_spill] sm:$0xff] }
 0x332   : > { %2450 = vmatmul.mubr.msk.bf16.vlgmr.msra.gmra.mrb[4].mxu0 %vm398_vm0, %v1698_v54  ;;  %2466 = vmatmul.mubr.msk.bf16.vlgmr.msra.gmra.mrb[4].mxu1 %vm398_vm0, %v1706_v47  ;;  %v1707_v49 = vpack.c.bf16 %v1686_v16, %v1685_v33  ;;  %v1687_v61 = vmul.f32 %v1664_v3, %v4564_v51  ;;  %v1688_v1 = vmul.f32 %v1664_v3, %v4569_v27  ;;  %v5543_v25 = vunpack.c.l.bf16 %v5542_v46 }
 0x333   : > { %2453 = vmatprep.mubr.msk.bf16.mxu0 %vm398_vm0, %v1699_v32  ;;  %v1673_v50 = vmul.f32 %v1664_v3, %v4472_v40  ;;  %v1674_v55 = vmul.f32 %v1664_v3, %v4482_v60  ;;  %v1689_v59 = vmul.f32 %v1664_v3, %v4574_v7  ;;  %v1690_v41 = vmul.f32 %v1664_v3, %v4579_v18 }
 0x334   : > { %2469 = vmatprep.mubr.msk.bf16.mxu1 %vm398_vm0, %v1707_v49  ;;  %v1700_v39 = vpack.c.bf16 %v1672_v45, %v1671_v26  ;;  %v1708_v19 = vpack.c.bf16 %v1688_v1, %v1687_v61  ;;  %v1675_v6 = vmul.f32 %v1664_v3, %v4492_v15  ;;  %v1676_v29 = vmul.f32 %v1664_v3, %v4502_v35 }
 0x335   : > { %v1701_v56 = vpack.c.bf16 %v1674_v55, %v1673_v50  ;;  %v1709_v48 = vpack.c.bf16 %v1690_v41, %v1689_v59  ;;  %v1691_v40 = vmul.f32 %v1664_v3, %v4584_v31  ;;  %v1692_v60 = vmul.f32 %v1664_v3, %v4589_v37 }
 0x336   : > { %v1677_v51 = vmul.f32 %v1664_v3, %v4512_v42  ;;  %v1678_v27 = vmul.f32 %v1664_v3, %v4518_v43  ;;  %v1693_v7 = vmul.f32 %v1664_v3, %v4594_v24  ;;  %v1694_v18 = vmul.f32 %v1664_v3, %v4599_v53  ;;  %v4681_v24 = vld [vmem:[%s4861_s8] ss:$0 sm:$0xff] }
 0x337   : > { %v1702_v9 = vpack.c.bf16 %v1676_v29, %v1675_v6  ;;  %v1710_v12 = vpack.c.bf16 %v1692_v60, %v1691_v40  ;;  %v1679_v15 = vmul.f32 %v1664_v3, %v4524_v34  ;;  %v1680_v35 = vmul.f32 %v1664_v3, %v4529_v57 }
 0x338   : > { %v1703_v2 = vpack.c.bf16 %v1678_v27, %v1677_v51  ;;  %v1711_v8 = vpack.c.bf16 %v1694_v18, %v1693_v7  ;;  %v1695_v42 = vmul.f32 %v1664_v3, %v4604_v13  ;;  %v1696_v43 = vmul.f32 %v1664_v3, %v4609_v4 }
 0x339   : > { %v1704_v31 = vpack.c.bf16 %v1680_v35, %v1679_v15  ;;  %v5539_v3 = vunpack.c.l.bf16 %v5538_v14  ;;  %v5544_v16 = vunpack.c.h.bf16 %v5536_v38  ;;  %v5545_v49 = vunpack.c.h.bf16 %v5538_v14  ;;  %v5550_v15 = vld [vmem:[#allocation14_spill] sm:$0xff] }
 0x33a   : > { %2454 = vmatmul.mubr.msk.bf16.gmra.mrb[8].mxu0 %vm398_vm0, %v1700_v39  ;;  %2470 = vmatmul.mubr.msk.bf16.gmra.mrb[8].mxu1 %vm398_vm0, %v1708_v19  ;;  %v1712_v37 = vpack.c.bf16 %v1696_v43, %v1695_v42  ;;  %v5546_v1 = vunpack.c.h.bf16 %v5540_v20  ;;  %v5547_v55 = vunpack.c.h.bf16 %v5542_v46  ;;  %v5551_v35 = vunpack.c.l.bf16 %v5550_v15 }
 0x33b   : > { %2457 = vmatprep.mubr.msk.bf16.mxu0 %vm398_vm0, %v1701_v56  ;;  %2473 = vmatprep.mubr.msk.bf16.mxu1 %vm398_vm0, %v1709_v48  ;;  %v5557_v14 = vunpack.c.h.bf16 %v5550_v15 }
 0x342   : > { %2458 = vmatmul.mubr.msk.bf16.gmra.mrb[12].mxu0 %vm398_vm0, %v1702_v9  ;;  %2474 = vmatmul.mubr.msk.bf16.gmra.mrb[12].mxu1 %vm398_vm0, %v1710_v12  ;;  %v5548_v12 = vld [vmem:[#allocation6_spill] sm:$0xff] }
 0x343   : > { %2461 = vmatprep.mubr.msk.bf16.mxu0 %vm398_vm0, %v1703_v2  ;;  %2477 = vmatprep.mubr.msk.bf16.mxu1 %vm398_vm0, %v1711_v8  ;;  %v5549_v2 = vunpack.c.l.bf16 %v5548_v12 }
 0x34a   : > { %2462 = vmatmul.mubr.msk.bf16.gmra.mrb[16].mxu0 %vm398_vm0, %v1704_v31  ;;  %2478 = vmatmul.mubr.msk.bf16.gmra.mrb[16].mxu1 %vm398_vm0, %v1712_v37 }
 0x405   : > { %v2451_v53 = vpop.f32.mrb[4].mxu0  ;;  %v2467_v0 = vpop.f32.mrb[4].mxu1 }
 0x406   : > { %v1819_v34 = vadd.f32 %v2451_v53, %v4681_v24  ;;  %v1883_v57 = vadd.f32 %v2467_v0, %v4681_v24  ;;  %v1810_v13 = vpop.f32.mrb[5].mxu0  ;;  %v1874_v4 = vpop.f32.mrb[5].mxu1  ;;  %v5552_v0 = vld [vmem:[#allocation5_spill] sm:$0xff] }
 0x407   : > { %v1811_v22 = vadd.f32 %v4681_v24, %v1810_v13  ;;  %v1875_v28 = vadd.f32 %v4681_v24, %v1874_v4  ;;  %v2452_v5 = vpop.f32.mrb[6].mxu0  ;;  %v2468_v58 = vpop.f32.mrb[6].mxu1  ;;  %v5554_v13 = vld [vmem:[#allocation13_spill] sm:$0xff] }
 0x408   : > { %v1939_v23 = vadd.f32 %v5537_v10, %v1819_v34  ;;  %v1955_v30 = vadd.f32 %v5539_v3, %v1883_v57  ;;  %v1822_v36 = vadd.f32 %v2452_v5, %v4681_v24  ;;  %v1886_v44 = vadd.f32 %v2468_v58, %v4681_v24  ;;  %v1813_v62 = vpop.f32.mrb[7].mxu0  ;;  %v1877_v52 = vpop.f32.mrb[7].mxu1 }
 0x409   : > { %v1937_v21 = vadd.f32 %v5541_v11, %v1811_v22  ;;  %v1953_v63 = vadd.f32 %v5543_v25, %v1875_v28  ;;  %v1814_v17 = vadd.f32 %v4681_v24, %v1813_v62  ;;  %v1878_v54 = vadd.f32 %v4681_v24, %v1877_v52 }
 0x40a   : > { %v2305_v47 = vpack.c.bf16 %v1939_v23, %v1939_v23  ;;  %v2321_v33 = vpack.c.bf16 %v1955_v30, %v1955_v30  ;;  %v1940_v32 = vadd.f32 %v5544_v16, %v1822_v36  ;;  %v1956_v26 = vadd.f32 %v5545_v49, %v1886_v44 }
 0x40b   : > { %v2303_v45 = vpack.c.bf16 %v1937_v21, %v1937_v21  ;;  %v2319_v61 = vpack.c.bf16 %v1953_v63, %v1953_v63  ;;  %v1938_v50 = vadd.f32 %v5546_v1, %v1814_v17  ;;  %v1954_v59 = vadd.f32 %v5547_v55, %v1878_v54  ;;  %v5562_v55 = vld [vmem:[#allocation16_spill] sm:$0xff] }
 0x40c   : > { %2100 = vst.msk [vmem:[%s4698_s13 + $0x8] sm:$0xf] %vm2097_vm5, %v2305_v47  ;;  %2116 = vst.msk [vmem:[%s4698_s13 + $0x48] sm:$0xf] %vm2097_vm5, %v2321_v33  ;;  %v2306_v41 = vpack.c.bf16 %v1940_v32, %v1940_v32  ;;  %v2322_v39 = vpack.c.bf16 %v1956_v26, %v1956_v26  ;;  %v5553_v34 = vunpack.c.l.bf16 %v5552_v0  ;;  %v5555_v4 = vunpack.c.l.bf16 %v5554_v13 }
 0x40d   : > { %2098 = vst.msk [vmem:[%s4698_s13] sm:$0xf] %vm2097_vm5, %v2303_v45  ;;  %2114 = vst.msk [vmem:[%s4698_s13 + $0x40] sm:$0xf] %vm2097_vm5, %v2319_v61  ;;  %v2304_v19 = vpack.c.bf16 %v1938_v50, %v1938_v50  ;;  %v2320_v56 = vpack.c.bf16 %v1954_v59, %v1954_v59  ;;  %v2455_v48 = vpop.f32.mrb[8].mxu0  ;;  %v2471_v6 = vpop.f32.mrb[8].mxu1  ;;  %v5556_v10 = vunpack.c.h.bf16 %v5548_v12  ;;  %v5558_v44 = vunpack.c.h.bf16 %v5552_v0 }
 0x40e   : > { %2101 = vst.msk [vmem:[%s4698_s13 + $0xc] sm:$0xf] %vm2097_vm5, %v2306_v41  ;;  %2117 = vst.msk [vmem:[%s4698_s13 + $0x4c] sm:$0xf] %vm2097_vm5, %v2322_v39  ;;  %v1835_v29 = vadd.f32 %v2455_v48, %v4681_v24  ;;  %v1899_v40 = vadd.f32 %v2471_v6, %v4681_v24  ;;  %v1826_v60 = vpop.f32.mrb[9].mxu0  ;;  %v1890_v51 = vpop.f32.mrb[9].mxu1  ;;  %v5559_v52 = vunpack.c.h.bf16 %v5554_v13  ;;  %v5563_v59 = vunpack.c.l.bf16 %v5562_v55 }
 0x40f   : > { %2099 = vst.msk [vmem:[%s4698_s13 + $0x4] sm:$0xf] %vm2097_vm5, %v2304_v19  ;;  %2115 = vst.msk [vmem:[%s4698_s13 + $0x44] sm:$0xf] %vm2097_vm5, %v2320_v56  ;;  %v1827_v27 = vadd.f32 %v4681_v24, %v1826_v60  ;;  %v1891_v7 = vadd.f32 %v4681_v24, %v1890_v51  ;;  %v2456_v18 = vpop.f32.mrb[10].mxu0  ;;  %v2472_v9 = vpop.f32.mrb[10].mxu1  ;;  %v5569_v15 = vunpack.c.h.bf16 %v5562_v55 }
 0x410   : > { %v1943_v8 = vadd.f32 %v5549_v2, %v1835_v29  ;;  %v1959_v42 = vadd.f32 %v5551_v35, %v1899_v40  ;;  %v1838_v43 = vadd.f32 %v2456_v18, %v4681_v24  ;;  %v1902_v31 = vadd.f32 %v2472_v9, %v4681_v24  ;;  %v1829_v37 = vpop.f32.mrb[11].mxu0  ;;  %v1893_v53 = vpop.f32.mrb[11].mxu1  ;;  %v5560_v61 = vld [vmem:[#allocation8_spill] sm:$0xff]  ;;  %v5564_v6 = vld [vmem:[#allocation7_spill] sm:$0xff] }
 0x411   : > { %v1941_v57 = vadd.f32 %v5553_v34, %v1827_v27  ;;  %v1957_v22 = vadd.f32 %v5555_v4, %v1891_v7  ;;  %v1830_v28 = vadd.f32 %v4681_v24, %v1829_v37  ;;  %v1894_v5 = vadd.f32 %v4681_v24, %v1893_v53  ;;  %v5566_v60 = vld [vmem:[#allocation15_spill] sm:$0xff] }
 0x412   : > { %v2309_v58 = vpack.c.bf16 %v1943_v8, %v1943_v8  ;;  %v2325_v38 = vpack.c.bf16 %v1959_v42, %v1959_v42  ;;  %v1944_v23 = vadd.f32 %v5556_v10, %v1838_v43  ;;  %v1960_v3 = vadd.f32 %v5557_v14, %v1902_v31 }
 0x413   : > { %v2307_v30 = vpack.c.bf16 %v1941_v57, %v1941_v57  ;;  %v2323_v36 = vpack.c.bf16 %v1957_v22, %v1957_v22  ;;  %v1942_v62 = vadd.f32 %v5558_v44, %v1830_v28  ;;  %v1958_v20 = vadd.f32 %v5559_v52, %v1894_v5  ;;  %v5574_v52 = vld [vmem:[#allocation18_spill] sm:$0xff] }
 0x414   : > { %2104 = vst.msk [vmem:[%s4698_s13 + $0x18] sm:$0xf] %vm2097_vm5, %v2309_v58  ;;  %2120 = vst.msk [vmem:[%s4698_s13 + $0x58] sm:$0xf] %vm2097_vm5, %v2325_v38  ;;  %v2310_v11 = vpack.c.bf16 %v1944_v23, %v1944_v23  ;;  %v2326_v21 = vpack.c.bf16 %v1960_v3, %v1960_v3  ;;  %v5561_v1 = vunpack.c.l.bf16 %v5560_v61  ;;  %v5565_v29 = vunpack.c.l.bf16 %v5564_v6 }
 0x415   : > { %2102 = vst.msk [vmem:[%s4698_s13 + $0x10] sm:$0xf] %vm2097_vm5, %v2307_v30  ;;  %2118 = vst.msk [vmem:[%s4698_s13 + $0x50] sm:$0xf] %vm2097_vm5, %v2323_v36  ;;  %v2308_v46 = vpack.c.bf16 %v1942_v62, %v1942_v62  ;;  %v2324_v25 = vpack.c.bf16 %v1958_v20, %v1958_v20  ;;  %v2459_v63 = vpop.f32.mrb[12].mxu0  ;;  %v2475_v17 = vpop.f32.mrb[12].mxu1  ;;  %v5567_v51 = vunpack.c.l.bf16 %v5566_v60  ;;  %v5568_v2 = vunpack.c.h.bf16 %v5560_v61 }
 0x416   : > { %2105 = vst.msk [vmem:[%s4698_s13 + $0x1c] sm:$0xf] %vm2097_vm5, %v2310_v11  ;;  %2121 = vst.msk [vmem:[%s4698_s13 + $0x5c] sm:$0xf] %vm2097_vm5, %v2326_v21  ;;  %v1851_v54 = vadd.f32 %v2459_v63, %v4681_v24  ;;  %v1915_v47 = vadd.f32 %v2475_v17, %v4681_v24  ;;  %v1842_v33 = vpop.f32.mrb[13].mxu0  ;;  %v1906_v16 = vpop.f32.mrb[13].mxu1  ;;  %v5570_v31 = vunpack.c.h.bf16 %v5564_v6  ;;  %v5571_v53 = vunpack.c.h.bf16 %v5566_v60 }
 0x417   : > { %2103 = vst.msk [vmem:[%s4698_s13 + $0x14] sm:$0xf] %vm2097_vm5, %v2308_v46  ;;  %2119 = vst.msk [vmem:[%s4698_s13 + $0x54] sm:$0xf] %vm2097_vm5, %v2324_v25  ;;  %v1843_v32 = vadd.f32 %v4681_v24, %v1842_v33  ;;  %v1907_v49 = vadd.f32 %v4681_v24, %v1906_v16  ;;  %v2460_v26 = vpop.f32.mrb[14].mxu0  ;;  %v2476_v45 = vpop.f32.mrb[14].mxu1  ;;  %v5575_v20 = vunpack.c.l.bf16 %v5574_v52  ;;  %v5581_v55 = vunpack.c.h.bf16 %v5574_v52 }
 0x418   : > { %v1947_v50 = vadd.f32 %v5561_v1, %v1851_v54  ;;  %v1963_v41 = vadd.f32 %v5563_v59, %v1915_v47  ;;  %v1854_v39 = vadd.f32 %v2460_v26, %v4681_v24  ;;  %v1918_v19 = vadd.f32 %v2476_v45, %v4681_v24  ;;  %v1845_v56 = vpop.f32.mrb[15].mxu0  ;;  %v1909_v48 = vpop.f32.mrb[15].mxu1  ;;  %v5572_v36 = vld [vmem:[#allocation10_spill] sm:$0xff]  ;;  %v5576_v17 = vld [vmem:[#allocation9_spill] sm:$0xff] }
 0x419   : > { %v1945_v40 = vadd.f32 %v5565_v29, %v1843_v32  ;;  %v1961_v27 = vadd.f32 %v5567_v51, %v1907_v49  ;;  %v1846_v7 = vadd.f32 %v4681_v24, %v1845_v56  ;;  %v1910_v18 = vadd.f32 %v4681_v24, %v1909_v48  ;;  %v5578_v33 = vld [vmem:[#allocation17_spill] sm:$0xff] }
 0x41a   : > { %v2313_v9 = vpack.c.bf16 %v1947_v50, %v1947_v50  ;;  %v2329_v12 = vpack.c.bf16 %v1963_v41, %v1963_v41  ;;  %v1948_v8 = vadd.f32 %v5568_v2, %v1854_v39  ;;  %v1964_v35 = vadd.f32 %v5569_v15, %v1918_v19 }
 0x41b   : > { %v2311_v42 = vpack.c.bf16 %v1945_v40, %v1945_v40  ;;  %v2327_v43 = vpack.c.bf16 %v1961_v27, %v1961_v27  ;;  %v1946_v37 = vadd.f32 %v5570_v31, %v1846_v7  ;;  %v1962_v0 = vadd.f32 %v5571_v53, %v1910_v18 }
 0x41c   : > { %2108 = vst.msk [vmem:[%s4698_s13 + $0x28] sm:$0xf] %vm2097_vm5, %v2313_v9  ;;  %2124 = vst.msk [vmem:[%s4698_s13 + $0x68] sm:$0xf] %vm2097_vm5, %v2329_v12  ;;  %v2314_v34 = vpack.c.bf16 %v1948_v8, %v1948_v8  ;;  %v2330_v57 = vpack.c.bf16 %v1964_v35, %v1964_v35  ;;  %v5573_v44 = vunpack.c.l.bf16 %v5572_v36  ;;  %v5577_v54 = vunpack.c.l.bf16 %v5576_v17 }
 0x41d   : > { %2106 = vst.msk [vmem:[%s4698_s13 + $0x20] sm:$0xf] %vm2097_vm5, %v2311_v42  ;;  %2122 = vst.msk [vmem:[%s4698_s13 + $0x60] sm:$0xf] %vm2097_vm5, %v2327_v43  ;;  %v2312_v13 = vpack.c.bf16 %v1946_v37, %v1946_v37  ;;  %v2328_v4 = vpack.c.bf16 %v1962_v0, %v1962_v0  ;;  %v2463_v22 = vpop.f32.mrb[16].mxu0  ;;  %v2479_v28 = vpop.f32.mrb[16].mxu1  ;;  %v5579_v16 = vunpack.c.l.bf16 %v5578_v33  ;;  %v5580_v1 = vunpack.c.h.bf16 %v5572_v36 }
 0x41e   : > { %2109 = vst.msk [vmem:[%s4698_s13 + $0x2c] sm:$0xf] %vm2097_vm5, %v2314_v34  ;;  %2125 = vst.msk [vmem:[%s4698_s13 + $0x6c] sm:$0xf] %vm2097_vm5, %v2330_v57  ;;  %v1867_v5 = vadd.f32 %v2463_v22, %v4681_v24  ;;  %v1931_v58 = vadd.f32 %v2479_v28, %v4681_v24  ;;  %v1858_v38 = vpop.f32.mrb[17].mxu0  ;;  %v1922_v10 = vpop.f32.mrb[17].mxu1  ;;  %v5582_v19 = vunpack.c.h.bf16 %v5576_v17  ;;  %v5583_v48 = vunpack.c.h.bf16 %v5578_v33 }
 0x41f   : > { %2107 = vst.msk [vmem:[%s4698_s13 + $0x24] sm:$0xf] %vm2097_vm5, %v2312_v13  ;;  %2123 = vst.msk [vmem:[%s4698_s13 + $0x64] sm:$0xf] %vm2097_vm5, %v2328_v4  ;;  %v1859_v23 = vadd.f32 %v4681_v24, %v1858_v38  ;;  %v1923_v14 = vadd.f32 %v4681_v24, %v1922_v10  ;;  %v2464_v3 = vpop.f32.mrb[18].mxu0  ;;  %v2480_v30 = vpop.f32.mrb[18].mxu1 }
 0x420   : > { %v1951_v62 = vadd.f32 %v5573_v44, %v1867_v5  ;;  %v1967_v11 = vadd.f32 %v5575_v20, %v1931_v58  ;;  %v1870_v21 = vadd.f32 %v2464_v3, %v4681_v24  ;;  %v1934_v46 = vadd.f32 %v2480_v30, %v4681_v24  ;;  %v1861_v25 = vpop.f32.mrb[19].mxu0  ;;  %v1925_v63 = vpop.f32.mrb[19].mxu1 }
 0x421   : > { %v1949_v47 = vadd.f32 %v5577_v54, %v1859_v23  ;;  %v1965_v32 = vadd.f32 %v5579_v16, %v1923_v14  ;;  %v1862_v49 = vadd.f32 %v4681_v24, %v1861_v25  ;;  %v1926_v26 = vadd.f32 %v4681_v24, %v1925_v63 }
 0x422   : > { %v2317_v45 = vpack.c.bf16 %v1951_v62, %v1951_v62  ;;  %v2333_v61 = vpack.c.bf16 %v1967_v11, %v1967_v11  ;;  %v1952_v50 = vadd.f32 %v5580_v1, %v1870_v21  ;;  %v1968_v59 = vadd.f32 %v5581_v55, %v1934_v46 }
 0x423   : > { %v2315_v41 = vpack.c.bf16 %v1949_v47, %v1949_v47  ;;  %v2331_v39 = vpack.c.bf16 %v1965_v32, %v1965_v32  ;;  %v1950_v56 = vadd.f32 %v5582_v19, %v1862_v49  ;;  %v1966_v24 = vadd.f32 %v5583_v48, %v1926_v26 }
 0x424   : > { %2112 = vst.msk [vmem:[%s4698_s13 + $0x38] sm:$0xf] %vm2097_vm5, %v2317_v45  ;;  %2128 = vst.msk [vmem:[%s4698_s13 + $0x78] sm:$0xf] %vm2097_vm5, %v2333_v61  ;;  %v2318_v6 = vpack.c.bf16 %v1952_v50, %v1952_v50  ;;  %v2334_v29 = vpack.c.bf16 %v1968_v59, %v1968_v59 }
 0x425   : > { %2110 = vst.msk [vmem:[%s4698_s13 + $0x30] sm:$0xf] %vm2097_vm5, %v2315_v41  ;;  %2126 = vst.msk [vmem:[%s4698_s13 + $0x70] sm:$0xf] %vm2097_vm5, %v2331_v39  ;;  %v2316_v40 = vpack.c.bf16 %v1950_v56, %v1950_v56  ;;  %v2332_v60 = vpack.c.bf16 %v1966_v24, %v1966_v24 }
 0x426   : > { %2113 = vst.msk [vmem:[%s4698_s13 + $0x3c] sm:$0xf] %vm2097_vm5, %v2318_v6  ;;  %2129 = vst.msk [vmem:[%s4698_s13 + $0x7c] sm:$0xf] %vm2097_vm5, %v2334_v29 }
 0x427   : > { %2111 = vst.msk [vmem:[%s4698_s13 + $0x34] sm:$0xf] %vm2097_vm5, %v2316_v40  ;;  %2127 = vst.msk [vmem:[%s4698_s13 + $0x74] sm:$0xf] %vm2097_vm5, %v2332_v60 }
 0x428 PF: > { %s19_s30 = sadd.s32 1, %s2637_s30  }
 0x429   : > { %p16_p4 = scmp.ge.s32.totalorder %s19_s30, 4  }
 0x42b   :  { %18 = sbr.rel (!%p16_p4) target bundleno = 1 (0x1), region = 95 }

// kernel: sbi_detector_forward.7
= control target key start
LH: loop header
LB: loop body
LE: loop exit
PB: predicated region body
PF: predicated region fallthrough
CT: control target
= control target key end

     0   :  { %s3270_s21 = smov 0   ;;  %s4773_s0 = inlined_call_operand.vmem [shape: bf16[2,16,16,16], index: 0, kind: input, shape index: {}]   ;;  %s4774_s1 = inlined_call_operand.vmem [shape: bf16[16,96], index: 1, kind: input, shape index: {}]   ;;  %s4775_s2 = inlined_call_operand.vmem [shape: f32[1,96], index: 2, kind: input, shape index: {}]   ;;  %s4776_s3 = inlined_call_operand.vmem [shape: f32[9,1,96], index: 3, kind: input, shape index: {}]   ;;  %s4777_s4 = inlined_call_operand.vmem [shape: f32[1,96], index: 4, kind: input, shape index: {}]   ;;  %s4778_s5 = inlined_call_operand.vmem [shape: bf16[96,4], index: 5, kind: input, shape index: {}]   ;;  %s4779_s6 = inlined_call_operand.vmem [shape: f32[1,4], index: 6, kind: input, shape index: {}]   ;;  %s4780_s7 = inlined_call_operand.vmem [shape: bf16[4,96], index: 7, kind: input, shape index: {}]   ;;  %s4781_s8 = inlined_call_operand.vmem [shape: f32[1,96], index: 8, kind: input, shape index: {}]   ;;  %s4782_s9 = inlined_call_operand.vmem [shape: bf16[96,24], index: 9, kind: input, shape index: {}]   ;;  %s4783_s10 = inlined_call_operand.vmem [shape: f32[1,24], index: 10, kind: input, shape index: {}]   ;;  %s4784_s11 = inlined_call_operand.vmem [shape: bf16[64,256], index: 11, kind: input, shape index: {}]   ;;  %s4785_s12 = inlined_call_operand.vmem [shape: bf16[2,8,8,24], index: 12, kind: output, shape index: {}]  }
   0x1 LB: > { %s2548_s22 = sadd.s32 4294967295, %s3201_s21   ;;  %p2552_p0 = scmp.ge.s32.totalorder %s3201_s21, 1  ;;  %s3201_s21 = sphi %s3270_s21, %s22_s21  }
   0x2   : > { %p362_p1 = scmp.lt.s32.totalorder %s3201_s21, 3 }
   0x4   : > { %p363_p2 = pnand %p2552_p0, %p362_p1 }
   0x6   : > { %366 = sbr.rel (%p363_p2) target bundleno = 1493 (0x5d5), region = 68 }
   0xd   : > { %v2868_v0 = vld [vmem:[%s4774_s1] sm:$0xff]   ;;  %p404_p3 = scmp.lt.s32.totalorder %s2548_s22, 1  ;;  %vm510_vm0 = vcmask 130048   ;;  %vm944_vm1 = vcmask 785408   ;;  %v4786_v17 = vmov 0.0   ;;  %vm947_vm2 = vcmask 779264  }
   0xe   : > { %2782 = vmatprep.subr.bf16.mxu0 %v2868_v0  ;;  %952 = vst.msk [vmem:[#allocation2 + $0x30] sm:$0xff] %vm944_vm1, %v4786_v17  ;;  %953 = vst.msk [vmem:[#allocation2 + $0x38] sm:$0xff] %vm944_vm1, %v4786_v17  ;;  %v3433_v18 = vld [vmem:[%s4775_s2] ss:$0 sm:$0xff]  ;;  %vm3204_vm3 = vmmov 0   ;;  %vm2278_vm4 = vcmask 1041408  }
   0xf   : > { %s4804_s22 = smov (!%p404_p3, %s2548_s22), 1  ;;  %2783 = vmatpush3.bf16.msra.mxu0 %v2868_v0  ;;  %945 = vst.msk [vmem:[#allocation2] sm:$0xff] %vm944_vm1, %v4786_v17  ;;  %946 = vst.msk [vmem:[#allocation2 + $0x8] sm:$0xff] %vm944_vm1, %v4786_v17  ;;  %v3486_v0 = vld [vmem:[%s4776_s3] ss:$0 sm:$0xff]  ;;  %vm2274_vm5 = vcmask 31744  }
  0x10   : > { %s2704_s25 = sshll.u32 %s4804_s22, 7  ;;  %949 = vst.msk [vmem:[#allocation2 + $0x18] sm:$0xff] %vm944_vm1, %v4786_v17  ;;  %950 = vst.msk [vmem:[#allocation2 + $0x20] sm:$0xff] %vm944_vm1, %v4786_v17  ;;  %2816 = vmatprep.subr.bf16.mxu0 %v4786_v17  ;;  %s2705_s23 = sshll.u32 %s4804_s22, 5  ;;  %vm2484_vm6 = vcmask 191488  }
  0x11   : > { %s3287_s28 = scalar_lea.vmem %s4773_s0, %s2704_s25  ;;  %955 = vst.msk [vmem:[#allocation2 + $0x48] sm:$0xff] %vm944_vm1, %v4786_v17  ;;  %956 = vst.msk [vmem:[#allocation2 + $0x50] sm:$0xff] %vm944_vm1, %v4786_v17  ;;  %s413_s26 = scalar_lea.vmem %s4785_s12, %s2705_s23 }
  0x12   : > { %v2869_v1 = vld [vmem:[%s3287_s28] sm:$0xff]   ;;  %v2870_v2 = vld [vmem:[%s3287_s28 + $0x8] sm:$0xff]   ;;  %v2871_v3 = vld [vmem:[%s3287_s28 + $0x10] sm:$0xff]   ;;  %958 = vst.msk [vmem:[#allocation2 + $0x60] sm:$0xff] %vm944_vm1, %v4786_v17 }
  0x13   : > { %2784 = vmatprep.mubr.msk.bf16.mxu0 %vm510_vm0, %v2869_v1  ;;  %v2872_v4 = vld [vmem:[%s3287_s28 + $0x18] sm:$0xff]   ;;  %v2873_v5 = vld [vmem:[%s3287_s28 + $0x20] sm:$0xff]   ;;  %v2874_v6 = vld [vmem:[%s3287_s28 + $0x28] sm:$0xff]   ;;  %959 = vst.msk [vmem:[#allocation2 + $0x68] sm:$0xff] %vm944_vm1, %v4786_v17 }
  0x14   : > { %2785 = vmatmul.mubr.msk.bf16.vlgmr.msra.gmra.mrb[0].mxu0 %vm510_vm0, %v2870_v2  ;;  %v2875_v7 = vld [vmem:[%s3287_s28 + $0x30] sm:$0xff]   ;;  %v2876_v8 = vld [vmem:[%s3287_s28 + $0x38] sm:$0xff]   ;;  %v2877_v9 = vld [vmem:[%s3287_s28 + $0x40] sm:$0xff]   ;;  %961 = vst.msk [vmem:[#allocation2 + $0x78] sm:$0xff] %vm944_vm1, %v4786_v17 }
  0x15   : > { %2788 = vmatprep.mubr.msk.bf16.mxu0 %vm510_vm0, %v2871_v3  ;;  %v2878_v10 = vld [vmem:[%s3287_s28 + $0x48] sm:$0xff]   ;;  %v2879_v11 = vld [vmem:[%s3287_s28 + $0x50] sm:$0xff]   ;;  %v2880_v12 = vld [vmem:[%s3287_s28 + $0x58] sm:$0xff]   ;;  %962 = vst.msk [vmem:[#allocation2 + $0x80] sm:$0xff] %vm944_vm1, %v4786_v17 }
  0x16   : > { %v2881_v13 = vld [vmem:[%s3287_s28 + $0x60] sm:$0xff]   ;;  %v2882_v14 = vld [vmem:[%s3287_s28 + $0x68] sm:$0xff]   ;;  %v2883_v15 = vld [vmem:[%s3287_s28 + $0x70] sm:$0xff]   ;;  %964 = vst.msk [vmem:[#allocation2 + $0x90] sm:$0xff] %vm944_vm1, %v4786_v17 }
  0x17   : > { %v2884_v16 = vld [vmem:[%s3287_s28 + $0x78] sm:$0xff]   ;;  %965 = vst.msk [vmem:[#allocation2 + $0x98] sm:$0xff] %vm944_vm1, %v4786_v17  ;;  %967 = vst.msk [vmem:[#allocation2 + $0xa8] sm:$0xff] %vm944_vm1, %v4786_v17  ;;  %v1033_v1 = vld [vmem:[#allocation2] sm:$0xff] }
  0x18   : > { %968 = vst.msk [vmem:[#allocation2 + $0xb0] sm:$0xff] %vm944_vm1, %v4786_v17  ;;  %970 = vst.msk [vmem:[#allocation2 + $0xc0] sm:$0xff] %vm944_vm1, %v4786_v17 }
  0x19   : > { %971 = vst.msk [vmem:[#allocation2 + $0xc8] sm:$0xff] %vm944_vm1, %v4786_v17  ;;  %973 = vst.msk [vmem:[#allocation2 + $0xd8] sm:$0xff] %vm944_vm1, %v4786_v17 }
  0x1a   : > { %974 = vst.msk [vmem:[#allocation2 + $0xe0] sm:$0xff] %vm944_vm1, %v4786_v17  ;;  %976 = vst.msk [vmem:[#allocation2 + $0xf0] sm:$0xff] %vm944_vm1, %v4786_v17 }
  0x1b   : > { %977 = vst.msk [vmem:[#allocation2 + $0xf8] sm:$0xff] %vm944_vm1, %v4786_v17  ;;  %979 = vst.msk [vmem:[#allocation2 + $0x108] sm:$0xff] %vm944_vm1, %v4786_v17 }
  0x1c   : > { %2789 = vmatmul.mubr.msk.bf16.gmra.mrb[4].mxu0 %vm510_vm0, %v2872_v4  ;;  %980 = vst.msk [vmem:[#allocation2 + $0x110] sm:$0xff] %vm944_vm1, %v4786_v17  ;;  %982 = vst.msk [vmem:[#allocation2 + $0x120] sm:$0xff] %vm944_vm1, %v4786_v17 }
  0x1d   : > { %2792 = vmatprep.mubr.msk.bf16.mxu0 %vm510_vm0, %v2873_v5  ;;  %983 = vst.msk [vmem:[#allocation2 + $0x128] sm:$0xff] %vm944_vm1, %v4786_v17  ;;  %985 = vst.msk [vmem:[#allocation2 + $0x138] sm:$0xff] %vm944_vm1, %v4786_v17 }
  0x1e   : > { %986 = vst.msk [vmem:[#allocation2 + $0x140] sm:$0xff] %vm944_vm1, %v4786_v17  ;;  %988 = vst.msk [vmem:[#allocation2 + $0x150] sm:$0xff] %vm944_vm1, %v4786_v17 }
  0x1f   : > { %989 = vst.msk [vmem:[#allocation2 + $0x158] sm:$0xff] %vm944_vm1, %v4786_v17  ;;  %991 = vst.msk [vmem:[#allocation2 + $0x168] sm:$0xff] %vm944_vm1, %v4786_v17 }
  0x20   : > { %992 = vst.msk [vmem:[#allocation2 + $0x170] sm:$0xff] %vm944_vm1, %v4786_v17  ;;  %994 = vst.msk [vmem:[#allocation2 + $0x180] sm:$0xff] %vm944_vm1, %v4786_v17 }
  0x21   : > { %995 = vst.msk [vmem:[#allocation2 + $0x188] sm:$0xff] %vm944_vm1, %v4786_v17  ;;  %997 = vst.msk [vmem:[#allocation2 + $0x198] sm:$0xff] %vm944_vm1, %v4786_v17 }
  0x22   : > { %998 = vst.msk [vmem:[#allocation2 + $0x1a0] sm:$0xff] %vm944_vm1, %v4786_v17 }
  0x23   : > { %954 = vst.msk [vmem:[#allocation2 + $0x40] sm:$0x3] %vm947_vm2, %v4786_v17  ;;  %948 = vst.msk [vmem:[#allocation2 + $0x10] sm:$0x3] %vm947_vm2, %v4786_v17 }
  0x24   : > { %2793 = vmatmul.mubr.msk.bf16.gmra.mrb[8].mxu0 %vm510_vm0, %v2874_v6  ;;  %951 = vst.msk [vmem:[#allocation2 + $0x28] sm:$0x3] %vm947_vm2, %v4786_v17  ;;  %957 = vst.msk [vmem:[#allocation2 + $0x58] sm:$0x3] %vm947_vm2, %v4786_v17 }
  0x25   : > { %2796 = vmatprep.mubr.msk.bf16.mxu0 %vm510_vm0, %v2875_v7  ;;  %960 = vst.msk [vmem:[#allocation2 + $0x70] sm:$0x3] %vm947_vm2, %v4786_v17  ;;  %963 = vst.msk [vmem:[#allocation2 + $0x88] sm:$0x3] %vm947_vm2, %v4786_v17 }
  0x26   : > { %966 = vst.msk [vmem:[#allocation2 + $0xa0] sm:$0x3] %vm947_vm2, %v4786_v17  ;;  %969 = vst.msk [vmem:[#allocation2 + $0xb8] sm:$0x3] %vm947_vm2, %v4786_v17 }
  0x27   : > { %972 = vst.msk [vmem:[#allocation2 + $0xd0] sm:$0x3] %vm947_vm2, %v4786_v17  ;;  %975 = vst.msk [vmem:[#allocation2 + $0xe8] sm:$0x3] %vm947_vm2, %v4786_v17 }
  0x28   : > { %978 = vst.msk [vmem:[#allocation2 + $0x100] sm:$0x3] %vm947_vm2, %v4786_v17  ;;  %981 = vst.msk [vmem:[#allocation2 + $0x118] sm:$0x3] %vm947_vm2, %v4786_v17 }
  0x29   : > { %984 = vst.msk [vmem:[#allocation2 + $0x130] sm:$0x3] %vm947_vm2, %v4786_v17  ;;  %987 = vst.msk [vmem:[#allocation2 + $0x148] sm:$0x3] %vm947_vm2, %v4786_v17 }
  0x2a   : > { %990 = vst.msk [vmem:[#allocation2 + $0x160] sm:$0x3] %vm947_vm2, %v4786_v17  ;;  %993 = vst.msk [vmem:[#allocation2 + $0x178] sm:$0x3] %vm947_vm2, %v4786_v17 }
  0x2b   : > { %996 = vst.msk [vmem:[#allocation2 + $0x190] sm:$0x3] %vm947_vm2, %v4786_v17  ;;  %999 = vst.msk [vmem:[#allocation2 + $0x1a8] sm:$0x3] %vm947_vm2, %v4786_v17 }
  0x2c   : > { %2797 = vmatmul.mubr.msk.bf16.gmra.mrb[12].mxu0 %vm510_vm0, %v2876_v8 }
  0x2d   : > { %2800 = vmatprep.mubr.msk.bf16.mxu0 %vm510_vm0, %v2877_v9  ;;  %v3494_v9 = vld [vmem:[%s4776_s3 + $0x1] ss:$0 sm:$0xff] }
  0x34   : > { %2801 = vmatmul.mubr.msk.bf16.gmra.mrb[16].mxu0 %vm510_vm0, %v2878_v10  ;;  %v1069_v10 = vld [vmem:[#allocation2 + $0x1] sm:$0xff] }
  0x35   : > { %2804 = vmatprep.mubr.msk.bf16.mxu0 %vm510_vm0, %v2879_v11 }
  0x3c   : > { %2805 = vmatmul.mubr.msk.bf16.gmra.mrb[20].mxu0 %vm510_vm0, %v2880_v12 }
  0x3d   : > { %2808 = vmatprep.mubr.msk.bf16.mxu0 %vm510_vm0, %v2881_v13 }
  0x44   : > { %2809 = vmatmul.mubr.msk.bf16.gmra.mrb[24].mxu0 %vm510_vm0, %v2882_v14 }
  0x45   : > { %2812 = vmatprep.mubr.msk.bf16.mxu0 %vm510_vm0, %v2883_v15  ;;  %v1034_v15 = vld [vmem:[#allocation2 + $0x8] sm:$0xff] }
  0x4c   : > { %2813 = vmatmul.mubr.msk.bf16.gmra.mrb[28].mxu0 %vm510_vm0, %v2884_v16  ;;  %v1148_v16 = vmul.f32 %v3486_v0, %v1033_v1 }
  0xe7   : > { %v2786_v19 = vpop.f32.mrb[0].mxu0 }
  0xe8   : > { %v3436_v20 = vadd.f32 %v2786_v19, %v3433_v18  ;;  %v593_v21 = vpop.f32.mrb[1].mxu0 }
  0xe9   : > { %v3439_v22 = vadd.f32 %v3433_v18, %v593_v21  ;;  %v2787_v23 = vpop.f32.mrb[2].mxu0 }
  0xea   : > { %v2593_v24 = vmul.f32 -1.442695, %v3436_v20  ;;  %v3443_v25 = vadd.f32 %v2787_v23, %v3433_v18  ;;  %v596_v26 = vpop.f32.mrb[3].mxu0 }
  0xeb   : > { %v2591_v27 = vmul.f32 -1.442695, %v3439_v22  ;;  %v3447_v28 = vadd.f32 %v3433_v18, %v596_v26  ;;  %v1070_v26 = vld [vmem:[#allocation2 + $0x9] sm:$0xff] }
  0xec   : > { %2909 = vpow2.f32 %v2593_v24  ;;  %v2594_v29 = vmul.f32 -1.442695, %v3443_v25 }
  0xed   : > { %2911 = vpow2.f32 %v2591_v27  ;;  %v2592_v30 = vmul.f32 -1.442695, %v3447_v28 }
  0xee   : > { %2913 = vpow2.f32 %v2594_v29 }
  0xef   : > { %2915 = vpow2.f32 %v2592_v30  ;;  %v2790_v31 = vpop.f32.mrb[4].mxu0 }
  0xf0   : > { %v3452_v32 = vadd.f32 %v2790_v31, %v3433_v18  ;;  %v609_v33 = vpop.f32.mrb[5].mxu0  ;;  %v1188_v31 = vmul.f32 %v3494_v9, %v1069_v10 }
  0xf1   : > { %v3455_v34 = vadd.f32 %v3433_v18, %v609_v33  ;;  %v2791_v35 = vpop.f32.mrb[6].mxu0 }
  0xf2   : > { %v2597_v36 = vmul.f32 -1.442695, %v3452_v32  ;;  %v3459_v37 = vadd.f32 %v2791_v35, %v3433_v18  ;;  %v612_v38 = vpop.f32.mrb[7].mxu0 }
  0xf3   : > { %v2595_v39 = vmul.f32 -1.442695, %v3455_v34  ;;  %v3463_v40 = vadd.f32 %v3433_v18, %v612_v38  ;;  %v1149_v38 = vmul.f32 %v3486_v0, %v1034_v15 }
  0xf4   : > { %2917 = vpow2.f32 %v2597_v36  ;;  %v2598_v41 = vmul.f32 -1.442695, %v3459_v37 }
  0xf5   : > { %2919 = vpow2.f32 %v2595_v39  ;;  %v2596_v42 = vmul.f32 -1.442695, %v3463_v40 }
  0xf6   : > { %v2910_v43 = vpop.eup %2909  ;;  %2921 = vpow2.f32 %v2598_v41 }
  0xf7   : > { %v2912_v44 = vpop.eup %2911  ;;  %v818_v45 = vadd.f32 1.0, %v2910_v43  ;;  %2923 = vpow2.f32 %v2596_v42  ;;  %v2794_v46 = vpop.f32.mrb[8].mxu0  ;;  %v3517_v43 = vld [vmem:[%s4776_s3 + $0x2] ss:$0 sm:$0xff] }
  0xf8   : > { %v2914_v47 = vpop.eup %2913  ;;  %v816_v48 = vadd.f32 1.0, %v2912_v44  ;;  %v3468_v49 = vadd.f32 %v2794_v46, %v3433_v18  ;;  %v625_v50 = vpop.f32.mrb[9].mxu0  ;;  %v1105_v44 = vld [vmem:[#allocation2 + $0x2] sm:$0xff] }
  0xf9   : > { %v2916_v51 = vpop.eup %2915  ;;  %2925 = vrcp.f32 %v818_v45  ;;  %v819_v52 = vadd.f32 1.0, %v2914_v47  ;;  %v3471_v53 = vadd.f32 %v3433_v18, %v625_v50  ;;  %v2795_v54 = vpop.f32.mrb[10].mxu0  ;;  %v1189_v45 = vmul.f32 %v3494_v9, %v1070_v26  ;;  %v1106_v47 = vld [vmem:[#allocation2 + $0xa] sm:$0xff] }
  0xfa   : > { %2927 = vrcp.f32 %v816_v48  ;;  %v817_v55 = vadd.f32 1.0, %v2916_v51  ;;  %v2601_v56 = vmul.f32 -1.442695, %v3468_v49  ;;  %v3475_v57 = vadd.f32 %v2795_v54, %v3433_v18  ;;  %v628_v58 = vpop.f32.mrb[11].mxu0 }
  0xfb   : > { %2929 = vrcp.f32 %v819_v52  ;;  %v2599_v59 = vmul.f32 -1.442695, %v3471_v53  ;;  %v3479_v60 = vadd.f32 %v3433_v18, %v628_v58  ;;  %v1220_v51 = vadd.f32 %v1188_v31, %v1148_v16 }
  0xfc   : > { %2931 = vrcp.f32 %v817_v55  ;;  %v2602_v61 = vmul.f32 -1.442695, %v3475_v57 }
  0xfd   : > { %2933 = vpow2.f32 %v2601_v56  ;;  %v2600_v62 = vmul.f32 -1.442695, %v3479_v60 }
  0xfe   : > { %v2918_v63 = vpop.eup %2917  ;;  %2935 = vpow2.f32 %v2599_v59 }
  0xff   : > { %v2920_v2 = vpop.eup %2919  ;;  %v822_v3 = vadd.f32 1.0, %v2918_v63  ;;  %2937 = vpow2.f32 %v2602_v61  ;;  %v2798_v4 = vpop.f32.mrb[12].mxu0  ;;  %v1261_v63 = vmul.f32 %v3517_v43, %v1106_v47 }
 0x100   : > { %v2922_v5 = vpop.eup %2921  ;;  %v820_v6 = vadd.f32 1.0, %v2920_v2  ;;  %2939 = vpow2.f32 %v2600_v62  ;;  %v3489_v7 = vadd.f32 %v2798_v4, %v3433_v18  ;;  %v641_v8 = vpop.f32.mrb[13].mxu0  ;;  %v1221_v62 = vadd.f32 %v1189_v45, %v1149_v38 }
 0x101   : > { %v2924_v11 = vpop.eup %2923  ;;  %2941 = vrcp.f32 %v822_v3  ;;  %v823_v12 = vadd.f32 1.0, %v2922_v5  ;;  %v3497_v13 = vadd.f32 %v3433_v18, %v641_v8  ;;  %v2799_v14 = vpop.f32.mrb[14].mxu0 }
 0x102   : > { %2943 = vrcp.f32 %v820_v6  ;;  %v821_v19 = vadd.f32 1.0, %v2924_v11  ;;  %v2605_v21 = vmul.f32 -1.442695, %v3489_v7  ;;  %v3502_v23 = vadd.f32 %v2799_v14, %v3433_v18  ;;  %v644_v24 = vpop.f32.mrb[15].mxu0 }
 0x103   : > { %v2926_v27 = vpop.eup %2925  ;;  %2945 = vrcp.f32 %v823_v12  ;;  %v2603_v29 = vmul.f32 -1.442695, %v3497_v13  ;;  %v3506_v30 = vadd.f32 %v3433_v18, %v644_v24 }
 0x104   : > { %v2928_v33 = vpop.eup %2927  ;;  %v914_v35 = vmul.f32 %v2926_v27, %v3436_v20  ;;  %2947 = vrcp.f32 %v821_v19  ;;  %v2606_v36 = vmul.f32 -1.442695, %v3502_v23 }
 0x105   : > { %v2930_v39 = vpop.eup %2929  ;;  %v912_v41 = vmul.f32 %v2928_v33, %v3439_v22  ;;  %2949 = vpow2.f32 %v2605_v21  ;;  %v2604_v42 = vmul.f32 -1.442695, %v3506_v30 }
 0x106   : > { %v2932_v20 = vpop.eup %2931  ;;  %1003 = vst.msk [vmem:[#allocation2 + $0x31] sm:$0xff] %vm944_vm1, %v914_v35  ;;  %v915_v46 = vmul.f32 %v2930_v39, %v3443_v25  ;;  %2951 = vpow2.f32 %v2603_v29  ;;  %v1260_v25 = vmul.f32 %v3517_v43, %v1105_v44  ;;  %v3552_v29 = vadd.f32 %v1261_v63, %v1221_v62 }
 0x107   : > { %v2934_v48 = vpop.eup %2933  ;;  %1001 = vst.msk [vmem:[#allocation2 + $0x19] sm:$0xff] %vm944_vm1, %v912_v41  ;;  %v913_v22 = vmul.f32 %v2932_v20, %v3447_v28  ;;  %2953 = vpow2.f32 %v2606_v36  ;;  %v2802_v50 = vpop.f32.mrb[16].mxu0 }
 0x108   : > { %v2936_v52 = vpop.eup %2935  ;;  %1004 = vst.msk [vmem:[#allocation2 + $0x39] sm:$0xff] %vm944_vm1, %v915_v46  ;;  %v826_v54 = vadd.f32 1.0, %v2934_v48  ;;  %2955 = vpow2.f32 %v2604_v42  ;;  %v3526_v55 = vadd.f32 %v2802_v50, %v3433_v18  ;;  %v657_v56 = vpop.f32.mrb[17].mxu0  ;;  %v3544_v16 = vadd.f32 %v1260_v25, %v1220_v51 }
 0x109   : > { %v2938_v58 = vpop.eup %2937  ;;  %1002 = vst.msk [vmem:[#allocation2 + $0x21] sm:$0xff] %vm944_vm1, %v913_v22  ;;  %v824_v59 = vadd.f32 1.0, %v2936_v52  ;;  %v3531_v28 = vadd.f32 %v3433_v18, %v657_v56  ;;  %v2803_v61 = vpop.f32.mrb[18].mxu0 }
 0x10a   : > { %v2940_v1 = vpop.eup %2939  ;;  %2957 = vrcp.f32 %v826_v54  ;;  %v827_v2 = vadd.f32 1.0, %v2938_v58  ;;  %v2609_v3 = vmul.f32 -1.442695, %v3526_v55  ;;  %v3536_v4 = vadd.f32 %v2803_v61, %v3433_v18  ;;  %v660_v5 = vpop.f32.mrb[19].mxu0 }
 0x10b   : > { %v2942_v6 = vpop.eup %2941  ;;  %2959 = vrcp.f32 %v824_v59  ;;  %v825_v8 = vadd.f32 1.0, %v2940_v1  ;;  %v2607_v10 = vmul.f32 -1.442695, %v3531_v28  ;;  %v3540_v11 = vadd.f32 %v3433_v18, %v660_v5 }
 0x10c   : > { %v2944_v12 = vpop.eup %2943  ;;  %v918_v14 = vmul.f32 %v2942_v6, %v3452_v32  ;;  %2961 = vrcp.f32 %v827_v2  ;;  %v2610_v15 = vmul.f32 -1.442695, %v3536_v4 }
 0x10d   : > { %v2946_v19 = vpop.eup %2945  ;;  %v916_v21 = vmul.f32 %v2944_v12, %v3455_v34  ;;  %2963 = vrcp.f32 %v825_v8  ;;  %v2608_v24 = vmul.f32 -1.442695, %v3540_v11  ;;  %v3548_v26 = vld [vmem:[#allocation2 + $0x30] sm:$0xff] }
 0x10e   : > { %v3550_v27 = vld [vmem:[#allocation2 + $0x31] sm:$0xff]  ;;  %v2948_v31 = vpop.eup %2947  ;;  %1007 = vst.msk [vmem:[#allocation2 + $0x61] sm:$0xff] %vm944_vm1, %v918_v14  ;;  %v919_v32 = vmul.f32 %v2946_v19, %v3459_v37  ;;  %2965 = vpow2.f32 %v2609_v3  ;;  %v3558_v35 = vld [vmem:[#allocation2 + $0x19] sm:$0xff]  ;;  %v1152_v34 = vmul.f32 %v3486_v0, %v3548_v26 }
 0x10f   : > { %v3556_v33 = vld [vmem:[#allocation2 + $0x18] sm:$0xff]  ;;  %v1192_v36 = vmul.f32 %v3494_v9, %v3550_v27  ;;  %v2950_v38 = vpop.eup %2949  ;;  %1005 = vst.msk [vmem:[#allocation2 + $0x49] sm:$0xff] %vm944_vm1, %v916_v21  ;;  %v917_v39 = vmul.f32 %v2948_v31, %v3463_v40  ;;  %2967 = vpow2.f32 %v2607_v10  ;;  %v2806_v41 = vpop.f32.mrb[20].mxu0  ;;  %v1190_v44 = vmul.f32 %v3494_v9, %v3558_v35 }
 0x110   : > { %v3566_v42 = vld [vmem:[#allocation2 + $0x38] sm:$0xff]  ;;  %v1150_v37 = vmul.f32 %v3486_v0, %v3556_v33  ;;  %v2952_v45 = vpop.eup %2951  ;;  %1008 = vst.msk [vmem:[#allocation2 + $0x69] sm:$0xff] %vm944_vm1, %v919_v32  ;;  %v830_v20 = vadd.f32 1.0, %v2950_v38  ;;  %2969 = vpow2.f32 %v2610_v15  ;;  %v3574_v46 = vadd.f32 %v2806_v41, %v3433_v18  ;;  %v673_v47 = vpop.f32.mrb[21].mxu0  ;;  %v3576_v40 = vld [vmem:[#allocation2 + $0x20] sm:$0xff] }
 0x111   : > { %v1153_v48 = vmul.f32 %v3486_v0, %v3566_v42  ;;  %v2954_v22 = vpop.eup %2953  ;;  %1006 = vst.msk [vmem:[#allocation2 + $0x51] sm:$0xff] %vm944_vm1, %v917_v39  ;;  %v828_v50 = vadd.f32 1.0, %v2952_v45  ;;  %2971 = vpow2.f32 %v2608_v24  ;;  %v3582_v51 = vadd.f32 %v3433_v18, %v673_v47  ;;  %v2807_v52 = vpop.f32.mrb[22].mxu0  ;;  %v3584_v54 = vld [vmem:[#allocation2 + $0x21] sm:$0xff]  ;;  %v3586_v56 = vld [vmem:[#allocation2 + $0x39] sm:$0xff] }
 0x112   : > { %v1151_v25 = vmul.f32 %v3486_v0, %v3576_v40  ;;  %v2956_v58 = vpop.eup %2955  ;;  %2973 = vrcp.f32 %v830_v20  ;;  %v831_v59 = vadd.f32 1.0, %v2954_v22  ;;  %v2613_v61 = vmul.f32 -1.442695, %v3574_v46  ;;  %v676_v63 = vpop.f32.mrb[23].mxu0  ;;  %v3599_v8 = vld [vmem:[#allocation2 + $0x1a] sm:$0xff]  ;;  %v3607_v21 = vld [vmem:[#allocation2 + $0x22] sm:$0xff] }
 0x113   : > { %v3592_v62 = vadd.f32 %v2807_v52, %v3433_v18  ;;  %2975 = vrcp.f32 %v828_v50  ;;  %v829_v1 = vadd.f32 1.0, %v2956_v58  ;;  %v2611_v2 = vmul.f32 -1.442695, %v3582_v51  ;;  %v3610_v38 = vld [vmem:[#allocation2 + $0x32] sm:$0xff]  ;;  %v3614_v47 = vld [vmem:[#allocation2 + $0x3a] sm:$0xff] }
 0x114   : > { %v3596_v3 = vadd.f32 %v3433_v18, %v676_v63  ;;  %v2958_v5 = vpop.eup %2957  ;;  %2977 = vrcp.f32 %v831_v59  ;;  %v1191_v10 = vmul.f32 %v3494_v9, %v3584_v54  ;;  %v1193_v12 = vmul.f32 %v3494_v9, %v3586_v56 }
 0x115   : > { %v2614_v6 = vmul.f32 -1.442695, %v3592_v62  ;;  %v2960_v14 = vpop.eup %2959  ;;  %v922_v15 = vmul.f32 %v2958_v5, %v3468_v49  ;;  %2979 = vrcp.f32 %v829_v1  ;;  %v1222_v24 = vadd.f32 %v1190_v44, %v1150_v37 }
 0x116   : > { %v2612_v19 = vmul.f32 -1.442695, %v3596_v3  ;;  %v2962_v31 = vpop.eup %2961  ;;  %v920_v32 = vmul.f32 %v2960_v14, %v3471_v53  ;;  %2981 = vpow2.f32 %v2613_v61  ;;  %v1223_v39 = vadd.f32 %v1191_v10, %v1151_v25 }
 0x117   : > { %v1224_v41 = vadd.f32 %v1192_v36, %v1152_v34  ;;  %v2964_v45 = vpop.eup %2963  ;;  %1011 = vst.msk [vmem:[#allocation2 + $0x91] sm:$0xff] %vm944_vm1, %v922_v15  ;;  %v923_v20 = vmul.f32 %v2962_v31, %v3475_v57  ;;  %2983 = vpow2.f32 %v2611_v2  ;;  %v2810_v49 = vpop.f32.mrb[24].mxu0  ;;  %v1225_v22 = vadd.f32 %v1193_v12, %v1153_v48  ;;  %v3646_v31 = vld [vmem:[%s4776_s3 + $0x3] ss:$0 sm:$0xff] }
 0x118   : > { %v1262_v37 = vmul.f32 %v3517_v43, %v3599_v8  ;;  %v2966_v44 = vpop.eup %2965  ;;  %1009 = vst.msk [vmem:[#allocation2 + $0x79] sm:$0xff] %vm944_vm1, %v920_v32  ;;  %v921_v53 = vmul.f32 %v2964_v45, %v3479_v60  ;;  %2985 = vpow2.f32 %v2614_v6  ;;  %v3621_v34 = vadd.f32 %v2810_v49, %v3433_v18  ;;  %v689_v36 = vpop.f32.mrb[25].mxu0 }
 0x119   : > { %v1263_v57 = vmul.f32 %v3517_v43, %v3607_v21  ;;  %v2968_v50 = vpop.eup %2967  ;;  %1012 = vst.msk [vmem:[#allocation2 + $0x99] sm:$0xff] %vm944_vm1, %v923_v20  ;;  %v834_v48 = vadd.f32 1.0, %v2966_v44  ;;  %2987 = vpow2.f32 %v2612_v19  ;;  %v3627_v52 = vadd.f32 %v3433_v18, %v689_v36  ;;  %v2811_v25 = vpop.f32.mrb[26].mxu0 }
 0x11a   : > { %v1264_v60 = vmul.f32 %v3517_v43, %v3610_v38  ;;  %v2970_v58 = vpop.eup %2969  ;;  %1010 = vst.msk [vmem:[#allocation2 + $0x81] sm:$0xff] %vm944_vm1, %v921_v53  ;;  %v832_v59 = vadd.f32 1.0, %v2968_v50  ;;  %v2617_v61 = vmul.f32 -1.442695, %v3621_v34  ;;  %v3634_v63 = vadd.f32 %v2811_v25, %v3433_v18  ;;  %v692_v1 = vpop.f32.mrb[27].mxu0 }
 0x11b   : > { %v1265_v2 = vmul.f32 %v3517_v43, %v3614_v47  ;;  %v2972_v5 = vpop.eup %2971  ;;  %2989 = vrcp.f32 %v834_v48  ;;  %v835_v6 = vadd.f32 1.0, %v2970_v58  ;;  %v2615_v10 = vmul.f32 -1.442695, %v3627_v52 }
 0x11c   : > { %v3640_v12 = vadd.f32 %v3433_v18, %v692_v1  ;;  %v2974_v14 = vpop.eup %2973  ;;  %2991 = vrcp.f32 %v832_v59  ;;  %v833_v15 = vadd.f32 1.0, %v2972_v5  ;;  %v2618_v19 = vmul.f32 -1.442695, %v3634_v63  ;;  %v3676_v59 = vld [vmem:[#allocation2 + $0x48] sm:$0xff] }
 0x11d   : > { %v3648_v32 = vadd.f32 %v1262_v37, %v1222_v24  ;;  %v2976_v45 = vpop.eup %2975  ;;  %v926_v20 = vmul.f32 %v2974_v14, %v3489_v7  ;;  %2993 = vrcp.f32 %v835_v6  ;;  %v3652_v44 = vadd.f32 %v1263_v57, %v1223_v39 }
 0x11e   : > { %v2616_v49 = vmul.f32 -1.442695, %v3640_v12  ;;  %v2978_v53 = vpop.eup %2977  ;;  %v924_v36 = vmul.f32 %v2976_v45, %v3497_v13  ;;  %2995 = vrcp.f32 %v833_v15  ;;  %v1296_v50 = vadd.f32 %v1264_v60, %v1224_v41 }
 0x11f   : > { %4788 = vst [vmem:[#allocation3_spill] sm:$0xff] %v3652_v44  ;;  %v3655_v48 = vadd.f32 %v1265_v2, %v1225_v22  ;;  %v2980_v25 = vpop.eup %2979  ;;  %1015 = vst.msk [vmem:[#allocation2 + $0xc1] sm:$0xff] %vm944_vm1, %v926_v20  ;;  %v927_v24 = vmul.f32 %v2978_v53, %v3502_v23  ;;  %2997 = vpow2.f32 %v2617_v61  ;;  %v2814_v37 = vpop.f32.mrb[28].mxu0  ;;  %v1332_v7 = vmul.f32 %v3646_v31, %v3556_v33 }
 0x120   : > { %v1333_v39 = vmul.f32 %v3646_v31, %v3576_v40  ;;  %v2982_v57 = vpop.eup %2981  ;;  %1013 = vst.msk [vmem:[#allocation2 + $0xa9] sm:$0xff] %vm944_vm1, %v924_v36  ;;  %v925_v13 = vmul.f32 %v2980_v25, %v3506_v30  ;;  %2999 = vpow2.f32 %v2615_v10  ;;  %v3666_v41 = vadd.f32 %v2814_v37, %v3433_v18  ;;  %v705_v22 = vpop.f32.mrb[29].mxu0  ;;  %v3687_v10 = vld [vmem:[#allocation2 + $0x50] sm:$0xff] }
 0x121   : > { %v3670_v23 = vmul.f32 %v3646_v31, %v3548_v26  ;;  %v2984_v60 = vpop.eup %2983  ;;  %1016 = vst.msk [vmem:[#allocation2 + $0xc9] sm:$0xff] %vm944_vm1, %v927_v24  ;;  %v838_v33 = vadd.f32 1.0, %v2982_v57  ;;  %3001 = vpow2.f32 %v2618_v19  ;;  %v3674_v40 = vadd.f32 %v3433_v18, %v705_v22  ;;  %v2815_v58 = vpop.f32.mrb[30].mxu0  ;;  %v3700_v24 = vld [vmem:[%s4776_s3 + $0x4] ss:$0 sm:$0xff] }
 0x122   : > { %v3680_v30 = vmul.f32 %v3646_v31, %v3566_v42  ;;  %v2986_v61 = vpop.eup %2985  ;;  %1014 = vst.msk [vmem:[#allocation2 + $0xb1] sm:$0xff] %vm944_vm1, %v925_v13  ;;  %v836_v1 = vadd.f32 1.0, %v2984_v60  ;;  %3003 = vpow2.f32 %v2616_v49  ;;  %v2621_v2 = vmul.f32 -1.442695, %v3666_v41  ;;  %v708_v6 = vpop.f32.mrb[31].mxu0 }
 0x123   : > { %4789 = vst [vmem:[#allocation4_spill] sm:$0xff] %v3670_v23  ;;  %v3685_v5 = vadd.f32 %v2815_v58, %v3433_v18  ;;  %v2988_v14 = vpop.eup %2987  ;;  %3005 = vrcp.f32 %v838_v33  ;;  %v839_v15 = vadd.f32 1.0, %v2986_v61  ;;  %v2619_v19 = vmul.f32 -1.442695, %v3674_v40 }
 0x124   : > { %4790 = vst [vmem:[#allocation5_spill] sm:$0xff] %v3680_v30  ;;  %v3691_v45 = vadd.f32 %v3433_v18, %v708_v6  ;;  %3007 = vrcp.f32 %v836_v1  ;;  %v837_v20 = vadd.f32 1.0, %v2988_v14  ;;  %v1336_v53 = vmul.f32 %v3646_v31, %v3676_v59 }
 0x125   : > { %v2622_v49 = vmul.f32 -1.442695, %v3685_v5  ;;  %v2990_v36 = vpop.eup %2989  ;;  %3009 = vrcp.f32 %v839_v15  ;;  %v1337_v18 = vmul.f32 %v3646_v31, %v3687_v10  ;;  %v1364_v37 = vadd.f32 %v1332_v7, %v3544_v16 }
 0x126   : > { %v2620_v25 = vmul.f32 -1.442695, %v3691_v45  ;;  %v2992_v57 = vpop.eup %2991  ;;  %v930_v13 = vmul.f32 %v2990_v36, %v3526_v55  ;;  %3011 = vrcp.f32 %v837_v20  ;;  %v1049_v22 = vld [vmem:[#allocation2 + $0xc0] sm:$0xff]  ;;  %v1365_v33 = vadd.f32 %v1333_v39, %v3552_v29 }
 0x127   : > { %v1085_v60 = vld [vmem:[#allocation2 + $0xc1] sm:$0xff]  ;;  %v3707_v58 = vadd.f32 %v1336_v53, %v1296_v50  ;;  %v2994_v61 = vpop.eup %2993  ;;  %v928_v1 = vmul.f32 %v2992_v57, %v3531_v28  ;;  %3013 = vpow2.f32 %v2621_v2  ;;  %v1164_v6 = vmul.f32 %v3486_v0, %v1049_v22 }
 0x128   : > { %v1204_v14 = vmul.f32 %v3494_v9, %v1085_v60  ;;  %v2996_v15 = vpop.eup %2995  ;;  %1019 = vst.msk [vmem:[#allocation2 + $0xf1] sm:$0xff] %vm944_vm1, %v930_v13  ;;  %v931_v55 = vmul.f32 %v2994_v61, %v3536_v4  ;;  %3015 = vpow2.f32 %v2619_v19  ;;  %v1050_v16 = vld [vmem:[#allocation2 + $0xc8] sm:$0xff]  ;;  %v3715_v29 = vadd.f32 %v1337_v18, %v3655_v48 }
 0x129   : > { %4791 = vst [vmem:[#allocation6_spill] sm:$0xff] %v3707_v58  ;;  %v1086_v7 = vld [vmem:[#allocation2 + $0xc9] sm:$0xff]  ;;  %v1404_v28 = vmul.f32 %v3700_v24, %v3558_v35  ;;  %v2998_v50 = vpop.eup %2997  ;;  %1017 = vst.msk [vmem:[#allocation2 + $0xd9] sm:$0xff] %vm944_vm1, %v928_v1  ;;  %v929_v39 = vmul.f32 %v2996_v15, %v3540_v11  ;;  %3017 = vpow2.f32 %v2622_v49  ;;  %v1165_v53 = vmul.f32 %v3486_v0, %v1050_v16 }
 0x12a   : > { %v1121_v20 = vld [vmem:[#allocation2 + $0xc2] sm:$0xff]  ;;  %4792 = vst [vmem:[#allocation7_spill] sm:$0xff] %v3715_v29  ;;  %v1122_v2 = vld [vmem:[#allocation2 + $0xca] sm:$0xff]  ;;  %v1205_v4 = vmul.f32 %v3494_v9, %v1086_v7  ;;  %v3000_v19 = vpop.eup %2999  ;;  %1020 = vst.msk [vmem:[#allocation2 + $0xf9] sm:$0xff] %vm944_vm1, %v931_v55  ;;  %v842_v36 = vadd.f32 1.0, %v2998_v50  ;;  %3019 = vpow2.f32 %v2620_v25  ;;  %v1236_v48 = vadd.f32 %v1204_v14, %v1164_v6 }
 0x12b   : > { %v1276_v18 = vmul.f32 %v3517_v43, %v1121_v20  ;;  %v3002_v35 = vpop.eup %3001  ;;  %1018 = vst.msk [vmem:[#allocation2 + $0xe1] sm:$0xff] %vm944_vm1, %v929_v39  ;;  %v840_v57 = vadd.f32 1.0, %v3000_v19  ;;  %v1277_v11 = vmul.f32 %v3517_v43, %v1122_v2  ;;  %v1405_v49 = vmul.f32 %v3700_v24, %v3584_v54  ;;  %v3734_v25 = vld [vmem:[%s4776_s3 + $0x5] ss:$0 sm:$0xff] }
 0x12c   : > { %v1237_v13 = vadd.f32 %v1205_v4, %v1165_v53  ;;  %v3004_v22 = vpop.eup %3003  ;;  %3021 = vrcp.f32 %v842_v36  ;;  %v843_v60 = vadd.f32 1.0, %v3002_v35  ;;  %v3738_v1 = vmul.f32 %v3700_v24, %v3550_v27 }
 0x12d   : > { %v3729_v61 = vadd.f32 %v1276_v18, %v1236_v48  ;;  %v3006_v6 = vpop.eup %3005  ;;  %3023 = vrcp.f32 %v840_v57  ;;  %v841_v14 = vadd.f32 1.0, %v3004_v22  ;;  %v3744_v54 = vmul.f32 %v3700_v24, %v3586_v56 }
 0x12e   : > { %4793 = vst [vmem:[#allocation8_spill] sm:$0xff] %v3738_v1  ;;  %v3740_v15 = vadd.f32 %v1277_v11, %v1237_v13  ;;  %v3008_v55 = vpop.eup %3007  ;;  %v934_v16 = vmul.f32 %v3006_v6, %v3574_v46  ;;  %3025 = vrcp.f32 %v843_v60  ;;  %v3747_v7 = vadd.f32 %v1404_v28, %v1364_v37 }
 0x12f   : > { %4794 = vst [vmem:[#allocation9_spill] sm:$0xff] %v3744_v54  ;;  %v3749_v20 = vadd.f32 %v1405_v49, %v1365_v33  ;;  %v3010_v50 = vpop.eup %3009  ;;  %v932_v39 = vmul.f32 %v3008_v55, %v3582_v51  ;;  %3027 = vrcp.f32 %v841_v14  ;;  %v3752_v2 = vld [vmem:[#allocation2 + $0xf0] sm:$0xff]  ;;  %v3758_v4 = vmul.f32 %v3734_v25, %v3599_v8 }
 0x130   : > { %v3754_v53 = vld [vmem:[#allocation2 + $0xf1] sm:$0xff]  ;;  %v3762_v46 = vmul.f32 %v3734_v25, %v3607_v21  ;;  %v3012_v37 = vpop.eup %3011  ;;  %1023 = vst.msk [vmem:[#allocation2 + $0x121] sm:$0xff] %vm944_vm1, %v934_v16  ;;  %v935_v33 = vmul.f32 %v3010_v50, %v3592_v62  ;;  %v3766_v51 = vld [vmem:[#allocation2 + $0xd9] sm:$0xff]  ;;  %v1168_v19 = vmul.f32 %v3486_v0, %v3752_v2  ;;  %v1350_v8 = vmul.f32 %v3646_v31, %v3752_v2 }
 0x131   : > { %v1051_v28 = vld [vmem:[#allocation2 + $0xd8] sm:$0xff]  ;;  %v1208_v36 = vmul.f32 %v3494_v9, %v3754_v53  ;;  %v3014_v48 = vpop.eup %3013  ;;  %1021 = vst.msk [vmem:[#allocation2 + $0x109] sm:$0xff] %vm944_vm1, %v932_v39  ;;  %v933_v21 = vmul.f32 %v3012_v37, %v3596_v3  ;;  %v1206_v57 = vmul.f32 %v3494_v9, %v3766_v51 }
 0x132   : > { %v3776_v18 = vld [vmem:[#allocation2 + $0xf8] sm:$0xff]  ;;  %v1166_v35 = vmul.f32 %v3486_v0, %v1051_v28  ;;  %v1348_v13 = vmul.f32 %v3646_v31, %v1051_v28  ;;  %v3016_v11 = vpop.eup %3015  ;;  %1024 = vst.msk [vmem:[#allocation2 + $0x129] sm:$0xff] %vm944_vm1, %v935_v33  ;;  %v846_v49 = vadd.f32 1.0, %v3014_v48  ;;  %v1052_v22 = vld [vmem:[#allocation2 + $0xe0] sm:$0xff] }
 0x133   : > { %v3778_v62 = vld [vmem:[#allocation2 + $0xf9] sm:$0xff]  ;;  %v1088_v60 = vld [vmem:[#allocation2 + $0xe1] sm:$0xff]  ;;  %v1169_v3 = vmul.f32 %v3486_v0, %v3776_v18  ;;  %v1240_v55 = vadd.f32 %v1208_v36, %v1168_v19  ;;  %v3018_v16 = vpop.eup %3017  ;;  %1022 = vst.msk [vmem:[#allocation2 + $0x111] sm:$0xff] %vm944_vm1, %v933_v21  ;;  %v844_v50 = vadd.f32 1.0, %v3016_v11  ;;  %v1167_v33 = vmul.f32 %v3486_v0, %v1052_v22 }
 0x134   : > { %v1123_v6 = vld [vmem:[#allocation2 + $0xda] sm:$0xff]  ;;  %v1209_v14 = vmul.f32 %v3494_v9, %v3778_v62  ;;  %v1124_v39 = vld [vmem:[#allocation2 + $0xe2] sm:$0xff]  ;;  %v3790_v37 = vld [vmem:[#allocation2 + $0xf2] sm:$0xff]  ;;  %v1207_v48 = vmul.f32 %v3494_v9, %v1088_v60  ;;  %v1238_v17 = vadd.f32 %v1206_v57, %v1166_v35  ;;  %v3020_v29 = vpop.eup %3019  ;;  %3029 = vrcp.f32 %v846_v49 }
 0x135   : > { %v3792_v28 = vld [vmem:[#allocation2 + $0xfa] sm:$0xff]  ;;  %v847_v58 = vadd.f32 1.0, %v3018_v16  ;;  %v1278_v19 = vmul.f32 %v3517_v43, %v1123_v6  ;;  %3031 = vrcp.f32 %v844_v50  ;;  %v845_v36 = vadd.f32 1.0, %v3020_v29 }
 0x136   : > { %v1241_v54 = vadd.f32 %v1209_v14, %v1169_v3  ;;  %v1239_v21 = vadd.f32 %v1207_v48, %v1167_v33  ;;  %v1279_v11 = vmul.f32 %v3517_v43, %v1124_v39  ;;  %v3022_v1 = vpop.eup %3021  ;;  %v1280_v30 = vmul.f32 %v3517_v43, %v3790_v37 }
 0x137   : > { %3033 = vrcp.f32 %v847_v58  ;;  %v1281_v44 = vmul.f32 %v3517_v43, %v3792_v28  ;;  %v1310_v35 = vadd.f32 %v1278_v19, %v1238_v17  ;;  %v3024_v57 = vpop.eup %3023  ;;  %v938_v49 = vmul.f32 %v3022_v1, %v3621_v34 }
 0x138   : > { %3035 = vrcp.f32 %v845_v36  ;;  %v1311_v3 = vadd.f32 %v1279_v11, %v1239_v21  ;;  %v1349_v14 = vmul.f32 %v3646_v31, %v1052_v22  ;;  %v3026_v29 = vpop.eup %3025  ;;  %v936_v16 = vmul.f32 %v3024_v57, %v3627_v52  ;;  %v3805_v50 = vld [vmem:[#allocation2 + $0x108] sm:$0xff]  ;;  %v3841_v11 = vld [vmem:[%s4776_s3 + $0x6] ss:$0 sm:$0xff] }
 0x139   : > { %v1312_v58 = vadd.f32 %v1280_v30, %v1240_v55  ;;  %v1313_v33 = vadd.f32 %v1281_v44, %v1241_v54  ;;  %v1351_v48 = vmul.f32 %v3646_v31, %v3776_v18  ;;  %v3028_v23 = vpop.eup %3027  ;;  %1027 = vst.msk [vmem:[#allocation2 + $0x151] sm:$0xff] %vm944_vm1, %v938_v49  ;;  %v939_v17 = vmul.f32 %v3026_v29, %v3634_v63 }
 0x13a   : > { %v1352_v34 = vmul.f32 %v3646_v31, %v3805_v50  ;;  %v1380_v1 = vadd.f32 %v1348_v13, %v3729_v61  ;;  %v1381_v22 = vadd.f32 %v1349_v14, %v3740_v15  ;;  %1025 = vst.msk [vmem:[#allocation2 + $0x139] sm:$0xff] %vm944_vm1, %v936_v16  ;;  %v937_v52 = vmul.f32 %v3028_v23, %v3640_v12  ;;  %v3817_v44 = vld [vmem:[#allocation2 + $0x110] sm:$0xff] }
 0x13b   : > { %v1382_v30 = vadd.f32 %v1350_v8, %v1310_v35  ;;  %v1383_v54 = vadd.f32 %v1351_v48, %v1311_v3  ;;  %v1420_v55 = vmul.f32 %v3700_v24, %v3766_v51  ;;  %1028 = vst.msk [vmem:[#allocation2 + $0x159] sm:$0xff] %vm944_vm1, %v939_v17  ;;  %v1353_v63 = vmul.f32 %v3646_v31, %v3817_v44 }
 0x13c   : > { %v3824_v19 = vadd.f32 %v1352_v34, %v1312_v58  ;;  %v1421_v61 = vmul.f32 %v3700_v24, %v1088_v60  ;;  %v1422_v15 = vmul.f32 %v3700_v24, %v3754_v53  ;;  %1026 = vst.msk [vmem:[#allocation2 + $0x141] sm:$0xff] %vm944_vm1, %v937_v52  ;;  %v1423_v12 = vmul.f32 %v3700_v24, %v3778_v62 }
 0x13d   : > { %v1452_v23 = vadd.f32 %v1420_v55, %v1380_v1  ;;  %v1492_v51 = vmul.f32 %v3734_v25, %v1123_v6  ;;  %v1493_v8 = vmul.f32 %v3734_v25, %v1124_v39  ;;  %v3834_v13 = vadd.f32 %v1353_v63, %v1313_v33  ;;  %v3855_v33 = vld [vmem:[%s4776_s3 + $0x7] ss:$0 sm:$0xff]  ;;  %v3865_v1 = vld [vmem:[%s4776_s3 + $0x8] ss:$0 sm:$0xff] }
 0x13e   : > { %v1453_v36 = vadd.f32 %v1421_v61, %v1381_v22  ;;  %v1454_v21 = vadd.f32 %v1422_v15, %v1382_v30  ;;  %v1494_v60 = vmul.f32 %v3734_v25, %v3790_v37  ;;  %v3030_v35 = vpop.eup %3029  ;;  %v1455_v57 = vadd.f32 %v1423_v12, %v1383_v54 }
 0x13f   : > { %v1495_v49 = vmul.f32 %v3734_v25, %v3792_v28  ;;  %v1524_v6 = vadd.f32 %v1492_v51, %v1452_v23  ;;  %v1564_v39 = vmul.f32 %v3841_v11, %v3752_v2  ;;  %v3032_v3 = vpop.eup %3031  ;;  %v942_v14 = vmul.f32 %v3030_v35, %v3666_v41  ;;  %v1091_v23 = vld [vmem:[#allocation2 + $0x109] sm:$0xff]  ;;  %v1092_v51 = vld [vmem:[#allocation2 + $0x111] sm:$0xff] }
 0x140   : > { %v1525_v29 = vadd.f32 %v1493_v8, %v1453_v36  ;;  %v3848_v16 = vadd.f32 %v1494_v60, %v1454_v21  ;;  %v1565_v58 = vmul.f32 %v3841_v11, %v3776_v18  ;;  %v940_v17 = vmul.f32 %v3032_v3, %v3674_v40  ;;  %v1128_v21 = vld [vmem:[#allocation2 + $0x112] sm:$0xff] }
 0x141   : > { %v3034_v48 = vpop.eup %3033  ;;  %v3858_v34 = vadd.f32 %v1495_v49, %v1455_v57  ;;  %v1596_v2 = vadd.f32 %v1564_v39, %v1524_v6  ;;  %v1636_v41 = vmul.f32 %v3855_v33, %v3754_v53  ;;  %1031 = vst.msk [vmem:[#allocation2 + $0x181] sm:$0xff] %vm944_vm1, %v942_v14  ;;  %v1637_v40 = vmul.f32 %v3855_v33, %v3778_v62 }
 0x142   : > { %v3036_v18 = vpop.eup %3035  ;;  %v943_v22 = vmul.f32 %v3034_v48, %v3685_v5  ;;  %v1597_v52 = vadd.f32 %v1565_v58, %v1525_v29  ;;  %v1708_v30 = vmul.f32 %v3865_v1, %v3790_v37  ;;  %1029 = vst.msk [vmem:[#allocation2 + $0x169] sm:$0xff] %vm944_vm1, %v940_v17  ;;  %v1709_v55 = vmul.f32 %v3865_v1, %v3792_v28 }
 0x143   : > { %v941_v53 = vmul.f32 %v3036_v18, %v3691_v45  ;;  %v1668_v54 = vadd.f32 %v1636_v41, %v1596_v2  ;;  %v3879_v63 = vmul.f32 %v3734_v25, %v3610_v38  ;;  %v3884_v62 = vmul.f32 %v3734_v25, %v3614_v47 }
 0x144   : > { %1032 = vst.msk [vmem:[#allocation2 + $0x189] sm:$0xff] %vm944_vm1, %v943_v22  ;;  %v1669_v5 = vadd.f32 %v1637_v40, %v1597_v52  ;;  %v1508_v37 = vadd.f32 %v3758_v4, %v3747_v7  ;;  %v1509_v45 = vadd.f32 %v3762_v46, %v3749_v20  ;;  %v1548_v61 = vmul.f32 %v3841_v11, %v3548_v26  ;;  %v3900_v7 = vld [vmem:[%s4777_s4] ss:$0 sm:$0xff]  ;;  %v1127_v4 = vld [vmem:[#allocation2 + $0x10a] sm:$0xff] }
 0x145   : > { %1030 = vst.msk [vmem:[#allocation2 + $0x171] sm:$0xff] %vm944_vm1, %v941_v53  ;;  %v1740_v28 = vadd.f32 %v1708_v30, %v1668_v54  ;;  %v1549_v15 = vmul.f32 %v3841_v11, %v3566_v42  ;;  %v1620_v12 = vmul.f32 %v3855_v33, %v3550_v27  ;;  %v1621_v20 = vmul.f32 %v3855_v33, %v3586_v56 }
 0x146   : > { %v1741_v8 = vadd.f32 %v1709_v55, %v1669_v5  ;;  %v1692_v26 = vmul.f32 %v3865_v1, %v3610_v38  ;;  %v1693_v42 = vmul.f32 %v3865_v1, %v3614_v47  ;;  %v1580_v46 = vadd.f32 %v1548_v61, %v1508_v37  ;;  %v1111_v61 = vld [vmem:[#allocation2 + $0x4a] sm:$0xff] }
 0x147   : > { %v3909_v27 = vadd.f32 %v3900_v7, %v1740_v28  ;;  %v1581_v36 = vadd.f32 %v1549_v15, %v1509_v45  ;;  %v1170_v60 = vmul.f32 %v3486_v0, %v3805_v50  ;;  %v1171_v56 = vmul.f32 %v3486_v0, %v3817_v44  ;;  %v1075_v45 = vld [vmem:[#allocation2 + $0x49] sm:$0xff]  ;;  %v1076_v28 = vld [vmem:[#allocation2 + $0x51] sm:$0xff] }
 0x148   : > { %v3914_v35 = vadd.f32 %v3900_v7, %v1741_v8  ;;  %v1210_v38 = vmul.f32 %v3494_v9, %v1091_v23  ;;  %v1211_v47 = vmul.f32 %v3494_v9, %v1092_v51  ;;  %v1652_v49 = vadd.f32 %v1620_v12, %v1580_v46 }
 0x149   : > { %v2657_v57 = vmul.f32 -1.442695, %v3909_v27  ;;  %v1653_v6 = vadd.f32 %v1621_v20, %v1581_v36  ;;  %v1282_v39 = vmul.f32 %v3517_v43, %v1127_v4  ;;  %v1283_v58 = vmul.f32 %v3517_v43, %v1128_v21 }
 0x14a   : > { %v2658_v3 = vmul.f32 -1.442695, %v3914_v35  ;;  %v1242_v14 = vadd.f32 %v1210_v38, %v1170_v60  ;;  %v1243_v29 = vadd.f32 %v1211_v47, %v1171_v56  ;;  %v1724_v48 = vadd.f32 %v1692_v26, %v1652_v49  ;;  %v1112_v26 = vld [vmem:[#allocation2 + $0x52] sm:$0xff] }
 0x14b   : > { %3037 = vpow2.f32 %v2657_v57  ;;  %v1725_v17 = vadd.f32 %v1693_v42, %v1653_v6  ;;  %v3925_v2 = vmul.f32 %v3700_v24, %v1091_v23  ;;  %v3932_v22 = vmul.f32 %v3700_v24, %v1092_v51  ;;  %v4795_v56 = vld [vmem:[#allocation4_spill] sm:$0xff]  ;;  %v4796_v47 = vld [vmem:[#allocation3_spill] sm:$0xff]  ;;  %v4797_v57 = vld [vmem:[#allocation5_spill] sm:$0xff] }
 0x14c   : > { %3039 = vpow2.f32 %v2658_v3  ;;  %v3927_v41 = vadd.f32 %v1282_v39, %v1242_v14  ;;  %v3929_v18 = vadd.f32 %v1283_v58, %v1243_v29  ;;  %v3935_v52 = vadd.f32 %v3900_v7, %v1724_v48  ;;  %v4798_v58 = vld [vmem:[#allocation8_spill] sm:$0xff] }
 0x14d   : > { %v3938_v40 = vadd.f32 %v3900_v7, %v1725_v17  ;;  %v3941_v30 = vmul.f32 %v3734_v25, %v1127_v4  ;;  %v3944_v53 = vmul.f32 %v3734_v25, %v1128_v21  ;;  %v1566_v54 = vmul.f32 %v3841_v11, %v3805_v50  ;;  %v4799_v17 = vld [vmem:[#allocation9_spill] sm:$0xff] }
 0x14e   : > { %v1567_v55 = vmul.f32 %v3841_v11, %v3817_v44  ;;  %v1638_v5 = vmul.f32 %v3855_v33, %v1091_v23  ;;  %v1639_v37 = vmul.f32 %v3855_v33, %v1092_v51  ;;  %v2641_v15 = vmul.f32 -1.442695, %v3935_v52 }
 0x14f   : > { %v2642_v12 = vmul.f32 -1.442695, %v3938_v40  ;;  %v1710_v8 = vmul.f32 %v3865_v1, %v1127_v4  ;;  %v1711_v20 = vmul.f32 %v3865_v1, %v1128_v21  ;;  %v1598_v50 = vadd.f32 %v1566_v54, %v3848_v16 }
 0x150   : > { %v1599_v44 = vadd.f32 %v1567_v55, %v3858_v34  ;;  %v1154_v23 = vmul.f32 %v3486_v0, %v3676_v59  ;;  %v1155_v51 = vmul.f32 %v3486_v0, %v3687_v10  ;;  %3041 = vpow2.f32 %v2641_v15 }
 0x151   : > { %v1194_v42 = vmul.f32 %v3494_v9, %v1075_v45  ;;  %v1195_v46 = vmul.f32 %v3494_v9, %v1076_v28  ;;  %v1266_v4 = vmul.f32 %v3517_v43, %v1111_v61  ;;  %3043 = vpow2.f32 %v2642_v12 }
 0x152   : > { %v1670_v36 = vadd.f32 %v1638_v5, %v1598_v50  ;;  %v1671_v21 = vadd.f32 %v1639_v37, %v1599_v44  ;;  %v1267_v16 = vmul.f32 %v3517_v43, %v1112_v26  ;;  %v1366_v38 = vadd.f32 %v4795_v56, %v3648_v32  ;;  %v1129_v56 = vld [vmem:[#allocation2 + $0x122] sm:$0xff] }
 0x153   : > { %v1226_v60 = vadd.f32 %v1194_v42, %v1154_v23  ;;  %v1227_v34 = vadd.f32 %v1195_v46, %v1155_v51  ;;  %v1367_v0 = vadd.f32 %v4797_v57, %v4796_v47  ;;  %v3971_v39 = vmul.f32 %v3700_v24, %v1075_v45  ;;  %v1057_v42 = vld [vmem:[#allocation2 + $0x120] sm:$0xff]  ;;  %v1058_v46 = vld [vmem:[#allocation2 + $0x128] sm:$0xff] }
 0x154   : > { %v1742_v49 = vadd.f32 %v1710_v8, %v1670_v36  ;;  %v1743_v6 = vadd.f32 %v1711_v20, %v1671_v21  ;;  %v3974_v9 = vmul.f32 %v3700_v24, %v1076_v28  ;;  %v1438_v48 = vadd.f32 %v4798_v58, %v1366_v38  ;;  %v1093_v21 = vld [vmem:[#allocation2 + $0x121] sm:$0xff] }
 0x155   : > { %v3038_v3 = vpop.eup %3037  ;;  %v3976_v14 = vadd.f32 %v1266_v4, %v1226_v60  ;;  %v3978_v29 = vadd.f32 %v1267_v16, %v1227_v34  ;;  %v1439_v32 = vadd.f32 %v4799_v17, %v1367_v0  ;;  %v3989_v15 = vmul.f32 %v3734_v25, %v1111_v61 }
 0x156   : > { %v3040_v54 = vpop.eup %3039  ;;  %v1907_v55 = vadd.f32 1.0, %v3038_v3  ;;  %v3983_v5 = vadd.f32 %v3900_v7, %v1742_v49  ;;  %v3986_v37 = vadd.f32 %v3900_v7, %v1743_v6  ;;  %v3992_v8 = vmul.f32 %v3734_v25, %v1112_v26 }
 0x157   : > { %v1908_v12 = vadd.f32 1.0, %v3040_v54  ;;  %v1510_v20 = vadd.f32 %v3879_v63, %v1438_v48  ;;  %v1511_v50 = vadd.f32 %v3884_v62, %v1439_v32  ;;  %v1550_v51 = vmul.f32 %v3841_v11, %v3676_v59  ;;  %v1094_v62 = vld [vmem:[#allocation2 + $0x129] sm:$0xff] }
 0x158   : > { %3045 = vrcp.f32 %v1907_v55  ;;  %v2659_v44 = vmul.f32 -1.442695, %v3983_v5  ;;  %v2660_v23 = vmul.f32 -1.442695, %v3986_v37  ;;  %v1551_v4 = vmul.f32 %v3841_v11, %v3687_v10  ;;  %v4006_v59 = vld [vmem:[#allocation2 + $0x12a] sm:$0xff] }
 0x159   : > { %3047 = vrcp.f32 %v1908_v12  ;;  %v1622_v36 = vmul.f32 %v3855_v33, %v1075_v45  ;;  %v1623_v63 = vmul.f32 %v3855_v33, %v1076_v28  ;;  %v1582_v16 = vadd.f32 %v1550_v51, %v1510_v20  ;;  %v4011_v10 = vld [vmem:[%s4776_s3] ss:$0 sm:$0xff] }
 0x15a   : > { %3049 = vpow2.f32 %v2659_v44  ;;  %v1694_v60 = vmul.f32 %v3865_v1, %v1111_v61  ;;  %v1695_v34 = vmul.f32 %v3865_v1, %v1112_v26  ;;  %v3042_v38 = vpop.eup %3041  ;;  %v1583_v47 = vadd.f32 %v1551_v4, %v1511_v50  ;;  %v4018_v26 = vld [vmem:[%s4776_s3 + $0x1] ss:$0 sm:$0xff] }
 0x15b   : > { %3051 = vpow2.f32 %v2660_v23  ;;  %v1172_v45 = vmul.f32 %v4011_v10, %v1057_v42  ;;  %v1173_v28 = vmul.f32 %v4011_v10, %v1058_v46  ;;  %v3044_v57 = vpop.eup %3043  ;;  %v1891_v0 = vadd.f32 1.0, %v3042_v38 }
 0x15c   : > { %v1654_v61 = vadd.f32 %v1622_v36, %v1582_v16  ;;  %v1212_v49 = vmul.f32 %v4018_v26, %v1093_v21  ;;  %v1213_v6 = vmul.f32 %v4018_v26, %v1094_v62  ;;  %v1892_v3 = vadd.f32 1.0, %v3044_v57 }
 0x15d   : > { %v1655_v58 = vadd.f32 %v1623_v63, %v1583_v47  ;;  %v1284_v48 = vmul.f32 %v3517_v43, %v1129_v56  ;;  %v1285_v17 = vmul.f32 %v3517_v43, %v4006_v59  ;;  %3053 = vrcp.f32 %v1891_v0 }
 0x15e   : > { %v1726_v32 = vadd.f32 %v1694_v60, %v1654_v61  ;;  %v1244_v54 = vadd.f32 %v1212_v49, %v1172_v45  ;;  %v1245_v55 = vadd.f32 %v1213_v6, %v1173_v28  ;;  %3055 = vrcp.f32 %v1892_v3  ;;  %v1041_v6 = vld [vmem:[#allocation2 + $0x60] sm:$0xff] }
 0x15f   : > { %v1727_v12 = vadd.f32 %v1695_v34, %v1655_v58  ;;  %v4026_v20 = vmul.f32 %v3646_v31, %v1057_v42  ;;  %v4029_v50 = vmul.f32 %v3646_v31, %v1058_v46  ;;  %v4039_v43 = vmul.f32 %v3700_v24, %v1093_v21 }
 0x160   : > { %v4032_v44 = vadd.f32 %v3900_v7, %v1726_v32  ;;  %v4034_v23 = vadd.f32 %v1284_v48, %v1244_v54  ;;  %v4036_v51 = vadd.f32 %v1285_v17, %v1245_v55  ;;  %v4045_v36 = vmul.f32 %v3700_v24, %v1094_v62  ;;  %v1042_v48 = vld [vmem:[#allocation2 + $0x68] sm:$0xff] }
 0x161   : > { %v4042_v4 = vadd.f32 %v3900_v7, %v1727_v12  ;;  %v1456_v63 = vadd.f32 %v3925_v2, %v3824_v19  ;;  %v1457_v16 = vadd.f32 %v3932_v22, %v3834_v13  ;;  %v4053_v38 = vmul.f32 %v3734_v25, %v1129_v56  ;;  %v1077_v17 = vld [vmem:[#allocation2 + $0x61] sm:$0xff]  ;;  %v4071_v12 = vld [vmem:[#allocation2 + $0x6a] sm:$0xff] }
 0x162   : > { %v3046_v60 = vpop.eup %3045  ;;  %v2643_v34 = vmul.f32 -1.442695, %v4032_v44  ;;  %v4057_v47 = vmul.f32 %v3734_v25, %v4006_v59  ;;  %v1568_v45 = vmul.f32 %v3841_v11, %v1057_v42  ;;  %v1569_v61 = vmul.f32 %v3841_v11, %v1058_v46  ;;  %v1113_v55 = vld [vmem:[#allocation2 + $0x62] sm:$0xff] }
 0x163   : > { %v3048_v28 = vpop.eup %3047  ;;  %v2003_v57 = vmul.f32 %v3046_v60, %v3909_v27  ;;  %v2644_v19 = vmul.f32 -1.442695, %v4042_v4  ;;  %v1528_v2 = vadd.f32 %v3941_v30, %v1456_v63  ;;  %v1529_v13 = vadd.f32 %v3944_v53, %v1457_v16 }
 0x164   : > { %v3050_v22 = vpop.eup %3049  ;;  %v2004_v0 = vmul.f32 %v3048_v28, %v3914_v35  ;;  %3057 = vpow2.f32 %v2643_v34  ;;  %v1640_v49 = vmul.f32 %v3855_v33, %v1093_v21  ;;  %v1641_v27 = vmul.f32 %v3855_v33, %v1094_v62  ;;  %v1078_v35 = vld [vmem:[#allocation2 + $0x69] sm:$0xff] }
 0x165   : > { %v3052_v3 = vpop.eup %3051  ;;  %v1909_v42 = vadd.f32 1.0, %v3050_v22  ;;  %3059 = vpow2.f32 %v2644_v19  ;;  %v1600_v58 = vadd.f32 %v1568_v45, %v1528_v2  ;;  %v1601_v53 = vadd.f32 %v1569_v61, %v1529_v13 }
 0x166   : > { %v2035_v30 = vpack.c.bf16 %v2004_v0, %v2003_v57  ;;  %v1910_v32 = vadd.f32 1.0, %v3052_v3  ;;  %v1712_v54 = vmul.f32 %v3865_v1, %v1129_v56  ;;  %v1713_v21 = vmul.f32 %v3865_v1, %v4006_v59  ;;  %v4081_v59 = vld [vmem:[%s4776_s3 + $0x2] ss:$0 sm:$0xff] }
 0x167   : > { %3061 = vrcp.f32 %v1909_v42  ;;  %v1672_v46 = vadd.f32 %v1640_v49, %v1600_v58  ;;  %v1156_v63 = vmul.f32 %v4011_v10, %v1041_v6  ;;  %v3054_v16 = vpop.eup %3053  ;;  %v1673_v62 = vadd.f32 %v1641_v27, %v1601_v53 }
 0x168   : > { %2723 = vmatprep.subr.bf16.mxu1 %v2035_v30  ;;  %3063 = vrcp.f32 %v1910_v32  ;;  %v1157_v60 = vmul.f32 %v4011_v10, %v1042_v48  ;;  %v1196_v34 = vmul.f32 %v4018_v26, %v1077_v17  ;;  %v3056_v56 = vpop.eup %3055  ;;  %v1987_v45 = vmul.f32 %v3054_v16, %v3935_v52  ;;  %v4801_v16 = vld [vmem:[#allocation7_spill] sm:$0xff] }
 0x169   : > { %v1744_v28 = vadd.f32 %v1712_v54, %v1672_v46  ;;  %v1197_v57 = vmul.f32 %v4018_v26, %v1078_v35  ;;  %v1268_v19 = vmul.f32 %v4081_v59, %v1113_v55  ;;  %v1988_v2 = vmul.f32 %v3056_v56, %v3938_v40  ;;  %v4800_v54 = vld [vmem:[#allocation6_spill] sm:$0xff] }
 0x16a   : > { %v1745_v13 = vadd.f32 %v1713_v21, %v1673_v62  ;;  %v1228_v22 = vadd.f32 %v1196_v34, %v1156_v63  ;;  %v1269_v0 = vmul.f32 %v4081_v59, %v4071_v12  ;;  %v4091_v49 = vmul.f32 %v3646_v31, %v1041_v6 }
 0x16b   : > { %v4088_v61 = vadd.f32 %v3900_v7, %v1744_v28  ;;  %v1229_v52 = vadd.f32 %v1197_v57, %v1157_v60  ;;  %v4094_v3 = vmul.f32 %v3646_v31, %v1042_v48  ;;  %v2027_v42 = vpack.c.bf16 %v1988_v2, %v1987_v45  ;;  %v1059_v2 = vld [vmem:[#allocation2 + $0x138] sm:$0xff] }
 0x16c   : > { %v4097_v58 = vadd.f32 %v3900_v7, %v1745_v13  ;;  %v4099_v40 = vadd.f32 %v1268_v19, %v1228_v22  ;;  %v4102_v27 = vmul.f32 %v3700_v24, %v1077_v17  ;;  %v4108_v53 = vmul.f32 %v3700_v24, %v1078_v35 }
 0x16d   : > { %v2661_v30 = vmul.f32 -1.442695, %v4088_v61  ;;  %v4105_v32 = vadd.f32 %v1269_v0, %v1229_v52  ;;  %v1440_v46 = vadd.f32 %v3971_v39, %v4800_v54  ;;  %2724 = vmatpush3.bf16.msra.mxu1 %v2027_v42  ;;  %v1441_v62 = vadd.f32 %v3974_v9, %v4801_v16  ;;  %v1060_v42 = vld [vmem:[#allocation2 + $0x140] sm:$0xff] }
 0x16e   : > { %v3058_v21 = vpop.eup %3057  ;;  %v2662_v63 = vmul.f32 -1.442695, %v4097_v58  ;;  %v4116_v60 = vmul.f32 %v3734_v25, %v1113_v55  ;;  %v4120_v34 = vmul.f32 %v3734_v25, %v4071_v12  ;;  %v1552_v39 = vmul.f32 %v3841_v11, %v1041_v6  ;;  %v1096_v54 = vld [vmem:[#allocation2 + $0x141] sm:$0xff] }
 0x16f   : > { %v3060_v56 = vpop.eup %3059  ;;  %v1893_v45 = vadd.f32 1.0, %v3058_v21  ;;  %3065 = vpow2.f32 %v2661_v30  ;;  %v1512_v28 = vadd.f32 %v3989_v15, %v1440_v46  ;;  %v1513_v19 = vadd.f32 %v3992_v8, %v1441_v62  ;;  %v1095_v30 = vld [vmem:[#allocation2 + $0x139] sm:$0xff] }
 0x170   : > { %v1894_v57 = vadd.f32 1.0, %v3060_v56  ;;  %3067 = vpow2.f32 %v2662_v63  ;;  %v1553_v9 = vmul.f32 %v3841_v11, %v1042_v48  ;;  %v1624_v0 = vmul.f32 %v3855_v33, %v1077_v17  ;;  %v1131_v21 = vld [vmem:[#allocation2 + $0x13a] sm:$0xff]  ;;  %v1132_v48 = vld [vmem:[#allocation2 + $0x142] sm:$0xff] }
 0x171   : > { %v3062_v13 = vpop.eup %3061  ;;  %3069 = vrcp.f32 %v1893_v45  ;;  %v1584_v22 = vadd.f32 %v1552_v39, %v1512_v28  ;;  %v1625_v52 = vmul.f32 %v3855_v33, %v1078_v35  ;;  %v1696_v8 = vmul.f32 %v3865_v1, %v1113_v55 }
 0x172   : > { %v3064_v15 = vpop.eup %3063  ;;  %v2005_v6 = vmul.f32 %v3062_v13, %v3983_v5  ;;  %3071 = vrcp.f32 %v1894_v57  ;;  %v1585_v46 = vadd.f32 %v1553_v9, %v1513_v19  ;;  %v1697_v17 = vmul.f32 %v3865_v1, %v4071_v12 }
 0x173   : > { %v2006_v63 = vmul.f32 %v3064_v15, %v3986_v37  ;;  %v1656_v16 = vadd.f32 %v1624_v0, %v1584_v22  ;;  %v1174_v35 = vmul.f32 %v4011_v10, %v1059_v2  ;;  %v1175_v56 = vmul.f32 %v4011_v10, %v1060_v42 }
 0x174   : > { %v1657_v62 = vadd.f32 %v1625_v52, %v1585_v46  ;;  %v1214_v45 = vmul.f32 %v4018_v26, %v1095_v30  ;;  %v1215_v5 = vmul.f32 %v4018_v26, %v1096_v54  ;;  %v1286_v55 = vmul.f32 %v4081_v59, %v1131_v21 }
 0x175   : > { %v2036_v28 = vpack.c.bf16 %v2006_v63, %v2005_v6  ;;  %v1728_v39 = vadd.f32 %v1696_v8, %v1656_v16  ;;  %v1287_v57 = vmul.f32 %v4081_v59, %v1132_v48  ;;  %v4140_v12 = vmul.f32 %v3646_v31, %v1059_v2 }
 0x176   : > { %v1729_v37 = vadd.f32 %v1697_v17, %v1657_v62  ;;  %v1246_v19 = vadd.f32 %v1214_v45, %v1174_v35  ;;  %v1247_v9 = vadd.f32 %v1215_v5, %v1175_v56  ;;  %v4146_v22 = vmul.f32 %v3646_v31, %v1060_v42 }
 0x177   : > { %2725 = vmatprep.subr.bf16.mxu1 %v2036_v28  ;;  %v4143_v13 = vadd.f32 %v3900_v7, %v1728_v39  ;;  %v1386_v0 = vadd.f32 %v4026_v20, %v3927_v41  ;;  %v1387_v52 = vadd.f32 %v4029_v50, %v3929_v18  ;;  %v4160_v8 = vmul.f32 %v3700_v24, %v1095_v30 }
 0x178   : > { %v4153_v15 = vadd.f32 %v3900_v7, %v1729_v37  ;;  %v4155_v6 = vadd.f32 %v1286_v55, %v1246_v19  ;;  %v4157_v46 = vadd.f32 %v1287_v57, %v1247_v9  ;;  %v4164_v16 = vmul.f32 %v3700_v24, %v1096_v54  ;;  %v1043_v57 = vld [vmem:[#allocation2 + $0x78] sm:$0xff]  ;;  %v1044_v37 = vld [vmem:[#allocation2 + $0x80] sm:$0xff] }
 0x179   : > { %v3066_v63 = vpop.eup %3065  ;;  %v2645_v31 = vmul.f32 -1.442695, %v4143_v13  ;;  %v1458_v41 = vadd.f32 %v4039_v43, %v1386_v0  ;;  %v1459_v18 = vadd.f32 %v4045_v36, %v1387_v52  ;;  %v4170_v35 = vmul.f32 %v3734_v25, %v1131_v21  ;;  %v1080_v52 = vld [vmem:[#allocation2 + $0x81] sm:$0xff] }
 0x17a   : > { %v3068_v20 = vpop.eup %3067  ;;  %v1911_v50 = vadd.f32 1.0, %v3066_v63  ;;  %v2646_v17 = vmul.f32 -1.442695, %v4153_v15  ;;  %v4173_v62 = vmul.f32 %v3734_v25, %v1132_v48  ;;  %v1570_v39 = vmul.f32 %v3841_v11, %v1059_v2  ;;  %v1116_v2 = vld [vmem:[#allocation2 + $0x82] sm:$0xff] }
 0x17b   : > { %v3070_v56 = vpop.eup %3069  ;;  %v1912_v45 = vadd.f32 1.0, %v3068_v20  ;;  %3073 = vpow2.f32 %v2645_v31  ;;  %v1530_v5 = vadd.f32 %v4053_v38, %v1458_v41  ;;  %v1531_v28 = vadd.f32 %v4057_v47, %v1459_v18  ;;  %v1079_v38 = vld [vmem:[#allocation2 + $0x79] sm:$0xff] }
 0x17c   : > { %v3072_v43 = vpop.eup %3071  ;;  %v1989_v36 = vmul.f32 %v3070_v56, %v4032_v44  ;;  %3075 = vrcp.f32 %v1911_v50  ;;  %v1571_v55 = vmul.f32 %v3841_v11, %v1060_v42  ;;  %v1642_v9 = vmul.f32 %v3855_v33, %v1095_v30  ;;  %v1115_v31 = vld [vmem:[#allocation2 + $0x7a] sm:$0xff]  ;;  %v2887_v30 = vld [vmem:[%s4784_s11 + $0x4] ss:$8 sps:$4 sm:$0xff]  }
 0x17d   : > { %v1990_v19 = vmul.f32 %v3072_v43, %v4042_v4  ;;  %3077 = vrcp.f32 %v1912_v45  ;;  %v1643_v0 = vmul.f32 %v3855_v33, %v1096_v54  ;;  %v1602_v47 = vadd.f32 %v1570_v39, %v1530_v5  ;;  %2115 = vmatprep.mubr.bf16.mxu1 %v2887_v30 }
 0x17e   : > { %3079 = vpow2.f32 %v2646_v17  ;;  %v1603_v63 = vadd.f32 %v1571_v55, %v1531_v28  ;;  %v1714_v44 = vmul.f32 %v3865_v1, %v1131_v21  ;;  %v1715_v42 = vmul.f32 %v3865_v1, %v1132_v48  ;;  %v4197_v48 = vld [vmem:[%s4776_s3 + $0x3] ss:$0 sm:$0xff] }
 0x17f   : > { %v2028_v41 = vpack.c.bf16 %v1990_v19, %v1989_v36  ;;  %v1158_v18 = vmul.f32 %v4011_v10, %v1043_v57  ;;  %v1159_v4 = vmul.f32 %v4011_v10, %v1044_v37  ;;  %v1674_v54 = vadd.f32 %v1642_v9, %v1602_v47 }
 0x180   : > { %v1675_v20 = vadd.f32 %v1643_v0, %v1603_v63  ;;  %v1198_v50 = vmul.f32 %v4018_v26, %v1079_v38  ;;  %v1199_v17 = vmul.f32 %v4018_v26, %v1080_v52  ;;  %v1270_v21 = vmul.f32 %v4081_v59, %v1115_v31 }
 0x181   : > { %2726 = vmatpush3.bf16.msra.mxu1 %v2028_v41  ;;  %v1271_v56 = vmul.f32 %v4081_v59, %v1116_v2  ;;  %v4200_v45 = vmul.f32 %v4197_v48, %v1043_v57  ;;  %v4203_v5 = vmul.f32 %v4197_v48, %v1044_v37  ;;  %v1746_v28 = vadd.f32 %v1714_v44, %v1674_v54 }
 0x182   : > { %v1747_v43 = vadd.f32 %v1715_v42, %v1675_v20  ;;  %v1230_v36 = vadd.f32 %v1198_v50, %v1158_v18  ;;  %v1231_v39 = vadd.f32 %v1199_v17, %v1159_v4  ;;  %v1370_v55 = vadd.f32 %v4091_v49, %v3976_v14 }
 0x183   : > { %v1371_v19 = vadd.f32 %v4094_v3, %v3978_v29  ;;  %v4210_v9 = vmul.f32 %v3700_v24, %v1079_v38  ;;  %v4213_v0 = vmul.f32 %v3700_v24, %v1080_v52  ;;  %v4216_v47 = vadd.f32 %v3900_v7, %v1746_v28 }
 0x184   : > { %v4219_v63 = vadd.f32 %v3900_v7, %v1747_v43  ;;  %v4221_v44 = vadd.f32 %v1270_v21, %v1230_v36  ;;  %v4223_v41 = vadd.f32 %v1271_v56, %v1231_v39  ;;  %v1442_v49 = vadd.f32 %v4102_v27, %v1370_v55  ;;  %v1061_v43 = vld [vmem:[#allocation2 + $0x150] sm:$0xff]  ;;  %v1062_v55 = vld [vmem:[#allocation2 + $0x158] sm:$0xff] }
 0x185   : > { %v3074_v14 = vpop.eup %3073  ;;  %v1443_v29 = vadd.f32 %v4108_v53, %v1371_v19  ;;  %v4228_v3 = vmul.f32 %v3734_v25, %v1115_v31  ;;  %v4231_v24 = vmul.f32 %v3734_v25, %v1116_v2  ;;  %v2663_v4 = vmul.f32 -1.442695, %v4216_v47  ;;  %v1097_v36 = vld [vmem:[#allocation2 + $0x151] sm:$0xff] }
 0x186   : > { %v3076_v42 = vpop.eup %3075  ;;  %v1895_v18 = vadd.f32 1.0, %v3074_v14  ;;  %v2664_v30 = vmul.f32 -1.442695, %v4219_v63  ;;  %v1554_v54 = vmul.f32 %v3841_v11, %v1043_v57  ;;  %v1514_v27 = vadd.f32 %v4116_v60, %v1442_v49  ;;  %v1098_v60 = vld [vmem:[#allocation2 + $0x159] sm:$0xff] }
 0x187   : > { %v3078_v20 = vpop.eup %3077  ;;  %v2007_v50 = vmul.f32 %v3076_v42, %v4088_v61  ;;  %v1515_v53 = vadd.f32 %v4120_v34, %v1443_v29  ;;  %v1555_v17 = vmul.f32 %v3841_v11, %v1044_v37  ;;  %v1626_v56 = vmul.f32 %v3855_v33, %v1079_v38  ;;  %v1133_v19 = vld [vmem:[#allocation2 + $0x152] sm:$0xff]  ;;  %v1134_v14 = vld [vmem:[#allocation2 + $0x15a] sm:$0xff] }
 0x188   : > { %v3080_v21 = vpop.eup %3079  ;;  %v2008_v25 = vmul.f32 %v3078_v20, %v4097_v58  ;;  %3081 = vrcp.f32 %v1895_v18  ;;  %v1627_v28 = vmul.f32 %v3855_v33, %v1080_v52  ;;  %v1586_v39 = vadd.f32 %v1554_v54, %v1514_v27 }
 0x189   : > { %v1896_v57 = vadd.f32 1.0, %v3080_v21  ;;  %3083 = vpow2.f32 %v2663_v4  ;;  %v1587_v61 = vadd.f32 %v1555_v17, %v1515_v53  ;;  %v1698_v37 = vmul.f32 %v3865_v1, %v1115_v31 }
 0x18a   : > { %v2037_v34 = vpack.c.bf16 %v2008_v25, %v2007_v50  ;;  %3085 = vpow2.f32 %v2664_v30  ;;  %v1699_v58 = vmul.f32 %v3865_v1, %v1116_v2  ;;  %v1658_v38 = vadd.f32 %v1626_v56, %v1586_v39  ;;  %v4270_v56 = vld [vmem:[%s4776_s3 + $0x4] ss:$0 sm:$0xff] }
 0x18b   : > { %3087 = vrcp.f32 %v1896_v57  ;;  %v1659_v49 = vadd.f32 %v1627_v28, %v1587_v61  ;;  %v1176_v52 = vmul.f32 %v4011_v10, %v1061_v43  ;;  %v1177_v29 = vmul.f32 %v4011_v10, %v1062_v55 }
 0x18c   : > { %2727 = vmatprep.subr.bf16.mxu1 %v2037_v34  ;;  %v1216_v42 = vmul.f32 %v4018_v26, %v1097_v36  ;;  %v1217_v18 = vmul.f32 %v4018_v26, %v1098_v60  ;;  %v1288_v4 = vmul.f32 %v4081_v59, %v1133_v19  ;;  %v1730_v30 = vadd.f32 %v1698_v37, %v1658_v38  ;;  %v4289_v34 = vld [vmem:[%s4776_s3 + $0x5] ss:$0 sm:$0xff] }
 0x18d   : > { %v1731_v54 = vadd.f32 %v1699_v58, %v1659_v49  ;;  %v1289_v31 = vmul.f32 %v4081_v59, %v1134_v14  ;;  %v4252_v2 = vmul.f32 %v4197_v48, %v1061_v43  ;;  %v4255_v27 = vmul.f32 %v4197_v48, %v1062_v55 }
 0x18e   : > { %v1248_v20 = vadd.f32 %v1216_v42, %v1176_v52  ;;  %v1249_v50 = vadd.f32 %v1217_v18, %v1177_v29  ;;  %v1388_v53 = vadd.f32 %v4140_v12, %v4034_v23  ;;  %v4260_v17 = vadd.f32 %v3900_v7, %v1730_v30 }
 0x18f   : > { %v4263_v21 = vadd.f32 %v3900_v7, %v1731_v54  ;;  %v1389_v25 = vadd.f32 %v4146_v22, %v4036_v51  ;;  %v4273_v28 = vmul.f32 %v4270_v56, %v1097_v36  ;;  %v4280_v12 = vmul.f32 %v4270_v56, %v1098_v60 }
 0x190   : > { %v4275_v57 = vadd.f32 %v1288_v4, %v1248_v20  ;;  %v4277_v23 = vadd.f32 %v1289_v31, %v1249_v50  ;;  %v1460_v39 = vadd.f32 %v4160_v8, %v1388_v53  ;;  %v2647_v61 = vmul.f32 -1.442695, %v4260_v17  ;;  %v1045_v4 = vld [vmem:[#allocation2 + $0x90] sm:$0xff] }
 0x191   : > { %v2648_v51 = vmul.f32 -1.442695, %v4263_v21  ;;  %v1461_v22 = vadd.f32 %v4164_v16, %v1389_v25  ;;  %v4292_v37 = vmul.f32 %v4289_v34, %v1133_v19  ;;  %v4295_v38 = vmul.f32 %v4289_v34, %v1134_v14  ;;  %v1081_v50 = vld [vmem:[#allocation2 + $0x91] sm:$0xff] }
 0x192   : > { %v3082_v58 = vpop.eup %3081  ;;  %v1532_v8 = vadd.f32 %v4170_v35, %v1460_v39  ;;  %v1572_v49 = vmul.f32 %v3841_v11, %v1061_v43  ;;  %v1573_v52 = vmul.f32 %v3841_v11, %v1062_v55  ;;  %3089 = vpow2.f32 %v2647_v61  ;;  %v1046_v35 = vld [vmem:[#allocation2 + $0x98] sm:$0xff] }
 0x193   : > { %v3084_v29 = vpop.eup %3083  ;;  %v1991_v16 = vmul.f32 %v3082_v58, %v4143_v13  ;;  %v1533_v42 = vadd.f32 %v4173_v62, %v1461_v22  ;;  %v1644_v18 = vmul.f32 %v3855_v33, %v1097_v36  ;;  %3091 = vpow2.f32 %v2648_v51  ;;  %v1082_v39 = vld [vmem:[#allocation2 + $0x99] sm:$0xff] }
 0x194   : > { %v3086_v30 = vpop.eup %3085  ;;  %v1913_v54 = vadd.f32 1.0, %v3084_v29  ;;  %v1604_v31 = vadd.f32 %v1572_v49, %v1532_v8  ;;  %v1645_v20 = vmul.f32 %v3855_v33, %v1098_v60  ;;  %v1716_v25 = vmul.f32 %v3865_v1, %v1133_v19  ;;  %v4306_v62 = vld [vmem:[#allocation2 + $0x92] sm:$0xff]  ;;  %v4309_v51 = vld [vmem:[#allocation2 + $0x9a] sm:$0xff] }
 0x195   : > { %v3088_v43 = vpop.eup %3087  ;;  %v1914_v53 = vadd.f32 1.0, %v3086_v30  ;;  %v1605_v55 = vadd.f32 %v1573_v52, %v1533_v42  ;;  %v1717_v13 = vmul.f32 %v3865_v1, %v1134_v14  ;;  %v1160_v60 = vmul.f32 %v4011_v10, %v1045_v4 }
 0x196   : > { %v1992_v36 = vmul.f32 %v3088_v43, %v4153_v15  ;;  %3093 = vrcp.f32 %v1913_v54  ;;  %v1676_v61 = vadd.f32 %v1644_v18, %v1604_v31  ;;  %v1161_v58 = vmul.f32 %v4011_v10, %v1046_v35 }
 0x197   : > { %3095 = vrcp.f32 %v1914_v53  ;;  %v1677_v22 = vadd.f32 %v1645_v20, %v1605_v55  ;;  %v1200_v8 = vmul.f32 %v4018_v26, %v1081_v50  ;;  %v1201_v14 = vmul.f32 %v4018_v26, %v1082_v39  ;;  %v2897_v20 = vld [vmem:[%s4778_s5] sm:$0xff]  }
 0x198   : > { %v2029_v19 = vpack.c.bf16 %v1992_v36, %v1991_v16  ;;  %v1748_v49 = vadd.f32 %v1716_v25, %v1676_v61  ;;  %v1272_v52 = vmul.f32 %v4081_v59, %v4306_v62  ;;  %v1273_v42 = vmul.f32 %v4081_v59, %v4309_v51  ;;  %2817 = vmatpush3.bf16.msra.mxu0 %v2897_v20  ;;  %v2898_v61 = vld [vmem:[%s4778_s5 + $0x8] sm:$0xff]  }
 0x199   : > { %v1749_v15 = vadd.f32 %v1717_v13, %v1677_v22  ;;  %v1232_v29 = vadd.f32 %v1200_v8, %v1160_v60  ;;  %v4320_v18 = vmul.f32 %v4197_v48, %v1045_v4  ;;  %v1233_v54 = vadd.f32 %v1201_v14, %v1161_v58 }
 0x19a   : > { %2728 = vmatpush3.bf16.msra.mxu1 %v2029_v19  ;;  %v4323_v30 = vadd.f32 %v3900_v7, %v1748_v49  ;;  %v4326_v16 = vmul.f32 %v4197_v48, %v1046_v35  ;;  %v1372_v31 = vadd.f32 %v4200_v45, %v4099_v40  ;;  %v1373_v55 = vadd.f32 %v4203_v5, %v4105_v32 }
 0x19b   : > { %v4334_v43 = vadd.f32 %v3900_v7, %v1749_v15  ;;  %v4336_v53 = vadd.f32 %v1272_v52, %v1232_v29  ;;  %v4341_v25 = vmul.f32 %v4270_v56, %v1081_v50  ;;  %v4344_v36 = vadd.f32 %v1273_v42, %v1233_v54  ;;  %v1063_v29 = vld [vmem:[#allocation2 + $0x168] sm:$0xff] }
 0x19c   : > { %v2665_v13 = vmul.f32 -1.442695, %v4323_v30  ;;  %v4347_v40 = vmul.f32 %v4270_v56, %v1082_v39  ;;  %v1444_v45 = vadd.f32 %v4210_v9, %v1372_v31  ;;  %v3090_v60 = vpop.eup %3089  ;;  %v1445_v5 = vadd.f32 %v4213_v0, %v1373_v55  ;;  %v1064_v55 = vld [vmem:[#allocation2 + $0x170] sm:$0xff] }
 0x19d   : > { %v2666_v32 = vmul.f32 -1.442695, %v4334_v43  ;;  %v4357_v22 = vmul.f32 %v4289_v34, %v4306_v62  ;;  %v4361_v58 = vmul.f32 %v4289_v34, %v4309_v51  ;;  %v4802_v8 = vmov 0.0   ;;  %v3092_v9 = vpop.eup %3091 }
 0x19e   : > { %2818 = vmatprep.subr.bf16.mxu0 %v4802_v8  ;;  %v1897_v19 = vadd.f32 1.0, %v3090_v60  ;;  %3097 = vpow2.f32 %v2665_v13  ;;  %v1516_v49 = vadd.f32 %v4228_v3, %v1444_v45  ;;  %v1556_v14 = vmul.f32 %v3841_v11, %v1045_v4  ;;  %v1099_v13 = vld [vmem:[#allocation2 + $0x169] sm:$0xff]  ;;  %v1100_v60 = vld [vmem:[#allocation2 + $0x171] sm:$0xff]  ;;  %2828 = vmatprep.mubr.msk.bf16.mxu0 %vm3204_vm3, %v4802_v8 }
 0x19f   : > { %v1898_v52 = vadd.f32 1.0, %v3092_v9  ;;  %3099 = vpow2.f32 %v2666_v32  ;;  %v1517_v0 = vadd.f32 %v4231_v24, %v1445_v5  ;;  %v1557_v15 = vmul.f32 %v3841_v11, %v1046_v35  ;;  %2819 = vmatpush3.bf16.msra.mxu0 %v2898_v61  ;;  %v1135_v24 = vld [vmem:[#allocation2 + $0x16a] sm:$0xff]  ;;  %v4373_v35 = vld [vmem:[#allocation2 + $0x172] sm:$0xff] }
 0x1a0   : > { %v3094_v42 = vpop.eup %3093  ;;  %3101 = vrcp.f32 %v1897_v19  ;;  %v1588_v54 = vadd.f32 %v1556_v14, %v1516_v49  ;;  %v1628_v31 = vmul.f32 %v3855_v33, %v1081_v50  ;;  %v1629_v20 = vmul.f32 %v3855_v33, %v1082_v39  ;;  %2820 = vmatprep.subr.bf16.mxu0 %v4802_v8 }
 0x1a1   : > { %v3096_v3 = vpop.eup %3095  ;;  %v2009_v4 = vmul.f32 %v3094_v42, %v4216_v47  ;;  %3103 = vrcp.f32 %v1898_v52  ;;  %v1589_v45 = vadd.f32 %v1557_v15, %v1517_v0  ;;  %v1700_v11 = vmul.f32 %v3865_v1, %v4306_v62 }
 0x1a2   : > { %v2010_v50 = vmul.f32 %v3096_v3, %v4219_v63  ;;  %v1660_v33 = vadd.f32 %v1628_v31, %v1588_v54  ;;  %v1701_v39 = vmul.f32 %v3865_v1, %v4309_v51  ;;  %v1178_v61 = vmul.f32 %v4011_v10, %v1063_v29 }
 0x1a3   : > { %v1661_v32 = vadd.f32 %v1629_v20, %v1589_v45  ;;  %v1179_v47 = vmul.f32 %v4011_v10, %v1064_v55  ;;  %v1218_v5 = vmul.f32 %v4018_v26, %v1099_v13  ;;  %v1219_v62 = vmul.f32 %v4018_v26, %v1100_v60 }
 0x1a4   : > { %v2038_v9 = vpack.c.bf16 %v2010_v50, %v2009_v4  ;;  %v1732_v19 = vadd.f32 %v1700_v11, %v1660_v33  ;;  %v1290_v49 = vmul.f32 %v4081_v59, %v1135_v24  ;;  %v1291_v63 = vmul.f32 %v4081_v59, %v4373_v35 }
 0x1a5   : > { %v1733_v14 = vadd.f32 %v1701_v39, %v1661_v32  ;;  %v1250_v52 = vadd.f32 %v1218_v5, %v1178_v61  ;;  %v1251_v0 = vadd.f32 %v1219_v62, %v1179_v47  ;;  %v4387_v1 = vmul.f32 %v4197_v48, %v1063_v29  ;;  %v4429_v62 = vld [vmem:[%s4776_s3 + $0x6] ss:$0 sm:$0xff] }
 0x1a6   : > { %2729 = vmatprep.subr.bf16.mxu1 %v2038_v9  ;;  %v4390_v51 = vadd.f32 %v3900_v7, %v1732_v19  ;;  %v4393_v15 = vmul.f32 %v4197_v48, %v1064_v55  ;;  %v1390_v42 = vadd.f32 %v4252_v2, %v4155_v6  ;;  %v1391_v54 = vadd.f32 %v4255_v27, %v4157_v46 }
 0x1a7   : > { %v4400_v31 = vadd.f32 %v3900_v7, %v1733_v14  ;;  %v4402_v20 = vadd.f32 %v1290_v49, %v1250_v52  ;;  %v4404_v3 = vadd.f32 %v1291_v63, %v1251_v0  ;;  %v4407_v4 = vmul.f32 %v4270_v56, %v1099_v13  ;;  %v1047_v49 = vld [vmem:[#allocation2 + $0xa8] sm:$0xff]  ;;  %v1048_v63 = vld [vmem:[#allocation2 + $0xb0] sm:$0xff] }
 0x1a8   : > { %v3098_v45 = vpop.eup %3097  ;;  %v2649_v11 = vmul.f32 -1.442695, %v4390_v51  ;;  %v4411_v50 = vmul.f32 %v4270_v56, %v1100_v60  ;;  %v1462_v6 = vadd.f32 %v4273_v28, %v1390_v42  ;;  %v1463_v46 = vadd.f32 %v4280_v12, %v1391_v54  ;;  %v1083_v52 = vld [vmem:[#allocation2 + $0xa9] sm:$0xff]  ;;  %v1084_v0 = vld [vmem:[#allocation2 + $0xb1] sm:$0xff] }
 0x1a9   : > { %v3100_v2 = vpop.eup %3099  ;;  %v1915_v7 = vadd.f32 1.0, %v3098_v45  ;;  %v2650_v27 = vmul.f32 -1.442695, %v4400_v31  ;;  %v4417_v33 = vmul.f32 %v4289_v34, %v1135_v24  ;;  %v4421_v39 = vmul.f32 %v4289_v34, %v4373_v35  ;;  %v1119_v54 = vld [vmem:[#allocation2 + $0xaa] sm:$0xff]  ;;  %v1120_v45 = vld [vmem:[#allocation2 + $0xb2] sm:$0xff] }
 0x1aa   : > { %v3102_v61 = vpop.eup %3101  ;;  %v1916_v32 = vadd.f32 1.0, %v3100_v2  ;;  %3105 = vpow2.f32 %v2649_v11  ;;  %v1534_v47 = vadd.f32 %v4292_v37, %v1462_v6  ;;  %v1535_v28 = vadd.f32 %v4295_v38, %v1463_v46  ;;  %v4437_v37 = vld [vmem:[%s4776_s3 + $0x7] ss:$0 sm:$0xff] }
 0x1ab   : > { %v3104_v5 = vpop.eup %3103  ;;  %v1993_v12 = vmul.f32 %v3102_v61, %v4260_v17  ;;  %3107 = vrcp.f32 %v1915_v7  ;;  %v1574_v9 = vmul.f32 %v4429_v62, %v1063_v29  ;;  %v1575_v19 = vmul.f32 %v4429_v62, %v1064_v55  ;;  %v4444_v55 = vld [vmem:[%s4776_s3 + $0x8] ss:$0 sm:$0xff] }
 0x1ac   : > { %v1994_v14 = vmul.f32 %v3104_v5, %v4263_v21  ;;  %3109 = vrcp.f32 %v1916_v32  ;;  %v1646_v17 = vmul.f32 %v4437_v37, %v1099_v13  ;;  %v1647_v38 = vmul.f32 %v4437_v37, %v1100_v60 }
 0x1ad   : > { %3111 = vpow2.f32 %v2650_v27  ;;  %v1606_v29 = vadd.f32 %v1574_v9, %v1534_v47  ;;  %v1607_v42 = vadd.f32 %v1575_v19, %v1535_v28  ;;  %v1718_v21 = vmul.f32 %v4444_v55, %v1135_v24  ;;  %v4474_v19 = vld [vmem:[%s4777_s4] ss:$0 sm:$0xff] }
 0x1ae   : > { %v2030_v11 = vpack.c.bf16 %v1994_v14, %v1993_v12  ;;  %v1719_v13 = vmul.f32 %v4444_v55, %v4373_v35  ;;  %v1162_v60 = vmul.f32 %v4011_v10, %v1047_v49  ;;  %v1163_v6 = vmul.f32 %v4011_v10, %v1048_v63 }
 0x1af   : > { %v1678_v46 = vadd.f32 %v1646_v17, %v1606_v29  ;;  %v1679_v2 = vadd.f32 %v1647_v38, %v1607_v42  ;;  %v1202_v7 = vmul.f32 %v4018_v26, %v1083_v52  ;;  %v1203_v27 = vmul.f32 %v4018_v26, %v1084_v0 }
 0x1b0   : > { %2730 = vmatpush3.bf16.msra.mxu1 %v2030_v11  ;;  %v1274_v61 = vmul.f32 %v4081_v59, %v1119_v54  ;;  %v1275_v24 = vmul.f32 %v4081_v59, %v1120_v45  ;;  %v4456_v32 = vmul.f32 %v4197_v48, %v1047_v49  ;;  %v4459_v35 = vmul.f32 %v4197_v48, %v1048_v63 }
 0x1b1   : > { %v1750_v47 = vadd.f32 %v1718_v21, %v1678_v46  ;;  %v1751_v28 = vadd.f32 %v1719_v13, %v1679_v2  ;;  %v1234_v10 = vadd.f32 %v1202_v7, %v1162_v60  ;;  %v1235_v5 = vadd.f32 %v1203_v27, %v1163_v6 }
 0x1b2   : > { %v1374_v12 = vadd.f32 %v4320_v18, %v4221_v44  ;;  %v1375_v26 = vadd.f32 %v4326_v16, %v4223_v41  ;;  %v4466_v9 = vmul.f32 %v4270_v56, %v1083_v52  ;;  %v4469_v59 = vmul.f32 %v4270_v56, %v1084_v0 }
 0x1b3   : > { %v4477_v14 = vadd.f32 %v4474_v19, %v1750_v47  ;;  %v4480_v17 = vadd.f32 %v4474_v19, %v1751_v28  ;;  %v4482_v44 = vadd.f32 %v1274_v61, %v1234_v10  ;;  %v4484_v41 = vadd.f32 %v1275_v24, %v1235_v5  ;;  %v1065_v28 = vld [vmem:[#allocation2 + $0x180] sm:$0xff] }
 0x1b4   : > { %v3106_v18 = vpop.eup %3105  ;;  %v1446_v16 = vadd.f32 %v4341_v25, %v1374_v12  ;;  %v1447_v38 = vadd.f32 %v4347_v40, %v1375_v26  ;;  %v4489_v29 = vmul.f32 %v4289_v34, %v1119_v54  ;;  %v4492_v42 = vmul.f32 %v4289_v34, %v1120_v45  ;;  %v1101_v12 = vld [vmem:[#allocation2 + $0x181] sm:$0xff]  ;;  %v1102_v26 = vld [vmem:[#allocation2 + $0x189] sm:$0xff] }
 0x1b5   : > { %v3108_v21 = vpop.eup %3107  ;;  %v1899_v11 = vadd.f32 1.0, %v3106_v18  ;;  %v2667_v13 = vmul.f32 -1.442695, %v4477_v14  ;;  %v2668_v60 = vmul.f32 -1.442695, %v4480_v17  ;;  %v1558_v6 = vmul.f32 %v4429_v62, %v1047_v49 }
 0x1b6   : > { %v3110_v46 = vpop.eup %3109  ;;  %v2011_v2 = vmul.f32 %v3108_v21, %v4323_v30  ;;  %v1518_v25 = vadd.f32 %v4357_v22, %v1446_v16  ;;  %v1519_v40 = vadd.f32 %v4361_v58, %v1447_v38  ;;  %v1559_v7 = vmul.f32 %v4429_v62, %v1048_v63  ;;  %v1066_v30 = vld [vmem:[#allocation2 + $0x188] sm:$0xff] }
 0x1b7   : > { %v3112_v27 = vpop.eup %3111  ;;  %v2012_v61 = vmul.f32 %v3110_v46, %v4334_v43  ;;  %3113 = vrcp.f32 %v1899_v11  ;;  %v1630_v24 = vmul.f32 %v4437_v37, %v1083_v52  ;;  %v1631_v47 = vmul.f32 %v4437_v37, %v1084_v0  ;;  %v1137_v43 = vld [vmem:[#allocation2 + $0x182] sm:$0xff]  ;;  %v1138_v16 = vld [vmem:[#allocation2 + $0x18a] sm:$0xff] }
 0x1b8   : > { %v1900_v10 = vadd.f32 1.0, %v3112_v27  ;;  %3115 = vpow2.f32 %v2667_v13  ;;  %v1590_v49 = vadd.f32 %v1558_v6, %v1518_v25  ;;  %v1591_v5 = vadd.f32 %v1559_v7, %v1519_v40 }
 0x1b9   : > { %v2039_v22 = vpack.c.bf16 %v2012_v61, %v2011_v2  ;;  %3117 = vpow2.f32 %v2668_v60  ;;  %v1702_v58 = vmul.f32 %v4444_v55, %v1119_v54  ;;  %v1703_v63 = vmul.f32 %v4444_v55, %v1120_v45 }
 0x1ba   : > { %3119 = vrcp.f32 %v1900_v10  ;;  %v1662_v18 = vadd.f32 %v1630_v24, %v1590_v49  ;;  %v1663_v52 = vadd.f32 %v1631_v47, %v1591_v5  ;;  %v4507_v0 = vmul.f32 %v4197_v48, %v1065_v28 }
 0x1bb   : > { %2731 = vmatprep.subr.bf16.mxu1 %v2039_v22  ;;  %v4510_v38 = vmul.f32 %v4197_v48, %v1066_v30  ;;  %v1392_v21 = vadd.f32 %v4387_v1, %v4275_v57  ;;  %v1393_v54 = vadd.f32 %v4393_v15, %v4277_v23  ;;  %v4517_v45 = vmul.f32 %v4270_v56, %v1101_v12 }
 0x1bc   : > { %v1734_v11 = vadd.f32 %v1702_v58, %v1662_v18  ;;  %v1735_v13 = vadd.f32 %v1703_v63, %v1663_v52  ;;  %v4520_v60 = vmul.f32 %v4270_v56, %v1102_v26  ;;  %v4523_v6 = vmul.f32 %v4289_v34, %v1137_v43  ;;  %v4556_v63 = vld [vmem:[#allocation2 + $0xc8] sm:$0xff] }
 0x1bd   : > { %v1464_v46 = vadd.f32 %v4407_v4, %v1392_v21  ;;  %v1465_v2 = vadd.f32 %v4411_v50, %v1393_v54  ;;  %v4528_v57 = vmul.f32 %v4289_v34, %v1138_v16  ;;  %v1576_v23 = vmul.f32 %v4429_v62, %v1065_v28 }
 0x1be   : > { %v4532_v1 = vadd.f32 %v4474_v19, %v1734_v11  ;;  %v4535_v15 = vadd.f32 %v4474_v19, %v1735_v13  ;;  %v1577_v25 = vmul.f32 %v4429_v62, %v1066_v30  ;;  %v1648_v40 = vmul.f32 %v4437_v37, %v1101_v12 }
 0x1bf   : > { %v1536_v7 = vadd.f32 %v4417_v33, %v1464_v46  ;;  %v1537_v4 = vadd.f32 %v4421_v39, %v1465_v2  ;;  %v1649_v50 = vmul.f32 %v4437_v37, %v1102_v26  ;;  %v1720_v27 = vmul.f32 %v4444_v55, %v1137_v43  ;;  %v4550_v39 = vld [vmem:[#allocation2 + $0xc0] sm:$0xff]  ;;  %v4568_v2 = vld [vmem:[#allocation2 + $0xc9] sm:$0xff] }
 0x1c0   : > { %v2651_v61 = vmul.f32 -1.442695, %v4532_v1  ;;  %v2652_v24 = vmul.f32 -1.442695, %v4535_v15  ;;  %v1721_v47 = vmul.f32 %v4444_v55, %v1138_v16  ;;  %v1376_v28 = vadd.f32 %v4456_v32, %v4336_v53 }
 0x1c1   : > { %v3114_v10 = vpop.eup %3113  ;;  %v1608_v49 = vadd.f32 %v1576_v23, %v1536_v7  ;;  %v1609_v5 = vadd.f32 %v1577_v25, %v1537_v4  ;;  %v1377_v33 = vadd.f32 %v4459_v35, %v4344_v36  ;;  %v1560_v30 = vmul.f32 %v4550_v39, %v4429_v62  ;;  %v1068_v4 = vld [vmem:[#allocation2 + $0x1a0] sm:$0xff] }
 0x1c2   : > { %v3116_v12 = vpop.eup %3115  ;;  %v1995_v22 = vmul.f32 %v3114_v10, %v4390_v51  ;;  %3121 = vpow2.f32 %v2651_v61  ;;  %v1448_v58 = vadd.f32 %v4466_v9, %v1376_v28  ;;  %v1561_v53 = vmul.f32 %v4556_v63, %v4429_v62  ;;  %v4562_v51 = vld [vmem:[#allocation2 + $0xc1] sm:$0xff] }
 0x1c3   : > { %v3118_v32 = vpop.eup %3117  ;;  %v1917_v26 = vadd.f32 1.0, %v3116_v12  ;;  %3123 = vpow2.f32 %v2652_v24  ;;  %v1680_v36 = vadd.f32 %v1648_v40, %v1608_v49  ;;  %v1681_v35 = vadd.f32 %v1649_v50, %v1609_v5  ;;  %v1103_v24 = vld [vmem:[#allocation2 + $0x199] sm:$0xff] }
 0x1c4   : > { %v3120_v43 = vpop.eup %3119  ;;  %v1918_v18 = vadd.f32 1.0, %v3118_v32  ;;  %v1449_v52 = vadd.f32 %v4469_v59, %v1377_v33  ;;  %v1520_v16 = vadd.f32 %v4489_v29, %v1448_v58  ;;  %v1632_v9 = vmul.f32 %v4562_v51, %v4437_v37  ;;  %v1067_v29 = vld [vmem:[#allocation2 + $0x198] sm:$0xff]  ;;  %v1140_v58 = vld [vmem:[#allocation2 + $0x1a2] sm:$0xff] }
 0x1c5   : > { %v1996_v21 = vmul.f32 %v3120_v43, %v4400_v31  ;;  %3125 = vrcp.f32 %v1917_v26  ;;  %v1752_v54 = vadd.f32 %v1720_v27, %v1680_v36  ;;  %v1753_v11 = vadd.f32 %v1721_v47, %v1681_v35  ;;  %v3187_v31 = vld [vmem:[#allocation2 + $0xc2] sm:$0xff]  ;;  %v3188_v27 = vld [vmem:[#allocation2 + $0xca] sm:$0xff] }
 0x1c6   : > { %3127 = vrcp.f32 %v1918_v18  ;;  %v1521_v13 = vadd.f32 %v4492_v42, %v1449_v52  ;;  %v1592_v46 = vadd.f32 %v1560_v30, %v1520_v16  ;;  %v1633_v59 = vmul.f32 %v4568_v2, %v4437_v37  ;;  %v1104_v47 = vld [vmem:[#allocation2 + $0x1a1] sm:$0xff] }
 0x1c7   : > { %v2031_v23 = vpack.c.bf16 %v1996_v21, %v1995_v22  ;;  %v4573_v25 = vadd.f32 %v4474_v19, %v1752_v54  ;;  %v4576_v40 = vadd.f32 %v4474_v19, %v1753_v11  ;;  %v1704_v7 = vmul.f32 %v3187_v31, %v4444_v55  ;;  %v1139_v22 = vld [vmem:[#allocation2 + $0x19a] sm:$0xff] }
 0x1c8   : > { %v1593_v50 = vadd.f32 %v1561_v53, %v1521_v13  ;;  %v1664_v42 = vadd.f32 %v1632_v9, %v1592_v46  ;;  %v1705_v61 = vmul.f32 %v3188_v27, %v4444_v55  ;;  %v1394_v28 = vadd.f32 %v4507_v0, %v4402_v20 }
 0x1c9   : > { %2732 = vmatpush3.bf16.msra.mxu1 %v2031_v23  ;;  %v2669_v10 = vmul.f32 -1.442695, %v4573_v25  ;;  %v2670_v49 = vmul.f32 -1.442695, %v4576_v40  ;;  %v1395_v5 = vadd.f32 %v4510_v38, %v4404_v3  ;;  %v1578_v33 = vmul.f32 %v4429_v62, %v1067_v29 }
 0x1ca   : > { %v1665_v30 = vadd.f32 %v1633_v59, %v1593_v50  ;;  %v1736_v12 = vadd.f32 %v1704_v7, %v1664_v42  ;;  %v1466_v53 = vadd.f32 %v4517_v45, %v1394_v28  ;;  %v1579_v32 = vmul.f32 %v4429_v62, %v1068_v4 }
 0x1cb   : > { %3129 = vpow2.f32 %v2669_v10  ;;  %v1467_v20 = vadd.f32 %v4520_v60, %v1395_v5  ;;  %v1650_v0 = vmul.f32 %v4437_v37, %v1103_v24  ;;  %v1651_v26 = vmul.f32 %v4437_v37, %v1104_v47 }
 0x1cc   : > { %v3122_v36 = vpop.eup %3121  ;;  %3131 = vpow2.f32 %v2670_v49  ;;  %v1737_v3 = vadd.f32 %v1705_v61, %v1665_v30  ;;  %v4593_v38 = vadd.f32 %v4474_v19, %v1736_v12  ;;  %v1538_v35 = vadd.f32 %v4523_v6, %v1466_v53 }
 0x1cd   : > { %v3124_v43 = vpop.eup %3123  ;;  %v1901_v18 = vadd.f32 1.0, %v3122_v36  ;;  %v1539_v45 = vadd.f32 %v4528_v57, %v1467_v20  ;;  %v1722_v52 = vmul.f32 %v4444_v55, %v1139_v22  ;;  %v1723_v60 = vmul.f32 %v4444_v55, %v1140_v58  ;;  %v3190_v22 = vld [vmem:[#allocation2 + $0xe0] sm:$0xff] }
 0x1ce   : > { %v1902_v16 = vadd.f32 1.0, %v3124_v43  ;;  %v4600_v9 = vadd.f32 %v4474_v19, %v1737_v3  ;;  %v2653_v21 = vmul.f32 -1.442695, %v4593_v38  ;;  %v1610_v54 = vadd.f32 %v1578_v33, %v1538_v35  ;;  %v3193_v35 = vld [vmem:[#allocation2 + $0xda] sm:$0xff] }
 0x1cf   : > { %v3126_v11 = vpop.eup %3125  ;;  %3133 = vrcp.f32 %v1901_v18  ;;  %v1611_v13 = vadd.f32 %v1579_v32, %v1539_v45  ;;  %v1346_v6 = vmul.f32 %v4550_v39, %v4197_v48  ;;  %v1347_v57 = vmul.f32 %v4556_v63, %v4197_v48  ;;  %v3191_v32 = vld [vmem:[#allocation2 + $0xd9] sm:$0xff]  ;;  %v3194_v18 = vld [vmem:[#allocation2 + $0xe2] sm:$0xff] }
 0x1d0   : > { %v3128_v46 = vpop.eup %3127  ;;  %v2013_v59 = vmul.f32 %v3126_v11, %v4477_v14  ;;  %3135 = vrcp.f32 %v1902_v16  ;;  %v2654_v29 = vmul.f32 -1.442695, %v4600_v9  ;;  %v1682_v23 = vadd.f32 %v1650_v0, %v1610_v54  ;;  %v3192_v0 = vld [vmem:[#allocation2 + $0xe1] sm:$0xff] }
 0x1d1   : > { %v2014_v7 = vmul.f32 %v3128_v46, %v4480_v17  ;;  %3137 = vpow2.f32 %v2653_v21  ;;  %v1683_v4 = vadd.f32 %v1651_v26, %v1611_v13  ;;  %v1378_v50 = vadd.f32 %v1346_v6, %v4482_v44 }
 0x1d2   : > { %3139 = vpow2.f32 %v2654_v29  ;;  %v1754_v42 = vadd.f32 %v1722_v52, %v1682_v23  ;;  %v1379_v39 = vadd.f32 %v1347_v57, %v4484_v41  ;;  %v1418_v48 = vmul.f32 %v4562_v51, %v4270_v56 }
 0x1d3   : > { %v2040_v63 = vpack.c.bf16 %v2014_v7, %v2013_v59  ;;  %v1755_v61 = vadd.f32 %v1723_v60, %v1683_v4  ;;  %v1419_v14 = vmul.f32 %v4568_v2, %v4270_v56  ;;  %v1490_v47 = vmul.f32 %v3187_v31, %v4289_v34  ;;  %v3189_v56 = vld [vmem:[#allocation2 + $0xd8] sm:$0xff] }
 0x1d4   : > { %v4617_v24 = vadd.f32 %v4474_v19, %v1754_v42  ;;  %v1450_v17 = vadd.f32 %v1418_v48, %v1378_v50  ;;  %v1491_v10 = vmul.f32 %v3188_v27, %v4289_v34  ;;  %v1562_v2 = vmul.f32 %v3189_v56, %v4429_v62 }
 0x1d5   : > { %v3130_v28 = vpop.eup %3129  ;;  %2733 = vmatprep.subr.bf16.mxu1 %v2040_v63  ;;  %v4621_v44 = vadd.f32 %v4474_v19, %v1755_v61  ;;  %v1451_v41 = vadd.f32 %v1419_v14, %v1379_v39  ;;  %v1563_v58 = vmul.f32 %v3190_v22, %v4429_v62  ;;  %v1634_v34 = vmul.f32 %v3191_v32, %v4437_v37  ;;  %v2896_v22 = vld [vmem:[%s4784_s11 + $0x30] ss:$8 sps:$4 sm:$0xff]   ;;  %v2901_v32 = vld [vmem:[%s4778_s5 + $0x20] sm:$0xff]  }
 0x1d6   : > { %v3132_v51 = vpop.eup %3131  ;;  %v1919_v49 = vadd.f32 1.0, %v3130_v28  ;;  %v2671_v5 = vmul.f32 -1.442695, %v4617_v24  ;;  %v1522_v33 = vadd.f32 %v1490_v47, %v1450_v17  ;;  %v1635_v26 = vmul.f32 %v3192_v0, %v4437_v37 }
 0x1d7   : > { %v1920_v30 = vadd.f32 1.0, %v3132_v51  ;;  %v2672_v12 = vmul.f32 -1.442695, %v4621_v44  ;;  %v1523_v31 = vadd.f32 %v1491_v10, %v1451_v41  ;;  %v1706_v43 = vmul.f32 %v3193_v35, %v4444_v55 }
 0x1d8   : > { %3141 = vrcp.f32 %v1919_v49  ;;  %v1594_v53 = vadd.f32 %v1562_v2, %v1522_v33  ;;  %v1707_v62 = vmul.f32 %v3194_v18, %v4444_v55  ;;  %v2885_v2 = vld [vmem:[%s4784_s11] ss:$8 sps:$4 sm:$0xff]  }
 0x1d9   : > { %v3134_v27 = vpop.eup %3133  ;;  %3143 = vrcp.f32 %v1920_v30  ;;  %v1595_v20 = vadd.f32 %v1563_v58, %v1523_v31  ;;  %v2888_v30 = vld [vmem:[%s4784_s11 + $0x14] ss:$8 sps:$4 sm:$0xff]  }
 0x1da   : > { %v3136_v36 = vpop.eup %3135  ;;  %3145 = vpow2.f32 %v2671_v5  ;;  %v1666_v3 = vadd.f32 %v1634_v34, %v1594_v53  ;;  %v1997_v52 = vmul.f32 %v3134_v27, %v4532_v1  ;;  %v2894_v31 = vld [vmem:[%s4784_s11 + $0x34] ss:$8 sps:$4 sm:$0xff]   ;;  %v2902_v34 = vld [vmem:[%s4778_s5 + $0x28] sm:$0xff]  }
 0x1db   : > { %v3138_v45 = vpop.eup %3137  ;;  %v1998_v60 = vmul.f32 %v3136_v36, %v4535_v15  ;;  %3147 = vpow2.f32 %v2672_v12  ;;  %v1667_v16 = vadd.f32 %v1635_v26, %v1595_v20  ;;  %v2893_v12 = vld [vmem:[%s4784_s11 + $0x20] ss:$8 sps:$4 sm:$0xff]   ;;  %v2899_v58 = vld [vmem:[%s4778_s5 + $0x10] sm:$0xff]   ;;  %v2900_v53 = vld [vmem:[%s4778_s5 + $0x18] sm:$0xff]  }
 0x1dc   : > { %v3140_v21 = vpop.eup %3139  ;;  %v1903_v54 = vadd.f32 1.0, %v3138_v45  ;;  %v1738_v11 = vadd.f32 %v1706_v43, %v1666_v3  ;;  %2821 = vmatpush3.bf16.msra.mxu0 %v2899_v58 }
 0x1dd   : > { %v2032_v37 = vpack.c.bf16 %v1998_v60, %v1997_v52  ;;  %v1904_v13 = vadd.f32 1.0, %v3140_v21  ;;  %v1739_v6 = vadd.f32 %v1707_v62, %v1667_v16  ;;  %2822 = vmatprep.subr.bf16.mxu0 %v4802_v8 }
 0x1de   : > { %3149 = vrcp.f32 %v1903_v54  ;;  %v1777_v57 = vadd.f32 %v4474_v19, %v1738_v11 }
 0x1df   : > { %2734 = vmatpush3.bf16.msra.mxu1 %v2032_v37  ;;  %3151 = vrcp.f32 %v1904_v13  ;;  %v1778_v55 = vadd.f32 %v4474_v19, %v1739_v6 }
 0x1e0   : > { %v2655_v46 = vmul.f32 -1.442695, %v1777_v57  ;;  %2823 = vmatpush3.bf16.msra.mxu0 %v2900_v53  ;;  %v2903_v53 = vld [vmem:[%s4782_s9] sm:$0xff]  }
 0x1e1   : > { %v2656_v59 = vmul.f32 -1.442695, %v1778_v55  ;;  %2824 = vmatprep.subr.bf16.mxu0 %v4802_v8 }
 0x1e2   : > { %v3142_v1 = vpop.eup %3141  ;;  %3153 = vpow2.f32 %v2655_v46 }
 0x1e3   : > { %v3144_v15 = vpop.eup %3143  ;;  %3155 = vpow2.f32 %v2656_v59  ;;  %v2015_v23 = vmul.f32 %v3142_v1, %v4573_v25 }
 0x1e4   : > { %v3146_v29 = vpop.eup %3145  ;;  %v2016_v7 = vmul.f32 %v3144_v15, %v4576_v40  ;;  %2825 = vmatpush3.bf16.msra.mxu0 %v2901_v32  ;;  %v2904_v32 = vld [vmem:[%s4782_s9 + $0x8] sm:$0xff]  }
 0x1e5   : > { %v3148_v4 = vpop.eup %3147  ;;  %v1921_v50 = vadd.f32 1.0, %v3146_v29  ;;  %2826 = vmatprep.subr.bf16.mxu0 %v4802_v8 }
 0x1e6   : > { %v2041_v42 = vpack.c.bf16 %v2016_v7, %v2015_v23  ;;  %v1922_v39 = vadd.f32 1.0, %v3148_v4 }
 0x1e7   : > { %3157 = vrcp.f32 %v1921_v50 }
 0x1e8   : > { %v3150_v48 = vpop.eup %3149  ;;  %2735 = vmatprep.subr.bf16.mxu1 %v2041_v42  ;;  %3159 = vrcp.f32 %v1922_v39  ;;  %2827 = vmatpush3.bf16.msra.mxu0 %v2902_v34  ;;  %v2905_v34 = vld [vmem:[%s4782_s9 + $0x10] sm:$0xff]  }
 0x1e9   : > { %v3152_v19 = vpop.eup %3151  ;;  %v1999_v63 = vmul.f32 %v3150_v48, %v4593_v38  ;;  %2832 = vmatprep.subr.bf16.mxu0 %v4802_v8 }
 0x1ea   : > { %v2000_v61 = vmul.f32 %v3152_v19, %v4600_v9 }
 0x1ec   : > { %v3154_v14 = vpop.eup %3153  ;;  %v2033_v17 = vpack.c.bf16 %v2000_v61, %v1999_v63 }
 0x1ed   : > { %v3156_v47 = vpop.eup %3155  ;;  %v1905_v28 = vadd.f32 1.0, %v3154_v14 }
 0x1ee   : > { %2736 = vmatpush3.bf16.msra.mxu1 %v2033_v17  ;;  %v1906_v25 = vadd.f32 1.0, %v3156_v47 }
 0x1ef   : > { %3161 = vrcp.f32 %v1905_v28 }
 0x1f0   : > { %3163 = vrcp.f32 %v1906_v25 }
 0x1f1   : > { %v3158_v40 = vpop.eup %3157 }
 0x1f2   : > { %v3160_v41 = vpop.eup %3159  ;;  %v2017_v10 = vmul.f32 %v3158_v40, %v4617_v24  ;;  %v2890_v24 = vld [vmem:[%s4784_s11 + $0x10] ss:$8 sps:$4 sm:$0xff]  }
 0x1f3   : > { %v2018_v51 = vmul.f32 %v3160_v41, %v4621_v44  ;;  %v2891_v44 = vld [vmem:[%s4784_s11 + $0x24] ss:$8 sps:$4 sm:$0xff]  }
 0x1f5   : > { %v2042_v49 = vpack.c.bf16 %v2018_v51, %v2017_v10 }
 0x1f7   : > { %2737 = vmatprep.subr.bf16.mxu1 %v2042_v49 }
 0x1f9   : > { %v3162_v5 = vpop.eup %3161 }
 0x1fa   : > { %v3164_v38 = vpop.eup %3163  ;;  %v2001_v33 = vmul.f32 %v3162_v5, %v1777_v57  ;;  %v2272_v5 = vld [vmem:[%s4780_s7] sm:$0x3] }
 0x1fb   : > { %v2002_v9 = vmul.f32 %v3164_v38, %v1778_v55  ;;  %v2280_v38 = vsel %vm2278_vm4, %v2272_v5, 0 }
 0x1fd   : > { %v2034_v56 = vpack.c.bf16 %v2002_v9, %v2001_v33  ;;  %v2184_v33 = vld [vmem:[%s4779_s6] sm:$0x1] }
 0x1ff   : > { %2738 = vmatpush3.bf16.msra.mxu1 %v2034_v56 }
 0x200   : > { %2838 = vmatprep.subr.bf16.mxu1 %v2903_v53 }
 0x202   : > { %2116 = vmatmul.mubr.bf16.vlgmr.msra.gmra.mrb[0].mxu1 %v2885_v2 }
 0x203   : > { %2123 = vmatprep.mubr.bf16.mxu1 %v2888_v30  ;;  %2839 = vmatpush3.bf16.msra.mxu1 %v2903_v53 }
 0x204   : > { %2840 = vmatprep.subr.bf16.mxu1 %v2904_v32 }
 0x207   : > { %2841 = vmatpush3.bf16.msra.mxu1 %v2904_v32 }
 0x208   : > { %2842 = vmatprep.subr.bf16.mxu1 %v2905_v34 }
 0x20a   : > { %2124 = vmatmul.mubr.bf16.gmra.mrb[4].mxu1 %v2890_v24 }
 0x20b   : > { %2131 = vmatprep.mubr.bf16.mxu1 %v2891_v44  ;;  %2843 = vmatpush3.bf16.msra.mxu1 %v2905_v34 }
 0x212   : > { %2132 = vmatmul.mubr.bf16.gmra.mrb[8].mxu1 %v2893_v12 }
 0x213   : > { %2139 = vmatprep.mubr.bf16.mxu1 %v2894_v31 }
 0x21a   : > { %2140 = vmatmul.mubr.bf16.gmra.mrb[12].mxu1 %v2896_v22 }
 0x2d5   : > { %v2739_v27 = vpop.f32.mrb[0].mxu1 }
 0x2d6   : > { %v2740_v20 = vpop.f32.mrb[1].mxu1 }
 0x2d7   : > { %v4681_v0 = vadd.f32 %v2740_v20, %v2739_v27  ;;  %v2742_v26 = vpop.f32.mrb[2].mxu1  ;;  %v2906_v27 = vld [vmem:[%s4782_s9 + $0x18] sm:$0xff]   ;;  %v2907_v20 = vld [vmem:[%s4782_s9 + $0x20] sm:$0xff]  }
 0x2d8   : > { %v2743_v36 = vpop.f32.mrb[3].mxu1  ;;  %2844 = vmatprep.subr.bf16.mxu1 %v2906_v27 }
 0x2d9   : > { %v4683_v3 = vadd.f32 %v2743_v36, %v2742_v26  ;;  %v2148_v16 = vsel %vm944_vm1, %v4681_v0, 0.0  ;;  %2845 = vmatpush3.bf16.msra.mxu1 %v2906_v27  ;;  %v2908_v26 = vld [vmem:[%s4782_s9 + $0x28] sm:$0xff]   ;;  %v2273_v36 = vld [vmem:[%s4781_s8] sm:$0x1] }
 0x2da   : > { %2846 = vmatprep.subr.bf16.mxu1 %v2907_v20 }
 0x2db   : > { %v2149_v52 = vsel %vm944_vm1, %v4683_v3, 0.0 }
 0x2dc   : > { %v2150_v54 = vadd.f32 %v2149_v52, %v2148_v16 }
 0x2dd   : > { %v2745_v35 = vpop.f32.mrb[4].mxu1  ;;  %2847 = vmatpush3.bf16.msra.mxu1 %v2907_v20 }
 0x2de   : > { %v2746_v43 = vpop.f32.mrb[5].mxu1  ;;  %2848 = vmatprep.subr.bf16.mxu1 %v2908_v26 }
 0x2df   : > { %v4685_v18 = vadd.f32 %v2746_v43, %v2745_v35  ;;  %v2748_v62 = vpop.f32.mrb[6].mxu1 }
 0x2e0   : > { %v2749_v45 = vpop.f32.mrb[7].mxu1 }
 0x2e1   : > { %v4689_v60 = vadd.f32 %v2749_v45, %v2748_v62  ;;  %v2151_v21 = vsel %vm944_vm1, %v4685_v18, 0.0  ;;  %2849 = vmatpush3.bf16.msra.mxu1 %v2908_v26 }
 0x2e2   : > { %v2152_v37 = vadd.f32 %v2151_v21, %v2150_v54 }
 0x2e3   : > { %v2153_v6 = vsel %vm944_vm1, %v4689_v60, 0.0 }
 0x2e4   : > { %v2154_v15 = vadd.f32 %v2153_v6, %v2152_v37 }
 0x2e5   : > { %v2751_v11 = vpop.f32.mrb[8].mxu1 }
 0x2e6   : > { %v2752_v13 = vpop.f32.mrb[9].mxu1 }
 0x2e7   : > { %v4697_v57 = vadd.f32 %v2752_v13, %v2751_v11  ;;  %v2754_v55 = vpop.f32.mrb[10].mxu1  ;;  %v2328_v11 = vlaneseq }
 0x2e8   : > { %v2755_v46 = vpop.f32.mrb[11].mxu1 }
 0x2e9   : > { %v2155_v59 = vsel %vm944_vm1, %v4697_v57, 0.0  ;;  %v4701_v1 = vadd.f32 %v2755_v46, %v2754_v55  ;;  %v2329_v37 = vshrl.u32 %v2328_v11, 7 }
 0x2ea   : > { %v2156_v29 = vadd.f32 %v2155_v59, %v2154_v15 }
 0x2eb   : > { %v2157_v23 = vsel %vm944_vm1, %v4701_v1, 0.0  ;;  %v2330_v13 = vsub.s32 0, %v2329_v37 }
 0x2ec   : > { %v2158_v39 = vadd.f32 %v2157_v23, %v2156_v29 }
 0x2ed   : > { %v2757_v7 = vpop.f32.mrb[12].mxu1 }
 0x2ee   : > { %v2758_v4 = vpop.f32.mrb[13].mxu1 }
 0x2ef   : > { %v4705_v50 = vadd.f32 %v2758_v4, %v2757_v7  ;;  %v2760_v42 = vpop.f32.mrb[14].mxu1 }
 0x2f0   : > { %v2761_v48 = vpop.f32.mrb[15].mxu1 }
 0x2f1   : > { %v2159_v19 = vsel %vm944_vm1, %v4705_v50, 0.0  ;;  %v4709_v63 = vadd.f32 %v2761_v48, %v2760_v42 }
 0x2f2   : > { %v2160_v61 = vadd.f32 %v2159_v19, %v2158_v39 }
 0x2f3   : > { %v2161_v14 = vsel %vm944_vm1, %v4709_v63, 0.0 }
 0x2f4   : > { %v2162_v17 = vadd.f32 %v2161_v14, %v2160_v61 }
 0x2f6   : > { %v2163_v47 = vrot.slane %v2162_v17, 4 }
 0x2f8   : > { %v2164_v28 = vadd.f32 %v2163_v47, %v2162_v17 }
 0x2fa   : > { %v2165_v25 = vrot.slane %v2164_v28, 2 }
 0x2fc   : > { %v2166_v40 = vadd.f32 %v2165_v25, %v2164_v28 }
 0x2fe   : > { %v2167_v41 = vrot.slane %v2166_v40, 1 }
 0x300   : > { %v2168_v10 = vadd.f32 %v2167_v41, %v2166_v40 }
 0x302   : > { %v2170_v51 = vmul.f32 0.015625, %v2168_v10 }
 0x304   : > { %v2171_v49 = vpack.c.bf16 %v2170_v51, %v2170_v51 }
 0x306   : > { %2829 = vmatmul.mubr.msk.bf16.vlgmr.msra.gmra.mrb[32].mxu0 %vm944_vm1, %v2171_v49 }
 0x307   : > { %2834 = vmatprep.mubr.msk.bf16.mxu0 %vm3204_vm3, %v4802_v8  ;;  %2833 = vmatpush3.bf16.msra.mxu0 %v2280_v38 }
 0x3d9   : > { %v2258_v9 = vpop.f32.mrb[32].mxu0 }
 0x3da   : > { %v2259_v56 = vadd.f32 %v2258_v9, %v2184_v33  ;;  %v2830_v2 = vpop.f32.mrb[33].mxu0 }
 0x3db   : > { %v2261_v30 = vpop.f32.mrb[34].mxu0 }
 0x3dc   : > { %v2688_v24 = vmul.f32 -1.442695, %v2259_v56  ;;  %v2831_v44 = vpop.f32.mrb[35].mxu0 }
 0x3de   : > { %3165 = vpow2.f32 %v2688_v24 }
 0x3e8   : > { %v3166_v12 = vpop.eup %3165 }
 0x3e9   : > { %v2267_v8 = vadd.f32 1.0, %v3166_v12 }
 0x3eb   : > { %3167 = vrcp.f32 %v2267_v8 }
 0x3f5   : > { %v3168_v31 = vpop.eup %3167 }
 0x3f6   : > { %v2270_v22 = vmul.f32 %v3168_v31, %v2259_v56 }
 0x3f8   : > { %v2271_v58 = vpack.c.bf16 %v2270_v22, %v2270_v22 }
 0x3fa   : > { %2835 = vmatmul.mubr.msk.bf16.vlgmr.msra.gmra.mrb[36].mxu0 %vm2274_vm5, %v2271_v58 }
 0x4cd   : > { %v2316_v35 = vpop.f32.mrb[36].mxu0 }
 0x4ce   : > { %v2317_v43 = vadd.f32 %v2316_v35, %v2273_v36  ;;  %v2836_v62 = vpop.f32.mrb[37].mxu0 }
 0x4cf   : > { %v2319_v45 = vpop.f32.mrb[38].mxu0 }
 0x4d0   : > { %v2690_v52 = vmul.f32 -1.442695, %v2317_v43  ;;  %v2837_v16 = vpop.f32.mrb[39].mxu0 }
 0x4d2   : > { %3169 = vpow2.f32 %v2690_v52 }
 0x4dc   : > { %v3170_v21 = vpop.eup %3169 }
 0x4dd   : > { %v2325_v54 = vadd.f32 1.0, %v3170_v21 }
 0x4df   : > { %3171 = vrcp.f32 %v2325_v54 }
 0x4e9   : > { %v3172_v6 = vpop.eup %3171 }
 0x4ea   : > { %v2331_v55 = vrot.slane %v3172_v6, %v2330_v13 }
 0x4ec   : > { %v2332_v46 = vmul.f32 %v4681_v0, %v2331_v55  ;;  %v2333_v59 = vmul.f32 %v4683_v3, %v2331_v55  ;;  %v2334_v15 = vmul.f32 %v4685_v18, %v2331_v55  ;;  %v2335_v29 = vmul.f32 %v4689_v60, %v2331_v55  ;;  %v2691_v60 = vld [vmem:[%s4783_s10] ss:$0 sm:$0xff] }
 0x4ed   : > { %v2336_v23 = vmul.f32 %v4697_v57, %v2331_v55  ;;  %v2337_v7 = vmul.f32 %v4701_v1, %v2331_v55  ;;  %v2338_v0 = vmul.f32 %v4705_v50, %v2331_v55  ;;  %v2339_v3 = vmul.f32 %v4709_v63, %v2331_v55 }
 0x4ee   : > { %v2340_v4 = vpack.c.bf16 %v2333_v59, %v2332_v46  ;;  %v2341_v42 = vpack.c.bf16 %v2335_v29, %v2334_v15 }
 0x4ef   : > { %v2342_v39 = vpack.c.bf16 %v2337_v7, %v2336_v23  ;;  %v2343_v18 = vpack.c.bf16 %v2339_v3, %v2338_v0 }
 0x4f0   : > { %2850 = vmatprep.mubr.msk.bf16.mxu1 %vm944_vm1, %v2340_v4 }
 0x4f1   : > { %2851 = vmatmul.mubr.msk.bf16.vlgmr.msra.gmra.mrb[16].mxu1 %vm944_vm1, %v2341_v42 }
 0x4f2   : > { %2854 = vmatprep.mubr.msk.bf16.mxu1 %vm944_vm1, %v2342_v39 }
 0x4f9   : > { %2855 = vmatmul.mubr.msk.bf16.gmra.mrb[20].mxu1 %vm944_vm1, %v2343_v18 }
 0x5c4   : > { %v2852_v57 = vpop.f32.mrb[16].mxu1 }
 0x5c5   : > { %v2454_v1 = vadd.f32 %v2852_v57, %v2691_v60  ;;  %v2445_v48 = vpop.f32.mrb[17].mxu1 }
 0x5c6   : > { %v2446_v19 = vadd.f32 %v2691_v60, %v2445_v48  ;;  %v2853_v50 = vpop.f32.mrb[18].mxu1 }
 0x5c7   : > { %v2478_v61 = vpack.c.bf16 %v2454_v1, %v2454_v1  ;;  %v2457_v63 = vadd.f32 %v2853_v50, %v2691_v60  ;;  %v2448_v14 = vpop.f32.mrb[19].mxu1 }
 0x5c8   : > { %v2476_v17 = vpack.c.bf16 %v2446_v19, %v2446_v19  ;;  %v2449_v47 = vadd.f32 %v2691_v60, %v2448_v14 }
 0x5c9   : > { %2487 = vst.msk [vmem:[%s413_s26 + $0x8] sm:$0xf] %vm2484_vm6, %v2478_v61  ;;  %v2479_v28 = vpack.c.bf16 %v2457_v63, %v2457_v63 }
 0x5ca   : > { %2485 = vst.msk [vmem:[%s413_s26] sm:$0xf] %vm2484_vm6, %v2476_v17  ;;  %v2477_v25 = vpack.c.bf16 %v2449_v47, %v2449_v47 }
 0x5cb   : > { %2488 = vst.msk [vmem:[%s413_s26 + $0xc] sm:$0xf] %vm2484_vm6, %v2479_v28 }
 0x5cc   : > { %2486 = vst.msk [vmem:[%s413_s26 + $0x4] sm:$0xf] %vm2484_vm6, %v2477_v25  ;;  %v2856_v40 = vpop.f32.mrb[20].mxu1 }
 0x5cd   : > { %v2470_v41 = vadd.f32 %v2856_v40, %v2691_v60  ;;  %v2461_v10 = vpop.f32.mrb[21].mxu1 }
 0x5ce   : > { %v2462_v51 = vadd.f32 %v2691_v60, %v2461_v10  ;;  %v2857_v49 = vpop.f32.mrb[22].mxu1 }
 0x5cf   : > { %v2482_v5 = vpack.c.bf16 %v2470_v41, %v2470_v41  ;;  %v2473_v38 = vadd.f32 %v2857_v49, %v2691_v60  ;;  %v2464_v33 = vpop.f32.mrb[23].mxu1 }
 0x5d0   : > { %v2480_v9 = vpack.c.bf16 %v2462_v51, %v2462_v51  ;;  %v2465_v56 = vadd.f32 %v2691_v60, %v2464_v33 }
 0x5d1   : > { %2491 = vst.msk [vmem:[%s413_s26 + $0x18] sm:$0xf] %vm2484_vm6, %v2482_v5  ;;  %v2483_v2 = vpack.c.bf16 %v2473_v38, %v2473_v38 }
 0x5d2   : > { %2489 = vst.msk [vmem:[%s413_s26 + $0x10] sm:$0xf] %vm2484_vm6, %v2480_v9  ;;  %v2481_v30 = vpack.c.bf16 %v2465_v56, %v2465_v56 }
 0x5d3   : > { %2492 = vst.msk [vmem:[%s413_s26 + $0x1c] sm:$0xf] %vm2484_vm6, %v2483_v2 }
 0x5d4   : > { %2490 = vst.msk [vmem:[%s413_s26 + $0x14] sm:$0xf] %vm2484_vm6, %v2481_v30 }
 0x5d5 PF: > { %s22_s21 = sadd.s32 1, %s3201_s21  }
 0x5d6   : > { %p19_p4 = scmp.ge.s32.totalorder %s22_s21, 4  }
 0x5d8   :  { %21 = sbr.rel (!%p19_p4) target bundleno = 1 (0x1), region = 107 }

// kernel: sbi_detector_forward.9
= control target key start
LH: loop header
LB: loop body
LE: loop exit
PB: predicated region body
PF: predicated region fallthrough
CT: control target
= control target key end

     0   :  { %vm106_vm0 = vcmask 1043456   ;;  %vm81_vm1 = vcmask 195584   ;;  %s866_s0 = inlined_call_operand.vmem [shape: bf16[2,8,8,24], index: 0, kind: input, shape index: {}]   ;;  %s867_s1 = inlined_call_operand.vmem [shape: bf16[24,64], index: 1, kind: input, shape index: {}]   ;;  %s868_s2 = inlined_call_operand.vmem [shape: f32[1,64], index: 2, kind: input, shape index: {}]   ;;  %s869_s3 = inlined_call_operand.vmem [shape: bf16[64,2], index: 3, kind: input, shape index: {}]   ;;  %s870_s4 = inlined_call_operand.vmem [shape: f32[1,2], index: 4, kind: input, shape index: {}]   ;;  %s871_s5 = inlined_call_operand.hbm [shape: f32[2,2], index: 5, kind: output, shape index: {}]  }
   0x1   :  { %v564_v0 = vld [vmem:[%s867_s1] sm:$0xff]   ;;  %v565_v1 = vld [vmem:[%s867_s1 + $0x8] ss:$0 sps:$4 sm:$0xff]   ;;  %v568_v5 = vld [vmem:[%s866_s0 + $0x10] sm:$0xff]  }
   0x2   :  { %528 = vmatprep.subr.bf16.mxu0 %v564_v0  ;;  %v566_v2 = vld [vmem:[%s866_s0] sm:$0xff]   ;;  %v108_v3 = vsel %vm106_vm0, %v565_v1, 0  ;;  %v567_v4 = vld [vmem:[%s866_s0 + $0x8] sm:$0xff]  }
   0x3   :  { %529 = vmatpush3.bf16.msra.mxu0 %v564_v0  ;;  %532 = vmatprep.mubr.msk.bf16.mxu0 %vm81_vm1, %v566_v2 }
   0x4   :  { %560 = vmatprep.subr.msk.bf16.mxu0 %vm106_vm0, %v565_v1 }
   0x7   :  { %531 = vmatpush3.bf16.msra.mxu0 %v108_v3 }
   0xa   :  { %533 = vmatmul.mubr.msk.bf16.vlgmr.msra.gmra.mrb[0].mxu0 %vm81_vm1, %v567_v4 }
   0xb   :  { %536 = vmatprep.mubr.msk.bf16.mxu0 %vm81_vm1, %v568_v5 }
   0xc   :  { %10 = vsyncpa [#allocation3], 0  ;;  %v569_v6 = vld [vmem:[%s866_s0 + $0x18] sm:$0xff]   ;;  %v570_v7 = vld [vmem:[%s866_s0 + $0x20] sm:$0xff]   ;;  %v666_v12 = vmov 0.0   ;;  %vm667_vm2 = vmmov 0  }
   0xd   :  { %v571_v8 = vld [vmem:[%s866_s0 + $0x28] sm:$0xff]   ;;  %v572_v9 = vld [vmem:[%s866_s0 + $0x30] sm:$0xff]   ;;  %v573_v10 = vld [vmem:[%s866_s0 + $0x38] sm:$0xff]   ;;  %548 = vmatprep.subr.bf16.mxu1 %v666_v12  ;;  %556 = vmatprep.mubr.msk.bf16.mxu1 %vm667_vm2, %v666_v12  ;;  %vm319_vm3 = vcmask 523264   ;;  %vm386_vm4 = vcmask 1041409   ;;  %s668_s21 = smov [#allocation2]  }
   0xe   :  { %v574_v11 = vld [vmem:[%s869_s3] sm:$0xff]   ;;  %v575_v13 = vld [vmem:[%s869_s3 + $0x8] sm:$0xff]   ;;  %v576_v14 = vld [vmem:[%s869_s3 + $0x10] sm:$0xff]   ;;  %s464_s22 = sshll.u32 %s668_s21, 4  ;;  %vm456_vm5 = vcmask 9216   ;;  %s465_s22 = int_to_ptr.vmem [resolvable:$true] %s464_s22 }
   0xf   :  { %549 = vmatpush3.bf16.msra.mxu1 %v574_v11  ;;  %v577_v15 = vld [vmem:[%s869_s3 + $0x18] sm:$0xff]   ;;  %v752_v16 = vld [vmem:[%s868_s2] ss:$0 sm:$0xff]  ;;  %s642_s23 = scalar_lea.vmem %s465_s22, 32  ;;  %p647_p1 = scmp.lt.s32.totalorder %s465_s22, %s465_s22 }
  0x10   :  { %550 = vmatprep.subr.bf16.mxu1 %v666_v12  ;;  %p643_p0 = scmp.ne.s32.totalorder %s465_s22, %s642_s23  ;;  %p648_p2 = scmp.lt.s32.totalorder %s642_s23, %s642_s23 }
  0x12   :  { %537 = vmatmul.mubr.msk.bf16.gmra.mrb[4].mxu0 %vm81_vm1, %v569_v6  ;;  %p649_p3 = por %p648_p2, %p647_p1 }
  0x13   :  { %540 = vmatprep.mubr.msk.bf16.mxu0 %vm81_vm1, %v570_v7  ;;  %551 = vmatpush3.bf16.msra.mxu1 %v575_v13 }
  0x14   :  { %552 = vmatprep.subr.bf16.mxu1 %v666_v12  ;;  %p650_p4 = pnand %p649_p3, %p643_p0 }
  0x17   :  { %553 = vmatpush3.bf16.msra.mxu1 %v576_v14 }
  0x18   :  { %554 = vmatprep.subr.bf16.mxu1 %v666_v12 }
  0x1a   :  { %541 = vmatmul.mubr.msk.bf16.gmra.mrb[8].mxu0 %vm81_vm1, %v571_v8 }
  0x1b   :  { %544 = vmatprep.mubr.msk.bf16.mxu0 %vm81_vm1, %v572_v9  ;;  %555 = vmatpush3.bf16.msra.mxu1 %v577_v15 }
  0x22   :  { %545 = vmatmul.mubr.msk.bf16.gmra.mrb[12].mxu0 %vm81_vm1, %v573_v10 }
  0xdd   :  { %v534_v17 = vpop.f32.mrb[0].mxu0 }
  0xde   :  { %v755_v18 = vadd.f32 %v534_v17, %v752_v16  ;;  %v144_v19 = vpop.f32.mrb[1].mxu0 }
  0xdf   :  { %v758_v20 = vadd.f32 %v752_v16, %v144_v19  ;;  %v535_v21 = vpop.f32.mrb[2].mxu0 }
  0xe0   :  { %v493_v22 = vmul.f32 -1.442695, %v755_v18  ;;  %v762_v23 = vadd.f32 %v535_v21, %v752_v16  ;;  %v147_v24 = vpop.f32.mrb[3].mxu0 }
  0xe1   :  { %v491_v25 = vmul.f32 -1.442695, %v758_v20  ;;  %v766_v26 = vadd.f32 %v752_v16, %v147_v24 }
  0xe2   :  { %578 = vpow2.f32 %v493_v22  ;;  %v494_v27 = vmul.f32 -1.442695, %v762_v23 }
  0xe3   :  { %580 = vpow2.f32 %v491_v25  ;;  %v492_v28 = vmul.f32 -1.442695, %v766_v26 }
  0xe4   :  { %582 = vpow2.f32 %v494_v27 }
  0xe5   :  { %584 = vpow2.f32 %v492_v28  ;;  %v538_v29 = vpop.f32.mrb[4].mxu0 }
  0xe6   :  { %v771_v30 = vadd.f32 %v538_v29, %v752_v16  ;;  %v160_v31 = vpop.f32.mrb[5].mxu0 }
  0xe7   :  { %v774_v32 = vadd.f32 %v752_v16, %v160_v31  ;;  %v539_v33 = vpop.f32.mrb[6].mxu0 }
  0xe8   :  { %v497_v34 = vmul.f32 -1.442695, %v771_v30  ;;  %v778_v35 = vadd.f32 %v539_v33, %v752_v16  ;;  %v163_v36 = vpop.f32.mrb[7].mxu0 }
  0xe9   :  { %v495_v37 = vmul.f32 -1.442695, %v774_v32  ;;  %v782_v38 = vadd.f32 %v752_v16, %v163_v36 }
  0xea   :  { %586 = vpow2.f32 %v497_v34  ;;  %v498_v39 = vmul.f32 -1.442695, %v778_v35 }
  0xeb   :  { %588 = vpow2.f32 %v495_v37  ;;  %v496_v40 = vmul.f32 -1.442695, %v782_v38 }
  0xec   :  { %v579_v41 = vpop.eup %578  ;;  %590 = vpow2.f32 %v498_v39 }
  0xed   :  { %v581_v42 = vpop.eup %580  ;;  %v257_v43 = vadd.f32 1.0, %v579_v41  ;;  %592 = vpow2.f32 %v496_v40  ;;  %v542_v44 = vpop.f32.mrb[8].mxu0 }
  0xee   :  { %v583_v45 = vpop.eup %582  ;;  %v255_v46 = vadd.f32 1.0, %v581_v42  ;;  %v787_v47 = vadd.f32 %v542_v44, %v752_v16  ;;  %v176_v48 = vpop.f32.mrb[9].mxu0 }
  0xef   :  { %v585_v49 = vpop.eup %584  ;;  %594 = vrcp.f32 %v257_v43  ;;  %v258_v50 = vadd.f32 1.0, %v583_v45  ;;  %v790_v51 = vadd.f32 %v752_v16, %v176_v48  ;;  %v543_v52 = vpop.f32.mrb[10].mxu0 }
  0xf0   :  { %596 = vrcp.f32 %v255_v46  ;;  %v256_v53 = vadd.f32 1.0, %v585_v49  ;;  %v501_v54 = vmul.f32 -1.442695, %v787_v47  ;;  %v794_v55 = vadd.f32 %v543_v52, %v752_v16  ;;  %v179_v56 = vpop.f32.mrb[11].mxu0 }
  0xf1   :  { %598 = vrcp.f32 %v258_v50  ;;  %v499_v57 = vmul.f32 -1.442695, %v790_v51  ;;  %v798_v58 = vadd.f32 %v752_v16, %v179_v56 }
  0xf2   :  { %600 = vrcp.f32 %v256_v53  ;;  %v502_v59 = vmul.f32 -1.442695, %v794_v55 }
  0xf3   :  { %602 = vpow2.f32 %v501_v54  ;;  %v500_v60 = vmul.f32 -1.442695, %v798_v58 }
  0xf4   :  { %v587_v61 = vpop.eup %586  ;;  %604 = vpow2.f32 %v499_v57 }
  0xf5   :  { %v589_v62 = vpop.eup %588  ;;  %v261_v63 = vadd.f32 1.0, %v587_v61  ;;  %606 = vpow2.f32 %v502_v59  ;;  %v546_v0 = vpop.f32.mrb[12].mxu0 }
  0xf6   :  { %v591_v1 = vpop.eup %590  ;;  %v259_v2 = vadd.f32 1.0, %v589_v62  ;;  %608 = vpow2.f32 %v500_v60  ;;  %v803_v3 = vadd.f32 %v546_v0, %v752_v16  ;;  %v192_v4 = vpop.f32.mrb[13].mxu0 }
  0xf7   :  { %v593_v5 = vpop.eup %592  ;;  %610 = vrcp.f32 %v261_v63  ;;  %v262_v6 = vadd.f32 1.0, %v591_v1  ;;  %v806_v7 = vadd.f32 %v752_v16, %v192_v4  ;;  %v547_v8 = vpop.f32.mrb[14].mxu0 }
  0xf8   :  { %612 = vrcp.f32 %v259_v2  ;;  %v260_v9 = vadd.f32 1.0, %v593_v5  ;;  %v505_v10 = vmul.f32 -1.442695, %v803_v3  ;;  %v810_v11 = vadd.f32 %v547_v8, %v752_v16  ;;  %v195_v12 = vpop.f32.mrb[15].mxu0 }
  0xf9   :  { %v595_v13 = vpop.eup %594  ;;  %614 = vrcp.f32 %v262_v6  ;;  %v503_v14 = vmul.f32 -1.442695, %v806_v7  ;;  %v814_v15 = vadd.f32 %v752_v16, %v195_v12 }
  0xfa   :  { %v597_v17 = vpop.eup %596  ;;  %616 = vrcp.f32 %v260_v9  ;;  %v506_v19 = vmul.f32 -1.442695, %v810_v11  ;;  %v305_v28 = vmul.f32 %v595_v13, %v755_v18 }
  0xfb   :  { %v599_v21 = vpop.eup %598  ;;  %v303_v22 = vmul.f32 %v597_v17, %v758_v20  ;;  %618 = vpow2.f32 %v505_v10  ;;  %v504_v24 = vmul.f32 -1.442695, %v814_v15 }
  0xfc   :  { %v601_v25 = vpop.eup %600  ;;  %620 = vpow2.f32 %v503_v14  ;;  %v306_v20 = vmul.f32 %v599_v21, %v762_v23  ;;  %v323_v18 = vsel %vm319_vm3, %v305_v28, 0.0 }
  0xfd   :  { %v603_v27 = vpop.eup %602  ;;  %v304_v29 = vmul.f32 %v601_v25, %v766_v26  ;;  %622 = vpow2.f32 %v506_v19  ;;  %v320_v34 = vsel %vm319_vm3, %v303_v22, 0.0 }
  0xfe   :  { %v605_v16 = vpop.eup %604  ;;  %v265_v31 = vadd.f32 1.0, %v603_v27  ;;  %624 = vpow2.f32 %v504_v24  ;;  %v325_v46 = vsel %vm319_vm3, %v306_v20, 0.0 }
  0xff   :  { %v607_v33 = vpop.eup %606  ;;  %v321_v36 = vsel %vm319_vm3, %v304_v29, 0.0  ;;  %v263_v37 = vadd.f32 1.0, %v605_v16 }
 0x100   :  { %v609_v39 = vpop.eup %608  ;;  %v322_v40 = vadd.f32 %v321_v36, %v320_v34  ;;  %626 = vrcp.f32 %v265_v31  ;;  %v266_v41 = vadd.f32 1.0, %v607_v33 }
 0x101   :  { %v611_v42 = vpop.eup %610  ;;  %628 = vrcp.f32 %v263_v37  ;;  %v264_v26 = vadd.f32 1.0, %v609_v39 }
 0x102   :  { %v613_v43 = vpop.eup %612  ;;  %v324_v44 = vadd.f32 %v323_v18, %v322_v40  ;;  %630 = vrcp.f32 %v266_v41  ;;  %v309_v52 = vmul.f32 %v611_v42, %v771_v30 }
 0x103   :  { %v615_v45 = vpop.eup %614  ;;  %v307_v23 = vmul.f32 %v613_v43, %v774_v32  ;;  %632 = vrcp.f32 %v264_v26 }
 0x104   :  { %v617_v48 = vpop.eup %616  ;;  %v326_v49 = vadd.f32 %v325_v46, %v324_v44  ;;  %v310_v61 = vmul.f32 %v615_v45, %v778_v35  ;;  %v331_v2 = vsel %vm319_vm3, %v309_v52, 0.0 }
 0x105   :  { %v619_v50 = vpop.eup %618  ;;  %v327_v53 = vsel %vm319_vm3, %v307_v23, 0.0  ;;  %v308_v54 = vmul.f32 %v617_v48, %v782_v38 }
 0x106   :  { %v621_v56 = vpop.eup %620  ;;  %v328_v57 = vadd.f32 %v327_v53, %v326_v49  ;;  %v269_v59 = vadd.f32 1.0, %v619_v50  ;;  %v333_v6 = vsel %vm319_vm3, %v310_v61, 0.0 }
 0x107   :  { %v623_v60 = vpop.eup %622  ;;  %v329_v62 = vsel %vm319_vm3, %v308_v54, 0.0  ;;  %v267_v63 = vadd.f32 1.0, %v621_v56 }
 0x108   :  { %v625_v32 = vpop.eup %624  ;;  %v330_v0 = vadd.f32 %v329_v62, %v328_v57  ;;  %634 = vrcp.f32 %v269_v59  ;;  %v270_v1 = vadd.f32 1.0, %v623_v60  ;;  %v507_v59 = vld [vmem:[%s870_s4] ss:$0 sm:$0xff] }
 0x109   :  { %636 = vrcp.f32 %v267_v63  ;;  %v268_v30 = vadd.f32 1.0, %v625_v32 }
 0x10a   :  { %v627_v4 = vpop.eup %626  ;;  %v332_v5 = vadd.f32 %v331_v2, %v330_v0  ;;  %638 = vrcp.f32 %v270_v1 }
 0x10b   :  { %v629_v38 = vpop.eup %628  ;;  %640 = vrcp.f32 %v268_v30  ;;  %v313_v12 = vmul.f32 %v627_v4, %v787_v47 }
 0x10c   :  { %v631_v8 = vpop.eup %630  ;;  %v334_v35 = vadd.f32 %v333_v6, %v332_v5  ;;  %v311_v9 = vmul.f32 %v629_v38, %v790_v51 }
 0x10d   :  { %v633_v10 = vpop.eup %632  ;;  %v314_v19 = vmul.f32 %v631_v8, %v794_v55  ;;  %v344_v25 = vsel %vm319_vm3, %v313_v12, 0.0 }
 0x10e   :  { %v312_v13 = vmul.f32 %v633_v10, %v798_v58  ;;  %v335_v14 = vrot.slane %v334_v35, 4  ;;  %v341_v17 = vsel %vm319_vm3, %v311_v9, 0.0 }
 0x10f   :  { %v346_v16 = vsel %vm319_vm3, %v314_v19, 0.0 }
 0x110   :  { %v342_v21 = vsel %vm319_vm3, %v312_v13, 0.0  ;;  %v336_v28 = vadd.f32 %v335_v14, %v334_v35 }
 0x111   :  { %v343_v22 = vadd.f32 %v342_v21, %v341_v17 }
 0x112   :  { %v635_v24 = vpop.eup %634  ;;  %v337_v20 = vrot.slane %v336_v28, 2 }
 0x113   :  { %v637_v27 = vpop.eup %636  ;;  %v345_v29 = vadd.f32 %v344_v25, %v343_v22  ;;  %v317_v33 = vmul.f32 %v635_v24, %v803_v3 }
 0x114   :  { %v639_v51 = vpop.eup %638  ;;  %v315_v47 = vmul.f32 %v637_v27, %v806_v7  ;;  %v338_v42 = vadd.f32 %v337_v20, %v336_v28 }
 0x115   :  { %v641_v58 = vpop.eup %640  ;;  %v347_v31 = vadd.f32 %v346_v16, %v345_v29  ;;  %v318_v37 = vmul.f32 %v639_v51, %v810_v11  ;;  %v352_v41 = vsel %vm319_vm3, %v317_v33, 0.0 }
 0x116   :  { %v348_v55 = vsel %vm319_vm3, %v315_v47, 0.0  ;;  %v316_v34 = vmul.f32 %v641_v58, %v814_v15  ;;  %v339_v43 = vrot.slane %v338_v42, 1 }
 0x117   :  { %v349_v36 = vadd.f32 %v348_v55, %v347_v31  ;;  %v354_v7 = vsel %vm319_vm3, %v318_v37, 0.0 }
 0x118   :  { %v350_v39 = vsel %vm319_vm3, %v316_v34, 0.0  ;;  %v340_v46 = vadd.f32 %v339_v43, %v338_v42 }
 0x119   :  { %v351_v40 = vadd.f32 %v350_v39, %v349_v36 }
 0x11a   :  { %v363_v48 = vmul.f32 0.015625, %v340_v46 }
 0x11b   :  { %v353_v18 = vadd.f32 %v352_v41, %v351_v40 }
 0x11c   :  { %v365_v50 = vpack.c.bf16 %v363_v48, %v363_v48 }
 0x11d   :  { %v355_v26 = vadd.f32 %v354_v7, %v353_v18 }
 0x11e   :  { %v384_v53 = vunpack.c.l.b16 %v365_v50 }
 0x11f   :  { %v356_v3 = vrot.slane %v355_v26, 4 }
 0x121   :  { %v357_v44 = vadd.f32 %v356_v3, %v355_v26 }
 0x123   :  { %v358_v45 = vrot.slane %v357_v44, 2 }
 0x125   :  { %v359_v15 = vadd.f32 %v358_v45, %v357_v44 }
 0x127   :  { %v360_v23 = vrot.slane %v359_v15, 1 }
 0x129   :  { %v361_v49 = vadd.f32 %v360_v23, %v359_v15 }
 0x12b   :  { %v364_v11 = vmul.f32 0.015625, %v361_v49 }
 0x12d   :  { %v366_v52 = vpack.c.bf16 %v364_v11, %v364_v11 }
 0x12f   :  { %v385_v54 = vunpack.c.l.b16 %v366_v52 }
 0x131   :  { %v387_v56 = vsel %vm386_vm4, %v385_v54, %v384_v53 }
 0x132   :  { %v388_v57 = vpack.c.b16 %v387_v56, %v387_v56 }
 0x134   :  { %557 = vmatmul.mubr.msk.bf16.vlgmr.msra.gmra.mrb[0].mxu1 %vm319_vm3, %v388_v57 }
 0x207   :  { %v450_v60 = vpop.f32.mrb[0].mxu1 }
 0x208   :  { %v451_v61 = vadd.f32 %v507_v59, %v450_v60  ;;  %v558_v62 = vpop.f32.mrb[1].mxu1 }
 0x209   :  { %v453_v63 = vpop.f32.mrb[2].mxu1 }
 0x20a   :  { %v559_v32 = vpop.f32.mrb[3].mxu1  ;;  %457 = vst.msk [vmem:[#allocation2] sm:$0x3] %vm456_vm5, %v451_v61 }
 0x20b   :  { %653 = shalt.err (!%p650_p4)
}
 0x20c   :  { %s654_s4 = scalar_lea.hbm %s871_s5, 32 }
 0x20d   :  { %p655_p5 = scmp.ne.s32.totalorder %s871_s5, %s654_s4  ;;  %p658_p6 = scmp.lt.u32.totalorder %s654_s4, %s871_s5 }
 0x20f   :  { %p660_p7 = pnand %p658_p6, %p655_p5 }
 0x211   :  { %663 = shalt.err (!%p660_p7)
}
 0x212   :  { %467 = dma.vmem_to_hbm [thread:$0]  %s465_s22, 32, %s871_s5, [#allocation3]  }
 0x213   :  { %664 = dma.done.wait [#allocation3], 32  }
 0x214   :  { %665 = vsyncadd [#allocation3], 4294967264 }
 0x215   :  { %471 = vsyncpa [#allocation3], 1 }

// kernel: sbi_detector_forward.8
= control target key start
LH: loop header
LB: loop body
LE: loop exit
PB: predicated region body
PF: predicated region fallthrough
CT: control target
= control target key end

     0   :  { %s2941_s17 = smov 0   ;;  %s4490_s0 = inlined_call_operand.vmem [shape: bf16[2,8,8,24], index: 0, kind: input, shape index: {}]   ;;  %s4491_s1 = inlined_call_operand.vmem [shape: bf16[24,144], index: 1, kind: input, shape index: {}]   ;;  %s4492_s2 = inlined_call_operand.vmem [shape: f32[1,144], index: 2, kind: input, shape index: {}]   ;;  %s4493_s3 = inlined_call_operand.vmem [shape: f32[9,1,144], index: 3, kind: input, shape index: {}]   ;;  %s4494_s4 = inlined_call_operand.vmem [shape: f32[1,144], index: 4, kind: input, shape index: {}]   ;;  %s4495_s5 = inlined_call_operand.vmem [shape: bf16[144,6], index: 5, kind: input, shape index: {}]   ;;  %s4496_s6 = inlined_call_operand.vmem [shape: f32[1,6], index: 6, kind: input, shape index: {}]   ;;  %s4497_s7 = inlined_call_operand.vmem [shape: bf16[6,144], index: 7, kind: input, shape index: {}]   ;;  %s4498_s8 = inlined_call_operand.vmem [shape: f32[1,144], index: 8, kind: input, shape index: {}]   ;;  %s4499_s9 = inlined_call_operand.vmem [shape: bf16[144,24], index: 9, kind: input, shape index: {}]   ;;  %s4500_s10 = inlined_call_operand.vmem [shape: f32[1,24], index: 10, kind: input, shape index: {}]   ;;  %s4501_s11 = inlined_call_operand.vmem [shape: bf16[2,8,8,24], index: 11, kind: output, shape index: {}]  }
   0x1 LB: > { %s2583_s18 = sadd.s32 4294967295, %s2877_s17   ;;  %p2587_p0 = scmp.ge.s32.totalorder %s2877_s17, 1  ;;  %s2877_s17 = sphi %s2941_s17, %s21_s17  }
   0x2   : > { %p337_p1 = scmp.lt.s32.totalorder %s2877_s17, 3 }
   0x4   : > { %p338_p2 = pnand %p2587_p0, %p337_p1 }
   0x6   : > { %341 = sbr.rel (%p338_p2) target bundleno = 1260 (0x4ec), region = 64 }
   0xd   : > { %v2690_v0 = vld [vmem:[%s4491_s1 + $0x4] ss:$8 sps:$4 sm:$0xff]   ;;  %v2692_v1 = vld [vmem:[%s4491_s1] ss:$8 sps:$4 sm:$0xff]   ;;  %v410_v2 = vld [vmem:[%s4491_s1 + $0x10] sm:$0xff]  ;;  %vm451_vm0 = vcmask 1043456   ;;  %v413_v12 = vlaneseq }
   0xe   : > { %v4502_v3 = vmov 0   ;;  %p377_p3 = scmp.lt.s32.totalorder %s2583_s18, 1  ;;  %458 = vmatprep.subr.bf16.mxu0 %v2690_v0  ;;  %v2599_v4 = vcombine.high %v410_v2, %v410_v2  ;;  %v2598_v5 = vcombine.low %v410_v2, %v410_v2  ;;  %vm438_vm1 = vcmask 195584   ;;  %v411_v15 = vld [vmem:[%s4492_s2] sm:$0x3]  ;;  %v2700_v20 = vld [vmem:[%s4495_s5 + $0x8] sm:$0xff]  }
   0xf   : > { %490 = vmatprep.mubr.bf16.mxu0 %v4502_v3  ;;  %2438 = vmatprep.subr.bf16.mxu1 %v4502_v3  ;;  %v2880_v11 = vmov 0.0   ;;  %vm644_vm2 = vcmask 130048   ;;  %vm647_vm3 = vcmask 123904   ;;  %v414_v13 = vshrl.u32 %v413_v12, 7  ;;  %v2621_v17 = vld [vmem:[%s4493_s3 + $0x2] sm:$0x3] }
  0x10   : > { %459 = vmatpush1.bf16.msra.mxu0 %v2692_v1  ;;  %s4882_s18 = smov (!%p377_p3, %s2583_s18), 1  ;;  %v453_v6 = vsel %vm451_vm0, %v2598_v5, 0  ;;  %643 = vst [vmem:[#allocation2] sm:$0xff] %v2880_v11  ;;  %646 = vst [vmem:[#allocation2 + $0x10] sm:$0x3] %v2880_v11  ;;  %v2699_v18 = vld [vmem:[%s4495_s5] sm:$0xff]  }
  0x11   : > { %2600 = vmatprep.subr.msk.bf16.mxu0 %vm451_vm0, %v2599_v4  ;;  %s2678_s25 = sshll.u32 %s4882_s18, 5  ;;  %649 = vst [vmem:[#allocation2 + $0x20] sm:$0xff] %v2880_v11  ;;  %651 = vst [vmem:[#allocation2 + $0x30] sm:$0x3] %v2880_v11  ;;  %v2998_v14 = vsub.s32 0, %v414_v13  ;;  %v3003_v16 = vsub.s32 1, %v414_v13 }
  0x12   : > { %s2968_s28 = scalar_lea.vmem %s4490_s0, %s2678_s25  ;;  %653 = vst [vmem:[#allocation2 + $0x40] sm:$0xff] %v2880_v11  ;;  %655 = vst [vmem:[#allocation2 + $0x50] sm:$0x3] %v2880_v11  ;;  %v2622_v26 = vld [vmem:[%s4493_s3 + $0x4] sm:$0x3]  ;;  %v2701_v29 = vld [vmem:[%s4495_s5 + $0x10] sm:$0xff]   ;;  %s4466_s22 = scalar_lea.vmem %s4501_s11, %s2678_s25 }
  0x13   : > { %v388_v7 = vld [vmem:[%s2968_s28] sm:$0xff]   ;;  %v390_v8 = vld [vmem:[%s2968_s28 + $0x8] sm:$0xff]   ;;  %v392_v9 = vld [vmem:[%s2968_s28 + $0x10] sm:$0xff]   ;;  %657 = vst [vmem:[#allocation2 + $0x60] sm:$0xff] %v2880_v11  ;;  %v3012_v19 = vrot.slane %v411_v15, %v2998_v14  ;;  %v3018_v21 = vrot.slane %v2621_v17, %v2998_v14  ;;  %v3021_v22 = vrot.slane %v411_v15, %v3003_v16  ;;  %v3046_v36 = vrot.slane %v2622_v26, %v2998_v14 }
  0x14   : > { %461 = vmatpush1.bf16.msra.mxu0 %v453_v6  ;;  %v394_v10 = vld [vmem:[%s2968_s28 + $0x18] sm:$0xff]   ;;  %659 = vst [vmem:[#allocation2 + $0x70] sm:$0x3] %v2880_v11  ;;  %661 = vst [vmem:[#allocation2 + $0x80] sm:$0xff] %v2880_v11  ;;  %v3036_v30 = vld [vmem:[%s4493_s3] sm:$0x3]  ;;  %v3068_v51 = vrot.slane %v2621_v17, %v3003_v16 }
  0x15   : > { %2185 = vmatprep.subr.bf16.mxu0 %v4502_v3  ;;  %663 = vst [vmem:[#allocation2 + $0x90] sm:$0x3] %v2880_v11  ;;  %665 = vst [vmem:[#allocation2 + $0xa0] sm:$0xff] %v2880_v11  ;;  %v3057_v43 = vrot.slane %v3036_v30, %v2998_v14  ;;  %v2702_v45 = vld [vmem:[%s4495_s5 + $0x18] sm:$0xff]   ;;  %vm973_vm4 = vcmask 1046528   ;;  %v2703_v56 = vld [vmem:[%s4495_s5 + $0x20] sm:$0xff]  }
  0x16   : > { %667 = vst [vmem:[#allocation2 + $0xb0] sm:$0x3] %v2880_v11  ;;  %669 = vst [vmem:[#allocation2 + $0xc0] sm:$0xff] %v2880_v11  ;;  %vm1131_vm5 = vcmask 1045504   ;;  %vm735_vm6 = vcmask 130049   ;;  %vm738_vm7 = vcmask 122880  }
  0x17   : > { %2601 = vmatmul.mubr.msk.bf16.vlgmr.msra.gmra.mrb[0].mxu0 %vm438_vm1, %v388_v7  ;;  %671 = vst [vmem:[#allocation2 + $0xd0] sm:$0x3] %v2880_v11  ;;  %673 = vst [vmem:[#allocation2 + $0xe0] sm:$0xff] %v2880_v11  ;;  %v788_v23 = vld [vmem:[#allocation2] sm:$0xfe]  ;;  %v880_v57 = vmul.f32 0.0, %v3057_v43 }
  0x18   : > { %500 = vmatprep.mubr.bf16.mxu0 %v4502_v3  ;;  %675 = vst [vmem:[#allocation2 + $0xf0] sm:$0x3] %v2880_v11  ;;  %677 = vst [vmem:[#allocation2 + $0x100] sm:$0xff] %v2880_v11  ;;  %2186 = vmatpush1.bf16.msra.mxu0 %v2699_v18  ;;  %v790_v24 = vld [vmem:[#allocation2 + $0x10] sm:$0x1]  ;;  %v909_v31 = vmul.f32 %v3018_v21, %v788_v23  ;;  %vm2255_vm8 = vcmask 1042432  }
  0x19   : > { %679 = vst [vmem:[#allocation2 + $0x110] sm:$0x3] %v2880_v11  ;;  %681 = vst [vmem:[#allocation2 + $0x120] sm:$0xff] %v2880_v11  ;;  %2187 = vmatprep.subr.bf16.mxu0 %v4502_v3  ;;  %v911_v32 = vmul.f32 %v3018_v21, %v790_v24  ;;  %v828_v39 = vld [vmem:[#allocation2] sm:$0xfc]  ;;  %v3104_v24 = vrot.slane %v3036_v30, %v3003_v16  ;;  %vm2251_vm9 = vcmask 48128  }
  0x1a   : > { %683 = vst [vmem:[#allocation2 + $0x130] sm:$0x3] %v2880_v11  ;;  %645 = vst.msk [vmem:[#allocation2 + $0x8] sm:$0xff] %vm644_vm2, %v2880_v11  ;;  %v830_v40 = vld [vmem:[#allocation2 + $0x10] sm:$0x3]  ;;  %v974_v46 = vrot.slane %v909_v31, 1  ;;  %v1067_v49 = vmul.f32 %v3046_v36, %v828_v39 }
  0x1b   : > { %648 = vst.msk [vmem:[#allocation2 + $0x18] sm:$0x3] %vm647_vm3, %v2880_v11  ;;  %652 = vst.msk [vmem:[#allocation2 + $0x38] sm:$0x3] %vm647_vm3, %v2880_v11  ;;  %v975_v47 = vrot.slane %v911_v32, 1  ;;  %v1069_v50 = vmul.f32 %v3046_v36, %v830_v40  ;;  %v2705_v39 = vld [vmem:[%s4495_s5 + $0x30] sm:$0xff]  }
  0x1c   : > { %650 = vst.msk [vmem:[#allocation2 + $0x28] sm:$0xff] %vm644_vm2, %v2880_v11  ;;  %654 = vst.msk [vmem:[#allocation2 + $0x48] sm:$0xff] %vm644_vm2, %v2880_v11  ;;  %2188 = vmatpush1.bf16.msra.mxu0 %v2700_v20  ;;  %v1132_v62 = vrot.slane %v1067_v49, 2  ;;  %v2623_v40 = vld [vmem:[%s4493_s3 + $0x6] sm:$0x3]  ;;  %vm2519_vm10 = vcmask 191488  }
  0x1d   : > { %684 = vst.msk [vmem:[#allocation2 + $0x138] sm:$0x3] %vm647_vm3, %v2880_v11  ;;  %656 = vst.msk [vmem:[#allocation2 + $0x58] sm:$0x3] %vm647_vm3, %v2880_v11  ;;  %2189 = vmatprep.subr.bf16.mxu0 %v4502_v3  ;;  %v976_v58 = vsel %vm973_vm4, %v974_v46, %v975_v47  ;;  %v1133_v63 = vrot.slane %v1069_v50, 2 }
  0x1e   : > { %658 = vst.msk [vmem:[#allocation2 + $0x68] sm:$0xff] %vm644_vm2, %v2880_v11  ;;  %662 = vst.msk [vmem:[#allocation2 + $0x88] sm:$0xff] %vm644_vm2, %v2880_v11  ;;  %v1038_v15 = vadd.f32 %v976_v58, %v880_v57  ;;  %v3137_v58 = vrot.slane %v2623_v40, %v2998_v14 }
  0x1f   : > { %2602 = vmatmul.mubr.msk.bf16.gmra.mrb[4].mxu0 %vm438_vm1, %v390_v8  ;;  %660 = vst.msk [vmem:[#allocation2 + $0x78] sm:$0x3] %vm647_vm3, %v2880_v11  ;;  %664 = vst.msk [vmem:[#allocation2 + $0x98] sm:$0x3] %vm647_vm3, %v2880_v11  ;;  %v3093_v8 = vrot.slane %v2622_v26, %v3003_v16  ;;  %v1134_v17 = vsel %vm1131_vm5, %v1132_v62, %v1133_v63  ;;  %v2706_v62 = vld [vmem:[%s4495_s5 + $0x38] sm:$0xff]  }
  0x20   : > { %510 = vmatprep.mubr.bf16.mxu0 %v4502_v3  ;;  %666 = vst.msk [vmem:[#allocation2 + $0xa8] sm:$0xff] %vm644_vm2, %v2880_v11  ;;  %670 = vst.msk [vmem:[#allocation2 + $0xc8] sm:$0xff] %vm644_vm2, %v2880_v11  ;;  %2190 = vmatpush1.bf16.msra.mxu0 %v2701_v29 }
  0x21   : > { %668 = vst.msk [vmem:[#allocation2 + $0xb8] sm:$0x3] %vm647_vm3, %v2880_v11  ;;  %672 = vst.msk [vmem:[#allocation2 + $0xd8] sm:$0x3] %vm647_vm3, %v2880_v11  ;;  %2191 = vmatprep.subr.bf16.mxu0 %v4502_v3  ;;  %v789_v53 = vld [vmem:[#allocation2 + $0x8] sm:$0xfe] }
  0x22   : > { %674 = vst.msk [vmem:[#allocation2 + $0xe8] sm:$0xff] %vm644_vm2, %v2880_v11  ;;  %678 = vst.msk [vmem:[#allocation2 + $0x108] sm:$0xff] %vm644_vm2, %v2880_v11  ;;  %v791_v59 = vld [vmem:[#allocation2 + $0x18] sm:$0x1]  ;;  %v910_v4 = vmul.f32 %v3068_v51, %v789_v53  ;;  %v769_v31 = vld [vmem:[#allocation2 + $0x8] sm:$0xff] }
  0x23   : > { %676 = vst.msk [vmem:[#allocation2 + $0xf8] sm:$0x3] %vm647_vm3, %v2880_v11  ;;  %680 = vst.msk [vmem:[#allocation2 + $0x118] sm:$0x3] %vm647_vm3, %v2880_v11  ;;  %v912_v7 = vmul.f32 %v3068_v51, %v791_v59  ;;  %v831_v18 = vld [vmem:[#allocation2 + $0x18] sm:$0x3] }
  0x24   : > { %682 = vst.msk [vmem:[#allocation2 + $0x128] sm:$0xff] %vm644_vm2, %v2880_v11  ;;  %4606 = vst [vmem:[#allocation3_spill] sm:$0xff] %v2998_v14  ;;  %2192 = vmatpush1.bf16.msra.mxu0 %v2702_v45  ;;  %v829_v11 = vld [vmem:[#allocation2 + $0x8] sm:$0xfc] }
  0x25   : > { %4607 = vst [vmem:[#allocation4_spill] sm:$0xff] %v3003_v16  ;;  %2193 = vmatprep.subr.bf16.mxu0 %v4502_v3  ;;  %v978_v32 = vrot.slane %v912_v7, 1  ;;  %v2625_v53 = vld [vmem:[%s4493_s3 + $0xa] sm:$0x3]  ;;  %4608 = vst [vmem:[#allocation5_spill] sm:$0xff] %v3137_v58 }
  0x27   : > { %2603 = vmatmul.mubr.msk.bf16.gmra.mrb[8].mxu0 %vm438_vm1, %v392_v9 }
  0x28   : > { %520 = vmatprep.mubr.bf16.mxu0 %v4502_v3  ;;  %2194 = vmatpush1.bf16.msra.mxu0 %v2703_v56 }
  0x29   : > { %2195 = vmatprep.subr.bf16.mxu0 %v4502_v3 }
  0x2f   : > { %2604 = vmatmul.mubr.msk.bf16.gmra.mrb[12].mxu0 %vm438_vm1, %v394_v10  ;;  %v2704_v10 = vld [vmem:[%s4495_s5 + $0x28] sm:$0xff]  }
  0x30   : > { %2196 = vmatpush1.bf16.msra.mxu0 %v2704_v10 }
  0x31   : > { %2197 = vmatprep.subr.bf16.mxu0 %v4502_v3 }
  0x34   : > { %2198 = vmatpush1.bf16.msra.mxu0 %v2705_v39  ;;  %v825_v39 = vld [vmem:[#allocation2 + $0x128] sm:$0xfe] }
  0x35   : > { %2199 = vmatprep.subr.bf16.mxu0 %v4502_v3 }
  0x38   : > { %2200 = vmatpush1.bf16.msra.mxu0 %v2706_v62 }
  0x39   : > { %2201 = vmatprep.subr.bf16.mxu0 %v4502_v3 }
  0xea   : > { %v492_v25 = vpop.f32.mrb[0].mxu0 }
  0xeb   : > { %v3028_v27 = vadd.f32 %v492_v25, %v3012_v19  ;;  %v494_v28 = vpop.f32.mrb[1].mxu0  ;;  %v977_v25 = vrot.slane %v910_v4, 1 }
  0xec   : > { %v3041_v33 = vadd.f32 %v494_v28, %v3021_v22  ;;  %v496_v34 = vpop.f32.mrb[2].mxu0 }
  0xed   : > { %v2605_v35 = vmul.f32 -1.442695, %v3028_v27  ;;  %v3049_v37 = vadd.f32 %v496_v34, %v3012_v19  ;;  %v498_v38 = vpop.f32.mrb[3].mxu0  ;;  %v1068_v34 = vmul.f32 %v3093_v8, %v829_v11  ;;  %v979_v59 = vsel %vm973_vm4, %v977_v25, %v978_v32 }
  0xee   : > { %v2606_v41 = vmul.f32 -1.442695, %v3041_v33  ;;  %v3053_v42 = vadd.f32 %v498_v38, %v3021_v22 }
  0xef   : > { %2723 = vpow2.f32 %v2605_v35  ;;  %v2607_v44 = vmul.f32 -1.442695, %v3049_v37  ;;  %v1135_v63 = vrot.slane %v1068_v34, 2 }
  0xf0   : > { %2725 = vpow2.f32 %v2606_v41  ;;  %v2608_v48 = vmul.f32 -1.442695, %v3053_v42  ;;  %v1070_v41 = vmul.f32 %v3093_v8, %v831_v18 }
  0xf1   : > { %2727 = vpow2.f32 %v2607_v44 }
  0xf2   : > { %2729 = vpow2.f32 %v2608_v48  ;;  %v502_v52 = vpop.f32.mrb[4].mxu0 }
  0xf3   : > { %v3071_v54 = vadd.f32 %v502_v52, %v3012_v19  ;;  %v504_v55 = vpop.f32.mrb[5].mxu0  ;;  %v2624_v52 = vld [vmem:[%s4493_s3 + $0x8] sm:$0x3] }
  0xf4   : > { %v3079_v60 = vadd.f32 %v504_v55, %v3021_v22  ;;  %v506_v61 = vpop.f32.mrb[6].mxu0  ;;  %v881_v55 = vmul.f32 %v3104_v24, %v769_v31  ;;  %v3149_v7 = vrot.slane %v2624_v52, %v2998_v14 }
  0xf5   : > { %v2609_v0 = vmul.f32 -1.442695, %v3071_v54  ;;  %v3084_v1 = vadd.f32 %v506_v61, %v3012_v19  ;;  %v508_v2 = vpop.f32.mrb[7].mxu0 }
  0xf6   : > { %v2610_v5 = vmul.f32 -1.442695, %v3079_v60  ;;  %v3089_v6 = vadd.f32 %v508_v2, %v3021_v22  ;;  %4609 = vst [vmem:[#allocation6_spill] sm:$0xff] %v3149_v7  ;;  %v1039_v11 = vadd.f32 %v979_v59, %v881_v55  ;;  %v3190_v59 = vrot.slane %v2625_v53, %v3003_v16 }
  0xf7   : > { %2731 = vpow2.f32 %v2609_v0  ;;  %v2611_v9 = vmul.f32 -1.442695, %v3084_v1  ;;  %v1136_v0 = vrot.slane %v1070_v41, 2 }
  0xf8   : > { %2733 = vpow2.f32 %v2610_v5  ;;  %v2612_v12 = vmul.f32 -1.442695, %v3089_v6  ;;  %v3146_v5 = vadd.f32 %v1134_v17, %v1038_v15  ;;  %v3158_v15 = vrot.slane %v2624_v52, %v3003_v16  ;;  %v3163_v17 = vld [vmem:[%s4493_s3 + $0xe] sm:$0x3] }
  0xf9   : > { %v2724_v13 = vpop.eup %2723  ;;  %2735 = vpow2.f32 %v2611_v9  ;;  %v3152_v9 = vrot.slane %v2625_v53, %v2998_v14  ;;  %v1137_v31 = vsel %vm1131_vm5, %v1135_v63, %v1136_v0  ;;  %v3186_v52 = vrot.slane %v3163_v17, %v3003_v16  ;;  %v865_v0 = vld [vmem:[#allocation2 + $0x128] sm:$0xfc] }
  0xfa   : > { %v2726_v20 = vpop.eup %2725  ;;  %v579_v23 = vadd.f32 1.0, %v2724_v13  ;;  %2737 = vpow2.f32 %v2612_v12  ;;  %v512_v26 = vpop.f32.mrb[8].mxu0  ;;  %v3155_v12 = vrot.slane %v2623_v40, %v3003_v16  ;;  %v3197_v63 = vadd.f32 %v1137_v31, %v1039_v11 }
  0xfb   : > { %v2728_v28 = vpop.eup %2727  ;;  %v580_v29 = vadd.f32 1.0, %v2726_v20  ;;  %v3108_v35 = vadd.f32 %v512_v26, %v3012_v19  ;;  %v514_v38 = vpop.f32.mrb[9].mxu0  ;;  %4610 = vst [vmem:[#allocation7_spill] sm:$0xff] %v3152_v9  ;;  %4615 = vst [vmem:[#allocation12_spill] sm:$0xff] %v3186_v52  ;;  %v1658_v53 = vmul.f32 %v3186_v52, %v825_v39  ;;  %v787_v39 = vld [vmem:[#allocation2 + $0x128] sm:$0xff] }
  0xfc   : > { %v2730_v30 = vpop.eup %2729  ;;  %2739 = vrcp.f32 %v579_v23  ;;  %v581_v44 = vadd.f32 1.0, %v2728_v28  ;;  %v3118_v45 = vadd.f32 %v514_v38, %v3021_v22  ;;  %v516_v46 = vpop.f32.mrb[10].mxu0  ;;  %v2707_v28 = vld [vmem:[%s4495_s5 + $0x40] sm:$0xff]  }
  0xfd   : > { %2741 = vrcp.f32 %v580_v29  ;;  %v582_v47 = vadd.f32 1.0, %v2730_v30  ;;  %v2613_v48 = vmul.f32 -1.442695, %v3108_v35  ;;  %v3123_v49 = vadd.f32 %v516_v46, %v3012_v19  ;;  %v518_v50 = vpop.f32.mrb[11].mxu0  ;;  %v827_v46 = vld [vmem:[#allocation2 + $0x138] sm:$0x1]  ;;  %2202 = vmatpush1.bf16.msra.mxu0 %v2707_v28 }
  0xfe   : > { %2743 = vrcp.f32 %v581_v44  ;;  %v2614_v56 = vmul.f32 -1.442695, %v3118_v45  ;;  %v3134_v57 = vadd.f32 %v518_v50, %v3021_v22 }
  0xff   : > { %2745 = vrcp.f32 %v582_v47  ;;  %v2615_v61 = vmul.f32 -1.442695, %v3123_v49 }
 0x100   : > { %2747 = vpow2.f32 %v2613_v48  ;;  %v2616_v2 = vmul.f32 -1.442695, %v3134_v57 }
 0x101   : > { %v2732_v4 = vpop.eup %2731  ;;  %2749 = vpow2.f32 %v2614_v56 }
 0x102   : > { %v2734_v10 = vpop.eup %2733  ;;  %v583_v13 = vadd.f32 1.0, %v2732_v4  ;;  %2751 = vpow2.f32 %v2615_v61  ;;  %v522_v18 = vpop.f32.mrb[12].mxu0 }
 0x103   : > { %v2736_v20 = vpop.eup %2735  ;;  %v584_v23 = vadd.f32 1.0, %v2734_v10  ;;  %2753 = vpow2.f32 %v2616_v2  ;;  %v3166_v25 = vadd.f32 %v522_v18, %v3012_v19  ;;  %v524_v26 = vpop.f32.mrb[13].mxu0  ;;  %v1660_v2 = vmul.f32 %v3186_v52, %v827_v46 }
 0x104   : > { %v2738_v29 = vpop.eup %2737  ;;  %2755 = vrcp.f32 %v583_v13  ;;  %v585_v32 = vadd.f32 1.0, %v2736_v20  ;;  %v3173_v34 = vadd.f32 %v524_v26, %v3021_v22  ;;  %v526_v38 = vpop.f32.mrb[14].mxu0  ;;  %v867_v20 = vld [vmem:[#allocation2 + $0x138] sm:$0x3] }
 0x105   : > { %4611 = vst [vmem:[#allocation8_spill] sm:$0xff] %v3166_v25  ;;  %2757 = vrcp.f32 %v584_v23  ;;  %v586_v30 = vadd.f32 1.0, %v2738_v29  ;;  %v2617_v40 = vmul.f32 -1.442695, %v3166_v25  ;;  %v3178_v41 = vadd.f32 %v526_v38, %v3012_v19  ;;  %v528_v44 = vpop.f32.mrb[15].mxu0 }
 0x106   : > { %4612 = vst [vmem:[#allocation9_spill] sm:$0xff] %v3173_v34  ;;  %v2740_v47 = vpop.eup %2739  ;;  %2759 = vrcp.f32 %v585_v32  ;;  %v2618_v48 = vmul.f32 -1.442695, %v3173_v34  ;;  %v3182_v50 = vadd.f32 %v528_v44, %v3021_v22  ;;  %v2628_v19 = vld [vmem:[%s4493_s3 + $0x10] sm:$0x3] }
 0x107   : > { %4613 = vst [vmem:[#allocation10_spill] sm:$0xff] %v3178_v41  ;;  %v2742_v55 = vpop.eup %2741  ;;  %v627_v56 = vmul.f32 %v2740_v47, %v3028_v27  ;;  %2761 = vrcp.f32 %v586_v30  ;;  %v2619_v61 = vmul.f32 -1.442695, %v3178_v41  ;;  %v2626_v27 = vld [vmem:[%s4493_s3 + $0xc] sm:$0x3]  ;;  %v3208_v26 = vrot.slane %v2628_v19, %v3003_v16 }
 0x108   : > { %4614 = vst [vmem:[#allocation11_spill] sm:$0xff] %v3182_v50  ;;  %v2744_v22 = vpop.eup %2743  ;;  %v628_v62 = vmul.f32 %v2742_v55, %v3041_v33  ;;  %2763 = vpow2.f32 %v2617_v40  ;;  %v2620_v18 = vmul.f32 -1.442695, %v3182_v50  ;;  %v1738_v47 = vrot.slane %v1658_v53, 1 }
 0x109   : > { %v2746_v4 = vpop.eup %2745  ;;  %v701_v10 = vrot.slane %v627_v56, 7  ;;  %v629_v13 = vmul.f32 %v2744_v22, %v3049_v37  ;;  %2765 = vpow2.f32 %v2618_v48  ;;  %4616 = vst [vmem:[#allocation13_spill] sm:$0xff] %v3208_v26  ;;  %v3211_v37 = vrot.slane %v2626_v27, %v3003_v16 }
 0x10a   : > { %v2748_v33 = vpop.eup %2747  ;;  %v702_v11 = vrot.slane %v628_v62, 7  ;;  %v630_v23 = vmul.f32 %v2746_v4, %v3053_v42  ;;  %2767 = vpow2.f32 %v2619_v61  ;;  %v1815_v30 = vmul.f32 %v3208_v26, %v865_v0 }
 0x10b   : > { %v2750_v28 = vpop.eup %2749  ;;  %734 = vst [vmem:[#allocation2 + $0x20] sm:$0xfe] %v701_v10  ;;  %737 = vst [vmem:[#allocation2 + $0x30] sm:$0x1] %v701_v10  ;;  %v703_v29 = vrot.slane %v629_v13, 7  ;;  %v587_v31 = vadd.f32 1.0, %v2748_v33  ;;  %v1817_v40 = vmul.f32 %v3208_v26, %v867_v20  ;;  %2769 = vpow2.f32 %v2620_v18 }
 0x10c   : > { %4617 = vst [vmem:[#allocation14_spill] sm:$0xff] %v3211_v37  ;;  %v2752_v32 = vpop.eup %2751  ;;  %736 = vst.msk [vmem:[#allocation2 + $0x28] sm:$0xfe] %vm735_vm6, %v702_v11  ;;  %v704_v38 = vrot.slane %v630_v23, 7  ;;  %v588_v42 = vadd.f32 1.0, %v2750_v28  ;;  %v1739_v48 = vrot.slane %v1660_v2, 1  ;;  %v3218_v56 = vrot.slane %v2626_v27, %v2998_v14 }
 0x10d   : > { %739 = vst.msk [vmem:[#allocation2 + $0x38] sm:$0x1] %vm738_vm7, %v702_v11  ;;  %v2754_v44 = vpop.eup %2753  ;;  %740 = vst [vmem:[#allocation2 + $0x40] sm:$0xfe] %v703_v29  ;;  %v589_v46 = vadd.f32 1.0, %v2752_v32  ;;  %v3222_v61 = vrot.slane %v3163_v17, %v2998_v14  ;;  %2771 = vrcp.f32 %v587_v31  ;;  %v3227_v0 = vrot.slane %v2628_v19, %v2998_v14 }
 0x10e   : > { %742 = vst [vmem:[#allocation2 + $0x50] sm:$0x1] %v703_v29  ;;  %v2756_v55 = vpop.eup %2755  ;;  %4618 = vst [vmem:[#allocation15_spill] sm:$0xff] %v3218_v56  ;;  %v590_v22 = vadd.f32 1.0, %v2754_v44  ;;  %2773 = vrcp.f32 %v588_v42  ;;  %v3231_v27 = vmul.f32 %v3211_v37, %v787_v39  ;;  %v1895_v4 = vrot.slane %v1815_v30, 2 }
 0x10f   : > { %4619 = vst [vmem:[#allocation16_spill] sm:$0xff] %v3222_v61  ;;  %741 = vst.msk [vmem:[#allocation2 + $0x48] sm:$0xfe] %vm735_vm6, %v704_v38  ;;  %v2758_v62 = vpop.eup %2757  ;;  %v631_v53 = vmul.f32 %v2756_v55, %v3071_v54  ;;  %2775 = vrcp.f32 %v589_v46  ;;  %v1896_v10 = vrot.slane %v1817_v40, 2  ;;  %v3238_v19 = vsel %vm973_vm4, %v1738_v47, %v1739_v48  ;;  %v1930_v54 = vld [vmem:[%s4494_s4] sm:$0x3] }
 0x110   : > { %743 = vst.msk [vmem:[#allocation2 + $0x58] sm:$0x1] %vm738_vm7, %v704_v38  ;;  %4620 = vst [vmem:[#allocation17_spill] sm:$0xff] %v3227_v0  ;;  %v2760_v2 = vpop.eup %2759  ;;  %v632_v17 = vmul.f32 %v2758_v62, %v3079_v60  ;;  %2777 = vrcp.f32 %v590_v22 }
 0x111   : > { %4621 = vst [vmem:[#allocation18_spill] sm:$0xff] %v3231_v27  ;;  %v2762_v13 = vpop.eup %2761  ;;  %v705_v18 = vrot.slane %v631_v53, 7  ;;  %v3235_v20 = vmul.f32 %v2760_v2, %v3084_v1  ;;  %4622 = vst [vmem:[#allocation19_spill] sm:$0xff] %v3238_v19  ;;  %v3247_v29 = vsel %vm1131_vm5, %v1895_v4, %v1896_v10  ;;  %v3250_v1 = vrot.slane %v1930_v54, %v2998_v14 }
 0x112   : > { %v770_v33 = vld [vmem:[#allocation2 + $0x20] sm:$0xff]  ;;  %v794_v23 = vld [vmem:[#allocation2 + $0x30] sm:$0x1]  ;;  %v706_v60 = vrot.slane %v632_v17, 7  ;;  %v3244_v28 = vmul.f32 %v2762_v13, %v3089_v6  ;;  %4623 = vst [vmem:[#allocation20_spill] sm:$0xff] %v3247_v29  ;;  %v3252_v31 = vpop.eup %2763 }
 0x113   : > { %v792_v11 = vld [vmem:[#allocation2 + $0x20] sm:$0xfe]  ;;  %4624 = vst [vmem:[#allocation21_spill] sm:$0xff] %v3250_v1  ;;  %v834_v38 = vld [vmem:[#allocation2 + $0x30] sm:$0x3]  ;;  %v882_v42 = vmul.f32 %v3057_v43, %v770_v33  ;;  %v915_v30 = vmul.f32 %v3018_v21, %v794_v23  ;;  %v1225_v40 = vmul.f32 %v3137_v58, %v770_v33  ;;  %v3258_v6 = vpop.eup %2765  ;;  %v1272_v48 = vmul.f32 %v3149_v7, %v794_v23  ;;  %v771_v55 = vld [vmem:[#allocation2 + $0x28] sm:$0xff] }
 0x114   : > { %v832_v32 = vld [vmem:[#allocation2 + $0x20] sm:$0xfc]  ;;  %v913_v39 = vmul.f32 %v3018_v21, %v792_v11  ;;  %744 = vst [vmem:[#allocation2 + $0x60] sm:$0xfe] %v705_v18  ;;  %746 = vst [vmem:[#allocation2 + $0x70] sm:$0x1] %v705_v18  ;;  %v1073_v46 = vmul.f32 %v3046_v36, %v834_v38  ;;  %v1270_v47 = vmul.f32 %v3149_v7, %v792_v11  ;;  %v3266_v22 = vpop.eup %2767 }
 0x115   : > { %v1071_v44 = vmul.f32 %v3046_v36, %v832_v32  ;;  %745 = vst.msk [vmem:[#allocation2 + $0x68] sm:$0xfe] %vm735_vm6, %v706_v60  ;;  %v981_v53 = vrot.slane %v915_v30, 1  ;;  %v1241_v2 = vadd.f32 %v1225_v40, %v3146_v5  ;;  %v1427_v17 = vmul.f32 %v3152_v9, %v832_v32  ;;  %v793_v4 = vld [vmem:[#allocation2 + $0x28] sm:$0xfe]  ;;  %v3270_v23 = vpop.eup %2769 }
 0x116   : > { %747 = vst.msk [vmem:[#allocation2 + $0x78] sm:$0x1] %vm738_vm7, %v706_v60  ;;  %v980_v62 = vrot.slane %v913_v39, 1  ;;  %v795_v10 = vld [vmem:[#allocation2 + $0x38] sm:$0x1]  ;;  %v1139_v18 = vrot.slane %v1073_v46, 2  ;;  %v1429_v60 = vmul.f32 %v3152_v9, %v834_v38  ;;  %v883_v30 = vmul.f32 %v3104_v24, %v771_v55 }
 0x117   : > { %v1138_v13 = vrot.slane %v1071_v44, 2  ;;  %v1334_v54 = vrot.slane %v1270_v47, 1  ;;  %v1335_v33 = vrot.slane %v1272_v48, 1  ;;  %v833_v11 = vld [vmem:[#allocation2 + $0x28] sm:$0xfc]  ;;  %v1491_v14 = vrot.slane %v1427_v17, 2  ;;  %v3275_v5 = vpop.eup %2771 }
 0x118   : > { %v982_v3 = vsel %vm973_vm4, %v980_v62, %v981_v53  ;;  %v835_v39 = vld [vmem:[#allocation2 + $0x38] sm:$0x3]  ;;  %v914_v46 = vmul.f32 %v3068_v51, %v793_v4  ;;  %v3280_v47 = vpop.eup %2773  ;;  %v1492_v62 = vrot.slane %v1429_v60, 2  ;;  %v916_v38 = vmul.f32 %v3068_v51, %v795_v10  ;;  %v836_v29 = vld [vmem:[#allocation2 + $0x40] sm:$0xfc] }
 0x119   : > { %v1040_v32 = vadd.f32 %v982_v3, %v882_v42  ;;  %v1140_v40 = vsel %vm1131_vm5, %v1138_v13, %v1139_v18  ;;  %v1336_v44 = vsel %vm973_vm4, %v1334_v54, %v1335_v33  ;;  %v1072_v53 = vmul.f32 %v3093_v8, %v833_v11  ;;  %v3286_v17 = vpop.eup %2775  ;;  %v772_v13 = vld [vmem:[#allocation2 + $0x40] sm:$0xff] }
 0x11a   : > { %v3282_v48 = vadd.f32 %v1336_v44, %v1241_v2  ;;  %v983_v16 = vrot.slane %v914_v46, 1  ;;  %v1074_v3 = vmul.f32 %v3093_v8, %v835_v39  ;;  %v1226_v42 = vmul.f32 %v3155_v12, %v771_v55  ;;  %v3290_v18 = vpop.eup %2777  ;;  %v796_v44 = vld [vmem:[#allocation2 + $0x40] sm:$0xfe]  ;;  %v798_v46 = vld [vmem:[#allocation2 + $0x50] sm:$0x1] }
 0x11b   : > { %v1198_v1 = vadd.f32 %v1140_v40, %v1040_v32  ;;  %v3293_v54 = vsel %vm1131_vm5, %v1491_v14, %v1492_v62  ;;  %v984_v2 = vrot.slane %v916_v38, 1  ;;  %v1141_v33 = vrot.slane %v1072_v53, 2  ;;  %v838_v38 = vld [vmem:[#allocation2 + $0x50] sm:$0x3]  ;;  %v800_v37 = vld [vmem:[#allocation2 + $0x60] sm:$0xfe] }
 0x11c   : > { %4625 = vst [vmem:[#allocation22_spill] sm:$0xff] %v3282_v48  ;;  %4626 = vst [vmem:[#allocation23_spill] sm:$0xff] %v3293_v54  ;;  %v3296_v60 = vmul.f32 %v3158_v15, %v793_v4  ;;  %v1142_v48 = vrot.slane %v1074_v3, 2  ;;  %v3299_v32 = vadd.f32 %v1226_v42, %v3197_v63  ;;  %v3302_v40 = vmul.f32 %v3158_v15, %v795_v10 }
 0x11d   : > { %v3305_v55 = vmul.f32 %v3190_v59, %v833_v11  ;;  %v985_v14 = vsel %vm973_vm4, %v983_v16, %v984_v2  ;;  %v3310_v4 = vmul.f32 %v3190_v59, %v835_v39  ;;  %v884_v53 = vmul.f32 %v3057_v43, %v772_v13 }
 0x11e   : > { %v1041_v63 = vadd.f32 %v985_v14, %v883_v30  ;;  %v1143_v3 = vsel %vm1131_vm5, %v1141_v33, %v1142_v48  ;;  %v917_v54 = vmul.f32 %v3018_v21, %v796_v44  ;;  %v919_v16 = vmul.f32 %v3018_v21, %v798_v46 }
 0x11f   : > { %4627 = vst [vmem:[#allocation24_spill] sm:$0xff] %v3305_v55  ;;  %4628 = vst [vmem:[#allocation25_spill] sm:$0xff] %v3310_v4  ;;  %v3320_v2 = vmul.f32 %v3046_v36, %v836_v29  ;;  %v3325_v62 = vmul.f32 %v3046_v36, %v838_v38  ;;  %v1227_v30 = vmul.f32 %v3137_v58, %v772_v13 }
 0x120   : > { %v3322_v39 = vadd.f32 %v1143_v3, %v1041_v63  ;;  %v1274_v48 = vmul.f32 %v3149_v7, %v796_v44  ;;  %v986_v33 = vrot.slane %v917_v54, 1  ;;  %v987_v14 = vrot.slane %v919_v16, 1  ;;  %v3342_v16 = vld [vmem:[#allocation2 + $0x48] sm:$0xff] }
 0x121   : > { %v1144_v11 = vrot.slane %v3320_v2, 2  ;;  %v1276_v42 = vmul.f32 %v3149_v7, %v798_v46  ;;  %v1145_v10 = vrot.slane %v3325_v62, 2  ;;  %v1243_v26 = vadd.f32 %v1227_v30, %v1198_v1  ;;  %4632 = vst [vmem:[#allocation29_spill] sm:$0xff] %v3342_v16  ;;  %v3351_v30 = vld [vmem:[#allocation2 + $0x48] sm:$0xfe] }
 0x122   : > { %v1340_v19 = vrot.slane %v1274_v48, 1  ;;  %v3333_v63 = vmul.f32 %v3152_v9, %v836_v29  ;;  %v988_v3 = vsel %vm973_vm4, %v986_v33, %v987_v14  ;;  %v3337_v27 = vmul.f32 %v3152_v9, %v838_v38  ;;  %4635 = vst [vmem:[#allocation32_spill] sm:$0xff] %v3351_v30  ;;  %v3363_v14 = vld [vmem:[#allocation2 + $0x48] sm:$0xfc] }
 0x123   : > { %v1341_v52 = vrot.slane %v1276_v42, 1  ;;  %v3340_v54 = vmul.f32 %v3218_v56, %v772_v13  ;;  %v1042_v2 = vadd.f32 %v988_v3, %v884_v53  ;;  %v3346_v1 = vmul.f32 %v3222_v61, %v796_v44  ;;  %v3353_v42 = vld [vmem:[#allocation2 + $0x58] sm:$0x1]  ;;  %4639 = vst [vmem:[#allocation36_spill] sm:$0xff] %v3363_v14 }
 0x124   : > { %4629 = vst [vmem:[#allocation26_spill] sm:$0xff] %v3333_v63  ;;  %4630 = vst [vmem:[#allocation27_spill] sm:$0xff] %v3337_v27  ;;  %v3349_v62 = vmul.f32 %v3222_v61, %v798_v46  ;;  %v3358_v33 = vmul.f32 %v3227_v0, %v836_v29  ;;  %v3361_v53 = vmul.f32 %v3227_v0, %v838_v38  ;;  %v3365_v44 = vld [vmem:[#allocation2 + $0x58] sm:$0x3]  ;;  %v774_v29 = vld [vmem:[#allocation2 + $0x60] sm:$0xff] }
 0x125   : > { %4631 = vst [vmem:[#allocation28_spill] sm:$0xff] %v3340_v54  ;;  %4633 = vst [vmem:[#allocation30_spill] sm:$0xff] %v3346_v1  ;;  %v1342_v48 = vsel %vm973_vm4, %v1340_v19, %v1341_v52  ;;  %v885_v52 = vmul.f32 %v3104_v24, %v3342_v16  ;;  %v918_v38 = vmul.f32 %v3068_v51, %v3351_v30  ;;  %v802_v54 = vld [vmem:[#allocation2 + $0x70] sm:$0x1] }
 0x126   : > { %4634 = vst [vmem:[#allocation31_spill] sm:$0xff] %v3349_v62  ;;  %4636 = vst [vmem:[#allocation33_spill] sm:$0xff] %v3353_v42  ;;  %v3367_v46 = vadd.f32 %v1342_v48, %v1243_v26  ;;  %v920_v13 = vmul.f32 %v3068_v51, %v3353_v42  ;;  %v3381_v26 = vmul.f32 %v3093_v8, %v3363_v14 }
 0x127   : > { %4637 = vst [vmem:[#allocation34_spill] sm:$0xff] %v3358_v33  ;;  %4638 = vst [vmem:[#allocation35_spill] sm:$0xff] %v3361_v53  ;;  %v3385_v48 = vmul.f32 %v3093_v8, %v3365_v44  ;;  %v3389_v3 = vmul.f32 %v3155_v12, %v3342_v16  ;;  %v3393_v19 = vmul.f32 %v3158_v15, %v3351_v30  ;;  %v989_v33 = vrot.slane %v918_v38, 1 }
 0x128   : > { %4640 = vst [vmem:[#allocation37_spill] sm:$0xff] %v3365_v44  ;;  %4641 = vst [vmem:[#allocation38_spill] sm:$0xff] %v3367_v46  ;;  %v990_v53 = vrot.slane %v920_v13, 1  ;;  %v3397_v1 = vmul.f32 %v3158_v15, %v3353_v42  ;;  %v3401_v62 = vmul.f32 %v3190_v59, %v3363_v14  ;;  %v840_v46 = vld [vmem:[#allocation2 + $0x60] sm:$0xfc]  ;;  %v3408_v38 = vmul.f32 %v3190_v59, %v3365_v44 }
 0x129   : > { %v842_v13 = vld [vmem:[#allocation2 + $0x70] sm:$0x3]  ;;  %v886_v55 = vmul.f32 %v3057_v43, %v774_v29  ;;  %v921_v27 = vmul.f32 %v3018_v21, %v800_v37  ;;  %v923_v30 = vmul.f32 %v3018_v21, %v802_v54  ;;  %v1079_v44 = vmul.f32 %v3046_v36, %v840_v46 }
 0x12a   : > { %4642 = vst [vmem:[#allocation39_spill] sm:$0xff] %v3401_v62  ;;  %4643 = vst [vmem:[#allocation40_spill] sm:$0xff] %v3408_v38  ;;  %v991_v42 = vsel %vm973_vm4, %v989_v33, %v990_v53  ;;  %v1081_v50 = vmul.f32 %v3046_v36, %v842_v13  ;;  %v1146_v33 = vsel %vm1131_vm5, %v1144_v11, %v1145_v10  ;;  %v3439_v11 = vld [vmem:[#allocation2 + $0x68] sm:$0xff] }
 0x12b   : > { %v3414_v4 = vadd.f32 %v991_v42, %v885_v52  ;;  %v1229_v53 = vmul.f32 %v3137_v58, %v774_v29  ;;  %v992_v16 = vrot.slane %v921_v27, 1  ;;  %v993_v14 = vrot.slane %v923_v30, 1 }
 0x12c   : > { %v1200_v62 = vadd.f32 %v1146_v33, %v1042_v2  ;;  %v3424_v42 = vmul.f32 %v3149_v7, %v800_v37  ;;  %v1150_v52 = vrot.slane %v1079_v44, 2  ;;  %v1151_v63 = vrot.slane %v1081_v50, 2  ;;  %v3441_v2 = vld [vmem:[#allocation2 + $0x68] sm:$0xfe]  ;;  %v3443_v50 = vld [vmem:[#allocation2 + $0x78] sm:$0x1] }
 0x12d   : > { %v3427_v38 = vmul.f32 %v3149_v7, %v802_v54  ;;  %v3430_v41 = vmul.f32 %v3152_v9, %v840_v46  ;;  %v994_v34 = vsel %vm973_vm4, %v992_v16, %v993_v14  ;;  %v3437_v27 = vmul.f32 %v3152_v9, %v842_v13  ;;  %4649 = vst [vmem:[#allocation46_spill] sm:$0xff] %v3443_v50 }
 0x12e   : > { %4644 = vst [vmem:[#allocation41_spill] sm:$0xff] %v3424_v42  ;;  %v3433_v25 = vadd.f32 %v1229_v53, %v1200_v62  ;;  %v1044_v30 = vadd.f32 %v994_v34, %v886_v55  ;;  %v3448_v16 = vmul.f32 %v3218_v56, %v774_v29  ;;  %v3450_v62 = vld [vmem:[#allocation2 + $0x68] sm:$0xfc]  ;;  %v3454_v53 = vmul.f32 %v3222_v61, %v800_v37  ;;  %v3462_v34 = vld [vmem:[#allocation2 + $0x78] sm:$0x3] }
 0x12f   : > { %4645 = vst [vmem:[#allocation42_spill] sm:$0xff] %v3427_v38  ;;  %4646 = vst [vmem:[#allocation43_spill] sm:$0xff] %v3430_v41  ;;  %v3457_v10 = vmul.f32 %v3222_v61, %v802_v54  ;;  %v3465_v55 = vmul.f32 %v3227_v0, %v842_v13  ;;  %v887_v29 = vmul.f32 %v3104_v24, %v3439_v11 }
 0x130   : > { %4647 = vst [vmem:[#allocation44_spill] sm:$0xff] %v3433_v25  ;;  %4648 = vst [vmem:[#allocation45_spill] sm:$0xff] %v3437_v27  ;;  %v3460_v25 = vmul.f32 %v3227_v0, %v840_v46  ;;  %v922_v33 = vmul.f32 %v3068_v51, %v3441_v2  ;;  %v924_v37 = vmul.f32 %v3068_v51, %v3443_v50 }
 0x131   : > { %4650 = vst [vmem:[#allocation47_spill] sm:$0xff] %v3448_v16  ;;  %4651 = vst [vmem:[#allocation48_spill] sm:$0xff] %v3450_v62  ;;  %v1080_v44 = vmul.f32 %v3093_v8, %v3450_v62  ;;  %v1082_v27 = vmul.f32 %v3093_v8, %v3462_v34  ;;  %v1230_v38 = vmul.f32 %v3155_v12, %v3439_v11 }
 0x132   : > { %4652 = vst [vmem:[#allocation49_spill] sm:$0xff] %v3454_v53  ;;  %4653 = vst [vmem:[#allocation50_spill] sm:$0xff] %v3457_v10  ;;  %v995_v16 = vrot.slane %v922_v33, 1  ;;  %v996_v41 = vrot.slane %v924_v37, 1  ;;  %v1279_v54 = vmul.f32 %v3158_v15, %v3441_v2  ;;  %v1281_v46 = vmul.f32 %v3158_v15, %v3443_v50 }
 0x133   : > { %4654 = vst [vmem:[#allocation51_spill] sm:$0xff] %v3460_v25  ;;  %4655 = vst [vmem:[#allocation52_spill] sm:$0xff] %v3462_v34  ;;  %v1153_v42 = vrot.slane %v1080_v44, 2  ;;  %v1154_v14 = vrot.slane %v1082_v27, 2  ;;  %v3489_v25 = vmul.f32 %v3190_v59, %v3450_v62  ;;  %v3493_v33 = vmul.f32 %v3190_v59, %v3462_v34 }
 0x134   : > { %4656 = vst [vmem:[#allocation53_spill] sm:$0xff] %v3465_v55  ;;  %v707_v44 = vrot.slane %v3235_v20, 7  ;;  %v1349_v37 = vrot.slane %v1279_v54, 1  ;;  %v1350_v13 = vrot.slane %v1281_v46, 1  ;;  %v1152_v55 = vsel %vm1131_vm5, %v1150_v52, %v1151_v63 }
 0x135   : > { %v708_v53 = vrot.slane %v3244_v28, 7  ;;  %v1202_v62 = vadd.f32 %v1152_v55, %v1044_v30  ;;  %v635_v50 = vmul.f32 %v3275_v5, %v3108_v35  ;;  %v636_v20 = vmul.f32 %v3280_v47, %v3118_v45 }
 0x136   : > { %748 = vst [vmem:[#allocation2 + $0x80] sm:$0xfe] %v707_v44  ;;  %750 = vst [vmem:[#allocation2 + $0x90] sm:$0x1] %v707_v44  ;;  %v637_v28 = vmul.f32 %v3286_v17, %v3123_v49  ;;  %v638_v63 = vmul.f32 %v3290_v18, %v3134_v57  ;;  %v591_v52 = vadd.f32 1.0, %v3252_v31  ;;  %v592_v30 = vadd.f32 1.0, %v3258_v6 }
 0x137   : > { %749 = vst.msk [vmem:[#allocation2 + $0x88] sm:$0xfe] %vm735_vm6, %v708_v53  ;;  %v709_v54 = vrot.slane %v635_v50, 7  ;;  %v593_v35 = vadd.f32 1.0, %v3266_v22  ;;  %v594_v5 = vadd.f32 1.0, %v3270_v23  ;;  %v710_v55 = vrot.slane %v636_v20, 7 }
 0x138   : > { %751 = vst.msk [vmem:[#allocation2 + $0x98] sm:$0x1] %vm738_vm7, %v708_v53  ;;  %v711_v53 = vrot.slane %v637_v28, 7  ;;  %v712_v46 = vrot.slane %v638_v63, 7  ;;  %2779 = vrcp.f32 %v591_v52  ;;  %v997_v45 = vsel %vm973_vm4, %v995_v16, %v996_v41 }
 0x139   : > { %752 = vst [vmem:[#allocation2 + $0xa0] sm:$0xfe] %v709_v54  ;;  %754 = vst [vmem:[#allocation2 + $0xb0] sm:$0x1] %v709_v54  ;;  %2781 = vrcp.f32 %v592_v30  ;;  %v4657_v49 = vrot.slane %v3385_v48, 2  ;;  %v4658_v57 = vrot.slane %v3381_v26, 2  ;;  %v1155_v6 = vsel %vm1131_vm5, %v1153_v42, %v1154_v14 }
 0x13a   : > { %753 = vst.msk [vmem:[#allocation2 + $0xa8] sm:$0xfe] %vm735_vm6, %v710_v55  ;;  %756 = vst [vmem:[#allocation2 + $0xc0] sm:$0xfe] %v711_v53  ;;  %2783 = vrcp.f32 %v593_v35  ;;  %v1045_v41 = vadd.f32 %v997_v45, %v887_v29  ;;  %v1244_v23 = vadd.f32 %v3389_v3, %v3322_v39  ;;  %v4659_v47 = vrot.slane %v3302_v40, 1 }
 0x13b   : > { %v1149_v31 = vsel %vm1131_vm5, %v4658_v57, %v4657_v49  ;;  %755 = vst.msk [vmem:[#allocation2 + $0xb8] sm:$0x1] %vm738_vm7, %v710_v55  ;;  %758 = vst [vmem:[#allocation2 + $0xd0] sm:$0x1] %v711_v53  ;;  %2785 = vrcp.f32 %v594_v5  ;;  %v4660_v17 = vrot.slane %v3296_v60, 1  ;;  %v4661_v26 = vrot.slane %v3397_v1, 1 }
 0x13c   : > { %757 = vst.msk [vmem:[#allocation2 + $0xc8] sm:$0xfe] %vm735_vm6, %v712_v46  ;;  %v1201_v22 = vadd.f32 %v1149_v31, %v3414_v4  ;;  %v4662_v48 = vrot.slane %v3393_v19, 1  ;;  %v3539_v50 = vsel %vm973_vm4, %v1349_v37, %v1350_v13  ;;  %v3541_v39 = vadd.f32 %v1155_v6, %v1045_v41 }
 0x13d   : > { %759 = vst.msk [vmem:[#allocation2 + $0xd8] sm:$0x1] %vm738_vm7, %v712_v46  ;;  %v1339_v18 = vsel %vm973_vm4, %v4660_v17, %v4659_v47  ;;  %v776_v4 = vld [vmem:[#allocation2 + $0x80] sm:$0xff]  ;;  %v806_v14 = vld [vmem:[#allocation2 + $0x90] sm:$0x1] }
 0x13e   : > { %v1345_v42 = vsel %vm973_vm4, %v4662_v48, %v4661_v26  ;;  %v804_v16 = vld [vmem:[#allocation2 + $0x80] sm:$0xfe]  ;;  %v3543_v3 = vadd.f32 %v1230_v38, %v1201_v22  ;;  %v3546_v60 = vadd.f32 %v1339_v18, %v3299_v32  ;;  %v846_v29 = vld [vmem:[#allocation2 + $0x90] sm:$0x3]  ;;  %v888_v19 = vmul.f32 %v3057_v43, %v776_v4  ;;  %v3571_v35 = vld [vmem:[#allocation2 + $0x88] sm:$0xff] }
 0x13f   : > { %v3548_v40 = vadd.f32 %v1345_v42, %v1244_v23  ;;  %v844_v1 = vld [vmem:[#allocation2 + $0x80] sm:$0xfc]  ;;  %v925_v44 = vmul.f32 %v3018_v21, %v804_v16  ;;  %v927_v13 = vmul.f32 %v3018_v21, %v806_v14  ;;  %v1231_v37 = vmul.f32 %v3137_v58, %v776_v4  ;;  %v3577_v45 = vld [vmem:[#allocation2 + $0x88] sm:$0xfe]  ;;  %v3587_v6 = vld [vmem:[#allocation2 + $0x98] sm:$0x1] }
 0x140   : > { %v3555_v20 = vmul.f32 %v3046_v36, %v844_v1  ;;  %v3558_v38 = vmul.f32 %v3046_v36, %v846_v29  ;;  %v3561_v32 = vmul.f32 %v3149_v7, %v804_v16  ;;  %v3564_v28 = vmul.f32 %v3149_v7, %v806_v14  ;;  %v3602_v18 = vld [vmem:[#allocation2 + $0x88] sm:$0xfc]  ;;  %v3604_v26 = vld [vmem:[#allocation2 + $0x98] sm:$0x3] }
 0x141   : > { %v998_v63 = vrot.slane %v925_v44, 1  ;;  %v999_v52 = vrot.slane %v927_v13, 1  ;;  %v3566_v54 = vadd.f32 %v1231_v37, %v1202_v62  ;;  %v3569_v30 = vmul.f32 %v3152_v9, %v844_v1  ;;  %v850_v37 = vld [vmem:[#allocation2 + $0xb0] sm:$0x3]  ;;  %v3693_v46 = vld [vmem:[#allocation2 + $0xc0] sm:$0xff] }
 0x142   : > { %4663 = vst [vmem:[#allocation54_spill] sm:$0xff] %v3555_v20  ;;  %4664 = vst [vmem:[#allocation55_spill] sm:$0xff] %v3558_v38  ;;  %v3581_v62 = vmul.f32 %v3152_v9, %v846_v29  ;;  %v3585_v31 = vmul.f32 %v3218_v56, %v776_v4  ;;  %v3589_v41 = vpop.eup %2779  ;;  %v3594_v23 = vmul.f32 %v3222_v61, %v804_v16 }
 0x143   : > { %4665 = vst [vmem:[#allocation56_spill] sm:$0xff] %v3561_v32  ;;  %4666 = vst [vmem:[#allocation57_spill] sm:$0xff] %v3564_v28  ;;  %v1000_v49 = vsel %vm973_vm4, %v998_v63, %v999_v52  ;;  %v3597_v47 = vmul.f32 %v3222_v61, %v806_v14  ;;  %v3600_v17 = vmul.f32 %v3227_v0, %v844_v1  ;;  %v3606_v48 = vpop.eup %2781  ;;  %v3620_v1 = vld [vmem:[#allocation2 + $0xa0] sm:$0xff]  ;;  %v810_v52 = vld [vmem:[#allocation2 + $0xb0] sm:$0x1] }
 0x144   : > { %4667 = vst [vmem:[#allocation58_spill] sm:$0xff] %v3566_v54  ;;  %4668 = vst [vmem:[#allocation59_spill] sm:$0xff] %v3569_v30  ;;  %v3591_v22 = vadd.f32 %v1000_v49, %v888_v19  ;;  %v3610_v4 = vmul.f32 %v3227_v0, %v846_v29  ;;  %v3614_v16 = vmul.f32 %v3104_v24, %v3571_v35  ;;  %v808_v19 = vld [vmem:[#allocation2 + $0xa0] sm:$0xfe]  ;;  %v3622_v44 = vpop.eup %2783 }
 0x145   : > { %4669 = vst [vmem:[#allocation60_spill] sm:$0xff] %v3581_v62  ;;  %4670 = vst [vmem:[#allocation61_spill] sm:$0xff] %v3585_v31  ;;  %v3618_v14 = vmul.f32 %v3068_v51, %v3577_v45  ;;  %v3629_v63 = vmul.f32 %v3068_v51, %v3587_v6  ;;  %v3631_v49 = vpop.eup %2785  ;;  %v3637_v53 = vmul.f32 %v3093_v8, %v3602_v18  ;;  %v848_v29 = vld [vmem:[#allocation2 + $0xa0] sm:$0xfc]  ;;  %v3681_v62 = vld [vmem:[#allocation2 + $0xa8] sm:$0xfe] }
 0x146   : > { %4671 = vst [vmem:[#allocation62_spill] sm:$0xff] %v3591_v22  ;;  %4672 = vst [vmem:[#allocation63_spill] sm:$0xff] %v3594_v23  ;;  %v3641_v13 = vmul.f32 %v3093_v8, %v3604_v26  ;;  %v3646_v5 = vmul.f32 %v3158_v15, %v3577_v45  ;;  %v3650_v57 = vmul.f32 %v3158_v15, %v3587_v6  ;;  %v3695_v32 = vld [vmem:[#allocation2 + $0xc0] sm:$0xfe] }
 0x147   : > { %4673 = vst [vmem:[#allocation64_spill] sm:$0xff] %v3597_v47  ;;  %4674 = vst [vmem:[#allocation65_spill] sm:$0xff] %v3600_v17  ;;  %v890_v55 = vmul.f32 %v3057_v43, %v3620_v1  ;;  %v929_v42 = vmul.f32 %v3018_v21, %v808_v19  ;;  %v931_v17 = vmul.f32 %v3018_v21, %v810_v52 }
 0x148   : > { %4675 = vst [vmem:[#allocation66_spill] sm:$0xff] %v3610_v4  ;;  %4676 = vst [vmem:[#allocation67_spill] sm:$0xff] %v3620_v1  ;;  %v3661_v0 = vmul.f32 %v3046_v36, %v848_v29  ;;  %v3664_v23 = vmul.f32 %v3046_v36, %v850_v37  ;;  %v3668_v10 = vmul.f32 %v3137_v58, %v3620_v1  ;;  %v3708_v1 = vld [vmem:[#allocation2 + $0xd0] sm:$0x3] }
 0x149   : > { %v1004_v47 = vrot.slane %v929_v42, 1  ;;  %v1005_v31 = vrot.slane %v931_v17, 1  ;;  %v3671_v27 = vmul.f32 %v3149_v7, %v808_v19  ;;  %v3676_v4 = vmul.f32 %v3149_v7, %v810_v52  ;;  %v3683_v17 = vld [vmem:[#allocation2 + $0xb8] sm:$0x1]  ;;  %4685 = vst [vmem:[#allocation76_spill] sm:$0xff] %v3693_v46  ;;  %4686 = vst [vmem:[#allocation77_spill] sm:$0xff] %v3695_v32 }
 0x14a   : > { %4677 = vst [vmem:[#allocation68_spill] sm:$0xff] %v3661_v0  ;;  %4678 = vst [vmem:[#allocation69_spill] sm:$0xff] %v3664_v23  ;;  %v3679_v30 = vmul.f32 %v3152_v9, %v848_v29  ;;  %v3688_v54 = vmul.f32 %v3152_v9, %v850_v37  ;;  %v3691_v56 = vmul.f32 %v3222_v61, %v808_v19  ;;  %v3697_v29 = vld [vmem:[#allocation2 + $0xd0] sm:$0x1]  ;;  %v3706_v37 = vld [vmem:[#allocation2 + $0xc0] sm:$0xfc] }
 0x14b   : > { %4679 = vst [vmem:[#allocation70_spill] sm:$0xff] %v3668_v10  ;;  %4680 = vst [vmem:[#allocation71_spill] sm:$0xff] %v3671_v27  ;;  %v1006_v42 = vsel %vm973_vm4, %v1004_v47, %v1005_v31  ;;  %v3704_v47 = vmul.f32 %v3222_v61, %v810_v52  ;;  %v930_v22 = vmul.f32 %v3068_v51, %v3681_v62  ;;  %v3757_v61 = vld [vmem:[#allocation2 + $0xa8] sm:$0xff] }
 0x14c   : > { %4681 = vst [vmem:[#allocation72_spill] sm:$0xff] %v3676_v4  ;;  %4682 = vst [vmem:[#allocation73_spill] sm:$0xff] %v3679_v30  ;;  %v3699_v28 = vadd.f32 %v1006_v42, %v890_v55  ;;  %v932_v55 = vmul.f32 %v3068_v51, %v3683_v17  ;;  %v3719_v52 = vmul.f32 %v3057_v43, %v3693_v46 }
 0x14d   : > { %4683 = vst [vmem:[#allocation74_spill] sm:$0xff] %v3688_v54  ;;  %4684 = vst [vmem:[#allocation75_spill] sm:$0xff] %v3691_v56  ;;  %v3723_v31 = vmul.f32 %v3018_v21, %v3695_v32  ;;  %v3727_v19 = vmul.f32 %v3018_v21, %v3697_v29  ;;  %v1007_v27 = vrot.slane %v930_v22, 1  ;;  %v3731_v56 = vmul.f32 %v3046_v36, %v3706_v37  ;;  %v4703_v54 = vld [vmem:[#allocation9_spill] sm:$0xff] }
 0x14e   : > { %4687 = vst [vmem:[#allocation78_spill] sm:$0xff] %v3697_v29  ;;  %4688 = vst [vmem:[#allocation79_spill] sm:$0xff] %v3699_v28  ;;  %v1008_v10 = vrot.slane %v932_v55, 1  ;;  %v3735_v42 = vmul.f32 %v3046_v36, %v3708_v1  ;;  %v3741_v30 = vmul.f32 %v3137_v58, %v3693_v46  ;;  %v3745_v22 = vmul.f32 %v3149_v7, %v3695_v32  ;;  %v3770_v28 = vld [vmem:[#allocation2 + $0xc8] sm:$0xfe] }
 0x14f   : > { %4689 = vst [vmem:[#allocation80_spill] sm:$0xff] %v3704_v47  ;;  %4690 = vst [vmem:[#allocation81_spill] sm:$0xff] %v3706_v37  ;;  %v3751_v4 = vmul.f32 %v3149_v7, %v3697_v29  ;;  %v3755_v47 = vmul.f32 %v3152_v9, %v3706_v37  ;;  %v3762_v32 = vmul.f32 %v3152_v9, %v3708_v1  ;;  %v3768_v29 = vld [vmem:[#allocation2 + $0xc8] sm:$0xff]  ;;  %v3778_v9 = vld [vmem:[#allocation2 + $0xd8] sm:$0x1] }
 0x150   : > { %4691 = vst [vmem:[#allocation82_spill] sm:$0xff] %v3708_v1  ;;  %4692 = vst [vmem:[#allocation83_spill] sm:$0xff] %v3719_v52  ;;  %v640_v58 = vmul.f32 %v3606_v48, %v4703_v54  ;;  %v3783_v52 = vld [vmem:[#allocation2 + $0xb8] sm:$0x3]  ;;  %v891_v37 = vmul.f32 %v3104_v24, %v3757_v61  ;;  %v1234_v0 = vmul.f32 %v3155_v12, %v3757_v61 }
 0x151   : > { %4693 = vst [vmem:[#allocation84_spill] sm:$0xff] %v3723_v31  ;;  %4694 = vst [vmem:[#allocation85_spill] sm:$0xff] %v3727_v19 }
 0x152   : > { %4695 = vst [vmem:[#allocation86_spill] sm:$0xff] %v3731_v56  ;;  %4696 = vst [vmem:[#allocation87_spill] sm:$0xff] %v3735_v42  ;;  %v4704_v42 = vld [vmem:[#allocation10_spill] sm:$0xff]  ;;  %v714_v48 = vrot.slane %v640_v58, 7  ;;  %v936_v58 = vmul.f32 %v3068_v51, %v3778_v9 }
 0x153   : > { %4697 = vst [vmem:[#allocation88_spill] sm:$0xff] %v3741_v30  ;;  %4698 = vst [vmem:[#allocation89_spill] sm:$0xff] %v3745_v22  ;;  %v4702_v30 = vld [vmem:[#allocation8_spill] sm:$0xff]  ;;  %v641_v46 = vmul.f32 %v3622_v44, %v4704_v42  ;;  %v4705_v22 = vld [vmem:[#allocation11_spill] sm:$0xff]  ;;  %v934_v42 = vmul.f32 %v3068_v51, %v3770_v28 }
 0x154   : > { %4699 = vst [vmem:[#allocation90_spill] sm:$0xff] %v3751_v4  ;;  %4700 = vst [vmem:[#allocation91_spill] sm:$0xff] %v3755_v47  ;;  %v639_v55 = vmul.f32 %v3589_v41, %v4702_v30  ;;  %v642_v1 = vmul.f32 %v3631_v49, %v4705_v22  ;;  %v3780_v30 = vld [vmem:[#allocation2 + $0xa8] sm:$0xfc]  ;;  %v3789_v44 = vld [vmem:[#allocation2 + $0xd8] sm:$0x3]  ;;  %v893_v49 = vmul.f32 %v3104_v24, %v3768_v29 }
 0x155   : > { %4701 = vst [vmem:[#allocation92_spill] sm:$0xff] %v3762_v32  ;;  %v715_v56 = vrot.slane %v641_v46, 7  ;;  %v3787_v4 = vld [vmem:[#allocation2 + $0xc8] sm:$0xfc]  ;;  %761 = vst.msk [vmem:[#allocation2 + $0xe8] sm:$0xfe] %vm735_vm6, %v714_v48  ;;  %v1088_v54 = vmul.f32 %v3093_v8, %v3780_v30 }
 0x156   : > { %v713_v41 = vrot.slane %v639_v55, 7  ;;  %v716_v47 = vrot.slane %v642_v1, 7  ;;  %763 = vst.msk [vmem:[#allocation2 + $0xf8] sm:$0x1] %vm738_vm7, %v714_v48  ;;  %v4706_v46 = vrot.slane %v3629_v63, 1  ;;  %v4707_v1 = vrot.slane %v3618_v14, 1 }
 0x157   : > { %v1009_v55 = vsel %vm973_vm4, %v1007_v27, %v1008_v10  ;;  %764 = vst [vmem:[#allocation2 + $0x100] sm:$0xfe] %v715_v56  ;;  %766 = vst [vmem:[#allocation2 + $0x110] sm:$0x1] %v715_v56  ;;  %v1090_v14 = vmul.f32 %v3093_v8, %v3783_v52  ;;  %v1014_v63 = vrot.slane %v936_v58, 1  ;;  %v1092_v10 = vmul.f32 %v3093_v8, %v3787_v4 }
 0x158   : > { %760 = vst [vmem:[#allocation2 + $0xe0] sm:$0xfe] %v713_v41  ;;  %762 = vst [vmem:[#allocation2 + $0xf0] sm:$0x1] %v713_v41  ;;  %v1003_v22 = vsel %vm973_vm4, %v4707_v1, %v4706_v46  ;;  %v1013_v41 = vrot.slane %v934_v42, 1  ;;  %v1049_v32 = vadd.f32 %v1009_v55, %v891_v37  ;;  %v1094_v27 = vmul.f32 %v3093_v8, %v3789_v44 }
 0x159   : > { %765 = vst.msk [vmem:[#allocation2 + $0x108] sm:$0xfe] %vm735_vm6, %v716_v47  ;;  %v1047_v48 = vadd.f32 %v1003_v22, %v3614_v16  ;;  %v4708_v56 = vrot.slane %v3641_v13, 2  ;;  %v4709_v46 = vrot.slane %v3637_v53, 2  ;;  %v1165_v42 = vrot.slane %v1088_v54, 2 }
 0x15a   : > { %767 = vst.msk [vmem:[#allocation2 + $0x118] sm:$0x1] %vm738_vm7, %v716_v47  ;;  %v1166_v1 = vrot.slane %v1090_v14, 2  ;;  %v1232_v37 = vmul.f32 %v3155_v12, %v3571_v35  ;;  %v1015_v58 = vsel %vm973_vm4, %v1013_v41, %v1014_v63  ;;  %v1171_v22 = vrot.slane %v1092_v10, 2 }
 0x15b   : > { %v1161_v47 = vsel %vm1131_vm5, %v4709_v46, %v4708_v56  ;;  %v1172_v55 = vrot.slane %v1094_v27, 2  ;;  %v1051_v23 = vadd.f32 %v1015_v58, %v893_v49  ;;  %v1236_v53 = vmul.f32 %v3155_v12, %v3768_v29 }
 0x15c   : > { %v1205_v16 = vadd.f32 %v1161_v47, %v1047_v48  ;;  %v1167_v13 = vsel %vm1131_vm5, %v1165_v42, %v1166_v1  ;;  %v3830_v54 = vadd.f32 %v1232_v37, %v3541_v39  ;;  %v1287_v41 = vmul.f32 %v3158_v15, %v3681_v62  ;;  %v3869_v37 = vld [vmem:[#allocation2 + $0xe8] sm:$0xff] }
 0x15d   : > { %v1173_v48 = vsel %vm1131_vm5, %v1171_v22, %v1172_v55  ;;  %v1207_v14 = vadd.f32 %v1167_v13, %v1049_v32  ;;  %v1289_v46 = vmul.f32 %v3158_v15, %v3683_v17  ;;  %v1291_v39 = vmul.f32 %v3158_v15, %v3770_v28  ;;  %v3885_v55 = vld [vmem:[#allocation2 + $0xe8] sm:$0xfe]  ;;  %v3887_v13 = vld [vmem:[#allocation2 + $0xf8] sm:$0x1] }
 0x15e   : > { %v3833_v56 = vadd.f32 %v1234_v0, %v1205_v16  ;;  %v1209_v27 = vadd.f32 %v1173_v48, %v1051_v23  ;;  %v1293_v0 = vmul.f32 %v3158_v15, %v3778_v9  ;;  %4722 = vst [vmem:[#allocation101_spill] sm:$0xff] %v3885_v55  ;;  %4723 = vst [vmem:[#allocation102_spill] sm:$0xff] %v3887_v13 }
 0x15f   : > { %v3837_v63 = vld [vmem:[#allocation2 + $0xe0] sm:$0xff]  ;;  %v3841_v49 = vld [vmem:[#allocation2 + $0xf0] sm:$0x1]  ;;  %v895_v48 = vmul.f32 %v3104_v24, %v3869_v37  ;;  %v940_v24 = vmul.f32 %v3068_v51, %v3887_v13  ;;  %v1297_v38 = vmul.f32 %v3158_v15, %v3887_v13  ;;  %v1362_v31 = vrot.slane %v1289_v46, 1 }
 0x160   : > { %4710 = vst [vmem:[#allocation8_spill] sm:$0xff] %v3837_v63  ;;  %v3839_v10 = vld [vmem:[#allocation2 + $0xe0] sm:$0xfe]  ;;  %4712 = vst [vmem:[#allocation10_spill] sm:$0xff] %v3841_v49  ;;  %v3851_v47 = vld [vmem:[#allocation2 + $0xf0] sm:$0x3]  ;;  %v3855_v42 = vmul.f32 %v3057_v43, %v3837_v63  ;;  %v3863_v1 = vmul.f32 %v3018_v21, %v3841_v49  ;;  %v3881_v22 = vmul.f32 %v3149_v7, %v3841_v49 }
 0x161   : > { %4711 = vst [vmem:[#allocation9_spill] sm:$0xff] %v3839_v10  ;;  %v3849_v32 = vld [vmem:[#allocation2 + $0xe0] sm:$0xfc]  ;;  %4714 = vst [vmem:[#allocation93_spill] sm:$0xff] %v3851_v47  ;;  %v3859_v23 = vmul.f32 %v3018_v21, %v3839_v10  ;;  %v3867_v16 = vmul.f32 %v3149_v7, %v3839_v10  ;;  %v3877_v43 = vmul.f32 %v3046_v36, %v3851_v47  ;;  %v3883_v21 = vld [vmem:[#allocation2 + $0x108] sm:$0xff]  ;;  %v1367_v19 = vrot.slane %v1291_v39, 1 }
 0x162   : > { %4713 = vst [vmem:[#allocation11_spill] sm:$0xff] %v3849_v32  ;;  %4715 = vst [vmem:[#allocation94_spill] sm:$0xff] %v3855_v42  ;;  %v3873_v58 = vmul.f32 %v3046_v36, %v3849_v32  ;;  %v3894_v47 = vld [vmem:[#allocation2 + $0x108] sm:$0xfe]  ;;  %v938_v49 = vmul.f32 %v3068_v51, %v3885_v55  ;;  %v3901_v20 = vld [vmem:[#allocation2 + $0x118] sm:$0x1]  ;;  %v1238_v36 = vmul.f32 %v3155_v12, %v3869_v37 }
 0x163   : > { %4716 = vst [vmem:[#allocation95_spill] sm:$0xff] %v3859_v23  ;;  %4717 = vst [vmem:[#allocation96_spill] sm:$0xff] %v3863_v1  ;;  %v3905_v10 = vld [vmem:[#allocation2 + $0xe8] sm:$0xfc]  ;;  %v3907_v32 = vld [vmem:[#allocation2 + $0xf8] sm:$0x3]  ;;  %v1252_v7 = vadd.f32 %v1236_v53, %v1207_v14  ;;  %v1295_v63 = vmul.f32 %v3158_v15, %v3885_v55  ;;  %v1299_v23 = vmul.f32 %v3158_v15, %v3894_v47 }
 0x164   : > { %4718 = vst [vmem:[#allocation97_spill] sm:$0xff] %v3867_v16  ;;  %4719 = vst [vmem:[#allocation98_spill] sm:$0xff] %v3873_v58  ;;  %v1240_v16 = vmul.f32 %v3155_v12, %v3883_v21  ;;  %v1019_v42 = vrot.slane %v938_v49, 1  ;;  %v1096_v58 = vmul.f32 %v3093_v8, %v3905_v10  ;;  %v1098_v51 = vmul.f32 %v3093_v8, %v3907_v32  ;;  %v3938_v46 = vld [vmem:[#allocation2 + $0x108] sm:$0xfc] }
 0x165   : > { %4720 = vst [vmem:[#allocation99_spill] sm:$0xff] %v3877_v43  ;;  %4721 = vst [vmem:[#allocation100_spill] sm:$0xff] %v3881_v22  ;;  %v1020_v22 = vrot.slane %v940_v24, 1  ;;  %v1254_v43 = vadd.f32 %v1238_v36, %v1209_v27  ;;  %v1301_v12 = vmul.f32 %v3158_v15, %v3901_v20  ;;  %v4725_v24 = vrot.slane %v3650_v57, 1  ;;  %v3940_v39 = vld [vmem:[#allocation2 + $0x118] sm:$0x3] }
 0x166   : > { %4724 = vst [vmem:[#allocation103_spill] sm:$0xff] %v3894_v47  ;;  %v1177_v14 = vrot.slane %v1096_v58, 2  ;;  %v1178_v49 = vrot.slane %v1098_v51, 2  ;;  %v4726_v1 = vrot.slane %v3646_v5, 1  ;;  %v1361_v36 = vrot.slane %v1287_v41, 1  ;;  %v4729_v51 = vld [vmem:[#allocation24_spill] sm:$0xff] }
 0x167   : > { %v1021_v53 = vsel %vm973_vm4, %v1019_v42, %v1020_v22  ;;  %v1368_v47 = vrot.slane %v1293_v0, 1  ;;  %v1373_v13 = vrot.slane %v1295_v63, 1  ;;  %v1374_v55 = vrot.slane %v1297_v38, 1 }
 0x168   : > { %v1357_v8 = vsel %vm973_vm4, %v4726_v1, %v4725_v24  ;;  %v1053_v27 = vadd.f32 %v1021_v53, %v895_v48  ;;  %v1179_v34 = vsel %vm1131_vm5, %v1177_v14, %v1178_v49  ;;  %v1363_v42 = vsel %vm973_vm4, %v1361_v36, %v1362_v31  ;;  %v4731_v14 = vld [vmem:[#allocation40_spill] sm:$0xff]  ;;  %v4733_v24 = vld [vmem:[#allocation39_spill] sm:$0xff] }
 0x169   : > { %v1379_v58 = vrot.slane %v1299_v23, 1  ;;  %v1380_v22 = vrot.slane %v1301_v12, 1  ;;  %v1369_v57 = vsel %vm973_vm4, %v1367_v19, %v1368_v47  ;;  %v1375_v5 = vsel %vm973_vm4, %v1373_v13, %v1374_v55  ;;  %v4727_v13 = vld [vmem:[#allocation25_spill] sm:$0xff] }
 0x16a   : > { %v1211_v15 = vadd.f32 %v1179_v34, %v1053_v27  ;;  %v1403_v1 = vadd.f32 %v3539_v50, %v3543_v3  ;;  %v1405_v41 = vadd.f32 %v1357_v8, %v3830_v54  ;;  %v1407_v38 = vadd.f32 %v1363_v42, %v3833_v56 }
 0x16b   : > { %v1381_v34 = vsel %vm973_vm4, %v1379_v58, %v1380_v22  ;;  %v1409_v31 = vadd.f32 %v1369_v57, %v1252_v7  ;;  %v1411_v0 = vadd.f32 %v1375_v5, %v1254_v43  ;;  %v1440_v19 = vmul.f32 %v3190_v59, %v3602_v18 }
 0x16c   : > { %v1256_v63 = vadd.f32 %v1240_v16, %v1211_v15  ;;  %v1442_v47 = vmul.f32 %v3190_v59, %v3604_v26  ;;  %v1444_v50 = vmul.f32 %v3190_v59, %v3780_v30  ;;  %v1446_v54 = vmul.f32 %v3190_v59, %v3783_v52 }
 0x16d   : > { %v1448_v23 = vmul.f32 %v3190_v59, %v3787_v4  ;;  %v1450_v7 = vmul.f32 %v3190_v59, %v3789_v44  ;;  %v1452_v56 = vmul.f32 %v3190_v59, %v3905_v10  ;;  %v1454_v16 = vmul.f32 %v3190_v59, %v3907_v32 }
 0x16e   : > { %v1413_v3 = vadd.f32 %v1381_v34, %v1256_v63  ;;  %v1456_v43 = vmul.f32 %v3190_v59, %v3938_v46  ;;  %v1458_v55 = vmul.f32 %v3190_v59, %v3940_v39  ;;  %v4728_v48 = vrot.slane %v4727_v13, 2 }
 0x16f   : > { %v4730_v12 = vrot.slane %v4729_v51, 2  ;;  %v4732_v49 = vrot.slane %v4731_v14, 2  ;;  %v4734_v8 = vrot.slane %v4733_v24, 2  ;;  %v4735_v36 = vrot.slane %v3493_v33, 2  ;;  %v4738_v24 = vld [vmem:[#allocation14_spill] sm:$0xff] }
 0x170   : > { %v4736_v15 = vrot.slane %v3489_v25, 2  ;;  %v1512_v58 = vrot.slane %v1440_v19, 2  ;;  %v1513_v59 = vrot.slane %v1442_v47, 2  ;;  %v1518_v22 = vrot.slane %v1444_v50, 2 }
 0x171   : > { %v1496_v53 = vsel %vm1131_vm5, %v4730_v12, %v4728_v48  ;;  %v1502_v27 = vsel %vm1131_vm5, %v4734_v8, %v4732_v49  ;;  %v1519_v57 = vrot.slane %v1446_v54, 2  ;;  %v1524_v5 = vrot.slane %v1448_v23, 2 }
 0x172   : > { %v1508_v42 = vsel %vm1131_vm5, %v4736_v15, %v4735_v36  ;;  %v1525_v63 = vrot.slane %v1450_v7, 2  ;;  %v1530_v34 = vrot.slane %v1452_v56, 2  ;;  %v1531_v13 = vrot.slane %v1454_v16, 2 }
 0x173   : > { %v1536_v48 = vrot.slane %v1456_v43, 2  ;;  %v1514_v51 = vsel %vm1131_vm5, %v1512_v58, %v1513_v59  ;;  %v1520_v12 = vsel %vm1131_vm5, %v1518_v22, %v1519_v57  ;;  %v1537_v14 = vrot.slane %v1458_v55, 2  ;;  %v4737_v43 = vld [vmem:[#allocation29_spill] sm:$0xff]  ;;  %v4743_v22 = vld [vmem:[#allocation46_spill] sm:$0xff] }
 0x174   : > { %v1556_v33 = vadd.f32 %v1496_v53, %v3546_v60  ;;  %v1526_v25 = vsel %vm1131_vm5, %v1524_v5, %v1525_v63  ;;  %v1532_v49 = vsel %vm1131_vm5, %v1530_v34, %v1531_v13  ;;  %v1558_v19 = vadd.f32 %v1502_v27, %v3548_v40  ;;  %v4742_v59 = vld [vmem:[#allocation33_spill] sm:$0xff] }
 0x175   : > { %v1560_v47 = vadd.f32 %v1508_v42, %v1403_v1  ;;  %v1538_v50 = vsel %vm1131_vm5, %v1536_v48, %v1537_v14  ;;  %v1562_v54 = vadd.f32 %v1514_v51, %v1405_v41  ;;  %v1564_v23 = vadd.f32 %v1520_v12, %v1407_v38  ;;  %v4740_v42 = vld [vmem:[#allocation32_spill] sm:$0xff]  ;;  %v4744_v48 = vld [vmem:[#allocation101_spill] sm:$0xff]  ;;  %v4745_v12 = vld [vmem:[#allocation102_spill] sm:$0xff] }
 0x176   : > { %v1566_v7 = vadd.f32 %v1526_v25, %v1409_v31  ;;  %v1568_v56 = vadd.f32 %v1532_v49, %v1411_v0  ;;  %v1570_v16 = vadd.f32 %v1538_v50, %v1413_v3  ;;  %v1585_v8 = vmul.f32 %v4738_v24, %v4737_v43  ;;  %v4739_v3 = vld [vmem:[#allocation18_spill] sm:$0xff]  ;;  %v4746_v14 = vld [vmem:[#allocation103_spill] sm:$0xff] }
 0x177   : > { %v1587_v60 = vmul.f32 %v4738_v24, %v3439_v11  ;;  %v1589_v55 = vmul.f32 %v4738_v24, %v3571_v35  ;;  %v1591_v40 = vmul.f32 %v4738_v24, %v3757_v61  ;;  %v1593_v1 = vmul.f32 %v4738_v24, %v3768_v29  ;;  %v4741_v61 = vld [vmem:[#allocation12_spill] sm:$0xff] }
 0x178   : > { %v1595_v41 = vmul.f32 %v4738_v24, %v3869_v37  ;;  %v1597_v38 = vmul.f32 %v4738_v24, %v3883_v21  ;;  %v1601_v31 = vadd.f32 %v1585_v8, %v1556_v33  ;;  %v1615_v53 = vadd.f32 %v4739_v3, %v1570_v16 }
 0x179   : > { %v1603_v0 = vadd.f32 %v1587_v60, %v1558_v19  ;;  %v1605_v11 = vadd.f32 %v1589_v55, %v1560_v47  ;;  %v1607_v27 = vadd.f32 %v1591_v40, %v1562_v54  ;;  %v1609_v36 = vadd.f32 %v1593_v1, %v1564_v23 }
 0x17a   : > { %v1611_v35 = vadd.f32 %v1595_v41, %v1566_v7  ;;  %v1613_v15 = vadd.f32 %v1597_v38, %v1568_v56  ;;  %v1630_v58 = vmul.f32 %v4741_v61, %v4740_v42  ;;  %v1632_v29 = vmul.f32 %v4741_v61, %v4742_v59 }
 0x17b   : > { %v1634_v37 = vmul.f32 %v4741_v61, %v3441_v2  ;;  %v1636_v21 = vmul.f32 %v4741_v61, %v4743_v22  ;;  %v1638_v57 = vmul.f32 %v4741_v61, %v3577_v45  ;;  %v1640_v5 = vmul.f32 %v4741_v61, %v3587_v6 }
 0x17c   : > { %v1642_v63 = vmul.f32 %v4741_v61, %v3681_v62  ;;  %v1644_v34 = vmul.f32 %v4741_v61, %v3683_v17  ;;  %v1646_v13 = vmul.f32 %v4741_v61, %v3770_v28  ;;  %v1648_v2 = vmul.f32 %v4741_v61, %v3778_v9 }
 0x17d   : > { %v1650_v51 = vmul.f32 %v4741_v61, %v4744_v48  ;;  %v1652_v45 = vmul.f32 %v4741_v61, %v4745_v12  ;;  %v1654_v6 = vmul.f32 %v4741_v61, %v4746_v14  ;;  %v1656_v62 = vmul.f32 %v4741_v61, %v3901_v20 }
 0x17e   : > { %v1696_v33 = vrot.slane %v1630_v58, 1  ;;  %v1697_v17 = vrot.slane %v1632_v29, 1  ;;  %v1702_v25 = vrot.slane %v1634_v37, 1  ;;  %v1703_v49 = vrot.slane %v1636_v21, 1  ;;  %v4747_v58 = vld [vmem:[#allocation19_spill] sm:$0xff]  ;;  %v4748_v29 = vld [vmem:[#allocation36_spill] sm:$0xff] }
 0x17f   : > { %v1708_v28 = vrot.slane %v1638_v57, 1  ;;  %v1709_v19 = vrot.slane %v1640_v5, 1  ;;  %v1714_v47 = vrot.slane %v1642_v63, 1  ;;  %v1715_v9 = vrot.slane %v1644_v34, 1  ;;  %v4749_v37 = vld [vmem:[#allocation13_spill] sm:$0xff]  ;;  %v4751_v63 = vld [vmem:[#allocation48_spill] sm:$0xff] }
 0x180   : > { %v1720_v50 = vrot.slane %v1646_v13, 1  ;;  %v1698_v54 = vsel %vm973_vm4, %v1696_v33, %v1697_v17  ;;  %v1704_v23 = vsel %vm973_vm4, %v1702_v25, %v1703_v49  ;;  %v1721_v7 = vrot.slane %v1648_v2, 1  ;;  %v4750_v57 = vld [vmem:[#allocation37_spill] sm:$0xff] }
 0x181   : > { %v1726_v56 = vrot.slane %v1650_v51, 1  ;;  %v1710_v16 = vsel %vm973_vm4, %v1708_v28, %v1709_v19  ;;  %v1716_v43 = vsel %vm973_vm4, %v1714_v47, %v1715_v9  ;;  %v1727_v20 = vrot.slane %v1652_v45, 1 }
 0x182   : > { %v1732_v24 = vrot.slane %v1654_v6, 1  ;;  %v1722_v8 = vsel %vm973_vm4, %v1720_v50, %v1721_v7  ;;  %v1733_v60 = vrot.slane %v1656_v62, 1  ;;  %v1758_v55 = vadd.f32 %v1698_v54, %v1601_v31 }
 0x183   : > { %v1760_v40 = vadd.f32 %v1704_v23, %v1603_v0  ;;  %v1728_v1 = vsel %vm973_vm4, %v1726_v56, %v1727_v20  ;;  %v1762_v41 = vadd.f32 %v1710_v16, %v1605_v11  ;;  %v1764_v38 = vadd.f32 %v1716_v43, %v1607_v27  ;;  %v4752_v0 = vld [vmem:[#allocation52_spill] sm:$0xff]  ;;  %v2863_v20 = vld [vmem:[%s4494_s4] sm:$0x3] }
 0x184   : > { %v1766_v3 = vadd.f32 %v1722_v8, %v1609_v36  ;;  %v1734_v42 = vsel %vm973_vm4, %v1732_v24, %v1733_v60  ;;  %v1768_v61 = vadd.f32 %v1728_v1, %v1611_v35  ;;  %v1772_v59 = vadd.f32 %v4747_v58, %v1615_v53  ;;  %v4753_v16 = vld [vmem:[#allocation20_spill] sm:$0xff]  ;;  %v4755_v60 = vld [vmem:[#allocation85_spill] sm:$0xff] }
 0x185   : > { %v1787_v22 = vmul.f32 %v4749_v37, %v4748_v29  ;;  %v1770_v21 = vadd.f32 %v1734_v42, %v1613_v15  ;;  %v1789_v5 = vmul.f32 %v4749_v37, %v4750_v57  ;;  %v1791_v31 = vmul.f32 %v4749_v37, %v4751_v63  ;;  %v4754_v24 = vld [vmem:[#allocation4_spill] sm:$0xff]  ;;  %v4763_v29 = vld [vmem:[#allocation55_spill] sm:$0xff]  ;;  %v4767_v57 = vld [vmem:[#allocation69_spill] sm:$0xff] }
 0x186   : > { %v1793_v11 = vmul.f32 %v4749_v37, %v4752_v0  ;;  %v1795_v27 = vmul.f32 %v4749_v37, %v3602_v18  ;;  %v1797_v36 = vmul.f32 %v4749_v37, %v3604_v26  ;;  %v1799_v53 = vmul.f32 %v4749_v37, %v3780_v30  ;;  %v4759_v42 = vld [vmem:[#allocation96_spill] sm:$0xff] }
 0x187   : > { %v1801_v35 = vmul.f32 %v4749_v37, %v3783_v52  ;;  %v1803_v15 = vmul.f32 %v4749_v37, %v3787_v4  ;;  %v1805_v34 = vmul.f32 %v4749_v37, %v3789_v44  ;;  %v1807_v13 = vmul.f32 %v4749_v37, %v3905_v10  ;;  %v4769_v63 = vld [vmem:[#allocation68_spill] sm:$0xff] }
 0x188   : > { %v1809_v18 = vmul.f32 %v4749_v37, %v3907_v32  ;;  %v1811_v26 = vmul.f32 %v4749_v37, %v3938_v46  ;;  %v1813_v30 = vmul.f32 %v4749_v37, %v3940_v39  ;;  %v1853_v2 = vrot.slane %v1787_v22, 2  ;;  %v4765_v37 = vld [vmem:[#allocation54_spill] sm:$0xff] }
 0x189   : > { %v1854_v52 = vrot.slane %v1789_v5, 2  ;;  %v1859_v48 = vrot.slane %v1791_v31, 2  ;;  %v1860_v51 = vrot.slane %v1793_v11, 2  ;;  %v1865_v4 = vrot.slane %v1795_v27, 2 }
 0x18a   : > { %v1866_v12 = vrot.slane %v1797_v36, 2  ;;  %v1871_v45 = vrot.slane %v1799_v53, 2  ;;  %v1872_v14 = vrot.slane %v1801_v35, 2  ;;  %v1877_v10 = vrot.slane %v1803_v15, 2 }
 0x18b   : > { %v1855_v44 = vsel %vm1131_vm5, %v1853_v2, %v1854_v52  ;;  %v1861_v6 = vsel %vm1131_vm5, %v1859_v48, %v1860_v51  ;;  %v1878_v62 = vrot.slane %v1805_v34, 2  ;;  %v1883_v46 = vrot.slane %v1807_v13, 2  ;;  %v4771_v2 = vld [vmem:[#allocation83_spill] sm:$0xff] }
 0x18c   : > { %v1867_v32 = vsel %vm1131_vm5, %v1865_v4, %v1866_v12  ;;  %v1873_v33 = vsel %vm1131_vm5, %v1871_v45, %v1872_v14  ;;  %v1884_v39 = vrot.slane %v1809_v18, 2  ;;  %v1889_v17 = vrot.slane %v1811_v26, 2  ;;  %v4772_v12 = vld [vmem:[#allocation94_spill] sm:$0xff] }
 0x18d   : > { %v1890_v25 = vrot.slane %v1813_v30, 2  ;;  %v1879_v49 = vsel %vm1131_vm5, %v1877_v10, %v1878_v62  ;;  %v1915_v28 = vadd.f32 %v1855_v44, %v1758_v55  ;;  %v1917_v19 = vadd.f32 %v1861_v6, %v1760_v40  ;;  %v4757_v40 = vld [vmem:[#allocation84_spill] sm:$0xff]  ;;  %v4123_v10 = vld [vmem:[#allocation2 + $0x100] sm:$0xff]  ;;  %v4775_v62 = vld [vmem:[#allocation86_spill] sm:$0xff] }
 0x18e   : > { %v1919_v47 = vadd.f32 %v1867_v32, %v1762_v41  ;;  %v1885_v9 = vsel %vm1131_vm5, %v1883_v46, %v1884_v39  ;;  %v1921_v54 = vadd.f32 %v1873_v33, %v1764_v38  ;;  %v1923_v23 = vadd.f32 %v1879_v49, %v1766_v3  ;;  %v4761_v38 = vld [vmem:[#allocation95_spill] sm:$0xff] }
 0x18f   : > { %v1891_v50 = vsel %vm1131_vm5, %v1889_v17, %v1890_v25  ;;  %v1925_v7 = vadd.f32 %v1885_v9, %v1768_v61  ;;  %v1929_v43 = vadd.f32 %v4753_v16, %v1772_v59  ;;  %v1939_v8 = vrot.slane %v2863_v20, %v4754_v24  ;;  %v4773_v6 = vld [vmem:[#allocation87_spill] sm:$0xff]  ;;  %v4132_v17 = vld [vmem:[#allocation2 + $0x110] sm:$0x1]  ;;  %v4781_v9 = vld [vmem:[#allocation62_spill] sm:$0xff] }
 0x190   : > { %v1927_v56 = vadd.f32 %v1891_v50, %v1770_v21  ;;  %v4756_v55 = vrot.slane %v4755_v60, 1  ;;  %v4758_v1 = vrot.slane %v4757_v40, 1  ;;  %v4760_v58 = vrot.slane %v4759_v42, 1  ;;  %v4130_v39 = vld [vmem:[#allocation2 + $0x100] sm:$0xfe]  ;;  %v4783_v16 = vld [vmem:[#allocation8_spill] sm:$0xff] }
 0x191   : > { %v4762_v3 = vrot.slane %v4761_v38, 1  ;;  %v4764_v59 = vrot.slane %v4763_v29, 2  ;;  %v4766_v22 = vrot.slane %v4765_v37, 2  ;;  %v4768_v5 = vrot.slane %v4767_v57, 2  ;;  %v4777_v25 = vld [vmem:[#allocation99_spill] sm:$0xff]  ;;  %v4785_v60 = vld [vmem:[#allocation70_spill] sm:$0xff] }
 0x192   : > { %v1012_v41 = vsel %vm973_vm4, %v4758_v1, %v4756_v55  ;;  %v4770_v31 = vrot.slane %v4769_v63, 2  ;;  %v4097_v11 = vadd.f32 %v1939_v8, %v1915_v28  ;;  %v4099_v27 = vadd.f32 %v1939_v8, %v1917_v19  ;;  %v4779_v28 = vld [vmem:[#allocation98_spill] sm:$0xff]  ;;  %v4786_v40 = vld [vmem:[#allocation88_spill] sm:$0xff] }
 0x193   : > { %v1018_v61 = vsel %vm973_vm4, %v4762_v3, %v4760_v58  ;;  %v1158_v21 = vsel %vm1131_vm5, %v4766_v22, %v4764_v59  ;;  %v4101_v36 = vadd.f32 %v1939_v8, %v1919_v47  ;;  %v4103_v53 = vadd.f32 %v1939_v8, %v1921_v54  ;;  %v4782_v54 = vld [vmem:[#allocation79_spill] sm:$0xff]  ;;  %v4787_v42 = vld [vmem:[#allocation6_spill] sm:$0xff]  ;;  %v4790_v59 = vld [vmem:[#allocation41_spill] sm:$0xff] }
 0x194   : > { %v1164_v0 = vsel %vm1131_vm5, %v4770_v31, %v4768_v5  ;;  %v4105_v35 = vadd.f32 %v1939_v8, %v1923_v23  ;;  %v4107_v15 = vadd.f32 %v1939_v8, %v1925_v7  ;;  %v4109_v34 = vadd.f32 %v1939_v8, %v1927_v56  ;;  %v4794_v5 = vld [vmem:[#allocation56_spill] sm:$0xff] }
 0x195   : > { %v4111_v13 = vadd.f32 %v1939_v8, %v1929_v43  ;;  %v2630_v18 = vmul.f32 -1.442695, %v4097_v11  ;;  %v2632_v26 = vmul.f32 -1.442695, %v4099_v27  ;;  %v2634_v30 = vmul.f32 -1.442695, %v4101_v36 }
 0x196   : > { %v1050_v52 = vadd.f32 %v1012_v41, %v4771_v2  ;;  %v2636_v48 = vmul.f32 -1.442695, %v4103_v53  ;;  %v2638_v51 = vmul.f32 -1.442695, %v4105_v35  ;;  %v2640_v4 = vmul.f32 -1.442695, %v4107_v15 }
 0x197   : > { %v1052_v44 = vadd.f32 %v1018_v61, %v4772_v12  ;;  %2787 = vpow2.f32 %v2630_v18  ;;  %v2642_v45 = vmul.f32 -1.442695, %v4109_v34  ;;  %v2644_v14 = vmul.f32 -1.442695, %v4111_v13  ;;  %v4784_v43 = vld [vmem:[#allocation5_spill] sm:$0xff]  ;;  %v4788_v61 = vld [vmem:[#allocation42_spill] sm:$0xff] }
 0x198   : > { %v4774_v32 = vrot.slane %v4773_v6, 2  ;;  %v4776_v46 = vrot.slane %v4775_v62, 2  ;;  %2789 = vpow2.f32 %v2632_v26  ;;  %v4778_v49 = vrot.slane %v4777_v25, 2  ;;  %v4796_v18 = vld [vmem:[#allocation72_spill] sm:$0xff]  ;;  %v4806_v62 = vld [vmem:[#allocation97_spill] sm:$0xff] }
 0x199   : > { %v4780_v19 = vrot.slane %v4779_v28, 2  ;;  %v1204_v50 = vadd.f32 %v1158_v21, %v4781_v9  ;;  %v1206_v23 = vadd.f32 %v1164_v0, %v4782_v54  ;;  %2791 = vpow2.f32 %v2634_v30  ;;  %v4792_v21 = vld [vmem:[#allocation57_spill] sm:$0xff]  ;;  %v4161_v0 = vld [vmem:[#allocation2 + $0x100] sm:$0xfc]  ;;  %v4804_v6 = vld [vmem:[#allocation100_spill] sm:$0xff] }
 0x19a   : > { %v1170_v33 = vsel %vm1131_vm5, %v4776_v46, %v4774_v32  ;;  %v1237_v20 = vmul.f32 %v4784_v43, %v4783_v16  ;;  %2793 = vpow2.f32 %v2636_v48  ;;  %v1239_v8 = vmul.f32 %v4784_v43, %v4123_v10  ;;  %v4798_v30 = vld [vmem:[#allocation71_spill] sm:$0xff]  ;;  %v4800_v48 = vld [vmem:[#allocation90_spill] sm:$0xff]  ;;  %v4808_v28 = vld [vmem:[#allocation44_spill] sm:$0xff] }
 0x19b   : > { %v1176_v47 = vsel %vm1131_vm5, %v4780_v19, %v4778_v49  ;;  %v1208_v7 = vadd.f32 %v1170_v33, %v1050_v52  ;;  %v1249_v55 = vadd.f32 %v4785_v60, %v1204_v50  ;;  %v1251_v1 = vadd.f32 %v4786_v40, %v1206_v23  ;;  %v4178_v33 = vld [vmem:[#allocation2 + $0x110] sm:$0x3]  ;;  %v4811_v43 = vld [vmem:[#allocation7_spill] sm:$0xff] }
 0x19c   : > { %v1210_v56 = vadd.f32 %v1176_v47, %v1052_v44  ;;  %2795 = vpow2.f32 %v2638_v51  ;;  %v1298_v58 = vmul.f32 %v4787_v42, %v4130_v39  ;;  %v1300_v38 = vmul.f32 %v4787_v42, %v4132_v17  ;;  %v4809_v47 = vld [vmem:[#allocation58_spill] sm:$0xff] }
 0x19d   : > { %v1253_v41 = vadd.f32 %v1237_v20, %v1208_v7  ;;  %2797 = vpow2.f32 %v2640_v4  ;;  %v4789_v29 = vrot.slane %v4788_v61, 1  ;;  %v4791_v37 = vrot.slane %v4790_v59, 1  ;;  %v4802_v4 = vld [vmem:[#allocation89_spill] sm:$0xff] }
 0x19e   : > { %v1255_v3 = vadd.f32 %v1239_v8, %v1210_v56  ;;  %v4793_v57 = vrot.slane %v4792_v21, 1  ;;  %v4795_v63 = vrot.slane %v4794_v5, 1  ;;  %2799 = vpow2.f32 %v2642_v45  ;;  %v4810_v56 = vld [vmem:[#allocation11_spill] sm:$0xff]  ;;  %v4812_v8 = vld [vmem:[#allocation93_spill] sm:$0xff] }
 0x19f   : > { %v1348_v22 = vsel %vm973_vm4, %v4791_v37, %v4789_v29  ;;  %v4797_v26 = vrot.slane %v4796_v18, 1  ;;  %v4799_v2 = vrot.slane %v4798_v30, 1  ;;  %v4801_v51 = vrot.slane %v4800_v48, 1  ;;  %v4817_v29 = vld [vmem:[#allocation45_spill] sm:$0xff]  ;;  %v4819_v37 = vld [vmem:[#allocation43_spill] sm:$0xff]  ;;  %v4825_v30 = vld [vmem:[#allocation74_spill] sm:$0xff] }
 0x1a0   : > { %v1354_v31 = vsel %vm973_vm4, %v4795_v63, %v4793_v57  ;;  %v4803_v12 = vrot.slane %v4802_v4, 1  ;;  %v4805_v32 = vrot.slane %v4804_v6, 1  ;;  %v4807_v46 = vrot.slane %v4806_v62, 1  ;;  %v4821_v63 = vld [vmem:[#allocation60_spill] sm:$0xff] }
 0x1a1   : > { %v1360_v52 = vsel %vm973_vm4, %v4799_v2, %v4797_v26  ;;  %2801 = vpow2.f32 %v2644_v14  ;;  %v1376_v25 = vrot.slane %v1298_v58, 1  ;;  %v1377_v49 = vrot.slane %v1300_v38, 1  ;;  %v2788_v40 = vpop.eup %2787  ;;  %v4813_v38 = vld [vmem:[#allocation27_spill] sm:$0xff]  ;;  %v4829_v4 = vld [vmem:[#allocation92_spill] sm:$0xff] }
 0x1a2   : > { %v1366_v44 = vsel %vm973_vm4, %v4803_v12, %v4801_v51  ;;  %v1372_v45 = vsel %vm973_vm4, %v4807_v46, %v4805_v32  ;;  %v1402_v19 = vadd.f32 %v1348_v22, %v4808_v28  ;;  %v1404_v9 = vadd.f32 %v1354_v31, %v4809_v47  ;;  %v2790_v57 = vpop.eup %2789 }
 0x1a3   : > { %v1406_v50 = vadd.f32 %v1360_v52, %v1249_v55  ;;  %v1408_v54 = vadd.f32 %v1366_v44, %v1251_v1  ;;  %v1410_v23 = vadd.f32 %v1372_v45, %v1253_v41  ;;  %v1378_v7 = vsel %vm973_vm4, %v1376_v25, %v1377_v49  ;;  %v4815_v1 = vld [vmem:[#allocation26_spill] sm:$0xff]  ;;  %v4827_v52 = vld [vmem:[#allocation73_spill] sm:$0xff]  ;;  %v4831_v44 = vld [vmem:[#allocation91_spill] sm:$0xff]  ;;  %v2792_v62 = vpop.eup %2791 }
 0x1a4   : > { %v1451_v20 = vmul.f32 %v4811_v43, %v4810_v56  ;;  %v1453_v60 = vmul.f32 %v4811_v43, %v4812_v8  ;;  %v1455_v14 = vmul.f32 %v4811_v43, %v4161_v0  ;;  %v1412_v42 = vadd.f32 %v1378_v7, %v1255_v3  ;;  %v4823_v3 = vld [vmem:[#allocation59_spill] sm:$0xff]  ;;  %v2794_v28 = vpop.eup %2793 }
 0x1a5   : > { %v1457_v58 = vmul.f32 %v4811_v43, %v4178_v33  ;;  %v4814_v55 = vrot.slane %v4813_v38, 2  ;;  %v4816_v41 = vrot.slane %v4815_v1, 2  ;;  %v4818_v59 = vrot.slane %v4817_v29, 2  ;;  %v4833_v43 = vld [vmem:[#allocation22_spill] sm:$0xff] }
 0x1a6   : > { %v4820_v22 = vrot.slane %v4819_v37, 2  ;;  %v2007_v5 = vadd.f32 1.0, %v2788_v40  ;;  %v4822_v31 = vrot.slane %v4821_v63, 2  ;;  %v4824_v18 = vrot.slane %v4823_v3, 2  ;;  %v4834_v40 = vld [vmem:[#allocation23_spill] sm:$0xff]  ;;  %v4835_v29 = vld [vmem:[#allocation38_spill] sm:$0xff] }
 0x1a7   : > { %v1499_v61 = vsel %vm1131_vm5, %v4816_v41, %v4814_v55  ;;  %v4826_v2 = vrot.slane %v4825_v30, 2  ;;  %v4828_v48 = vrot.slane %v4827_v52, 2  ;;  %v4830_v12 = vrot.slane %v4829_v4, 2  ;;  %v2796_v55 = vpop.eup %2795  ;;  %v4837_v52 = vld [vmem:[#allocation15_spill] sm:$0xff]  ;;  %v4838_v4 = vld [vmem:[#allocation76_spill] sm:$0xff] }
 0x1a8   : > { %v1505_v21 = vsel %vm1131_vm5, %v4820_v22, %v4818_v59  ;;  %v1511_v26 = vsel %vm1131_vm5, %v4824_v18, %v4822_v31  ;;  %v4832_v6 = vrot.slane %v4831_v44, 2  ;;  %v2009_v46 = vadd.f32 1.0, %v2790_v57  ;;  %v2798_v37 = vpop.eup %2797  ;;  %v826_v44 = vld [vmem:[#allocation2 + $0x130] sm:$0x1] }
 0x1a9   : > { %v1517_v51 = vsel %vm1131_vm5, %v4828_v48, %v4826_v2  ;;  %v1527_v45 = vrot.slane %v1451_v20, 2  ;;  %v1528_v25 = vrot.slane %v1453_v60, 2  ;;  %v1533_v49 = vrot.slane %v1455_v14, 2  ;;  %v2800_v14 = vpop.eup %2799 }
 0x1aa   : > { %v1523_v32 = vsel %vm1131_vm5, %v4832_v6, %v4830_v12  ;;  %v2011_v47 = vadd.f32 1.0, %v2792_v62  ;;  %2803 = vrcp.f32 %v2007_v5  ;;  %v1534_v7 = vrot.slane %v1457_v58, 2  ;;  %v824_v12 = vld [vmem:[#allocation2 + $0x120] sm:$0xfe]  ;;  %v4841_v6 = vld [vmem:[#allocation61_spill] sm:$0xff] }
 0x1ab   : > { %v1555_v38 = vadd.f32 %v4834_v40, %v4833_v43  ;;  %v2013_v1 = vadd.f32 1.0, %v2794_v28  ;;  %2805 = vrcp.f32 %v2009_v46  ;;  %v1529_v41 = vsel %vm1131_vm5, %v1527_v45, %v1528_v25  ;;  %v2802_v63 = vpop.eup %2801  ;;  %v4843_v28 = vld [vmem:[#allocation16_spill] sm:$0xff]  ;;  %v4845_v40 = vld [vmem:[#allocation9_spill] sm:$0xff] }
 0x1ac   : > { %v1557_v59 = vadd.f32 %v1499_v61, %v4835_v29  ;;  %v2015_v22 = vadd.f32 1.0, %v2796_v55  ;;  %2807 = vrcp.f32 %v2011_v47  ;;  %v1535_v20 = vsel %vm1131_vm5, %v1533_v49, %v1534_v7  ;;  %v4836_v61 = vld [vmem:[#allocation67_spill] sm:$0xff]  ;;  %v4842_v49 = vld [vmem:[#allocation77_spill] sm:$0xff]  ;;  %v4844_v47 = vld [vmem:[#allocation78_spill] sm:$0xff] }
 0x1ad   : > { %v1559_v60 = vadd.f32 %v1505_v21, %v1402_v19  ;;  %v2017_v57 = vadd.f32 1.0, %v2798_v37  ;;  %2809 = vrcp.f32 %v2013_v1  ;;  %v1561_v58 = vadd.f32 %v1511_v26, %v1404_v9  ;;  %v4846_v55 = vld [vmem:[#allocation10_spill] sm:$0xff] }
 0x1ae   : > { %v1563_v5 = vadd.f32 %v1517_v51, %v1406_v50  ;;  %v2019_v31 = vadd.f32 1.0, %v2800_v14  ;;  %2811 = vrcp.f32 %v2015_v22  ;;  %v1565_v3 = vadd.f32 %v1523_v32, %v1408_v54  ;;  %v2864_v50 = vld [vmem:[#allocation2] sm:$0xff] }
 0x1af   : > { %v1567_v18 = vadd.f32 %v1529_v41, %v1410_v23  ;;  %v2021_v30 = vadd.f32 1.0, %v2802_v63  ;;  %2813 = vrcp.f32 %v2017_v57  ;;  %v1569_v2 = vadd.f32 %v1535_v20, %v1412_v42  ;;  %v4839_v23 = vld [vmem:[#allocation28_spill] sm:$0xff]  ;;  %v4840_v42 = vld [vmem:[#allocation47_spill] sm:$0xff]  ;;  %v4849_v57 = vld [vmem:[#allocation30_spill] sm:$0xff] }
 0x1b0   : > { %v1590_v48 = vmul.f32 %v4837_v52, %v4836_v61  ;;  %2815 = vrcp.f32 %v2019_v31  ;;  %v1592_v19 = vmul.f32 %v4837_v52, %v4838_v4  ;;  %v1594_v21 = vmul.f32 %v4837_v52, %v4783_v16  ;;  %v4851_v31 = vld [vmem:[#allocation50_spill] sm:$0xff]  ;;  %v4857_v61 = vld [vmem:[#allocation63_spill] sm:$0xff]  ;;  %v4859_v4 = vld [vmem:[#allocation80_spill] sm:$0xff] }
 0x1b1   : > { %v1596_v9 = vmul.f32 %v4837_v52, %v4123_v10  ;;  %2817 = vrcp.f32 %v2021_v30  ;;  %v1598_v54 = vmul.f32 %v2864_v50, %v4837_v52  ;;  %v1600_v26 = vadd.f32 %v4839_v23, %v1555_v38  ;;  %v4855_v30 = vld [vmem:[#allocation64_spill] sm:$0xff] }
 0x1b2   : > { %v1602_v51 = vadd.f32 %v4840_v42, %v1557_v59  ;;  %v1604_v32 = vadd.f32 %v4841_v6, %v1559_v60  ;;  %v1606_v62 = vadd.f32 %v1590_v48, %v1561_v58  ;;  %v1608_v46 = vadd.f32 %v1592_v19, %v1563_v5  ;;  %v4847_v60 = vld [vmem:[#allocation31_spill] sm:$0xff] }
 0x1b3   : > { %v1610_v45 = vadd.f32 %v1594_v21, %v1565_v3  ;;  %v1612_v25 = vadd.f32 %v1596_v9, %v1567_v18  ;;  %v1614_v16 = vadd.f32 %v1598_v54, %v1569_v2  ;;  %v1645_v10 = vmul.f32 %v4843_v28, %v4842_v49  ;;  %v4853_v3 = vld [vmem:[#allocation49_spill] sm:$0xff]  ;;  %v4861_v21 = vld [vmem:[#allocation75_spill] sm:$0xff] }
 0x1b4   : > { %v1647_v7 = vmul.f32 %v4843_v28, %v4844_v47  ;;  %v2804_v43 = vpop.eup %2803  ;;  %v1649_v38 = vmul.f32 %v4843_v28, %v4845_v40  ;;  %v1651_v1 = vmul.f32 %v4843_v28, %v4846_v55  ;;  %v1653_v41 = vmul.f32 %v4843_v28, %v4130_v39 }
 0x1b5   : > { %v1655_v29 = vmul.f32 %v4843_v28, %v4132_v17  ;;  %v2806_v59 = vpop.eup %2805  ;;  %v4246_v37 = vmul.f32 %v2804_v43, %v4097_v11  ;;  %v1657_v22 = vmul.f32 %v4843_v28, %v824_v12  ;;  %v1659_v20 = vmul.f32 %v4843_v28, %v826_v44 }
 0x1b6   : > { %v4848_v14 = vrot.slane %v4847_v60, 1  ;;  %v4850_v58 = vrot.slane %v4849_v57, 1  ;;  %v2808_v63 = vpop.eup %2807  ;;  %v4256_v39 = vmul.f32 %v2806_v59, %v4099_v27  ;;  %v4852_v17 = vrot.slane %v4851_v31, 1 }
 0x1b7   : > { %v4854_v18 = vrot.slane %v4853_v3, 1  ;;  %v4856_v2 = vrot.slane %v4855_v30, 1  ;;  %v4858_v52 = vrot.slane %v4857_v61, 1  ;;  %v4860_v19 = vrot.slane %v4859_v4, 1  ;;  %v2810_v27 = vpop.eup %2809 }
 0x1b8   : > { %v1695_v5 = vsel %vm973_vm4, %v4850_v58, %v4848_v14  ;;  %v4862_v9 = vrot.slane %v4861_v21, 1  ;;  %v4274_v54 = vmul.f32 %v2808_v63, %v4101_v36  ;;  %v2083_v23 = vsel %vm644_vm2, %v4246_v37, 0.0  ;;  %v2812_v44 = vpop.eup %2811 }
 0x1b9   : > { %v1701_v11 = vsel %vm973_vm4, %v4854_v18, %v4852_v17  ;;  %v1707_v48 = vsel %vm973_vm4, %v4858_v52, %v4856_v2  ;;  %v1717_v42 = vrot.slane %v1645_v10, 1  ;;  %v1718_v12 = vrot.slane %v1647_v7, 1  ;;  %v2814_v43 = vpop.eup %2813  ;;  %v864_v52 = vld [vmem:[#allocation2 + $0x120] sm:$0xfc] }
 0x1ba   : > { %v1713_v50 = vsel %vm973_vm4, %v4862_v9, %v4860_v19  ;;  %v4279_v6 = vmul.f32 %v2810_v27, %v4103_v53  ;;  %v2084_v49 = vsel %vm644_vm2, %v4256_v39, 0.0  ;;  %v1723_v28 = vrot.slane %v1649_v38, 1  ;;  %v2816_v7 = vpop.eup %2815  ;;  %v2865_v27 = vld [vmem:[#allocation2 + $0xa0] sm:$0xfc] }
 0x1bb   : > { %v1724_v47 = vrot.slane %v1651_v1, 1  ;;  %v4284_v40 = vmul.f32 %v2812_v44, %v4105_v35  ;;  %v2085_v36 = vadd.f32 %v2084_v49, %v2083_v23  ;;  %v2086_v55 = vsel %vm644_vm2, %v4274_v54, 0.0  ;;  %v2818_v60 = vpop.eup %2817  ;;  %v4863_v23 = vld [vmem:[#allocation17_spill] sm:$0xff] }
 0x1bc   : > { %v1719_v10 = vsel %vm973_vm4, %v1717_v42, %v1718_v12  ;;  %v4290_v59 = vmul.f32 %v2814_v43, %v4107_v15  ;;  %v2088_v53 = vsel %vm644_vm2, %v4279_v6, 0.0  ;;  %v1729_v1 = vrot.slane %v1653_v41, 1  ;;  %v2866_v12 = vld [vmem:[#allocation2 + $0xb0] sm:$0x3] }
 0x1bd   : > { %v1725_v38 = vsel %vm973_vm4, %v1723_v28, %v1724_v47  ;;  %v4296_v35 = vmul.f32 %v2816_v7, %v4109_v34  ;;  %v2087_v14 = vadd.f32 %v2086_v55, %v2085_v36  ;;  %v2090_v57 = vsel %vm644_vm2, %v4284_v40, 0.0  ;;  %v4864_v44 = vld [vmem:[#allocation81_spill] sm:$0xff]  ;;  %v4868_v47 = vld [vmem:[#allocation34_spill] sm:$0xff] }
 0x1be   : > { %v1730_v58 = vrot.slane %v1655_v29, 1  ;;  %v4301_v63 = vmul.f32 %v2818_v60, %v4111_v13  ;;  %v2092_v15 = vsel %vm644_vm2, %v4290_v59, 0.0  ;;  %v1735_v31 = vrot.slane %v1657_v22, 1  ;;  %v4870_v36 = vld [vmem:[#allocation53_spill] sm:$0xff]  ;;  %v4874_v7 = vld [vmem:[#allocation66_spill] sm:$0xff] }
 0x1bf   : > { %v1736_v17 = vrot.slane %v1659_v20, 1  ;;  %v2089_v3 = vadd.f32 %v2088_v53, %v2087_v14  ;;  %v2094_v41 = vsel %vm644_vm2, %v4296_v35, 0.0  ;;  %v1757_v18 = vadd.f32 %v1695_v5, %v1600_v26  ;;  %v866_v20 = vld [vmem:[#allocation2 + $0x130] sm:$0x3] }
 0x1c0   : > { %v1731_v34 = vsel %vm973_vm4, %v1729_v1, %v1730_v58  ;;  %v2096_v30 = vsel %vm644_vm2, %v4301_v63, 0.0  ;;  %v1759_v2 = vadd.f32 %v1701_v11, %v1602_v51  ;;  %v1761_v13 = vadd.f32 %v1707_v48, %v1604_v32  ;;  %v4865_v51 = vld [vmem:[#allocation82_spill] sm:$0xff] }
 0x1c1   : > { %v1737_v29 = vsel %vm973_vm4, %v1735_v31, %v1736_v17  ;;  %v2091_v61 = vadd.f32 %v2090_v57, %v2089_v3  ;;  %v1763_v4 = vadd.f32 %v1713_v50, %v1606_v62  ;;  %v1765_v19 = vadd.f32 %v1719_v10, %v1608_v46  ;;  %v4866_v50 = vld [vmem:[#allocation35_spill] sm:$0xff] }
 0x1c2   : > { %v1767_v22 = vadd.f32 %v1725_v38, %v1610_v45  ;;  %v1769_v21 = vadd.f32 %v1731_v34, %v1612_v25  ;;  %v1771_v9 = vadd.f32 %v1737_v29, %v1614_v16  ;;  %v1798_v42 = vmul.f32 %v2865_v27, %v4863_v23 }
 0x1c3   : > { %v1800_v26 = vmul.f32 %v2866_v12, %v4863_v23  ;;  %v2093_v5 = vadd.f32 %v2092_v15, %v2091_v61  ;;  %v1802_v49 = vmul.f32 %v4863_v23, %v4864_v44  ;;  %v1804_v32 = vmul.f32 %v4863_v23, %v4865_v51 }
 0x1c4   : > { %v1806_v62 = vmul.f32 %v4863_v23, %v4810_v56  ;;  %v1808_v46 = vmul.f32 %v4863_v23, %v4812_v8  ;;  %v1810_v45 = vmul.f32 %v4863_v23, %v4161_v0  ;;  %v1812_v25 = vmul.f32 %v4863_v23, %v4178_v33  ;;  %v4872_v8 = vld [vmem:[#allocation51_spill] sm:$0xff]  ;;  %v4876_v33 = vld [vmem:[#allocation65_spill] sm:$0xff] }
 0x1c5   : > { %v1814_v16 = vmul.f32 %v4863_v23, %v864_v52  ;;  %v2095_v11 = vadd.f32 %v2094_v41, %v2093_v5  ;;  %v1816_v48 = vmul.f32 %v4863_v23, %v866_v20  ;;  %v4867_v28 = vrot.slane %v4866_v50, 2 }
 0x1c6   : > { %v4869_v43 = vrot.slane %v4868_v47, 2  ;;  %v4871_v55 = vrot.slane %v4870_v36, 2  ;;  %v4873_v10 = vrot.slane %v4872_v8, 2  ;;  %v4875_v53 = vrot.slane %v4874_v7, 2 }
 0x1c7   : > { %v4877_v38 = vrot.slane %v4876_v33, 2  ;;  %v1868_v60 = vrot.slane %v1798_v42, 2  ;;  %v1869_v14 = vrot.slane %v1800_v26, 2  ;;  %v1874_v57 = vrot.slane %v1802_v49, 2 }
 0x1c8   : > { %v1852_v56 = vsel %vm1131_vm5, %v4869_v43, %v4867_v28  ;;  %v1858_v0 = vsel %vm1131_vm5, %v4873_v10, %v4871_v55  ;;  %v2097_v58 = vadd.f32 %v2096_v30, %v2095_v11  ;;  %v1875_v15 = vrot.slane %v1804_v32, 2 }
 0x1c9   : > { %v1864_v1 = vsel %vm1131_vm5, %v4877_v38, %v4875_v53  ;;  %v1880_v31 = vrot.slane %v1806_v62, 2  ;;  %v1881_v17 = vrot.slane %v1808_v46, 2  ;;  %v1870_v3 = vsel %vm1131_vm5, %v1868_v60, %v1869_v14  ;;  %v4878_v46 = vld [vmem:[#allocation21_spill] sm:$0xff] }
 0x1ca   : > { %v1886_v41 = vrot.slane %v1810_v45, 2  ;;  %v1887_v34 = vrot.slane %v1812_v25, 2  ;;  %v1892_v29 = vrot.slane %v1814_v16, 2  ;;  %v2098_v61 = vrot.slane %v2097_v58, 4 }
 0x1cb   : > { %v1876_v52 = vsel %vm1131_vm5, %v1874_v57, %v1875_v15  ;;  %v1882_v20 = vsel %vm1131_vm5, %v1880_v31, %v1881_v17  ;;  %v1893_v27 = vrot.slane %v1816_v48, 2  ;;  %v1914_v42 = vadd.f32 %v1852_v56, %v1757_v18 }
 0x1cc   : > { %v1888_v23 = vsel %vm1131_vm5, %v1886_v41, %v1887_v34  ;;  %v1916_v12 = vadd.f32 %v1858_v0, %v1759_v2  ;;  %v1918_v26 = vadd.f32 %v1864_v1, %v1761_v13  ;;  %v2099_v30 = vadd.f32 %v2098_v61, %v2097_v58 }
 0x1cd   : > { %v1894_v5 = vsel %vm1131_vm5, %v1892_v29, %v1893_v27  ;;  %v1920_v44 = vadd.f32 %v1870_v3, %v1763_v4  ;;  %v1922_v49 = vadd.f32 %v1876_v52, %v1765_v19  ;;  %v1924_v51 = vadd.f32 %v1882_v20, %v1767_v22 }
 0x1ce   : > { %v1926_v32 = vadd.f32 %v1888_v23, %v1769_v21  ;;  %v1928_v62 = vadd.f32 %v1894_v5, %v1771_v9  ;;  %v1942_v45 = vadd.f32 %v4878_v46, %v1914_v42  ;;  %v2100_v25 = vrot.slane %v2099_v30, 2 }
 0x1cf   : > { %v1944_v16 = vadd.f32 %v4878_v46, %v1916_v12  ;;  %v1946_v11 = vadd.f32 %v4878_v46, %v1918_v26  ;;  %v1948_v48 = vadd.f32 %v4878_v46, %v1920_v44  ;;  %v1950_v18 = vadd.f32 %v4878_v46, %v1922_v49 }
 0x1d0   : > { %v4353_v2 = vadd.f32 %v4878_v46, %v1924_v51  ;;  %v4356_v13 = vadd.f32 %v4878_v46, %v1926_v32  ;;  %v2101_v4 = vadd.f32 %v2100_v25, %v2099_v30  ;;  %v2629_v19 = vmul.f32 -1.442695, %v1942_v45 }
 0x1d1   : > { %v2631_v22 = vmul.f32 -1.442695, %v1944_v16  ;;  %v2633_v21 = vmul.f32 -1.442695, %v1946_v11  ;;  %v1956_v9 = vadd.f32 %v4878_v46, %v1928_v62  ;;  %v2635_v50 = vmul.f32 -1.442695, %v1948_v48 }
 0x1d2   : > { %v2102_v28 = vrot.slane %v2101_v4, 1  ;;  %2819 = vpow2.f32 %v2629_v19  ;;  %v2637_v47 = vmul.f32 -1.442695, %v1950_v18  ;;  %v2639_v43 = vmul.f32 -1.442695, %v4353_v2 }
 0x1d3   : > { %2821 = vpow2.f32 %v2631_v22  ;;  %v2641_v36 = vmul.f32 -1.442695, %v4356_v13  ;;  %v2643_v55 = vmul.f32 -1.442695, %v1956_v9 }
 0x1d4   : > { %v2103_v56 = vadd.f32 %v2102_v28, %v2101_v4  ;;  %2823 = vpow2.f32 %v2633_v21 }
 0x1d5   : > { %2825 = vpow2.f32 %v2635_v50 }
 0x1d6   : > { %v2106_v8 = vmul.f32 0.015625, %v2103_v56  ;;  %2827 = vpow2.f32 %v2637_v47 }
 0x1d7   : > { %2829 = vpow2.f32 %v2639_v43 }
 0x1d8   : > { %v2108_v10 = vpack.c.bf16 %v2106_v8, %v2106_v8  ;;  %2831 = vpow2.f32 %v2641_v36 }
 0x1d9   : > { %2833 = vpow2.f32 %v2643_v55  ;;  %v2127_v55 = vld [vmem:[%s4496_s6] sm:$0x1] }
 0x1da   : > { %2654 = vmatprep.mubr.msk.bf16.mxu0 %vm644_vm2, %v2108_v10 }
 0x1dc   : > { %v2820_v0 = vpop.eup %2819 }
 0x1dd   : > { %v2822_v7 = vpop.eup %2821  ;;  %v2006_v53 = vadd.f32 1.0, %v2820_v0 }
 0x1de   : > { %v2824_v33 = vpop.eup %2823  ;;  %v2008_v38 = vadd.f32 1.0, %v2822_v7 }
 0x1df   : > { %v2826_v1 = vpop.eup %2825  ;;  %v2010_v60 = vadd.f32 1.0, %v2824_v33  ;;  %2835 = vrcp.f32 %v2006_v53 }
 0x1e0   : > { %v2828_v14 = vpop.eup %2827  ;;  %v2012_v57 = vadd.f32 1.0, %v2826_v1  ;;  %2837 = vrcp.f32 %v2008_v38 }
 0x1e1   : > { %v2830_v58 = vpop.eup %2829  ;;  %v2014_v15 = vadd.f32 1.0, %v2828_v14  ;;  %2839 = vrcp.f32 %v2010_v60 }
 0x1e2   : > { %v2832_v31 = vpop.eup %2831  ;;  %v2016_v17 = vadd.f32 1.0, %v2830_v58  ;;  %2841 = vrcp.f32 %v2012_v57  ;;  %v2710_v58 = vld [vmem:[%s4499_s9] sm:$0xff]  }
 0x1e3   : > { %v2834_v3 = vpop.eup %2833  ;;  %v2018_v41 = vadd.f32 1.0, %v2832_v31  ;;  %2843 = vrcp.f32 %v2014_v15  ;;  %2439 = vmatpush1.bf16.msra.mxu1 %v2710_v58  ;;  %v2711_v15 = vld [vmem:[%s4499_s9 + $0x8] sm:$0xff]   ;;  %v2712_v31 = vld [vmem:[%s4499_s9 + $0x10] sm:$0xff]  }
 0x1e4   : > { %v2020_v34 = vadd.f32 1.0, %v2834_v3  ;;  %2845 = vrcp.f32 %v2016_v17  ;;  %v2713_v17 = vld [vmem:[%s4499_s9 + $0x18] sm:$0xff]   ;;  %v2714_v3 = vld [vmem:[%s4499_s9 + $0x20] sm:$0xff]  }
 0x1e5   : > { %2847 = vrcp.f32 %v2018_v41  ;;  %v2715_v41 = vld [vmem:[%s4499_s9 + $0x28] sm:$0xff]  }
 0x1e6   : > { %2849 = vrcp.f32 %v2020_v34  ;;  %v2716_v34 = vld [vmem:[%s4499_s9 + $0x30] sm:$0xff]  }
 0x1e9   : > { %v2836_v29 = vpop.eup %2835 }
 0x1ea   : > { %v2838_v61 = vpop.eup %2837  ;;  %v4362_v20 = vmul.f32 %v2836_v29, %v1942_v45  ;;  %v2717_v29 = vld [vmem:[%s4499_s9 + $0x38] sm:$0xff]  }
 0x1eb   : > { %v2840_v52 = vpop.eup %2839  ;;  %v4364_v27 = vmul.f32 %v2838_v61, %v1944_v16  ;;  %v2718_v61 = vld [vmem:[%s4499_s9 + $0x40] sm:$0xff]  }
 0x1ec   : > { %v2842_v23 = vpop.eup %2841  ;;  %v4366_v42 = vmul.f32 %v2840_v52, %v1946_v11  ;;  %v2234_v52 = vld [vmem:[%s4498_s8] sm:$0x3] }
 0x1ed   : > { %v2844_v12 = vpop.eup %2843  ;;  %v4368_v26 = vmul.f32 %v2842_v23, %v1948_v48  ;;  %v2070_v30 = vadd.f32 %v4364_v27, %v4362_v20  ;;  %v4880_v23 = vld [vmem:[#allocation3_spill] sm:$0xff] }
 0x1ee   : > { %v2846_v5 = vpop.eup %2845  ;;  %v4372_v44 = vmul.f32 %v2844_v12, %v1950_v18  ;;  %v2244_v12 = vrot.slane %v2234_v52, %v4880_v23 }
 0x1ef   : > { %v2071_v49 = vadd.f32 %v2070_v30, %v4366_v42  ;;  %v2848_v51 = vpop.eup %2847  ;;  %v4376_v32 = vmul.f32 %v2846_v5, %v4353_v2  ;;  %v2248_v30 = vrot.slane %v2234_v52, %v4754_v24 }
 0x1f0   : > { %v2850_v46 = vpop.eup %2849  ;;  %v4380_v45 = vmul.f32 %v2848_v51, %v4356_v13  ;;  %v4879_v13 = vmov 0  }
 0x1f1   : > { %v2072_v62 = vadd.f32 %v2071_v49, %v4368_v26  ;;  %v4383_v16 = vmul.f32 %v2850_v46, %v1956_v9  ;;  %v2233_v9 = vld [vmem:[%s4497_s7] sm:$0x77]  ;;  %2440 = vmatprep.subr.bf16.mxu1 %v4879_v13 }
 0x1f2   : > { %v2657_v43 = vcombine.high %v2233_v9, %v2233_v9  ;;  %v2656_v56 = vcombine.low %v2233_v9, %v2233_v9  ;;  %2441 = vmatpush1.bf16.msra.mxu1 %v2711_v15 }
 0x1f3   : > { %v2073_v25 = vadd.f32 %v2072_v62, %v4372_v44  ;;  %2442 = vmatprep.subr.bf16.mxu1 %v4879_v13 }
 0x1f4   : > { %2658 = vmatprep.subr.msk.bf16.mxu0 %vm2255_vm8, %v2657_v43  ;;  %v2257_v36 = vsel %vm2255_vm8, %v2656_v56, 0 }
 0x1f5   : > { %v2074_v11 = vadd.f32 %v2073_v25, %v4376_v32 }
 0x1f6   : > { %2443 = vmatpush1.bf16.msra.mxu1 %v2712_v31 }
 0x1f7   : > { %v2075_v48 = vadd.f32 %v2074_v11, %v4380_v45  ;;  %2444 = vmatprep.subr.bf16.mxu1 %v4879_v13 }
 0x1f9   : > { %v2076_v18 = vadd.f32 %v2075_v48, %v4383_v16 }
 0x1fa   : > { %2445 = vmatpush1.bf16.msra.mxu1 %v2713_v17  ;;  %v2868_v17 = vld [vmem:[%s2968_s28 + $0x8] sm:$0xff]  }
 0x1fb   : > { %v2077_v4 = vrot.slane %v2076_v18, 4  ;;  %2446 = vmatprep.subr.bf16.mxu1 %v4879_v13 }
 0x1fd   : > { %v2078_v19 = vadd.f32 %v2077_v4, %v2076_v18 }
 0x1fe   : > { %2447 = vmatpush1.bf16.msra.mxu1 %v2714_v3  ;;  %v398_v3 = vunpack.c.l.bf16 %v2868_v17 }
 0x1ff   : > { %v2079_v2 = vrot.slane %v2078_v19, 2  ;;  %2448 = vmatprep.subr.bf16.mxu1 %v4879_v13 }
 0x201   : > { %v2080_v22 = vadd.f32 %v2079_v2, %v2078_v19 }
 0x202   : > { %2449 = vmatpush1.bf16.msra.mxu1 %v2715_v41 }
 0x203   : > { %v2081_v21 = vrot.slane %v2080_v22, 1  ;;  %2450 = vmatprep.subr.bf16.mxu1 %v4879_v13 }
 0x205   : > { %v2082_v50 = vadd.f32 %v2081_v21, %v2080_v22 }
 0x206   : > { %2451 = vmatpush1.bf16.msra.mxu1 %v2716_v34 }
 0x207   : > { %v2105_v28 = vmul.f32 0.015625, %v2082_v50  ;;  %2452 = vmatprep.subr.bf16.mxu1 %v4879_v13 }
 0x209   : > { %v2107_v47 = vpack.c.bf16 %v2105_v28, %v2105_v28 }
 0x20a   : > { %2453 = vmatpush1.bf16.msra.mxu1 %v2717_v29 }
 0x20b   : > { %2218 = vmatmul.mubr.bf16.vlgmr.msra.gmra.mrb[16].mxu0 %v2107_v47  ;;  %2454 = vmatprep.subr.bf16.mxu1 %v4879_v13 }
 0x20c   : > { %2294 = vmatprep.mubr.bf16.mxu0 %v4879_v13  ;;  %2263 = vmatpush1.bf16.msra.mxu0 %v2257_v36 }
 0x20e   : > { %2455 = vmatpush1.bf16.msra.mxu1 %v2718_v61  ;;  %v399_v61 = vunpack.c.h.bf16 %v2868_v17 }
 0x2de   : > { %v2219_v8 = vpop.f32.mrb[16].mxu0 }
 0x2df   : > { %v2220_v10 = vadd.f32 %v2219_v8, %v2127_v55  ;;  %v2221_v0 = vpop.f32.mrb[17].mxu0 }
 0x2e0   : > { %v2222_v7 = vpop.f32.mrb[18].mxu0 }
 0x2e1   : > { %v2655_v53 = vmul.f32 -1.442695, %v2220_v10  ;;  %v2223_v33 = vpop.f32.mrb[19].mxu0 }
 0x2e3   : > { %2851 = vpow2.f32 %v2655_v53 }
 0x2ed   : > { %v2852_v38 = vpop.eup %2851 }
 0x2ee   : > { %v2228_v1 = vadd.f32 1.0, %v2852_v38 }
 0x2f0   : > { %2853 = vrcp.f32 %v2228_v1 }
 0x2fa   : > { %v2854_v60 = vpop.eup %2853 }
 0x2fb   : > { %v2231_v14 = vmul.f32 %v2854_v60, %v2220_v10 }
 0x2fd   : > { %v2232_v57 = vpack.c.bf16 %v2231_v14, %v2231_v14 }
 0x2ff   : > { %2659 = vmatmul.mubr.msk.bf16.vlgmr.msra.gmra.mrb[20].mxu0 %vm2251_vm9, %v2232_v57 }
 0x3d2   : > { %v2296_v5 = vpop.f32.mrb[20].mxu0 }
 0x3d3   : > { %v2297_v49 = vadd.f32 %v2296_v5, %v2244_v12  ;;  %v2298_v51 = vpop.f32.mrb[21].mxu0 }
 0x3d4   : > { %v2299_v62 = vadd.f32 %v2298_v51, %v2248_v30  ;;  %v2300_v46 = vpop.f32.mrb[22].mxu0 }
 0x3d5   : > { %v2660_v25 = vmul.f32 -1.442695, %v2297_v49  ;;  %v2301_v11 = vpop.f32.mrb[23].mxu0 }
 0x3d6   : > { %v2661_v48 = vmul.f32 -1.442695, %v2299_v62  ;;  %v2869_v62 = vld [vmem:[%s2968_s28 + $0x10] sm:$0xff]  }
 0x3d7   : > { %2855 = vpow2.f32 %v2660_v25  ;;  %v400_v46 = vunpack.c.l.bf16 %v2869_v62 }
 0x3d8   : > { %2857 = vpow2.f32 %v2661_v48 }
 0x3e1   : > { %v2856_v18 = vpop.eup %2855 }
 0x3e2   : > { %v2858_v4 = vpop.eup %2857  ;;  %v2309_v19 = vadd.f32 1.0, %v2856_v18  ;;  %v401_v18 = vunpack.c.h.bf16 %v2869_v62 }
 0x3e3   : > { %v2310_v2 = vadd.f32 1.0, %v2858_v4 }
 0x3e4   : > { %2859 = vrcp.f32 %v2309_v19 }
 0x3e5   : > { %2861 = vrcp.f32 %v2310_v2 }
 0x3ee   : > { %v2860_v22 = vpop.eup %2859 }
 0x3ef   : > { %v2862_v21 = vpop.eup %2861  ;;  %v2318_v24 = vrot.slane %v2860_v22, %v4880_v23 }
 0x3f0   : > { %v2322_v50 = vrot.slane %v2862_v21, %v4880_v23 }
 0x3f1   : > { %v2323_v28 = vmul.f32 %v2318_v24, %v4362_v20  ;;  %v2325_v47 = vmul.f32 %v2318_v24, %v4364_v27  ;;  %v2327_v20 = vmul.f32 %v2318_v24, %v4366_v42  ;;  %v2329_v27 = vmul.f32 %v2318_v24, %v4368_v26 }
 0x3f2   : > { %v2324_v13 = vmul.f32 %v2322_v50, %v4246_v37  ;;  %v2326_v9 = vmul.f32 %v2322_v50, %v4256_v39  ;;  %v2328_v43 = vmul.f32 %v2322_v50, %v4274_v54  ;;  %v2330_v56 = vmul.f32 %v2322_v50, %v4279_v6 }
 0x3f3   : > { %v2339_v55 = vpack.c.bf16 %v2325_v47, %v2323_v28  ;;  %v2332_v37 = vmul.f32 %v2322_v50, %v4284_v40  ;;  %v2334_v39 = vmul.f32 %v2322_v50, %v4290_v59  ;;  %v2341_v10 = vpack.c.bf16 %v2329_v27, %v2327_v20  ;;  %v2870_v28 = vld [vmem:[%s2968_s28 + $0x18] sm:$0xff]  }
 0x3f4   : > { %v2340_v36 = vpack.c.bf16 %v2326_v9, %v2324_v13  ;;  %v2342_v8 = vpack.c.bf16 %v2330_v56, %v2328_v43  ;;  %v2331_v6 = vmul.f32 %v2318_v24, %v4372_v44  ;;  %v2333_v0 = vmul.f32 %v2318_v24, %v4376_v32  ;;  %v2662_v44 = vld [vmem:[%s4500_s10] ss:$0 sm:$0xff] }
 0x3f5   : > { %v2344_v54 = vpack.c.bf16 %v2334_v39, %v2332_v37  ;;  %v2336_v7 = vmul.f32 %v2322_v50, %v4296_v35  ;;  %v2338_v42 = vmul.f32 %v2322_v50, %v4301_v63  ;;  %v2335_v40 = vmul.f32 %v2318_v24, %v4380_v45  ;;  %v2867_v32 = vld [vmem:[%s2968_s28] sm:$0xff]  }
 0x3f6   : > { %2672 = vmatprep.mubr.msk.bf16.mxu1 %vm644_vm2, %v2340_v36  ;;  %v2343_v53 = vpack.c.bf16 %v2333_v0, %v2331_v6  ;;  %v2337_v59 = vmul.f32 %v2318_v24, %v4383_v16  ;;  %v396_v35 = vunpack.c.l.bf16 %v2867_v32  ;;  %v397_v60 = vunpack.c.h.bf16 %v2867_v32 }
 0x3f7   : > { %2471 = vmatmul.mubr.bf16.vlgmr.msra.gmra.mrb[0].mxu1 %v2339_v55  ;;  %v2346_v26 = vpack.c.bf16 %v2338_v42, %v2336_v7  ;;  %v402_v47 = vunpack.c.l.bf16 %v2870_v28  ;;  %v403_v56 = vunpack.c.h.bf16 %v2870_v28 }
 0x3f8   : > { %2673 = vmatprep.mubr.msk.bf16.mxu1 %vm644_vm2, %v2342_v8  ;;  %v2345_v33 = vpack.c.bf16 %v2337_v59, %v2335_v40 }
 0x3ff   : > { %2479 = vmatmul.mubr.bf16.gmra.mrb[4].mxu1 %v2341_v10 }
 0x400   : > { %2674 = vmatprep.mubr.msk.bf16.mxu1 %vm644_vm2, %v2344_v54 }
 0x407   : > { %2487 = vmatmul.mubr.bf16.gmra.mrb[8].mxu1 %v2343_v53 }
 0x408   : > { %2675 = vmatprep.mubr.msk.bf16.mxu1 %vm644_vm2, %v2346_v26 }
 0x40f   : > { %2495 = vmatmul.mubr.bf16.gmra.mrb[12].mxu1 %v2345_v33 }
 0x4ca   : > { %v2472_v63 = vpop.f32.mrb[0].mxu1 }
 0x4cb   : > { %v2473_v38 = vadd.f32 %v2662_v44, %v2472_v63  ;;  %v2474_v1 = vpop.f32.mrb[1].mxu1 }
 0x4cc   : > { %v2475_v14 = vpop.f32.mrb[2].mxu1 }
 0x4cd   : > { %v2503_v57 = vadd.f32 %v2473_v38, %v396_v35  ;;  %v2476_v58 = vadd.f32 %v2662_v44, %v2475_v14  ;;  %v2477_v15 = vpop.f32.mrb[3].mxu1 }
 0x4cf   : > { %v2511_v45 = vpack.c.bf16 %v2503_v57, %v2503_v57  ;;  %v2504_v16 = vadd.f32 %v2476_v58, %v397_v60 }
 0x4d1   : > { %2520 = vst.msk [vmem:[%s4466_s22] sm:$0xf] %vm2519_vm10, %v2511_v45  ;;  %v2512_v31 = vpack.c.bf16 %v2504_v16, %v2504_v16 }
 0x4d2   : > { %v2480_v41 = vpop.f32.mrb[4].mxu1 }
 0x4d3   : > { %2521 = vst.msk [vmem:[%s4466_s22 + $0x4] sm:$0xf] %vm2519_vm10, %v2512_v31  ;;  %v2481_v34 = vadd.f32 %v2662_v44, %v2480_v41  ;;  %v2482_v29 = vpop.f32.mrb[5].mxu1 }
 0x4d4   : > { %v2483_v52 = vpop.f32.mrb[6].mxu1 }
 0x4d5   : > { %v2505_v23 = vadd.f32 %v2481_v34, %v398_v3  ;;  %v2484_v12 = vadd.f32 %v2662_v44, %v2483_v52  ;;  %v2485_v30 = vpop.f32.mrb[7].mxu1 }
 0x4d7   : > { %v2513_v5 = vpack.c.bf16 %v2505_v23, %v2505_v23  ;;  %v2506_v49 = vadd.f32 %v2484_v12, %v399_v61 }
 0x4d9   : > { %2522 = vst.msk [vmem:[%s4466_s22 + $0x8] sm:$0xf] %vm2519_vm10, %v2513_v5  ;;  %v2514_v51 = vpack.c.bf16 %v2506_v49, %v2506_v49 }
 0x4da   : > { %v2488_v25 = vpop.f32.mrb[8].mxu1 }
 0x4db   : > { %2523 = vst.msk [vmem:[%s4466_s22 + $0xc] sm:$0xf] %vm2519_vm10, %v2514_v51  ;;  %v2489_v11 = vadd.f32 %v2662_v44, %v2488_v25  ;;  %v2490_v48 = vpop.f32.mrb[9].mxu1 }
 0x4dc   : > { %v2491_v4 = vpop.f32.mrb[10].mxu1 }
 0x4dd   : > { %v2507_v19 = vadd.f32 %v2489_v11, %v400_v46  ;;  %v2492_v2 = vadd.f32 %v2662_v44, %v2491_v4  ;;  %v2493_v22 = vpop.f32.mrb[11].mxu1 }
 0x4df   : > { %v2515_v21 = vpack.c.bf16 %v2507_v19, %v2507_v19  ;;  %v2508_v24 = vadd.f32 %v2492_v2, %v401_v18 }
 0x4e1   : > { %2524 = vst.msk [vmem:[%s4466_s22 + $0x10] sm:$0xf] %vm2519_vm10, %v2515_v21  ;;  %v2516_v50 = vpack.c.bf16 %v2508_v24, %v2508_v24 }
 0x4e2   : > { %v2496_v13 = vpop.f32.mrb[12].mxu1 }
 0x4e3   : > { %2525 = vst.msk [vmem:[%s4466_s22 + $0x14] sm:$0xf] %vm2519_vm10, %v2516_v50  ;;  %v2497_v9 = vadd.f32 %v2662_v44, %v2496_v13  ;;  %v2498_v43 = vpop.f32.mrb[13].mxu1 }
 0x4e4   : > { %v2499_v36 = vpop.f32.mrb[14].mxu1 }
 0x4e5   : > { %v2509_v55 = vadd.f32 %v2497_v9, %v402_v47  ;;  %v2500_v8 = vadd.f32 %v2662_v44, %v2499_v36  ;;  %v2501_v20 = vpop.f32.mrb[15].mxu1 }
 0x4e7   : > { %v2517_v27 = vpack.c.bf16 %v2509_v55, %v2509_v55  ;;  %v2510_v37 = vadd.f32 %v2500_v8, %v403_v56 }
 0x4e9   : > { %2526 = vst.msk [vmem:[%s4466_s22 + $0x18] sm:$0xf] %vm2519_vm10, %v2517_v27  ;;  %v2518_v39 = vpack.c.bf16 %v2510_v37, %v2510_v37 }
 0x4eb   : > { %2527 = vst.msk [vmem:[%s4466_s22 + $0x1c] sm:$0xf] %vm2519_vm10, %v2518_v39 }
 0x4ec PF: > { %s21_s17 = sadd.s32 1, %s2877_s17  }
 0x4ed   : > { %p18_p4 = scmp.ge.s32.totalorder %s21_s17, 4  }
 0x4ef   :  { %20 = sbr.rel (!%p18_p4) target bundleno = 1 (0x1), region = 103 }

</bundles_post_ra>
